<compile_context>
chip_gen: v6e
topology: v6e:2x2x1
jax: 0.10.0
libtpu: 0.0.40
codegen_flags: <defaults>
</compile_context>

<pallas_src>
import functools
import math

import jax
import jax.numpy as jnp
from jax.experimental import pallas as pl
from jax.experimental.pallas import tpu as pltpu


# ------------------------------ helpers ------------------------------------ #

def _pick_tile(n, target):
    """Largest 128-multiple tile <= target that divides n (or n itself if small)."""
    if n <= target:
        return n
    t = (target // 128) * 128
    while t > 0 and n % t != 0:
        t -= 128
    return t if t > 0 else n


# ----------------------------- Pallas kernels ------------------------------ #

def _matmul_residual_kernel(x_ref, w_ref, r_ref, o_ref, acc_ref):
    # o = x @ w + r.  x: [tm, tk] bf16, w: [tk, tn] bf16 ([in, out] layout),
    # r: [tm, tn] residual (same block across k -> fetched once per (i, j)).
    @pl.when(pl.program_id(2) == 0)
    def _():
        acc_ref[...] = jnp.zeros(acc_ref.shape, dtype=acc_ref.dtype)

    acc_ref[...] += jnp.dot(x_ref[...], w_ref[...],
                            preferred_element_type=jnp.float32)

    @pl.when(pl.program_id(2) == pl.num_programs(2) - 1)
    def _():
        o_ref[...] = (acc_ref[...] +
                      r_ref[...].astype(jnp.float32)).astype(o_ref.dtype)


def _rmsnorm_matmul_kernel(x_ref, g_ref, w_ref, o_ref, xn_ref, *, eps):
    # Fused RMSNorm(x) @ w.  x: [tm, K] (full K), g: [1, K], w: [K, tn].
    @pl.when(pl.program_id(1) == 0)
    def _():
        x = x_ref[...].astype(jnp.float32)
        ms = jnp.mean(x * x, axis=-1, keepdims=True)
        xn = x * jax.lax.rsqrt(ms + eps) * g_ref[...].astype(jnp.float32)
        xn_ref[...] = xn.astype(xn_ref.dtype)

    o_ref[...] = jnp.dot(xn_ref[...], w_ref[...],
                         preferred_element_type=jnp.float32).astype(o_ref.dtype)


def _ffn_kernel(x_ref, g_ref, w1_ref, w3_ref, w2_ref, o_ref, acc_ref, xn_ref, *, eps):
    # Fused RMSNorm + SwiGLU FFN + residual, tiled over the hidden dim (axis 1).
    # o = x + w2( SiLU(w1 @ norm(x)) * (w3 @ norm(x)) )
    j = pl.program_id(1)

    @pl.when(j == 0)
    def _():
        x = x_ref[...].astype(jnp.float32)
        ms = jnp.mean(x * x, axis=-1, keepdims=True)
        xn = x * jax.lax.rsqrt(ms + eps) * g_ref[...].astype(jnp.float32)
        xn_ref[...] = xn.astype(xn_ref.dtype)
        acc_ref[...] = jnp.zeros(acc_ref.shape, dtype=acc_ref.dtype)

    xn = xn_ref[...]
    h1 = jnp.dot(xn, w1_ref[...], preferred_element_type=jnp.float32)
    h3 = jnp.dot(xn, w3_ref[...], preferred_element_type=jnp.float32)
    h = (h1 * jax.nn.sigmoid(h1)) * h3                      # SiLU(w1 x) * (w3 x)
    acc_ref[...] += jnp.dot(h.astype(w2_ref.dtype), w2_ref[...],
                            preferred_element_type=jnp.float32)

    @pl.when(j == pl.num_programs(1) - 1)
    def _():
        o_ref[...] = (acc_ref[...] +
                      x_ref[...].astype(jnp.float32)).astype(o_ref.dtype)


def _flash_attn_kernel(q_ref, k_ref, v_ref, o_ref, m_sc, l_sc, acc_sc,
                       *, scale, blk_q, blk_k):
    # Flash attention with causal mask generated in-kernel.
    qi = pl.program_id(2)
    ki = pl.program_id(3)

    @pl.when(ki == 0)
    def _():
        m_sc[...] = jnp.full(m_sc.shape, -1e30, dtype=m_sc.dtype)
        l_sc[...] = jnp.zeros(l_sc.shape, dtype=l_sc.dtype)
        acc_sc[...] = jnp.zeros(acc_sc.shape, dtype=acc_sc.dtype)

    # Skip kv tiles entirely above the causal diagonal band.
    @pl.when(ki * blk_k <= qi * blk_q + (blk_q - 1))
    def _():
        # q: [blk_q, Dh], k/v: [blk_k, Dh]; contract Dh without transposing k.
        s = jax.lax.dot_general(
            q_ref[...], k_ref[...], (((1,), (1,)), ((), ())),
            preferred_element_type=jnp.float32) * scale
        row = qi * blk_q + jax.lax.broadcasted_iota(jnp.int32, (blk_q, blk_k), 0)
        col = ki * blk_k + jax.lax.broadcasted_iota(jnp.int32, (blk_q, blk_k), 1)
        s = jnp.where(col <= row, s, -1e30)

        m_prev = m_sc[...]
        m_new = jnp.maximum(m_prev, jnp.max(s, axis=-1, keepdims=True))
        alpha = jnp.exp(m_prev - m_new)
        p = jnp.exp(s - m_new)
        l_sc[...] = alpha * l_sc[...] + jnp.sum(p, axis=-1, keepdims=True)
        acc_sc[...] = alpha * acc_sc[...] + jnp.dot(
            p.astype(v_ref.dtype), v_ref[...], preferred_element_type=jnp.float32)
        m_sc[...] = m_new

    @pl.when(ki == pl.num_programs(3) - 1)
    def _():
        o_ref[...] = (acc_sc[...] *
                      pl.reciprocal(l_sc[...], approx=True)).astype(o_ref.dtype)


# ------------------------------ Wrappers ----------------------------------- #

def pallas_matmul_residual(x, wt, res, *, out_dtype=None, tm=256, tn=256, tk=512):
    # x: [M, K], wt: [K, N] ([in, out] layout), res: [M, N].  o = x @ wt + res.
    M, K = x.shape
    _, N = wt.shape
    tm, tn, tk = _pick_tile(M, tm), _pick_tile(N, tn), _pick_tile(K, tk)
    out_dtype = out_dtype or res.dtype
    return pl.pallas_call(
        _matmul_residual_kernel,
        grid=(M // tm, N // tn, K // tk),
        in_specs=[pl.BlockSpec((tm, tk), lambda i, j, k: (i, k)),
                  pl.BlockSpec((tk, tn), lambda i, j, k: (k, j)),
                  pl.BlockSpec((tm, tn), lambda i, j, k: (i, j))],
        out_specs=pl.BlockSpec((tm, tn), lambda i, j, k: (i, j)),
        out_shape=jax.ShapeDtypeStruct((M, N), out_dtype),
        scratch_shapes=[pltpu.VMEM((tm, tn), jnp.float32)],
        compiler_params=pltpu.CompilerParams(
            dimension_semantics=("parallel", "parallel", "arbitrary")),
    )(x, wt, res)


def pallas_rmsnorm_matmul(x, gamma, wt, eps, *, out_dtype=None, tm=256, tn=512):
    # Fused RMSNorm(x; gamma) @ wt.  x: [M, K], gamma: [K], wt: [K, N].
    M, K = x.shape
    _, N = wt.shape
    tm, tn = _pick_tile(M, tm), _pick_tile(N, tn)
    out_dtype = out_dtype or x.dtype
    return pl.pallas_call(
        functools.partial(_rmsnorm_matmul_kernel, eps=eps),
        grid=(M // tm, N // tn),
        in_specs=[pl.BlockSpec((tm, K), lambda i, j: (i, 0)),
                  pl.BlockSpec((1, K), lambda i, j: (0, 0)),
                  pl.BlockSpec((K, tn), lambda i, j: (0, j))],
        out_specs=pl.BlockSpec((tm, tn), lambda i, j: (i, j)),
        out_shape=jax.ShapeDtypeStruct((M, N), out_dtype),
        scratch_shapes=[pltpu.VMEM((tm, K), jnp.bfloat16)],
        compiler_params=pltpu.CompilerParams(
            dimension_semantics=("parallel", "arbitrary")),
    )(x, gamma.reshape(1, K), wt)


def pallas_ffn(x, gamma, w1t, w3t, w2t, eps, *, out_dtype=None, tm=256, th=512):
    # x: [M, D]; w1t, w3t: [D, H]; w2t: [H, D].  Hidden dim tiled as reduction.
    # Returns x + FFN(RMSNorm(x)) (residual fused into the finalize).
    M, D = x.shape
    H = w1t.shape[1]
    tm, th = _pick_tile(M, tm), _pick_tile(H, th)
    out_dtype = out_dtype or x.dtype
    return pl.pallas_call(
        functools.partial(_ffn_kernel, eps=eps),
        grid=(M // tm, H // th),
        in_specs=[pl.BlockSpec((tm, D), lambda i, j: (i, 0)),
                  pl.BlockSpec((1, D), lambda i, j: (0, 0)),
                  pl.BlockSpec((D, th), lambda i, j: (0, j)),
                  pl.BlockSpec((D, th), lambda i, j: (0, j)),
                  pl.BlockSpec((th, D), lambda i, j: (j, 0))],
        out_specs=pl.BlockSpec((tm, D), lambda i, j: (i, 0)),
        out_shape=jax.ShapeDtypeStruct((M, D), out_dtype),
        scratch_shapes=[pltpu.VMEM((tm, D), jnp.float32),
                        pltpu.VMEM((tm, D), jnp.bfloat16)],
        compiler_params=pltpu.CompilerParams(
            dimension_semantics=("parallel", "arbitrary")),
    )(x, gamma.reshape(1, D), w1t, w3t, w2t)


def pallas_flash_attention(q, k, v, n_heads, head_dim, *, blk_q=128, blk_k=128):
    # q, k, v: [B, S, n_heads*head_dim]; heads selected via BlockSpec index_map.
    B, S, D = q.shape
    blk_q = min(blk_q, S)
    blk_k = min(blk_k, S)
    assert S % blk_q == 0 and S % blk_k == 0
    scale = 1.0 / math.sqrt(head_dim)
    kernel = functools.partial(_flash_attn_kernel, scale=scale,
                               blk_q=blk_q, blk_k=blk_k)
    return pl.pallas_call(
        kernel,
        grid=(B, n_heads, S // blk_q, S // blk_k),
        in_specs=[
            pl.BlockSpec((None, blk_q, head_dim), lambda b, h, qi, ki: (b, qi, h)),
            pl.BlockSpec((None, blk_k, head_dim), lambda b, h, qi, ki: (b, ki, h)),
            pl.BlockSpec((None, blk_k, head_dim), lambda b, h, qi, ki: (b, ki, h)),
        ],
        out_specs=pl.BlockSpec((None, blk_q, head_dim),
                               lambda b, h, qi, ki: (b, qi, h)),
        out_shape=jax.ShapeDtypeStruct((B, S, D), q.dtype),
        scratch_shapes=[pltpu.VMEM((blk_q, 1), jnp.float32),
                        pltpu.VMEM((blk_q, 1), jnp.float32),
                        pltpu.VMEM((blk_q, head_dim), jnp.float32)],
        compiler_params=pltpu.CompilerParams(
            dimension_semantics=("parallel", "parallel", "parallel", "arbitrary")),
    )(q, k, v)


# --------------------------- Model glue (JAX) ------------------------------ #

def precompute_freqs_cos_sin(dim, end, theta=10000.0):
    freqs = 1.0 / (theta ** (jnp.arange(0, dim, 2)[: dim // 2].astype(jnp.float32) / dim))
    t = jnp.arange(end, dtype=jnp.float32)
    freqs = jnp.outer(t, freqs)                     # [end, dim//2]
    return jnp.cos(freqs), jnp.sin(freqs)


def apply_rotary_emb(xq, xk, cos, sin):
    # xq, xk: [B, S, H, Dh]; cos, sin: [S, Dh//2]  (interleaved real/imag pairs)
    def rope(x):
        xf = x.astype(jnp.float32)
        xr = xf.reshape(*x.shape[:-1], -1, 2)
        xre, xim = xr[..., 0], xr[..., 1]
        c = cos[None, :, None, :]
        s = sin[None, :, None, :]
        out_re = xre * c - xim * s
        out_im = xre * s + xim * c
        return jnp.stack([out_re, out_im], axis=-1).reshape(x.shape)
    return rope(xq), rope(xk)


def transformer_forward(params, tokens, cfg):
    B, S = tokens.shape
    dim = cfg["dim"]
    n_heads = cfg["n_heads"]
    head_dim = dim // n_heads
    eps = cfg["norm_eps"]

    h = jnp.take(params["tok_embeddings"], tokens, axis=0)   # [B, S, dim] bf16

    cos = params["freqs_cos"][:S]
    sin = params["freqs_sin"][:S]

    for lp in params["layers"]:
        # ---- attention block: fused norm + QKV projection ----
        x2d = h.reshape(B * S, dim)
        qkv = pallas_rmsnorm_matmul(x2d, lp["attention_norm"], lp["wqkv"], eps)
        qkv = qkv.reshape(B, S, 3 * dim)
        xq = qkv[..., :dim]
        xk = qkv[..., dim:2 * dim]
        xv = qkv[..., 2 * dim:]
        xq, xk = apply_rotary_emb(xq.reshape(B, S, n_heads, head_dim),
                                  xk.reshape(B, S, n_heads, head_dim), cos, sin)
        xq = xq.reshape(B, S, dim).astype(h.dtype)
        xk = xk.reshape(B, S, dim).astype(h.dtype)

        attn = pallas_flash_attention(xq, xk, xv, n_heads, head_dim)  # [B, S, dim]
        # wo projection with the attention-block residual fused in.
        h = pallas_matmul_residual(attn.reshape(B * S, dim), lp["wo"],
                                   x2d).reshape(B, S, dim)

        # ---- feed-forward block: fused norm + SwiGLU + residual ----
        h2d = h.reshape(B * S, dim)
        h = pallas_ffn(h2d, lp["ffn_norm"], lp["w1"], lp["w3"], lp["w2"],
                       eps).reshape(B, S, dim)

    # final norm + output head (logits in f32)
    h2d = h.reshape(B * S, dim)
    logits = pallas_rmsnorm_matmul(h2d, params["norm"], params["output"], eps,
                                   out_dtype=jnp.float32)
    return logits.reshape(B, S, cfg["vocab_size"])


# --------------------------- Parameter init -------------------------------- #

def init_params(key, cfg):
    dim = cfg["dim"]
    vocab = cfg["vocab_size"]
    n_layers = cfg["n_layers"]
    # FFN hidden dim (same formula as PyTorch FeedForward)
    hidden = int(2 * dim / 3)
    mo = cfg["multiple_of"]
    hidden = mo * ((hidden + mo - 1) // mo)

    # Weights are stored as [in_features, out_features] (transposed vs nn.Linear)
    # and in bf16 for the MXU; norm gains stay f32.
    def nrm(k, shape):
        return (0.02 * jax.random.normal(k, shape, dtype=jnp.float32)).astype(jnp.bfloat16)

    keys = jax.random.split(key, 2 + 5 * n_layers)
    ki = iter(range(len(keys)))

    params = {
        "tok_embeddings": nrm(keys[next(ki)], (vocab, dim)),
        "output": nrm(keys[next(ki)], (dim, vocab)),
        "norm": jnp.ones((dim,), jnp.float32),
        "layers": [],
    }
    for _ in range(n_layers):
        layer = {
            "wqkv": nrm(keys[next(ki)], (dim, 3 * dim)),   # fused q|k|v projection
            "wo": nrm(keys[next(ki)], (dim, dim)),
            "w1": nrm(keys[next(ki)], (dim, hidden)),
            "w3": nrm(keys[next(ki)], (dim, hidden)),
            "w2": nrm(keys[next(ki)], (hidden, dim)),
            "attention_norm": jnp.ones((dim,), jnp.float32),
            "ffn_norm": jnp.ones((dim,), jnp.float32),
        }
        params["layers"].append(layer)

    head_dim = dim // cfg["n_heads"]
    cos, sin = precompute_freqs_cos_sin(head_dim, cfg["max_seq_len"] * 2,
                                        cfg["rope_theta"])
    params["freqs_cos"] = cos
    params["freqs_sin"] = sin
    return params


# -------------------------------- Main -------------------------------------- #

if __name__ == "__main__":
    # Small but tile-aligned config: head_dim=128 keeps the lane dim dense.
    cfg = dict(
        dim=256,
        n_layers=2,
        n_heads=2,
        vocab_size=512,
        multiple_of=128,
        norm_eps=1e-5,
        rope_theta=10000.0,
        max_seq_len=256,
    )

    key = jax.random.PRNGKey(0)
    pkey, tkey = jax.random.split(key)
    params = init_params(pkey, cfg)

    B, S = 2, 128
    tokens = jax.random.randint(tkey, (B, S), 0, cfg["vocab_size"], dtype=jnp.int32)

    fwd = jax.jit(lambda p, t: transformer_forward(p, t, cfg))
    logits = fwd(params, tokens)
    logits = jax.block_until_ready(logits)

    assert logits.shape == (B, S, cfg["vocab_size"])
    assert bool(jnp.all(jnp.isfinite(logits)))
    print("KERNEL_OK")
</pallas_src>

<mosaic_0001>
module attributes {stable_mosaic.version = 11 : i64} {
  func.func @_rmsnorm_matmul_kernel(%arg0: i32, %arg1: i32, %arg2: memref<256x256xbf16, #tpu.memory_space<vmem>>, %arg3: memref<1x256xf32, #tpu.memory_space<vmem>>, %arg4: memref<256x384xbf16, #tpu.memory_space<vmem>>, %arg5: memref<256x384xbf16, #tpu.memory_space<vmem>>, %arg6: memref<256x256xbf16, #tpu.memory_space<vmem>>) attributes {dimension_semantics = [#tpu.dimension_semantics<parallel>, #tpu.dimension_semantics<arbitrary>], iteration_bounds = array<i64: 1, 2>, scalar_prefetch = 0 : i64, scratch_operands = 1 : i64, tpu.core_type = #tpu.core_type<tc>, window_params = [{transform_indices = @transform_0, window_bounds = array<i64: 256, 256>}, {pipeline_mode = #tpu.pipeline_mode<synchronous>, transform_indices = @transform_1, window_bounds = array<i64: 1, 256>}, {transform_indices = @transform_2, window_bounds = array<i64: 256, 384>}, {transform_indices = @transform_3, window_bounds = array<i64: 256, 384>}]} {
    %c0_i32 = arith.constant 0 : i32
    %0 = arith.cmpi eq, %arg1, %c0_i32 : i32
    %1 = arith.extui %0 : i1 to i32
    %c0_i32_0 = arith.constant 0 : i32
    %2 = arith.cmpi ne, %1, %c0_i32_0 : i32
    scf.if %2 {
      %c0_6 = arith.constant 0 : index
      %c0_7 = arith.constant 0 : index
      %8 = vector.load %arg2[%c0_6, %c0_7] : memref<256x256xbf16, #tpu.memory_space<vmem>>, vector<256x256xbf16>
      %9 = arith.extf %8 : vector<256x256xbf16> to vector<256x256xf32>
      %10 = arith.mulf %9, %9 : vector<256x256xf32>
      %cst_8 = arith.constant dense<0.000000e+00> : vector<256xf32>
      %11 = vector.multi_reduction <add>, %10, %cst_8 [1] : vector<256x256xf32> to vector<256xf32>
      %12 = vector.shape_cast %11 : vector<256xf32> to vector<256x1xf32>
      %cst_9 = arith.constant 2.560000e+02 : f32
      %13 = vector.broadcast %cst_9 : f32 to vector<256x1xf32>
      %14 = arith.divf %12, %13 : vector<256x1xf32>
      %cst_10 = arith.constant 9.99999974E-6 : f32
      %15 = vector.broadcast %cst_10 : f32 to vector<256x1xf32>
      %16 = arith.addf %14, %15 : vector<256x1xf32>
      %17 = math.rsqrt %16 : vector<256x1xf32>
      %18 = vector.broadcast %17 : vector<256x1xf32> to vector<256x256xf32>
      %19 = arith.mulf %9, %18 : vector<256x256xf32>
      %c0_11 = arith.constant 0 : index
      %c0_12 = arith.constant 0 : index
      %20 = vector.load %arg3[%c0_11, %c0_12] : memref<1x256xf32, #tpu.memory_space<vmem>>, vector<1x256xf32>
      %21 = vector.broadcast %20 : vector<1x256xf32> to vector<256x256xf32>
      %22 = arith.mulf %19, %21 : vector<256x256xf32>
      %23 = arith.truncf %22 : vector<256x256xf32> to vector<256x256xbf16>
      %c0_13 = arith.constant 0 : index
      %c0_14 = arith.constant 0 : index
      %24 = vector.load %arg6[%c0_13, %c0_14] : memref<256x256xbf16, #tpu.memory_space<vmem>>, vector<256x256xbf16>
      tpu.vector_store %arg6[%c0_13, %c0_14], %23 {strides = array<i32>} : memref<256x256xbf16, #tpu.memory_space<vmem>>, vector<256x256xbf16>,
    } else {
    }
    %c0 = arith.constant 0 : index
    %c0_1 = arith.constant 0 : index
    %3 = vector.load %arg6[%c0, %c0_1] : memref<256x256xbf16, #tpu.memory_space<vmem>>, vector<256x256xbf16>
    %c0_2 = arith.constant 0 : index
    %c0_3 = arith.constant 0 : index
    %4 = vector.load %arg4[%c0_2, %c0_3] : memref<256x384xbf16, #tpu.memory_space<vmem>>, vector<256x384xbf16>
    %cst = arith.constant dense<0.000000e+00> : vector<256x384xf32>
    %5 = tpu.matmul %3, %4, %cst {dimension_numbers = #tpu.dot_dimension_numbers<[1], [0], [0], [1], [0, 0, 1, 1], [], []>} : vector<256x256xbf16>, vector<256x384xbf16>, vector<256x384xf32> -> vector<256x384xf32>
    %6 = arith.truncf %5 : vector<256x384xf32> to vector<256x384xbf16>
    %c0_4 = arith.constant 0 : index
    %c0_5 = arith.constant 0 : index
    %7 = vector.load %arg5[%c0_4, %c0_5] : memref<256x384xbf16, #tpu.memory_space<vmem>>, vector<256x384xbf16>
    tpu.vector_store %arg5[%c0_4, %c0_5], %6 {strides = array<i32>} : memref<256x384xbf16, #tpu.memory_space<vmem>>, vector<256x384xbf16>,
    return
  }
  func.func @transform_0(%arg0: i32, %arg1: i32) -> (i32, i32) {
    %c0_i32 = arith.constant 0 : i32
    %c0_i32_0 = arith.constant 0 : i32
    return %arg0, %c0_i32 : i32, i32
  }
  func.func @transform_1(%arg0: i32, %arg1: i32) -> (i32, i32) {
    %c0_i32 = arith.constant 0 : i32
    %c0_i32_0 = arith.constant 0 : i32
    %c0_i32_1 = arith.constant 0 : i32
    return %c0_i32, %c0_i32_0 : i32, i32
  }
  func.func @transform_2(%arg0: i32, %arg1: i32) -> (i32, i32) {
    %c0_i32 = arith.constant 0 : i32
    %c0_i32_0 = arith.constant 0 : i32
    return %c0_i32, %arg1 : i32, i32
  }
  func.func @transform_3(%arg0: i32, %arg1: i32) -> (i32, i32) {
    %c0_i32 = arith.constant 0 : i32
    return %arg0, %arg1 : i32, i32
  }
}

module attributes {stable_mosaic.version = 11 : i64} {
  func.func @_flash_attn_kernel(%arg0: i32, %arg1: i32, %arg2: i32, %arg3: i32, %arg4: memref<1x128x128xbf16, #tpu.memory_space<vmem>>, %arg5: memref<1x128x128xbf16, #tpu.memory_space<vmem>>, %arg6: memref<1x128x128xbf16, #tpu.memory_space<vmem>>, %arg7: memref<1x128x128xbf16, #tpu.memory_space<vmem>>, %arg8: memref<128x1xf32, #tpu.memory_space<vmem>>, %arg9: memref<128x1xf32, #tpu.memory_space<vmem>>, %arg10: memref<128x128xf32, #tpu.memory_space<vmem>>) attributes {dimension_semantics = [#tpu.dimension_semantics<parallel>, #tpu.dimension_semantics<parallel>, #tpu.dimension_semantics<parallel>, #tpu.dimension_semantics<arbitrary>], iteration_bounds = array<i64: 2, 2, 1, 1>, scalar_prefetch = 0 : i64, scratch_operands = 3 : i64, tpu.core_type = #tpu.core_type<tc>, window_params = [{transform_indices = @transform_0, window_bounds = array<i64: 1, 128, 128>}, {transform_indices = @transform_1, window_bounds = array<i64: 1, 128, 128>}, {transform_indices = @transform_2, window_bounds = array<i64: 1, 128, 128>}, {transform_indices = @transform_3, window_bounds = array<i64: 1, 128, 128>}]} {
    %c0_i32 = arith.constant 0 : i32
    %0 = arith.cmpi eq, %arg3, %c0_i32 : i32
    %1 = arith.extui %0 : i1 to i32
    %c0_i32_0 = arith.constant 0 : i32
    %2 = arith.cmpi ne, %1, %c0_i32_0 : i32
    scf.if %2 {
      %cst = arith.constant -1.000000e+30 : f32
      %12 = vector.broadcast %cst : f32 to vector<128x1xf32>
      %c0 = arith.constant 0 : index
      %c0_5 = arith.constant 0 : index
      %13 = vector.load %arg8[%c0, %c0_5] : memref<128x1xf32, #tpu.memory_space<vmem>>, vector<128x1xf32>
      tpu.vector_store %arg8[%c0, %c0_5], %12 {strides = array<i32>} : memref<128x1xf32, #tpu.memory_space<vmem>>, vector<128x1xf32>,
      %cst_6 = arith.constant 0.000000e+00 : f32
      %14 = vector.broadcast %cst_6 : f32 to vector<128x1xf32>
      %c0_7 = arith.constant 0 : index
      %c0_8 = arith.constant 0 : index
      %15 = vector.load %arg9[%c0_7, %c0_8] : memref<128x1xf32, #tpu.memory_space<vmem>>, vector<128x1xf32>
      tpu.vector_store %arg9[%c0_7, %c0_8], %14 {strides = array<i32>} : memref<128x1xf32, #tpu.memory_space<vmem>>, vector<128x1xf32>,
      %cst_9 = arith.constant 0.000000e+00 : f32
      %16 = vector.broadcast %cst_9 : f32 to vector<128x128xf32>
      %c0_10 = arith.constant 0 : index
      %c0_11 = arith.constant 0 : index
      %17 = vector.load %arg10[%c0_10, %c0_11] : memref<128x128xf32, #tpu.memory_space<vmem>>, vector<128x128xf32>
      tpu.vector_store %arg10[%c0_10, %c0_11], %16 {strides = array<i32>} : memref<128x128xf32, #tpu.memory_space<vmem>>, vector<128x128xf32>,
    } else {
    }
    %c128_i32 = arith.constant 128 : i32
    %3 = arith.muli %arg3, %c128_i32 : i32
    %c128_i32_1 = arith.constant 128 : i32
    %4 = arith.muli %arg2, %c128_i32_1 : i32
    %c127_i32 = arith.constant 127 : i32
    %5 = arith.addi %4, %c127_i32 : i32
    %6 = arith.cmpi sle, %3, %5 : i32
    %7 = arith.extui %6 : i1 to i32
    %c0_i32_2 = arith.constant 0 : i32
    %8 = arith.cmpi ne, %7, %c0_i32_2 : i32
    scf.if %8 {
      %c0 = arith.constant 0 : index
      %c0_5 = arith.constant 0 : index
      %c0_6 = arith.constant 0 : index
      %12 = vector.load %arg4[%c0, %c0_5, %c0_6] : memref<1x128x128xbf16, #tpu.memory_space<vmem>>, vector<1x128x128xbf16>
      %13 = vector.shape_cast %12 : vector<1x128x128xbf16> to vector<128x128xbf16>
      %c0_7 = arith.constant 0 : index
      %c0_8 = arith.constant 0 : index
      %c0_9 = arith.constant 0 : index
      %14 = vector.load %arg5[%c0_7, %c0_8, %c0_9] : memref<1x128x128xbf16, #tpu.memory_space<vmem>>, vector<1x128x128xbf16>
      %15 = vector.shape_cast %14 : vector<1x128x128xbf16> to vector<128x128xbf16>
      %cst = arith.constant dense<0.000000e+00> : vector<128x128xf32>
      %16 = tpu.matmul %13, %15, %cst {dimension_numbers = #tpu.dot_dimension_numbers<[1], [1], [0], [0], [0, 0, 1, 0], [], []>} : vector<128x128xbf16>, vector<128x128xbf16>, vector<128x128xf32> -> vector<128x128xf32>
      %cst_10 = arith.constant 0.0883883461 : f32
      %17 = vector.broadcast %cst_10 : f32 to vector<128x128xf32>
      %18 = arith.mulf %16, %17 : vector<128x128xf32>
      %c128_i32_11 = arith.constant 128 : i32
      %19 = arith.muli %arg2, %c128_i32_11 : i32
      %20 = tpu.iota {dimensions = array<i32: 0>} : vector<128x128xi32>
      %21 = vector.broadcast %19 : i32 to vector<128x128xi32>
      %22 = arith.addi %21, %20 : vector<128x128xi32>
      %c128_i32_12 = arith.constant 128 : i32
      %23 = arith.muli %arg3, %c128_i32_12 : i32
      %24 = tpu.iota {dimensions = array<i32: 1>} : vector<128x128xi32>
      %25 = vector.broadcast %23 : i32 to vector<128x128xi32>
      %26 = arith.addi %25, %24 : vector<128x128xi32>
      %27 = arith.cmpi sle, %26, %22 : vector<128x128xi32>
      %cst_13 = arith.constant -1.000000e+30 : f32
      %28 = vector.broadcast %cst_13 : f32 to vector<128x128xf32>
      %29 = arith.select %27, %18, %28 : vector<128x128xi1>, vector<128x128xf32>
      %c0_14 = arith.constant 0 : index
      %c0_15 = arith.constant 0 : index
      %30 = vector.load %arg8[%c0_14, %c0_15] : memref<128x1xf32, #tpu.memory_space<vmem>>, vector<128x1xf32>
      %cst_16 = arith.constant dense<0xFF800000> : vector<128xf32>
      %31 = vector.multi_reduction <maximumf>, %29, %cst_16 [1] : vector<128x128xf32> to vector<128xf32>
      %32 = vector.shape_cast %31 : vector<128xf32> to vector<128x1xf32>
      %33 = arith.maximumf %30, %32 : vector<128x1xf32>
      %34 = arith.subf %30, %33 : vector<128x1xf32>
      %35 = math.exp %34 : vector<128x1xf32>
      %36 = vector.broadcast %33 : vector<128x1xf32> to vector<128x128xf32>
      %37 = arith.subf %29, %36 : vector<128x128xf32>
      %38 = math.exp %37 : vector<128x128xf32>
      %c0_17 = arith.constant 0 : index
      %c0_18 = arith.constant 0 : index
      %39 = vector.load %arg9[%c0_17, %c0_18] : memref<128x1xf32, #tpu.memory_space<vmem>>, vector<128x1xf32>
      %40 = arith.mulf %35, %39 : vector<128x1xf32>
      %cst_19 = arith.constant dense<0.000000e+00> : vector<128xf32>
      %41 = vector.multi_reduction <add>, %38, %cst_19 [1] : vector<128x128xf32> to vector<128xf32>
      %42 = vector.shape_cast %41 : vector<128xf32> to vector<128x1xf32>
      %43 = arith.addf %40, %42 : vector<128x1xf32>
      %c0_20 = arith.constant 0 : index
      %c0_21 = arith.constant 0 : index
      %44 = vector.load %arg9[%c0_20, %c0_21] : memref<128x1xf32, #tpu.memory_space<vmem>>, vector<128x1xf32>
      tpu.vector_store %arg9[%c0_20, %c0_21], %43 {strides = array<i32>} : memref<128x1xf32, #tpu.memory_space<vmem>>, vector<128x1xf32>,
      %c0_22 = arith.constant 0 : index
      %c0_23 = arith.constant 0 : index
      %45 = vector.load %arg10[%c0_22, %c0_23] : memref<128x128xf32, #tpu.memory_space<vmem>>, vector<128x128xf32>
      %46 = vector.broadcast %35 : vector<128x1xf32> to vector<128x128xf32>
      %47 = arith.mulf %46, %45 : vector<128x128xf32>
      %48 = arith.truncf %38 : vector<128x128xf32> to vector<128x128xbf16>
      %c0_24 = arith.constant 0 : index
      %c0_25 = arith.constant 0 : index
      %c0_26 = arith.constant 0 : index
      %49 = vector.load %arg6[%c0_24, %c0_25, %c0_26] : memref<1x128x128xbf16, #tpu.memory_space<vmem>>, vector<1x128x128xbf16>
      %50 = vector.shape_cast %49 : vector<1x128x128xbf16> to vector<128x128xbf16>
      %cst_27 = arith.constant dense<0.000000e+00> : vector<128x128xf32>
      %51 = tpu.matmul %48, %50, %cst_27 {dimension_numbers = #tpu.dot_dimension_numbers<[1], [0], [0], [1], [0, 0, 1, 1], [], []>} : vector<128x128xbf16>, vector<128x128xbf16>, vector<128x128xf32> -> vector<128x128xf32>
      %52 = arith.addf %47, %51 : vector<128x128xf32>
      %c0_28 = arith.constant 0 : index
      %c0_29 = arith.constant 0 : index
      %53 = vector.load %arg10[%c0_28, %c0_29] : memref<128x128xf32, #tpu.memory_space<vmem>>, vector<128x128xf32>
      tpu.vector_store %arg10[%c0_28, %c0_29], %52 {strides = array<i32>} : memref<128x128xf32, #tpu.memory_space<vmem>>, vector<128x128xf32>,
      %c0_30 = arith.constant 0 : index
      %c0_31 = arith.constant 0 : index
      %54 = vector.load %arg8[%c0_30, %c0_31] : memref<128x1xf32, #tpu.memory_space<vmem>>, vector<128x1xf32>
      tpu.vector_store %arg8[%c0_30, %c0_31], %33 {strides = array<i32>} : memref<128x1xf32, #tpu.memory_space<vmem>>, vector<128x1xf32>,
    } else {
    }
    %c0_i32_3 = arith.constant 0 : i32
    %9 = arith.cmpi eq, %arg3, %c0_i32_3 : i32
    %10 = arith.extui %9 : i1 to i32
    %c0_i32_4 = arith.constant 0 : i32
    %11 = arith.cmpi ne, %10, %c0_i32_4 : i32
    scf.if %11 {
      %c0 = arith.constant 0 : index
      %c0_5 = arith.constant 0 : index
      %12 = vector.load %arg10[%c0, %c0_5] : memref<128x128xf32, #tpu.memory_space<vmem>>, vector<128x128xf32>
      %c0_6 = arith.constant 0 : index
      %c0_7 = arith.constant 0 : index
      %13 = vector.load %arg9[%c0_6, %c0_7] : memref<128x1xf32, #tpu.memory_space<vmem>>, vector<128x1xf32>
      %14 = tpu.reciprocal %13 {approx = true} : vector<128x1xf32> -> vector<128x1xf32>
      %15 = vector.broadcast %14 : vector<128x1xf32> to vector<128x128xf32>
      %16 = arith.mulf %12, %15 : vector<128x128xf32>
      %17 = arith.truncf %16 : vector<128x128xf32> to vector<128x128xbf16>
      %c0_8 = arith.constant 0 : index
      %c0_9 = arith.constant 0 : index
      %c0_10 = arith.constant 0 : index
      %18 = vector.load %arg7[%c0_8, %c0_9, %c0_10] : memref<1x128x128xbf16, #tpu.memory_space<vmem>>, vector<1x128x128xbf16>
      %19 = vector.shape_cast %18 : vector<1x128x128xbf16> to vector<128x128xbf16>
      %20 = vector.shape_cast %17 : vector<128x128xbf16> to vector<1x128x128xbf16>
      tpu.vector_store %arg7[%c0_8, %c0_9, %c0_10], %20 {strides = array<i32>} : memref<1x128x128xbf16, #tpu.memory_space<vmem>>, vector<1x128x128xbf16>,
    } else {
    }
    return
  }
  func.func @transform_0(%arg0: i32, %arg1: i32, %arg2: i32, %arg3: i32) -> (i32, i32, i32) {
    %c0_i32 = arith.constant 0 : i32
    return %arg0, %arg2, %arg1 : i32, i32, i32
  }
  func.func @transform_1(%arg0: i32, %arg1: i32, %arg2: i32, %arg3: i32) -> (i32, i32, i32) {
    %c0_i32 = arith.constant 0 : i32
    return %arg0, %arg3, %arg1 : i32, i32, i32
  }
  func.func @transform_2(%arg0: i32, %arg1: i32, %arg2: i32, %arg3: i32) -> (i32, i32, i32) {
    %c0_i32 = arith.constant 0 : i32
    return %arg0, %arg3, %arg1 : i32, i32, i32
  }
  func.func @transform_3(%arg0: i32, %arg1: i32, %arg2: i32, %arg3: i32) -> (i32, i32, i32) {
    %c0_i32 = arith.constant 0 : i32
    return %arg0, %arg2, %arg1 : i32, i32, i32
  }
}

module attributes {stable_mosaic.version = 11 : i64} {
  func.func @_matmul_residual_kernel(%arg0: i32, %arg1: i32, %arg2: i32, %arg3: memref<256x256xbf16, #tpu.memory_space<vmem>>, %arg4: memref<256x256xbf16, #tpu.memory_space<vmem>>, %arg5: memref<256x256xbf16, #tpu.memory_space<vmem>>, %arg6: memref<256x256xbf16, #tpu.memory_space<vmem>>, %arg7: memref<256x256xf32, #tpu.memory_space<vmem>>) attributes {dimension_semantics = [#tpu.dimension_semantics<parallel>, #tpu.dimension_semantics<parallel>, #tpu.dimension_semantics<arbitrary>], iteration_bounds = array<i64: 1, 1, 1>, scalar_prefetch = 0 : i64, scratch_operands = 1 : i64, tpu.core_type = #tpu.core_type<tc>, window_params = [{transform_indices = @transform_0, window_bounds = array<i64: 256, 256>}, {transform_indices = @transform_1, window_bounds = array<i64: 256, 256>}, {transform_indices = @transform_2, window_bounds = array<i64: 256, 256>}, {transform_indices = @transform_3, window_bounds = array<i64: 256, 256>}]} {
    %c0_i32 = arith.constant 0 : i32
    %0 = arith.cmpi eq, %arg2, %c0_i32 : i32
    %1 = arith.extui %0 : i1 to i32
    %c0_i32_0 = arith.constant 0 : i32
    %2 = arith.cmpi ne, %1, %c0_i32_0 : i32
    scf.if %2 {
      %cst_10 = arith.constant 0.000000e+00 : f32
      %12 = vector.broadcast %cst_10 : f32 to vector<256x256xf32>
      %c0_11 = arith.constant 0 : index
      %c0_12 = arith.constant 0 : index
      %13 = vector.load %arg7[%c0_11, %c0_12] : memref<256x256xf32, #tpu.memory_space<vmem>>, vector<256x256xf32>
      tpu.vector_store %arg7[%c0_11, %c0_12], %12 {strides = array<i32>} : memref<256x256xf32, #tpu.memory_space<vmem>>, vector<256x256xf32>,
    } else {
    }
    %c0 = arith.constant 0 : index
    %c0_1 = arith.constant 0 : index
    %3 = vector.load %arg7[%c0, %c0_1] : memref<256x256xf32, #tpu.memory_space<vmem>>, vector<256x256xf32>
    %c0_2 = arith.constant 0 : index
    %c0_3 = arith.constant 0 : index
    %4 = vector.load %arg3[%c0_2, %c0_3] : memref<256x256xbf16, #tpu.memory_space<vmem>>, vector<256x256xbf16>
    %c0_4 = arith.constant 0 : index
    %c0_5 = arith.constant 0 : index
    %5 = vector.load %arg4[%c0_4, %c0_5] : memref<256x256xbf16, #tpu.memory_space<vmem>>, vector<256x256xbf16>
    %cst = arith.constant dense<0.000000e+00> : vector<256x256xf32>
    %6 = tpu.matmul %4, %5, %cst {dimension_numbers = #tpu.dot_dimension_numbers<[1], [0], [0], [1], [0, 0, 1, 1], [], []>} : vector<256x256xbf16>, vector<256x256xbf16>, vector<256x256xf32> -> vector<256x256xf32>
    %7 = arith.addf %3, %6 : vector<256x256xf32>
    %c0_6 = arith.constant 0 : index
    %c0_7 = arith.constant 0 : index
    %8 = vector.load %arg7[%c0_6, %c0_7] : memref<256x256xf32, #tpu.memory_space<vmem>>, vector<256x256xf32>
    tpu.vector_store %arg7[%c0_6, %c0_7], %7 {strides = array<i32>} : memref<256x256xf32, #tpu.memory_space<vmem>>, vector<256x256xf32>,
    %c0_i32_8 = arith.constant 0 : i32
    %9 = arith.cmpi eq, %arg2, %c0_i32_8 : i32
    %10 = arith.extui %9 : i1 to i32
    %c0_i32_9 = arith.constant 0 : i32
    %11 = arith.cmpi ne, %10, %c0_i32_9 : i32
    scf.if %11 {
      %c0_10 = arith.constant 0 : index
      %c0_11 = arith.constant 0 : index
      %12 = vector.load %arg7[%c0_10, %c0_11] : memref<256x256xf32, #tpu.memory_space<vmem>>, vector<256x256xf32>
      %c0_12 = arith.constant 0 : index
      %c0_13 = arith.constant 0 : index
      %13 = vector.load %arg5[%c0_12, %c0_13] : memref<256x256xbf16, #tpu.memory_space<vmem>>, vector<256x256xbf16>
      %14 = arith.extf %13 : vector<256x256xbf16> to vector<256x256xf32>
      %15 = arith.addf %12, %14 : vector<256x256xf32>
      %16 = arith.truncf %15 : vector<256x256xf32> to vector<256x256xbf16>
      %c0_14 = arith.constant 0 : index
      %c0_15 = arith.constant 0 : index
      %17 = vector.load %arg6[%c0_14, %c0_15] : memref<256x256xbf16, #tpu.memory_space<vmem>>, vector<256x256xbf16>
      tpu.vector_store %arg6[%c0_14, %c0_15], %16 {strides = array<i32>} : memref<256x256xbf16, #tpu.memory_space<vmem>>, vector<256x256xbf16>,
    } else {
    }
    return
  }
  func.func @transform_0(%arg0: i32, %arg1: i32, %arg2: i32) -> (i32, i32) {
    %c0_i32 = arith.constant 0 : i32
    return %arg0, %arg2 : i32, i32
  }
  func.func @transform_1(%arg0: i32, %arg1: i32, %arg2: i32) -> (i32, i32) {
    %c0_i32 = arith.constant 0 : i32
    return %arg2, %arg1 : i32, i32
  }
  func.func @transform_2(%arg0: i32, %arg1: i32, %arg2: i32) -> (i32, i32) {
    %c0_i32 = arith.constant 0 : i32
    return %arg0, %arg1 : i32, i32
  }
  func.func @transform_3(%arg0: i32, %arg1: i32, %arg2: i32) -> (i32, i32) {
    %c0_i32 = arith.constant 0 : i32
    return %arg0, %arg1 : i32, i32
  }
}

module attributes {stable_mosaic.version = 11 : i64} {
  func.func @_ffn_kernel(%arg0: i32, %arg1: i32, %arg2: memref<256x256xbf16, #tpu.memory_space<vmem>>, %arg3: memref<1x256xf32, #tpu.memory_space<vmem>>, %arg4: memref<256x256xbf16, #tpu.memory_space<vmem>>, %arg5: memref<256x256xbf16, #tpu.memory_space<vmem>>, %arg6: memref<256x256xbf16, #tpu.memory_space<vmem>>, %arg7: memref<256x256xbf16, #tpu.memory_space<vmem>>, %arg8: memref<256x256xf32, #tpu.memory_space<vmem>>, %arg9: memref<256x256xbf16, #tpu.memory_space<vmem>>) attributes {dimension_semantics = [#tpu.dimension_semantics<parallel>, #tpu.dimension_semantics<arbitrary>], iteration_bounds = array<i64: 1, 1>, scalar_prefetch = 0 : i64, scratch_operands = 2 : i64, tpu.core_type = #tpu.core_type<tc>, window_params = [{transform_indices = @transform_0, window_bounds = array<i64: 256, 256>}, {pipeline_mode = #tpu.pipeline_mode<synchronous>, transform_indices = @transform_1, window_bounds = array<i64: 1, 256>}, {transform_indices = @transform_2, window_bounds = array<i64: 256, 256>}, {transform_indices = @transform_3, window_bounds = array<i64: 256, 256>}, {transform_indices = @transform_4, window_bounds = array<i64: 256, 256>}, {transform_indices = @transform_5, window_bounds = array<i64: 256, 256>}]} {
    %c0_i32 = arith.constant 0 : i32
    %0 = arith.cmpi eq, %arg1, %c0_i32 : i32
    %1 = arith.extui %0 : i1 to i32
    %c0_i32_0 = arith.constant 0 : i32
    %2 = arith.cmpi ne, %1, %c0_i32_0 : i32
    scf.if %2 {
      %c0_17 = arith.constant 0 : index
      %c0_18 = arith.constant 0 : index
      %24 = vector.load %arg2[%c0_17, %c0_18] : memref<256x256xbf16, #tpu.memory_space<vmem>>, vector<256x256xbf16>
      %25 = arith.extf %24 : vector<256x256xbf16> to vector<256x256xf32>
      %26 = arith.mulf %25, %25 : vector<256x256xf32>
      %cst_19 = arith.constant dense<0.000000e+00> : vector<256xf32>
      %27 = vector.multi_reduction <add>, %26, %cst_19 [1] : vector<256x256xf32> to vector<256xf32>
      %28 = vector.shape_cast %27 : vector<256xf32> to vector<256x1xf32>
      %cst_20 = arith.constant 2.560000e+02 : f32
      %29 = vector.broadcast %cst_20 : f32 to vector<256x1xf32>
      %30 = arith.divf %28, %29 : vector<256x1xf32>
      %cst_21 = arith.constant 9.99999974E-6 : f32
      %31 = vector.broadcast %cst_21 : f32 to vector<256x1xf32>
      %32 = arith.addf %30, %31 : vector<256x1xf32>
      %33 = math.rsqrt %32 : vector<256x1xf32>
      %34 = vector.broadcast %33 : vector<256x1xf32> to vector<256x256xf32>
      %35 = arith.mulf %25, %34 : vector<256x256xf32>
      %c0_22 = arith.constant 0 : index
      %c0_23 = arith.constant 0 : index
      %36 = vector.load %arg3[%c0_22, %c0_23] : memref<1x256xf32, #tpu.memory_space<vmem>>, vector<1x256xf32>
      %37 = vector.broadcast %36 : vector<1x256xf32> to vector<256x256xf32>
      %38 = arith.mulf %35, %37 : vector<256x256xf32>
      %39 = arith.truncf %38 : vector<256x256xf32> to vector<256x256xbf16>
      %c0_24 = arith.constant 0 : index
      %c0_25 = arith.constant 0 : index
      %40 = vector.load %arg9[%c0_24, %c0_25] : memref<256x256xbf16, #tpu.memory_space<vmem>>, vector<256x256xbf16>
      tpu.vector_store %arg9[%c0_24, %c0_25], %39 {strides = array<i32>} : memref<256x256xbf16, #tpu.memory_space<vmem>>, vector<256x256xbf16>,
      %cst_26 = arith.constant 0.000000e+00 : f32
      %41 = vector.broadcast %cst_26 : f32 to vector<256x256xf32>
      %c0_27 = arith.constant 0 : index
      %c0_28 = arith.constant 0 : index
      %42 = vector.load %arg8[%c0_27, %c0_28] : memref<256x256xf32, #tpu.memory_space<vmem>>, vector<256x256xf32>
      tpu.vector_store %arg8[%c0_27, %c0_28], %41 {strides = array<i32>} : memref<256x256xf32, #tpu.memory_space<vmem>>, vector<256x256xf32>,
    } else {
    }
    %c0 = arith.constant 0 : index
    %c0_1 = arith.constant 0 : index
    %3 = vector.load %arg9[%c0, %c0_1] : memref<256x256xbf16, #tpu.memory_space<vmem>>, vector<256x256xbf16>
    %c0_2 = arith.constant 0 : index
    %c0_3 = arith.constant 0 : index
    %4 = vector.load %arg4[%c0_2, %c0_3] : memref<256x256xbf16, #tpu.memory_space<vmem>>, vector<256x256xbf16>
    %cst = arith.constant dense<0.000000e+00> : vector<256x256xf32>
    %5 = tpu.matmul %3, %4, %cst {dimension_numbers = #tpu.dot_dimension_numbers<[1], [0], [0], [1], [0, 0, 1, 1], [], []>} : vector<256x256xbf16>, vector<256x256xbf16>, vector<256x256xf32> -> vector<256x256xf32>
    %c0_4 = arith.constant 0 : index
    %c0_5 = arith.constant 0 : index
    %6 = vector.load %arg5[%c0_4, %c0_5] : memref<256x256xbf16, #tpu.memory_space<vmem>>, vector<256x256xbf16>
    %cst_6 = arith.constant dense<0.000000e+00> : vector<256x256xf32>
    %7 = tpu.matmul %3, %6, %cst_6 {dimension_numbers = #tpu.dot_dimension_numbers<[1], [0], [0], [1], [0, 0, 1, 1], [], []>} : vector<256x256xbf16>, vector<256x256xbf16>, vector<256x256xf32> -> vector<256x256xf32>
    %8 = arith.negf %5 : vector<256x256xf32>
    %9 = math.exp %8 : vector<256x256xf32>
    %cst_7 = arith.constant 1.000000e+00 : f32
    %10 = vector.broadcast %cst_7 : f32 to vector<256x256xf32>
    %11 = arith.addf %10, %9 : vector<256x256xf32>
    %12 = arith.divf %10, %11 : vector<256x256xf32>
    %13 = arith.mulf %5, %12 : vector<256x256xf32>
    %14 = arith.mulf %13, %7 : vector<256x256xf32>
    %c0_8 = arith.constant 0 : index
    %c0_9 = arith.constant 0 : index
    %15 = vector.load %arg8[%c0_8, %c0_9] : memref<256x256xf32, #tpu.memory_space<vmem>>, vector<256x256xf32>
    %16 = arith.truncf %14 : vector<256x256xf32> to vector<256x256xbf16>
    %c0_10 = arith.constant 0 : index
    %c0_11 = arith.constant 0 : index
    %17 = vector.load %arg6[%c0_10, %c0_11] : memref<256x256xbf16, #tpu.memory_space<vmem>>, vector<256x256xbf16>
    %cst_12 = arith.constant dense<0.000000e+00> : vector<256x256xf32>
    %18 = tpu.matmul %16, %17, %cst_12 {dimension_numbers = #tpu.dot_dimension_numbers<[1], [0], [0], [1], [0, 0, 1, 1], [], []>} : vector<256x256xbf16>, vector<256x256xbf16>, vector<256x256xf32> -> vector<256x256xf32>
    %19 = arith.addf %15, %18 : vector<256x256xf32>
    %c0_13 = arith.constant 0 : index
    %c0_14 = arith.constant 0 : index
    %20 = vector.load %arg8[%c0_13, %c0_14] : memref<256x256xf32, #tpu.memory_space<vmem>>, vector<256x256xf32>
    tpu.vector_store %arg8[%c0_13, %c0_14], %19 {strides = array<i32>} : memref<256x256xf32, #tpu.memory_space<vmem>>, vector<256x256xf32>,
    %c0_i32_15 = arith.constant 0 : i32
    %21 = arith.cmpi eq, %arg1, %c0_i32_15 : i32
    %22 = arith.extui %21 : i1 to i32
    %c0_i32_16 = arith.constant 0 : i32
    %23 = arith.cmpi ne, %22, %c0_i32_16 : i32
    scf.if %23 {
      %c0_17 = arith.constant 0 : index
      %c0_18 = arith.constant 0 : index
      %24 = vector.load %arg8[%c0_17, %c0_18] : memref<256x256xf32, #tpu.memory_space<vmem>>, vector<256x256xf32>
      %c0_19 = arith.constant 0 : index
      %c0_20 = arith.constant 0 : index
      %25 = vector.load %arg2[%c0_19, %c0_20] : memref<256x256xbf16, #tpu.memory_space<vmem>>, vector<256x256xbf16>
      %26 = arith.extf %25 : vector<256x256xbf16> to vector<256x256xf32>
      %27 = arith.addf %24, %26 : vector<256x256xf32>
      %28 = arith.truncf %27 : vector<256x256xf32> to vector<256x256xbf16>
      %c0_21 = arith.constant 0 : index
      %c0_22 = arith.constant 0 : index
      %29 = vector.load %arg7[%c0_21, %c0_22] : memref<256x256xbf16, #tpu.memory_space<vmem>>, vector<256x256xbf16>
      tpu.vector_store %arg7[%c0_21, %c0_22], %28 {strides = array<i32>} : memref<256x256xbf16, #tpu.memory_space<vmem>>, vector<256x256xbf16>,
    } else {
    }
    return
  }
  func.func @transform_0(%arg0: i32, %arg1: i32) -> (i32, i32) {
    %c0_i32 = arith.constant 0 : i32
    %c0_i32_0 = arith.constant 0 : i32
    return %arg0, %c0_i32 : i32, i32
  }
  func.func @transform_1(%arg0: i32, %arg1: i32) -> (i32, i32) {
    %c0_i32 = arith.constant 0 : i32
    %c0_i32_0 = arith.constant 0 : i32
    %c0_i32_1 = arith.constant 0 : i32
    return %c0_i32, %c0_i32_0 : i32, i32
  }
  func.func @transform_2(%arg0: i32, %arg1: i32) -> (i32, i32) {
    %c0_i32 = arith.constant 0 : i32
    %c0_i32_0 = arith.constant 0 : i32
    return %c0_i32, %arg1 : i32, i32
  }
  func.func @transform_3(%arg0: i32, %arg1: i32) -> (i32, i32) {
    %c0_i32 = arith.constant 0 : i32
    %c0_i32_0 = arith.constant 0 : i32
    return %c0_i32, %arg1 : i32, i32
  }
  func.func @transform_4(%arg0: i32, %arg1: i32) -> (i32, i32) {
    %c0_i32 = arith.constant 0 : i32
    %c0_i32_0 = arith.constant 0 : i32
    return %arg1, %c0_i32 : i32, i32
  }
  func.func @transform_5(%arg0: i32, %arg1: i32) -> (i32, i32) {
    %c0_i32 = arith.constant 0 : i32
    %c0_i32_0 = arith.constant 0 : i32
    return %arg0, %c0_i32 : i32, i32
  }
}

module attributes {stable_mosaic.version = 11 : i64} {
  func.func @_rmsnorm_matmul_kernel(%arg0: i32, %arg1: i32, %arg2: memref<256x256xbf16, #tpu.memory_space<vmem>>, %arg3: memref<1x256xf32, #tpu.memory_space<vmem>>, %arg4: memref<256x512xbf16, #tpu.memory_space<vmem>>, %arg5: memref<256x512xf32, #tpu.memory_space<vmem>>, %arg6: memref<256x256xbf16, #tpu.memory_space<vmem>>) attributes {dimension_semantics = [#tpu.dimension_semantics<parallel>, #tpu.dimension_semantics<arbitrary>], iteration_bounds = array<i64: 1, 1>, scalar_prefetch = 0 : i64, scratch_operands = 1 : i64, tpu.core_type = #tpu.core_type<tc>, window_params = [{transform_indices = @transform_0, window_bounds = array<i64: 256, 256>}, {pipeline_mode = #tpu.pipeline_mode<synchronous>, transform_indices = @transform_1, window_bounds = array<i64: 1, 256>}, {transform_indices = @transform_2, window_bounds = array<i64: 256, 512>}, {transform_indices = @transform_3, window_bounds = array<i64: 256, 512>}]} {
    %c0_i32 = arith.constant 0 : i32
    %0 = arith.cmpi eq, %arg1, %c0_i32 : i32
    %1 = arith.extui %0 : i1 to i32
    %c0_i32_0 = arith.constant 0 : i32
    %2 = arith.cmpi ne, %1, %c0_i32_0 : i32
    scf.if %2 {
      %c0_6 = arith.constant 0 : index
      %c0_7 = arith.constant 0 : index
      %7 = vector.load %arg2[%c0_6, %c0_7] : memref<256x256xbf16, #tpu.memory_space<vmem>>, vector<256x256xbf16>
      %8 = arith.extf %7 : vector<256x256xbf16> to vector<256x256xf32>
      %9 = arith.mulf %8, %8 : vector<256x256xf32>
      %cst_8 = arith.constant dense<0.000000e+00> : vector<256xf32>
      %10 = vector.multi_reduction <add>, %9, %cst_8 [1] : vector<256x256xf32> to vector<256xf32>
      %11 = vector.shape_cast %10 : vector<256xf32> to vector<256x1xf32>
      %cst_9 = arith.constant 2.560000e+02 : f32
      %12 = vector.broadcast %cst_9 : f32 to vector<256x1xf32>
      %13 = arith.divf %11, %12 : vector<256x1xf32>
      %cst_10 = arith.constant 9.99999974E-6 : f32
      %14 = vector.broadcast %cst_10 : f32 to vector<256x1xf32>
      %15 = arith.addf %13, %14 : vector<256x1xf32>
      %16 = math.rsqrt %15 : vector<256x1xf32>
      %17 = vector.broadcast %16 : vector<256x1xf32> to vector<256x256xf32>
      %18 = arith.mulf %8, %17 : vector<256x256xf32>
      %c0_11 = arith.constant 0 : index
      %c0_12 = arith.constant 0 : index
      %19 = vector.load %arg3[%c0_11, %c0_12] : memref<1x256xf32, #tpu.memory_space<vmem>>, vector<1x256xf32>
      %20 = vector.broadcast %19 : vector<1x256xf32> to vector<256x256xf32>
      %21 = arith.mulf %18, %20 : vector<256x256xf32>
      %22 = arith.truncf %21 : vector<256x256xf32> to vector<256x256xbf16>
      %c0_13 = arith.constant 0 : index
      %c0_14 = arith.constant 0 : index
      %23 = vector.load %arg6[%c0_13, %c0_14] : memref<256x256xbf16, #tpu.memory_space<vmem>>, vector<256x256xbf16>
      tpu.vector_store %arg6[%c0_13, %c0_14], %22 {strides = array<i32>} : memref<256x256xbf16, #tpu.memory_space<vmem>>, vector<256x256xbf16>,
    } else {
    }
    %c0 = arith.constant 0 : index
    %c0_1 = arith.constant 0 : index
    %3 = vector.load %arg6[%c0, %c0_1] : memref<256x256xbf16, #tpu.memory_space<vmem>>, vector<256x256xbf16>
    %c0_2 = arith.constant 0 : index
    %c0_3 = arith.constant 0 : index
    %4 = vector.load %arg4[%c0_2, %c0_3] : memref<256x512xbf16, #tpu.memory_space<vmem>>, vector<256x512xbf16>
    %cst = arith.constant dense<0.000000e+00> : vector<256x512xf32>
    %5 = tpu.matmul %3, %4, %cst {dimension_numbers = #tpu.dot_dimension_numbers<[1], [0], [0], [1], [0, 0, 1, 1], [], []>} : vector<256x256xbf16>, vector<256x512xbf16>, vector<256x512xf32> -> vector<256x512xf32>
    %c0_4 = arith.constant 0 : index
    %c0_5 = arith.constant 0 : index
    %6 = vector.load %arg5[%c0_4, %c0_5] : memref<256x512xf32, #tpu.memory_space<vmem>>, vector<256x512xf32>
    tpu.vector_store %arg5[%c0_4, %c0_5], %5 {strides = array<i32>} : memref<256x512xf32, #tpu.memory_space<vmem>>, vector<256x512xf32>,
    return
  }
  func.func @transform_0(%arg0: i32, %arg1: i32) -> (i32, i32) {
    %c0_i32 = arith.constant 0 : i32
    %c0_i32_0 = arith.constant 0 : i32
    return %arg0, %c0_i32 : i32, i32
  }
  func.func @transform_1(%arg0: i32, %arg1: i32) -> (i32, i32) {
    %c0_i32 = arith.constant 0 : i32
    %c0_i32_0 = arith.constant 0 : i32
    %c0_i32_1 = arith.constant 0 : i32
    return %c0_i32, %c0_i32_0 : i32, i32
  }
  func.func @transform_2(%arg0: i32, %arg1: i32) -> (i32, i32) {
    %c0_i32 = arith.constant 0 : i32
    %c0_i32_0 = arith.constant 0 : i32
    return %c0_i32, %arg1 : i32, i32
  }
  func.func @transform_3(%arg0: i32, %arg1: i32) -> (i32, i32) {
    %c0_i32 = arith.constant 0 : i32
    return %arg0, %arg1 : i32, i32
  }
}

</mosaic_0001>

<bundles_post_ra>
// kernel: _lambda_.9
= control target key start
LH: loop header
LB: loop body
LE: loop exit
PB: predicated region body
PF: predicated region fallthrough
CT: control target
= control target key end

     0   :  { %s3389_s12 = smov 0   ;;  %s3391_s13 = smov 0   ;;  %s4327_s0 = inlined_call_operand.vmem [shape: bf16[256,256], index: 0, kind: input, shape index: {}]   ;;  %s4328_s1 = inlined_call_operand.vmem [shape: f32[1,256], index: 1, kind: input, shape index: {}]   ;;  %s4329_s2 = inlined_call_operand.vmem [shape: bf16[256,768], index: 2, kind: input, shape index: {}]   ;;  %s4330_s3 = inlined_call_operand.vmem [shape: bf16[256,768], index: 3, kind: output, shape index: {}]  }
   0x1   :  { %s3393_s14 = smov 0   ;;  %s3395_s15 = smov 0  }
   0x2   :  { %s3397_s16 = smov 0  }
   0x3 LB: > { %s22_s17 = sadd.s32 1, %s3363_s15  ;;  %s2592_s18 = sadd.s32 4294967295, %s3367_s16   ;;  %s3367_s16 = sphi %s3397_s16, %s13_s16   ;;  %s3363_s15 = sphi %s3395_s15, %s4395_s15   ;;  %s3359_s14 = sphi %s3393_s14, %s4394_s14   ;;  %s3355_s13 = sphi %s3391_s13, %s4393_s13   ;;  %s3351_s12 = sphi %s3389_s12, %s4392_s12  }
   0x4   : > { %p23_p0 = scmp.ge.s32.totalorder %s22_s17, 2  ;;  %p86_p1 = scmp.ne.s32.totalorder %s3355_s13, %s3351_s12 }
   0x5   : > { %p87_p2 = scmp.eq.s32.totalorder %s3367_s16, 0  ;;  %p118_p4 = scmp.eq.s32.totalorder %s2592_s18, 1 }
   0x6   : > { %s4397_s17 = smov (%p23_p0, %s22_s17), 0  ;;  %s79_s20 = sadd.s32 1, %s3355_s13 }
   0x7   : > { %p88_p3 = por %p87_p2, %p86_p1  ;;  %s76_s19 = ssub.s32 %s3363_s15, %s4397_s17 }
   0x8   : > { %p77_p5 = scmp.eq.s32.totalorder %s76_s19, 0  ;;  %p3424_p6 = por %p118_p4, %p86_p1 }
   0x9   : > { %p2596_p7 = scmp.ge.s32.totalorder %s3367_s16, 2 }
   0xa   : > { %s3429_s22 = scalar_select %p77_p5, %s3355_s13, %s79_s20  }
   0xb   : > { %153 = sbr.rel (%p2596_p7) target bundleno = 58 (0x3a), region = 24 }
  0x10   : > { %156 = sbr.rel (!%p88_p3) target bundleno = 58 (0x3a), region = 28  ;;  %s158_s23 = sand.u32 (%p88_p3), 1, %s3355_s13  }
  0x11   : > { %s2907_s24 = smul.u32 (%p88_p3), 12, %s3363_s15 }
  0x12   : > { %s3117_s25 = smul.u32 (%p88_p3), 384, %s158_s23 }
  0x13   : > { %s3437_s28 = scalar_lea.vmem (%p88_p3), %s4329_s2, %s2907_s24 }
  0x14   : > { %v178_v0 = vld [vmem:[%s3437_s28] sm:$0xff] (%p88_p3)  ;;  %v180_v1 = vld [vmem:[%s3437_s28 + $0x18] sm:$0xff] (%p88_p3)  ;;  %v182_v2 = vld [vmem:[%s3437_s28 + $0x30] sm:$0xff] (%p88_p3)  ;;  %s3442_s29 = scalar_lea.vmem (%p88_p3), [#allocation3], %s3117_s25 }
  0x15   : > { %179 = vst [vmem:[%s3442_s29] sm:$0xff] %v178_v0  ;;  %181 = vst [vmem:[%s3442_s29 + $0xc] sm:$0xff] %v180_v1  ;;  %v184_v3 = vld [vmem:[%s3437_s28 + $0x48] sm:$0xff]  ;;  %v186_v4 = vld [vmem:[%s3437_s28 + $0x60] sm:$0xff] }
  0x16   : > { %183 = vst [vmem:[%s3442_s29 + $0x18] sm:$0xff] %v182_v2  ;;  %v188_v5 = vld [vmem:[%s3437_s28 + $0x78] sm:$0xff]  ;;  %185 = vst [vmem:[%s3442_s29 + $0x24] sm:$0xff] %v184_v3  ;;  %v190_v6 = vld [vmem:[%s3437_s28 + $0x90] sm:$0xff] }
  0x17   : > { %187 = vst [vmem:[%s3442_s29 + $0x30] sm:$0xff] %v186_v4  ;;  %189 = vst [vmem:[%s3442_s29 + $0x3c] sm:$0xff] %v188_v5  ;;  %v192_v7 = vld [vmem:[%s3437_s28 + $0xa8] sm:$0xff]  ;;  %v194_v8 = vld [vmem:[%s3437_s28 + $0xc0] sm:$0xff] }
  0x18   : > { %191 = vst [vmem:[%s3442_s29 + $0x48] sm:$0xff] %v190_v6  ;;  %193 = vst [vmem:[%s3442_s29 + $0x54] sm:$0xff] %v192_v7  ;;  %v196_v9 = vld [vmem:[%s3437_s28 + $0xd8] sm:$0xff]  ;;  %v198_v10 = vld [vmem:[%s3437_s28 + $0xf0] sm:$0xff] }
  0x19   : > { %195 = vst [vmem:[%s3442_s29 + $0x60] sm:$0xff] %v194_v8  ;;  %v200_v11 = vld [vmem:[%s3437_s28 + $0x108] sm:$0xff]  ;;  %197 = vst [vmem:[%s3442_s29 + $0x6c] sm:$0xff] %v196_v9  ;;  %v202_v12 = vld [vmem:[%s3437_s28 + $0x120] sm:$0xff] }
  0x1a   : > { %199 = vst [vmem:[%s3442_s29 + $0x78] sm:$0xff] %v198_v10  ;;  %201 = vst [vmem:[%s3442_s29 + $0x84] sm:$0xff] %v200_v11  ;;  %v204_v13 = vld [vmem:[%s3437_s28 + $0x138] sm:$0xff]  ;;  %v206_v14 = vld [vmem:[%s3437_s28 + $0x150] sm:$0xff] }
  0x1b   : > { %203 = vst [vmem:[%s3442_s29 + $0x90] sm:$0xff] %v202_v12  ;;  %205 = vst [vmem:[%s3442_s29 + $0x9c] sm:$0xff] %v204_v13  ;;  %v208_v15 = vld [vmem:[%s3437_s28 + $0x168] sm:$0xff]  ;;  %v210_v16 = vld [vmem:[%s3437_s28 + $0x180] sm:$0xff] }
  0x1c   : > { %207 = vst [vmem:[%s3442_s29 + $0xa8] sm:$0xff] %v206_v14  ;;  %v212_v17 = vld [vmem:[%s3437_s28 + $0x198] sm:$0xff]  ;;  %209 = vst [vmem:[%s3442_s29 + $0xb4] sm:$0xff] %v208_v15  ;;  %v214_v18 = vld [vmem:[%s3437_s28 + $0x1b0] sm:$0xff] }
  0x1d   : > { %211 = vst [vmem:[%s3442_s29 + $0xc0] sm:$0xff] %v210_v16  ;;  %213 = vst [vmem:[%s3442_s29 + $0xcc] sm:$0xff] %v212_v17  ;;  %v216_v19 = vld [vmem:[%s3437_s28 + $0x1c8] sm:$0xff]  ;;  %v218_v20 = vld [vmem:[%s3437_s28 + $0x1e0] sm:$0xff] }
  0x1e   : > { %215 = vst [vmem:[%s3442_s29 + $0xd8] sm:$0xff] %v214_v18  ;;  %217 = vst [vmem:[%s3442_s29 + $0xe4] sm:$0xff] %v216_v19  ;;  %v220_v21 = vld [vmem:[%s3437_s28 + $0x1f8] sm:$0xff]  ;;  %v222_v22 = vld [vmem:[%s3437_s28 + $0x210] sm:$0xff] }
  0x1f   : > { %219 = vst [vmem:[%s3442_s29 + $0xf0] sm:$0xff] %v218_v20  ;;  %v224_v23 = vld [vmem:[%s3437_s28 + $0x228] sm:$0xff]  ;;  %221 = vst [vmem:[%s3442_s29 + $0xfc] sm:$0xff] %v220_v21  ;;  %v226_v24 = vld [vmem:[%s3437_s28 + $0x240] sm:$0xff] }
  0x20   : > { %223 = vst [vmem:[%s3442_s29 + $0x108] sm:$0xff] %v222_v22  ;;  %225 = vst [vmem:[%s3442_s29 + $0x114] sm:$0xff] %v224_v23  ;;  %v228_v25 = vld [vmem:[%s3437_s28 + $0x258] sm:$0xff]  ;;  %v230_v26 = vld [vmem:[%s3437_s28 + $0x270] sm:$0xff] }
  0x21   : > { %227 = vst [vmem:[%s3442_s29 + $0x120] sm:$0xff] %v226_v24  ;;  %229 = vst [vmem:[%s3442_s29 + $0x12c] sm:$0xff] %v228_v25  ;;  %v232_v27 = vld [vmem:[%s3437_s28 + $0x288] sm:$0xff]  ;;  %v234_v28 = vld [vmem:[%s3437_s28 + $0x2a0] sm:$0xff] }
  0x22   : > { %231 = vst [vmem:[%s3442_s29 + $0x138] sm:$0xff] %v230_v26  ;;  %v236_v29 = vld [vmem:[%s3437_s28 + $0x2b8] sm:$0xff]  ;;  %233 = vst [vmem:[%s3442_s29 + $0x144] sm:$0xff] %v232_v27  ;;  %v238_v30 = vld [vmem:[%s3437_s28 + $0x2d0] sm:$0xff] }
  0x23   : > { %235 = vst [vmem:[%s3442_s29 + $0x150] sm:$0xff] %v234_v28  ;;  %237 = vst [vmem:[%s3442_s29 + $0x15c] sm:$0xff] %v236_v29  ;;  %v240_v31 = vld [vmem:[%s3437_s28 + $0x2e8] sm:$0xff]  ;;  %v2600_v33 = vld [vmem:[%s3437_s28 + $0x20] sm:$0xf] }
  0x24   : > { %v2598_v32 = vld [vmem:[%s3437_s28 + $0x8] sm:$0xf]  ;;  %239 = vst [vmem:[%s3442_s29 + $0x168] sm:$0xff] %v238_v30  ;;  %241 = vst [vmem:[%s3442_s29 + $0x174] sm:$0xff] %v240_v31  ;;  %v2602_v34 = vld [vmem:[%s3437_s28 + $0x38] sm:$0xf] }
  0x25   : > { %2599 = vst [vmem:[%s3442_s29 + $0x8] sm:$0xf] %v2598_v32  ;;  %v2604_v35 = vld [vmem:[%s3437_s28 + $0x50] sm:$0xf]  ;;  %2601 = vst [vmem:[%s3442_s29 + $0x14] sm:$0xf] %v2600_v33 }
  0x26   : > { %2603 = vst [vmem:[%s3442_s29 + $0x20] sm:$0xf] %v2602_v34  ;;  %2605 = vst [vmem:[%s3442_s29 + $0x2c] sm:$0xf] %v2604_v35  ;;  %v2606_v36 = vld [vmem:[%s3437_s28 + $0x68] sm:$0xf] }
  0x27   : > { %v2608_v37 = vld [vmem:[%s3437_s28 + $0x80] sm:$0xf]  ;;  %v2610_v38 = vld [vmem:[%s3437_s28 + $0x98] sm:$0xf]  ;;  %2607 = vst [vmem:[%s3442_s29 + $0x38] sm:$0xf] %v2606_v36 }
  0x28   : > { %2609 = vst [vmem:[%s3442_s29 + $0x44] sm:$0xf] %v2608_v37  ;;  %2611 = vst [vmem:[%s3442_s29 + $0x50] sm:$0xf] %v2610_v38  ;;  %v2612_v39 = vld [vmem:[%s3437_s28 + $0xb0] sm:$0xf] }
  0x29   : > { %v2614_v40 = vld [vmem:[%s3437_s28 + $0xc8] sm:$0xf]  ;;  %v2616_v41 = vld [vmem:[%s3437_s28 + $0xe0] sm:$0xf]  ;;  %2613 = vst [vmem:[%s3442_s29 + $0x5c] sm:$0xf] %v2612_v39 }
  0x2a   : > { %2615 = vst [vmem:[%s3442_s29 + $0x68] sm:$0xf] %v2614_v40  ;;  %2617 = vst [vmem:[%s3442_s29 + $0x74] sm:$0xf] %v2616_v41  ;;  %v2618_v42 = vld [vmem:[%s3437_s28 + $0xf8] sm:$0xf] }
  0x2b   : > { %v2620_v43 = vld [vmem:[%s3437_s28 + $0x110] sm:$0xf]  ;;  %v2622_v44 = vld [vmem:[%s3437_s28 + $0x128] sm:$0xf]  ;;  %2619 = vst [vmem:[%s3442_s29 + $0x80] sm:$0xf] %v2618_v42 }
  0x2c   : > { %2621 = vst [vmem:[%s3442_s29 + $0x8c] sm:$0xf] %v2620_v43  ;;  %2623 = vst [vmem:[%s3442_s29 + $0x98] sm:$0xf] %v2622_v44  ;;  %v2624_v45 = vld [vmem:[%s3437_s28 + $0x140] sm:$0xf] }
  0x2d   : > { %v2626_v46 = vld [vmem:[%s3437_s28 + $0x158] sm:$0xf]  ;;  %v2628_v47 = vld [vmem:[%s3437_s28 + $0x170] sm:$0xf]  ;;  %2625 = vst [vmem:[%s3442_s29 + $0xa4] sm:$0xf] %v2624_v45 }
  0x2e   : > { %2627 = vst [vmem:[%s3442_s29 + $0xb0] sm:$0xf] %v2626_v46  ;;  %2629 = vst [vmem:[%s3442_s29 + $0xbc] sm:$0xf] %v2628_v47  ;;  %v2630_v48 = vld [vmem:[%s3437_s28 + $0x188] sm:$0xf] }
  0x2f   : > { %v2632_v49 = vld [vmem:[%s3437_s28 + $0x1a0] sm:$0xf]  ;;  %v2634_v50 = vld [vmem:[%s3437_s28 + $0x1b8] sm:$0xf]  ;;  %2631 = vst [vmem:[%s3442_s29 + $0xc8] sm:$0xf] %v2630_v48 }
  0x30   : > { %2633 = vst [vmem:[%s3442_s29 + $0xd4] sm:$0xf] %v2632_v49  ;;  %2635 = vst [vmem:[%s3442_s29 + $0xe0] sm:$0xf] %v2634_v50  ;;  %v2636_v51 = vld [vmem:[%s3437_s28 + $0x1d0] sm:$0xf] }
  0x31   : > { %v2638_v52 = vld [vmem:[%s3437_s28 + $0x1e8] sm:$0xf]  ;;  %v2640_v53 = vld [vmem:[%s3437_s28 + $0x200] sm:$0xf]  ;;  %2637 = vst [vmem:[%s3442_s29 + $0xec] sm:$0xf] %v2636_v51 }
  0x32   : > { %2639 = vst [vmem:[%s3442_s29 + $0xf8] sm:$0xf] %v2638_v52  ;;  %2641 = vst [vmem:[%s3442_s29 + $0x104] sm:$0xf] %v2640_v53  ;;  %v2642_v54 = vld [vmem:[%s3437_s28 + $0x218] sm:$0xf] }
  0x33   : > { %v2644_v55 = vld [vmem:[%s3437_s28 + $0x230] sm:$0xf]  ;;  %v2646_v56 = vld [vmem:[%s3437_s28 + $0x248] sm:$0xf]  ;;  %2643 = vst [vmem:[%s3442_s29 + $0x110] sm:$0xf] %v2642_v54 }
  0x34   : > { %2645 = vst [vmem:[%s3442_s29 + $0x11c] sm:$0xf] %v2644_v55  ;;  %2647 = vst [vmem:[%s3442_s29 + $0x128] sm:$0xf] %v2646_v56  ;;  %v2648_v57 = vld [vmem:[%s3437_s28 + $0x260] sm:$0xf] }
  0x35   : > { %v2650_v58 = vld [vmem:[%s3437_s28 + $0x278] sm:$0xf]  ;;  %v2652_v59 = vld [vmem:[%s3437_s28 + $0x290] sm:$0xf]  ;;  %2649 = vst [vmem:[%s3442_s29 + $0x134] sm:$0xf] %v2648_v57 }
  0x36   : > { %2651 = vst [vmem:[%s3442_s29 + $0x140] sm:$0xf] %v2650_v58  ;;  %2653 = vst [vmem:[%s3442_s29 + $0x14c] sm:$0xf] %v2652_v59  ;;  %v2654_v60 = vld [vmem:[%s3437_s28 + $0x2a8] sm:$0xf] }
  0x37   : > { %v2656_v61 = vld [vmem:[%s3437_s28 + $0x2c0] sm:$0xf]  ;;  %v2658_v62 = vld [vmem:[%s3437_s28 + $0x2d8] sm:$0xf]  ;;  %2655 = vst [vmem:[%s3442_s29 + $0x158] sm:$0xf] %v2654_v60 }
  0x38   : > { %2657 = vst [vmem:[%s3442_s29 + $0x164] sm:$0xf] %v2656_v61  ;;  %2659 = vst [vmem:[%s3442_s29 + $0x170] sm:$0xf] %v2658_v62  ;;  %v2660_v63 = vld [vmem:[%s3437_s28 + $0x2f0] sm:$0xf] }
  0x39   : > { %2661 = vst [vmem:[%s3442_s29 + $0x17c] sm:$0xf] %v2660_v63 }
  0x3a PF: > { %p2662_p8 = scmp.ge.s32.totalorder %s3367_s16, 1  ;;  %p318_p9 = scmp.lt.s32.totalorder %s3367_s16, 3 }
  0x3c   : > { %p319_p10 = pnand %p2662_p8, %p318_p9 }
  0x3d   : > { %s325_s30 = sand.u32 (!%p319_p10), 1, %s3351_s12   ;;  %p2663_p11 = scmp.ne.s32.totalorder (!%p319_p10), %s3359_s14, 0 }
  0x3e   : > { %322 = sbr.rel (%p319_p10) target bundleno = 698 (0x2ba), region = 54 }
  0x3f   : > { %s3118_s4 = smul.u32 (!%p319_p10), 384, %s325_s30 }
  0x41   : > { %s3572_s5 = scalar_lea.vmem (!%p319_p10), [#allocation3], %s3118_s4  ;;  %s3574_s6 = scalar_lea.vmem (!%p319_p10), [#allocation4], %s3118_s4 }
  0x43   : > { %367 = sbr.rel (%p2663_p11) target bundleno = 303 (0x12f), region = 62 }
  0x48   : > { %v370_v0 = vld [vmem:[%s4327_s0 + $0x10] sm:$0xff]  ;;  %v368_v1 = vld [vmem:[%s4327_s0] sm:$0xff]  ;;  %v371_v2 = vld [vmem:[%s4327_s0 + $0x18] sm:$0xff] }
  0x49   : > { %v3586_v3 = vunpack.c.l.bf16 %v370_v0  ;;  %v3588_v4 = vunpack.c.h.bf16 %v370_v0  ;;  %v3590_v5 = vunpack.c.l.bf16 %v368_v1  ;;  %v3592_v6 = vunpack.c.h.bf16 %v368_v1  ;;  %v369_v7 = vld [vmem:[%s4327_s0 + $0x8] sm:$0xff]  ;;  %v372_v17 = vld [vmem:[%s4327_s0 + $0x20] sm:$0xff]  ;;  %v375_v22 = vld [vmem:[%s4327_s0 + $0x38] sm:$0xff] }
  0x4a   : > { %v3597_v8 = vunpack.c.l.bf16 %v371_v2  ;;  %v3599_v9 = vunpack.c.h.bf16 %v371_v2  ;;  %v3601_v10 = vunpack.c.l.bf16 %v369_v7  ;;  %v3603_v11 = vunpack.c.h.bf16 %v369_v7  ;;  %v373_v12 = vld [vmem:[%s4327_s0 + $0x28] sm:$0xff]  ;;  %v374_v27 = vld [vmem:[%s4327_s0 + $0x30] sm:$0xff]  ;;  %v376_v41 = vld [vmem:[%s4327_s0 + $0x40] sm:$0xff] }
  0x4b   : > { %v468_v13 = vmul.f32 %v3586_v3, %v3586_v3  ;;  %v469_v14 = vmul.f32 %v3588_v4, %v3588_v4  ;;  %v464_v15 = vmul.f32 %v3590_v5, %v3590_v5  ;;  %v465_v16 = vmul.f32 %v3592_v6, %v3592_v6  ;;  %v377_v32 = vld [vmem:[%s4327_s0 + $0x48] sm:$0xff]  ;;  %v379_v52 = vld [vmem:[%s4327_s0 + $0x58] sm:$0xff]  ;;  %v378_v53 = vld [vmem:[%s4327_s0 + $0x50] sm:$0xff] }
  0x4c   : > { %v470_v18 = vmul.f32 %v3597_v8, %v3597_v8  ;;  %v471_v19 = vmul.f32 %v3599_v9, %v3599_v9  ;;  %v466_v20 = vmul.f32 %v3601_v10, %v3601_v10  ;;  %v467_v21 = vmul.f32 %v3603_v11, %v3603_v11  ;;  %v381_v61 = vld [vmem:[%s4327_s0 + $0x68] sm:$0xff]  ;;  %v380_v1 = vld [vmem:[%s4327_s0 + $0x60] sm:$0xff] }
  0x4d   : > { %v534_v23 = vadd.f32 %v469_v14, %v468_v13  ;;  %v528_v24 = vadd.f32 %v465_v16, %v464_v15  ;;  %v3630_v25 = vunpack.c.l.bf16 %v373_v12  ;;  %v3632_v26 = vunpack.c.h.bf16 %v373_v12  ;;  %v383_v16 = vld [vmem:[%s4327_s0 + $0x78] sm:$0xff] }
  0x4e   : > { %v537_v28 = vadd.f32 %v471_v19, %v470_v18  ;;  %v531_v29 = vadd.f32 %v467_v21, %v466_v20  ;;  %v3637_v30 = vunpack.c.l.bf16 %v372_v17  ;;  %v3639_v31 = vunpack.c.h.bf16 %v372_v17  ;;  %v382_v21 = vld [vmem:[%s4327_s0 + $0x70] sm:$0xff] }
  0x4f   : > { %535 = vadd.xlane.f32.xlu1 %v534_v23  ;;  %529 = vadd.xlane.f32.xlu0 %v528_v24  ;;  %v474_v33 = vmul.f32 %v3630_v25, %v3630_v25  ;;  %v475_v34 = vmul.f32 %v3632_v26, %v3632_v26  ;;  %v3648_v35 = vunpack.c.l.bf16 %v375_v22  ;;  %v3650_v36 = vunpack.c.h.bf16 %v375_v22 }
  0x50   : > { %v472_v37 = vmul.f32 %v3637_v30, %v3637_v30  ;;  %v473_v38 = vmul.f32 %v3639_v31, %v3639_v31  ;;  %v3656_v39 = vunpack.c.l.bf16 %v374_v27  ;;  %v3658_v40 = vunpack.c.h.bf16 %v374_v27 }
  0x51   : > { %v478_v42 = vmul.f32 %v3648_v35, %v3648_v35  ;;  %v479_v43 = vmul.f32 %v3650_v36, %v3650_v36  ;;  %v3667_v44 = vunpack.c.l.bf16 %v377_v32  ;;  %v543_v45 = vadd.f32 %v475_v34, %v474_v33 }
  0x52   : > { %v476_v46 = vmul.f32 %v3656_v39, %v3656_v39  ;;  %v477_v47 = vmul.f32 %v3658_v40, %v3658_v40  ;;  %v540_v48 = vadd.f32 %v473_v38, %v472_v37  ;;  %v3673_v49 = vunpack.c.h.bf16 %v377_v32  ;;  %v385_v38 = vld [vmem:[%s4327_s0 + $0x88] sm:$0xff] }
  0x53   : > { %538 = vadd.xlane.f32.xlu1 %v537_v28  ;;  %532 = vadd.xlane.f32.xlu0 %v531_v29  ;;  %v3675_v50 = vunpack.c.l.bf16 %v376_v41  ;;  %v3677_v51 = vunpack.c.h.bf16 %v376_v41  ;;  %v549_v54 = vadd.f32 %v479_v43, %v478_v42  ;;  %v482_v56 = vmul.f32 %v3667_v44, %v3667_v44  ;;  %v384_v41 = vld [vmem:[%s4327_s0 + $0x80] sm:$0xff] }
  0x54   : > { %v546_v55 = vadd.f32 %v477_v47, %v476_v46  ;;  %v3687_v57 = vunpack.c.l.bf16 %v379_v52  ;;  %v3689_v58 = vunpack.c.h.bf16 %v379_v52  ;;  %v3691_v59 = vunpack.c.l.bf16 %v378_v53 }
  0x55   : > { %v3693_v60 = vunpack.c.h.bf16 %v378_v53  ;;  %v483_v62 = vmul.f32 %v3673_v49, %v3673_v49  ;;  %v480_v63 = vmul.f32 %v3675_v50, %v3675_v50  ;;  %v481_v0 = vmul.f32 %v3677_v51, %v3677_v51  ;;  %v387_v53 = vld [vmem:[%s4327_s0 + $0x98] sm:$0xff] }
  0x56   : > { %v3707_v2 = vunpack.c.l.bf16 %v381_v61  ;;  %v3709_v7 = vunpack.c.h.bf16 %v381_v61  ;;  %v486_v12 = vmul.f32 %v3687_v57, %v3687_v57  ;;  %v487_v13 = vmul.f32 %v3689_v58, %v3689_v58  ;;  %v386_v61 = vld [vmem:[%s4327_s0 + $0x90] sm:$0xff] }
  0x57   : > { %544 = vadd.xlane.f32.xlu1 %v543_v45  ;;  %541 = vadd.xlane.f32.xlu0 %v540_v48  ;;  %v484_v14 = vmul.f32 %v3691_v59, %v3691_v59  ;;  %v485_v15 = vmul.f32 %v3693_v60, %v3693_v60  ;;  %v555_v17 = vadd.f32 %v483_v62, %v482_v56  ;;  %v3722_v19 = vunpack.c.l.bf16 %v380_v1 }
  0x58   : > { %v552_v18 = vadd.f32 %v481_v0, %v480_v63  ;;  %v3724_v20 = vunpack.c.h.bf16 %v380_v1  ;;  %v490_v22 = vmul.f32 %v3707_v2, %v3707_v2  ;;  %v491_v23 = vmul.f32 %v3709_v7, %v3709_v7 }
  0x59   : > { %v3733_v24 = vunpack.c.l.bf16 %v383_v16  ;;  %v3735_v27 = vunpack.c.h.bf16 %v383_v16  ;;  %v561_v28 = vadd.f32 %v487_v13, %v486_v12  ;;  %v558_v29 = vadd.f32 %v485_v15, %v484_v14 }
  0x5a   : > { %v488_v32 = vmul.f32 %v3722_v19, %v3722_v19  ;;  %v489_v33 = vmul.f32 %v3724_v20, %v3724_v20  ;;  %v3741_v34 = vunpack.c.l.bf16 %v382_v21  ;;  %v3743_v37 = vunpack.c.h.bf16 %v382_v21  ;;  %v388_v21 = vld [vmem:[%s4327_s0 + $0xa0] sm:$0xff] }
  0x5b   : > { %550 = vadd.xlane.f32.xlu1 %v549_v54  ;;  %547 = vadd.xlane.f32.xlu0 %v546_v55  ;;  %v567_v42 = vadd.f32 %v491_v23, %v490_v22  ;;  %v494_v43 = vmul.f32 %v3733_v24, %v3733_v24  ;;  %v495_v45 = vmul.f32 %v3735_v27, %v3735_v27  ;;  %v3755_v46 = vunpack.c.l.bf16 %v385_v38 }
  0x5c   : > { %v3757_v47 = vunpack.c.h.bf16 %v385_v38  ;;  %v3759_v48 = vunpack.c.l.bf16 %v384_v41  ;;  %v3761_v52 = vunpack.c.h.bf16 %v384_v41  ;;  %v564_v54 = vadd.f32 %v489_v33, %v488_v32  ;;  %v391_v38 = vld [vmem:[%s4327_s0 + $0xb8] sm:$0xff] }
  0x5d   : > { %v492_v55 = vmul.f32 %v3741_v34, %v3741_v34  ;;  %v493_v56 = vmul.f32 %v3743_v37, %v3743_v37  ;;  %v3773_v62 = vunpack.c.l.bf16 %v387_v53  ;;  %v3775_v63 = vunpack.c.h.bf16 %v387_v53  ;;  %v390_v53 = vld [vmem:[%s4327_s0 + $0xb0] sm:$0xff] }
  0x5e   : > { %v498_v0 = vmul.f32 %v3755_v46, %v3755_v46  ;;  %v499_v1 = vmul.f32 %v3757_v47, %v3757_v47  ;;  %v496_v12 = vmul.f32 %v3759_v48, %v3759_v48  ;;  %v497_v13 = vmul.f32 %v3761_v52, %v3761_v52 }
  0x5f   : > { %556 = vadd.xlane.f32.xlu1 %v555_v17  ;;  %553 = vadd.xlane.f32.xlu0 %v552_v18  ;;  %v573_v14 = vadd.f32 %v495_v45, %v494_v43  ;;  %v570_v15 = vadd.f32 %v493_v56, %v492_v55  ;;  %v3785_v16 = vunpack.c.l.bf16 %v386_v61  ;;  %v3787_v17 = vunpack.c.h.bf16 %v386_v61  ;;  %v389_v18 = vld [vmem:[%s4327_s0 + $0xa8] sm:$0xff] }
  0x60   : > { %v502_v22 = vmul.f32 %v3773_v62, %v3773_v62  ;;  %v503_v23 = vmul.f32 %v3775_v63, %v3775_v63  ;;  %v3799_v32 = vunpack.c.l.bf16 %v389_v18  ;;  %v3801_v33 = vunpack.c.h.bf16 %v389_v18  ;;  %v393_v18 = vld [vmem:[%s4327_s0 + $0xc8] sm:$0xff] }
  0x61   : > { %v500_v41 = vmul.f32 %v3785_v16, %v3785_v16  ;;  %v3810_v43 = vunpack.c.l.bf16 %v388_v21  ;;  %v3812_v45 = vunpack.c.h.bf16 %v388_v21  ;;  %v3817_v55 = vunpack.c.l.bf16 %v391_v38  ;;  %v392_v21 = vld [vmem:[%s4327_s0 + $0xc0] sm:$0xff] }
  0x62   : > { %v3819_v56 = vunpack.c.h.bf16 %v391_v38  ;;  %v506_v61 = vmul.f32 %v3799_v32, %v3799_v32 }
  0x63   : > { %562 = vadd.xlane.f32.xlu1 %v561_v28  ;;  %559 = vadd.xlane.f32.xlu0 %v558_v29  ;;  %v579_v28 = vadd.f32 %v499_v1, %v498_v0  ;;  %v576_v29 = vadd.f32 %v497_v13, %v496_v12  ;;  %4352 = vst [vmem:[#allocation5_spill] sm:$0xff] %v3810_v43  ;;  %4353 = vst [vmem:[#allocation6_spill] sm:$0xff] %v3812_v45  ;;  %v3825_v1 = vunpack.c.l.bf16 %v390_v53 }
  0x64   : > { %4354 = vst [vmem:[#allocation7_spill] sm:$0xff] %v3817_v55  ;;  %4355 = vst [vmem:[#allocation8_spill] sm:$0xff] %v3819_v56  ;;  %v507_v0 = vmul.f32 %v3801_v33, %v3801_v33  ;;  %v3827_v12 = vunpack.c.h.bf16 %v390_v53 }
  0x65   : > { %4356 = vst [vmem:[#allocation9_spill] sm:$0xff] %v3825_v1 }
  0x66   : > { %4357 = vst [vmem:[#allocation10_spill] sm:$0xff] %v3827_v12  ;;  %v509_v38 = vmul.f32 %v3827_v12, %v3827_v12 }
  0x67   : > { %568 = vadd.xlane.f32.xlu1 %v567_v42  ;;  %565 = vadd.xlane.f32.xlu0 %v564_v54  ;;  %v501_v42 = vmul.f32 %v3787_v17, %v3787_v17  ;;  %v585_v54 = vadd.f32 %v503_v23, %v502_v22  ;;  %v510_v22 = vmul.f32 %v3817_v55, %v3817_v55  ;;  %v3852_v55 = vunpack.c.h.bf16 %v393_v18 }
  0x68   : > { %v511_v23 = vmul.f32 %v3819_v56, %v3819_v56 }
  0x69   : > { %v582_v13 = vadd.f32 %v501_v42, %v500_v41  ;;  %v3847_v41 = vunpack.c.l.bf16 %v393_v18  ;;  %v395_v42 = vld [vmem:[%s4327_s0 + $0xd8] sm:$0xff]  ;;  %4359 = vst [vmem:[#allocation12_spill] sm:$0xff] %v3852_v55  ;;  %v515_v18 = vmul.f32 %v3852_v55, %v3852_v55 }
  0x6a   : > { %v597_v12 = vadd.f32 %v511_v23, %v510_v22  ;;  %v3863_v56 = vunpack.c.h.bf16 %v395_v42  ;;  %v396_v23 = vld [vmem:[%s4327_s0 + $0xe0] sm:$0xff] }
  0x6b   : > { %574 = vadd.xlane.f32.xlu1 %v573_v14  ;;  %571 = vadd.xlane.f32.xlu0 %v570_v15  ;;  %v504_v14 = vmul.f32 %v3810_v43, %v3810_v43  ;;  %v505_v15 = vmul.f32 %v3812_v45, %v3812_v45  ;;  %4358 = vst [vmem:[#allocation11_spill] sm:$0xff] %v3847_v41  ;;  %v3854_v45 = vunpack.c.l.bf16 %v392_v21  ;;  %v3895_v55 = vunpack.c.l.bf16 %v396_v23 }
  0x6c   : > { %4363 = vst [vmem:[#allocation16_spill] sm:$0xff] %v3863_v56 }
  0x6d   : > { %v588_v53 = vadd.f32 %v505_v15, %v504_v14  ;;  %4360 = vst [vmem:[#allocation13_spill] sm:$0xff] %v3854_v45  ;;  %v397_v15 = vld [vmem:[%s4327_s0 + $0xe8] sm:$0xff]  ;;  %4366 = vst [vmem:[#allocation19_spill] sm:$0xff] %v3895_v55 }
  0x6f   : > { %580 = vadd.xlane.f32.xlu1 %v579_v28  ;;  %577 = vadd.xlane.f32.xlu0 %v576_v29  ;;  %v591_v28 = vadd.f32 %v507_v0, %v506_v61  ;;  %v508_v29 = vmul.f32 %v3825_v1, %v3825_v1  ;;  %v3856_v61 = vunpack.c.h.bf16 %v392_v21  ;;  %v394_v0 = vld [vmem:[%s4327_s0 + $0xd0] sm:$0xff]  ;;  %v3861_v1 = vunpack.c.l.bf16 %v395_v42 }
  0x70   : > { %v3869_v14 = vunpack.c.h.bf16 %v394_v0  ;;  %v512_v21 = vmul.f32 %v3854_v45, %v3854_v45 }
  0x71   : > { %4361 = vst [vmem:[#allocation14_spill] sm:$0xff] %v3856_v61  ;;  %4362 = vst [vmem:[#allocation15_spill] sm:$0xff] %v3861_v1  ;;  %v594_v43 = vadd.f32 %v509_v38, %v508_v29  ;;  %v513_v22 = vmul.f32 %v3856_v61, %v3856_v61  ;;  %v518_v29 = vmul.f32 %v3861_v1, %v3861_v1  ;;  %v3887_v38 = vunpack.c.l.bf16 %v397_v15 }
  0x72   : > { %v3897_v1 = vunpack.c.h.bf16 %v396_v23 }
  0x73   : > { %586 = vadd.xlane.f32.xlu1 %v585_v54  ;;  %583 = vadd.xlane.f32.xlu0 %v582_v13  ;;  %v514_v54 = vmul.f32 %v3847_v41, %v3847_v41  ;;  %v3867_v13 = vunpack.c.l.bf16 %v394_v0  ;;  %v3893_v0 = vunpack.c.h.bf16 %v397_v15  ;;  %v600_v45 = vadd.f32 %v513_v22, %v512_v21 }
  0x74   : > { %4367 = vst [vmem:[#allocation20_spill] sm:$0xff] %v3897_v1  ;;  %v522_v15 = vmul.f32 %v3887_v38, %v3887_v38  ;;  %v520_v21 = vmul.f32 %v3895_v55, %v3895_v55  ;;  %v521_v22 = vmul.f32 %v3897_v1, %v3897_v1 }
  0x75   : > { %4364 = vst [vmem:[#allocation17_spill] sm:$0xff] %v3867_v13  ;;  %v516_v42 = vmul.f32 %v3867_v13, %v3867_v13  ;;  %4365 = vst [vmem:[#allocation18_spill] sm:$0xff] %v3893_v0  ;;  %v603_v61 = vadd.f32 %v515_v18, %v514_v54  ;;  %v398_v13 = vld [vmem:[%s4327_s0 + $0xf0] sm:$0xff] }
  0x76   : > { %v3917_v23 = vunpack.c.l.bf16 %v398_v13 }
  0x77   : > { %592 = vadd.xlane.f32.xlu1 %v591_v28  ;;  %589 = vadd.xlane.f32.xlu0 %v588_v53  ;;  %v519_v28 = vmul.f32 %v3863_v56, %v3863_v56  ;;  %v517_v53 = vmul.f32 %v3869_v14, %v3869_v14  ;;  %v399_v56 = vld [vmem:[%s4327_s0 + $0xf8] sm:$0xff] }
  0x78   : > { %v3909_v54 = vunpack.c.l.bf16 %v399_v56  ;;  %v3911_v18 = vunpack.c.h.bf16 %v399_v56  ;;  %4370 = vst [vmem:[#allocation23_spill] sm:$0xff] %v3917_v23 }
  0x79   : > { %v609_v41 = vadd.f32 %v519_v28, %v518_v29  ;;  %v3919_v29 = vunpack.c.h.bf16 %v398_v13 }
  0x7a   : > { %4368 = vst [vmem:[#allocation21_spill] sm:$0xff] %v3909_v54  ;;  %4369 = vst [vmem:[#allocation22_spill] sm:$0xff] %v3911_v18  ;;  %v527_v56 = vmul.f32 %v3911_v18, %v3911_v18 }
  0x7b   : > { %598 = vadd.xlane.f32.xlu1 %v597_v12  ;;  %595 = vadd.xlane.f32.xlu0 %v594_v43  ;;  %v606_v12 = vadd.f32 %v517_v53, %v516_v42  ;;  %v523_v43 = vmul.f32 %v3893_v0, %v3893_v0  ;;  %4371 = vst [vmem:[#allocation24_spill] sm:$0xff] %v3919_v29 }
  0x7c   : > { %v526_v42 = vmul.f32 %v3909_v54, %v3909_v54  ;;  %v525_v53 = vmul.f32 %v3919_v29, %v3919_v29 }
  0x7d   : > { %v615_v28 = vadd.f32 %v523_v43, %v522_v15 }
  0x7e   : > { %v621_v13 = vadd.f32 %v527_v56, %v526_v42 }
  0x7f   : > { %604 = vadd.xlane.f32.xlu1 %v603_v61  ;;  %601 = vadd.xlane.f32.xlu0 %v600_v45  ;;  %v612_v45 = vadd.f32 %v521_v22, %v520_v21  ;;  %v524_v61 = vmul.f32 %v3917_v23, %v3917_v23 }
  0x81   : > { %v618_v1 = vadd.f32 %v525_v53, %v524_v61 }
  0x83   : > { %610 = vadd.xlane.f32.xlu1 %v609_v41  ;;  %607 = vadd.xlane.f32.xlu0 %v606_v12  ;;  %v787_v12 = vlaneseq }
  0x87   : > { %616 = vadd.xlane.f32.xlu1 %v615_v28  ;;  %613 = vadd.xlane.f32.xlu0 %v612_v45  ;;  %v788_v45 = vshrl.u32 %v787_v12, 7 }
  0x8b   : > { %622 = vadd.xlane.f32.xlu1 %v621_v13  ;;  %619 = vadd.xlane.f32.xlu0 %v618_v1 }
  0xd8   : > { %v536_v15 = vpop.xlane.xlu1 %535  ;;  %v530_v43 = vpop.xlane.xlu0 %529 }
  0xd9   : > { %v627_v54 = vmul.f32 0.00390625, %v536_v15  ;;  %v625_v55 = vmul.f32 0.00390625, %v530_v43  ;;  %v793_v43 = vsub.s32 1, %v788_v45 }
  0xdb   : > { %v659_v18 = vadd.f32 1e-05, %v627_v54  ;;  %v657_v41 = vadd.f32 1e-05, %v625_v55  ;;  %v789_v54 = vsub.s32 0, %v788_v45 }
  0xdc   : > { %v539_v21 = vpop.xlane.xlu1 %538  ;;  %v533_v22 = vpop.xlane.xlu0 %532 }
  0xdd   : > { %3159 = vrsqrt.f32 %v659_v18  ;;  %v628_v23 = vmul.f32 0.00390625, %v539_v21  ;;  %v626_v0 = vmul.f32 0.00390625, %v533_v22  ;;  %v785_v18 = vld [vmem:[%s4328_s1] sm:$0x3] }
  0xde   : > { %3161 = vrsqrt.f32 %v657_v41 }
  0xdf   : > { %v660_v29 = vadd.f32 1e-05, %v628_v23  ;;  %v658_v28 = vadd.f32 1e-05, %v626_v0 }
  0xe0   : > { %v545_v42 = vpop.xlane.xlu1 %544  ;;  %v542_v56 = vpop.xlane.xlu0 %541 }
  0xe1   : > { %3163 = vrsqrt.f32 %v660_v29  ;;  %v630_v1 = vmul.f32 0.00390625, %v545_v42  ;;  %v629_v61 = vmul.f32 0.00390625, %v542_v56  ;;  %v3932_v29 = vrot.slane %v785_v18, %v789_v54 }
  0xe2   : > { %3165 = vrsqrt.f32 %v658_v28  ;;  %v3934_v28 = vrot.slane %v785_v18, %v793_v43 }
  0xe3   : > { %v662_v53 = vadd.f32 1e-05, %v630_v1  ;;  %v661_v13 = vadd.f32 1e-05, %v629_v61 }
  0xe4   : > { %v551_v55 = vpop.xlane.xlu1 %550  ;;  %v548_v15 = vpop.xlane.xlu0 %547 }
  0xe5   : > { %3167 = vrsqrt.f32 %v662_v53  ;;  %v632_v23 = vmul.f32 0.00390625, %v551_v55  ;;  %v631_v0 = vmul.f32 0.00390625, %v548_v15 }
  0xe6   : > { %3169 = vrsqrt.f32 %v661_v13 }
  0xe7   : > { %v664_v41 = vadd.f32 1e-05, %v632_v23  ;;  %v663_v12 = vadd.f32 1e-05, %v631_v0 }
  0xe8   : > { %v557_v21 = vpop.xlane.xlu1 %556  ;;  %v554_v22 = vpop.xlane.xlu0 %553 }
  0xe9   : > { %3171 = vrsqrt.f32 %v664_v41  ;;  %v634_v42 = vmul.f32 0.00390625, %v557_v21  ;;  %v633_v56 = vmul.f32 0.00390625, %v554_v22 }
  0xea   : > { %v3160_v1 = vpop.eup %3159  ;;  %3173 = vrsqrt.f32 %v663_v12 }
  0xeb   : > { %v3162_v61 = vpop.eup %3161  ;;  %v725_v45 = vmul.f32 %v3160_v1, %v3586_v3  ;;  %v726_v53 = vmul.f32 %v3160_v1, %v3588_v4  ;;  %v666_v55 = vadd.f32 1e-05, %v634_v42  ;;  %v665_v13 = vadd.f32 1e-05, %v633_v56 }
  0xec   : > { %v721_v15 = vmul.f32 %v3162_v61, %v3590_v5  ;;  %v722_v54 = vmul.f32 %v3162_v61, %v3592_v6  ;;  %v563_v23 = vpop.xlane.xlu1 %562  ;;  %v560_v0 = vpop.xlane.xlu0 %559 }
  0xed   : > { %v801_v18 = vmul.f32 %v3932_v29, %v725_v45  ;;  %v802_v43 = vmul.f32 %v3934_v28, %v726_v53  ;;  %3175 = vrsqrt.f32 %v666_v55  ;;  %v636_v41 = vmul.f32 0.00390625, %v563_v23 }
  0xee   : > { %v3164_v12 = vpop.eup %3163  ;;  %v797_v21 = vmul.f32 %v3932_v29, %v721_v15  ;;  %v798_v3 = vmul.f32 %v3934_v28, %v722_v54  ;;  %3177 = vrsqrt.f32 %v665_v13  ;;  %v635_v4 = vmul.f32 0.00390625, %v560_v0 }
  0xef   : > { %v3166_v22 = vpop.eup %3165  ;;  %v2910_v42 = vpack.c.bf16 %v802_v43, %v801_v18  ;;  %v727_v5 = vmul.f32 %v3164_v12, %v3597_v8  ;;  %v728_v6 = vmul.f32 %v3164_v12, %v3599_v9  ;;  %v668_v56 = vadd.f32 1e-05, %v636_v41 }
  0xf0   : > { %v2908_v1 = vpack.c.bf16 %v798_v3, %v797_v21  ;;  %v723_v61 = vmul.f32 %v3166_v22, %v3601_v10  ;;  %v724_v45 = vmul.f32 %v3166_v22, %v3603_v11  ;;  %v667_v53 = vadd.f32 1e-05, %v635_v4  ;;  %v569_v55 = vpop.xlane.xlu1 %568  ;;  %v566_v23 = vpop.xlane.xlu0 %565 }
  0xf1   : > { %1055 = vst [vmem:[#allocation2 + $0xd8] sm:$0xff] %v2910_v42  ;;  %v803_v15 = vmul.f32 %v3932_v29, %v727_v5  ;;  %v804_v13 = vmul.f32 %v3934_v28, %v728_v6  ;;  %3179 = vrsqrt.f32 %v668_v56  ;;  %v638_v54 = vmul.f32 0.00390625, %v569_v55 }
  0xf2   : > { %v3168_v0 = vpop.eup %3167  ;;  %1053 = vst [vmem:[#allocation2 + $0xb0] sm:$0xff] %v2908_v1  ;;  %v799_v8 = vmul.f32 %v3932_v29, %v723_v61  ;;  %v800_v9 = vmul.f32 %v3934_v28, %v724_v45  ;;  %3181 = vrsqrt.f32 %v667_v53  ;;  %v637_v10 = vmul.f32 0.00390625, %v566_v23 }
  0xf3   : > { %v3170_v18 = vpop.eup %3169  ;;  %v2911_v11 = vpack.c.bf16 %v804_v13, %v803_v15  ;;  %v731_v43 = vmul.f32 %v3168_v0, %v3630_v25  ;;  %v732_v41 = vmul.f32 %v3168_v0, %v3632_v26  ;;  %v670_v12 = vadd.f32 1e-05, %v638_v54 }
  0xf4   : > { %v2909_v21 = vpack.c.bf16 %v800_v9, %v799_v8  ;;  %v729_v3 = vmul.f32 %v3170_v18, %v3637_v30  ;;  %v730_v4 = vmul.f32 %v3170_v18, %v3639_v31  ;;  %v669_v22 = vadd.f32 1e-05, %v637_v10  ;;  %v575_v42 = vpop.xlane.xlu1 %574  ;;  %v572_v5 = vpop.xlane.xlu0 %571 }
  0xf5   : > { %1056 = vst [vmem:[#allocation2 + $0x18] sm:$0xff] %v2911_v11  ;;  %v807_v6 = vmul.f32 %v3932_v29, %v731_v43  ;;  %v808_v56 = vmul.f32 %v3934_v28, %v732_v41  ;;  %3183 = vrsqrt.f32 %v670_v12  ;;  %v640_v1 = vmul.f32 0.00390625, %v575_v42 }
  0xf6   : > { %v3172_v61 = vpop.eup %3171  ;;  %1054 = vst [vmem:[#allocation2] sm:$0xff] %v2909_v21  ;;  %v805_v25 = vmul.f32 %v3932_v29, %v729_v3  ;;  %v806_v26 = vmul.f32 %v3934_v28, %v730_v4  ;;  %3185 = vrsqrt.f32 %v669_v22  ;;  %v639_v30 = vmul.f32 0.00390625, %v572_v5 }
  0xf7   : > { %v3174_v45 = vpop.eup %3173  ;;  %v2913_v31 = vpack.c.bf16 %v808_v56, %v807_v6  ;;  %v735_v53 = vmul.f32 %v3172_v61, %v3648_v35  ;;  %v736_v55 = vmul.f32 %v3172_v61, %v3650_v36  ;;  %v672_v23 = vadd.f32 1e-05, %v640_v1 }
  0xf8   : > { %v2912_v15 = vpack.c.bf16 %v806_v26, %v805_v25  ;;  %v733_v13 = vmul.f32 %v3174_v45, %v3656_v39  ;;  %v734_v54 = vmul.f32 %v3174_v45, %v3658_v40  ;;  %v671_v0 = vadd.f32 1e-05, %v639_v30  ;;  %v581_v8 = vpop.xlane.xlu1 %580  ;;  %v578_v9 = vpop.xlane.xlu0 %577 }
  0xf9   : > { %1058 = vst [vmem:[#allocation2 + $0x68] sm:$0xff] %v2913_v31  ;;  %v811_v10 = vmul.f32 %v3932_v29, %v735_v53  ;;  %v812_v18 = vmul.f32 %v3934_v28, %v736_v55  ;;  %3187 = vrsqrt.f32 %v672_v23  ;;  %v642_v11 = vmul.f32 0.00390625, %v581_v8 }
  0xfa   : > { %v3176_v43 = vpop.eup %3175  ;;  %1057 = vst [vmem:[#allocation2 + $0x50] sm:$0xff] %v2912_v15  ;;  %v809_v35 = vmul.f32 %v3932_v29, %v733_v13  ;;  %v810_v36 = vmul.f32 %v3934_v28, %v734_v54  ;;  %3189 = vrsqrt.f32 %v671_v0  ;;  %v641_v39 = vmul.f32 0.00390625, %v578_v9 }
  0xfb   : > { %v3178_v41 = vpop.eup %3177  ;;  %v2915_v40 = vpack.c.bf16 %v812_v18, %v811_v10  ;;  %v739_v12 = vmul.f32 %v3176_v43, %v3667_v44  ;;  %v740_v21 = vmul.f32 %v3176_v43, %v3673_v49  ;;  %v674_v3 = vadd.f32 1e-05, %v642_v11 }
  0xfc   : > { %v2914_v4 = vpack.c.bf16 %v810_v36, %v809_v35  ;;  %v737_v22 = vmul.f32 %v3178_v41, %v3675_v50  ;;  %v738_v42 = vmul.f32 %v3178_v41, %v3677_v51  ;;  %v673_v5 = vadd.f32 1e-05, %v641_v39  ;;  %v587_v6 = vpop.xlane.xlu1 %586  ;;  %v584_v56 = vpop.xlane.xlu0 %583 }
  0xfd   : > { %1060 = vst [vmem:[#allocation2 + $0x48] sm:$0xff] %v2915_v40  ;;  %v815_v1 = vmul.f32 %v3932_v29, %v739_v12  ;;  %v816_v61 = vmul.f32 %v3934_v28, %v740_v21  ;;  %3191 = vrsqrt.f32 %v674_v3  ;;  %v644_v25 = vmul.f32 0.00390625, %v587_v6 }
  0xfe   : > { %v3180_v26 = vpop.eup %3179  ;;  %1059 = vst [vmem:[#allocation2 + $0x30] sm:$0xff] %v2914_v4  ;;  %v813_v44 = vmul.f32 %v3932_v29, %v737_v22  ;;  %v814_v49 = vmul.f32 %v3934_v28, %v738_v42  ;;  %3193 = vrsqrt.f32 %v673_v5  ;;  %v643_v50 = vmul.f32 0.00390625, %v584_v56 }
  0xff   : > { %v3182_v30 = vpop.eup %3181  ;;  %v2917_v51 = vpack.c.bf16 %v816_v61, %v815_v1  ;;  %v743_v45 = vmul.f32 %v3180_v26, %v3687_v57  ;;  %v744_v31 = vmul.f32 %v3180_v26, %v3689_v58  ;;  %v676_v53 = vadd.f32 1e-05, %v644_v25 }
 0x100   : > { %v2916_v55 = vpack.c.bf16 %v814_v49, %v813_v44  ;;  %v741_v23 = vmul.f32 %v3182_v30, %v3691_v59  ;;  %v742_v15 = vmul.f32 %v3182_v30, %v3693_v60  ;;  %v675_v13 = vadd.f32 1e-05, %v643_v50  ;;  %v593_v54 = vpop.xlane.xlu1 %592  ;;  %v590_v0 = vpop.xlane.xlu0 %589 }
 0x101   : > { %1062 = vst [vmem:[#allocation2 + $0x88] sm:$0xff] %v2917_v51  ;;  %v819_v8 = vmul.f32 %v3932_v29, %v743_v45  ;;  %v820_v9 = vmul.f32 %v3934_v28, %v744_v31  ;;  %3195 = vrsqrt.f32 %v676_v53  ;;  %v646_v10 = vmul.f32 0.00390625, %v593_v54 }
 0x102   : > { %v3184_v18 = vpop.eup %3183  ;;  %1061 = vst [vmem:[#allocation2 + $0x80] sm:$0xff] %v2916_v55  ;;  %v817_v57 = vmul.f32 %v3932_v29, %v741_v23  ;;  %v818_v58 = vmul.f32 %v3934_v28, %v742_v15  ;;  %3197 = vrsqrt.f32 %v675_v13  ;;  %v645_v59 = vmul.f32 0.00390625, %v590_v0 }
 0x103   : > { %v3186_v11 = vpop.eup %3185  ;;  %v2919_v60 = vpack.c.bf16 %v820_v9, %v819_v8  ;;  %v747_v43 = vmul.f32 %v3184_v18, %v3707_v2  ;;  %v748_v35 = vmul.f32 %v3184_v18, %v3709_v7  ;;  %v678_v36 = vadd.f32 1e-05, %v646_v10 }
 0x104   : > { %v2918_v39 = vpack.c.bf16 %v818_v58, %v817_v57  ;;  %v745_v41 = vmul.f32 %v3186_v11, %v3722_v19  ;;  %v746_v40 = vmul.f32 %v3186_v11, %v3724_v20  ;;  %v677_v12 = vadd.f32 1e-05, %v645_v59  ;;  %v599_v21 = vpop.xlane.xlu1 %598  ;;  %v596_v3 = vpop.xlane.xlu0 %595 }
 0x105   : > { %1064 = vst [vmem:[#allocation2 + $0xb8] sm:$0xff] %v2919_v60  ;;  %v823_v4 = vmul.f32 %v3932_v29, %v747_v43  ;;  %v824_v22 = vmul.f32 %v3934_v28, %v748_v35  ;;  %3199 = vrsqrt.f32 %v678_v36  ;;  %v648_v42 = vmul.f32 0.00390625, %v599_v21 }
 0x106   : > { %v3188_v5 = vpop.eup %3187  ;;  %1063 = vst [vmem:[#allocation2 + $0xe8] sm:$0xff] %v2918_v39  ;;  %v821_v2 = vmul.f32 %v3932_v29, %v745_v41  ;;  %v822_v7 = vmul.f32 %v3934_v28, %v746_v40  ;;  %3201 = vrsqrt.f32 %v677_v12  ;;  %v647_v19 = vmul.f32 0.00390625, %v596_v3 }
 0x107   : > { %v3190_v6 = vpop.eup %3189  ;;  %v2921_v20 = vpack.c.bf16 %v824_v22, %v823_v4  ;;  %v751_v56 = vmul.f32 %v3188_v5, %v3733_v24  ;;  %v752_v1 = vmul.f32 %v3188_v5, %v3735_v27  ;;  %v680_v61 = vadd.f32 1e-05, %v648_v42 }
 0x108   : > { %v2920_v25 = vpack.c.bf16 %v822_v7, %v821_v2  ;;  %v749_v26 = vmul.f32 %v3190_v6, %v3741_v34  ;;  %v750_v44 = vmul.f32 %v3190_v6, %v3743_v37  ;;  %v679_v49 = vadd.f32 1e-05, %v647_v19  ;;  %v605_v50 = vpop.xlane.xlu1 %604  ;;  %v602_v30 = vpop.xlane.xlu0 %601 }
 0x109   : > { %1066 = vst [vmem:[#allocation2 + $0xf0] sm:$0xff] %v2921_v20  ;;  %v827_v51 = vmul.f32 %v3932_v29, %v751_v56  ;;  %v828_v45 = vmul.f32 %v3934_v28, %v752_v1  ;;  %3203 = vrsqrt.f32 %v680_v61  ;;  %v650_v31 = vmul.f32 0.00390625, %v605_v50  ;;  %v4372_v56 = vld [vmem:[#allocation5_spill] sm:$0xff]  ;;  %v4373_v61 = vld [vmem:[#allocation6_spill] sm:$0xff] }
 0x10a   : > { %v3192_v53 = vpop.eup %3191  ;;  %1065 = vst [vmem:[#allocation2 + $0x60] sm:$0xff] %v2920_v25  ;;  %v825_v24 = vmul.f32 %v3932_v29, %v749_v26  ;;  %v826_v27 = vmul.f32 %v3934_v28, %v750_v44  ;;  %3205 = vrsqrt.f32 %v679_v49  ;;  %v649_v34 = vmul.f32 0.00390625, %v602_v30 }
 0x10b   : > { %v3194_v55 = vpop.eup %3193  ;;  %v2923_v37 = vpack.c.bf16 %v828_v45, %v827_v51  ;;  %v755_v23 = vmul.f32 %v3192_v53, %v3755_v46  ;;  %v756_v15 = vmul.f32 %v3192_v53, %v3757_v47  ;;  %v682_v13 = vadd.f32 1e-05, %v650_v31 }
 0x10c   : > { %v2922_v54 = vpack.c.bf16 %v826_v27, %v825_v24  ;;  %v753_v0 = vmul.f32 %v3194_v55, %v3759_v48  ;;  %v754_v8 = vmul.f32 %v3194_v55, %v3761_v52  ;;  %v681_v9 = vadd.f32 1e-05, %v649_v34  ;;  %v611_v10 = vpop.xlane.xlu1 %610  ;;  %v608_v18 = vpop.xlane.xlu0 %607  ;;  %v4374_v27 = vld [vmem:[#allocation7_spill] sm:$0xff]  ;;  %v4375_v55 = vld [vmem:[#allocation8_spill] sm:$0xff] }
 0x10d   : > { %1068 = vst [vmem:[#allocation2 + $0x78] sm:$0xff] %v2923_v37  ;;  %v831_v57 = vmul.f32 %v3932_v29, %v755_v23  ;;  %v832_v58 = vmul.f32 %v3934_v28, %v756_v15  ;;  %3207 = vrsqrt.f32 %v682_v13  ;;  %v652_v59 = vmul.f32 0.00390625, %v611_v10  ;;  %v4376_v13 = vld [vmem:[#allocation9_spill] sm:$0xff] }
 0x10e   : > { %v3196_v11 = vpop.eup %3195  ;;  %1067 = vst [vmem:[#allocation2 + $0x8] sm:$0xff] %v2922_v54  ;;  %v829_v46 = vmul.f32 %v3932_v29, %v753_v0  ;;  %v830_v47 = vmul.f32 %v3934_v28, %v754_v8  ;;  %3209 = vrsqrt.f32 %v681_v9  ;;  %v651_v48 = vmul.f32 0.00390625, %v608_v18  ;;  %v4377_v0 = vld [vmem:[#allocation10_spill] sm:$0xff] }
 0x10f   : > { %v3198_v60 = vpop.eup %3197  ;;  %v2925_v52 = vpack.c.bf16 %v832_v58, %v831_v57  ;;  %v759_v43 = vmul.f32 %v3196_v11, %v3773_v62  ;;  %v760_v35 = vmul.f32 %v3196_v11, %v3775_v63  ;;  %v684_v36 = vadd.f32 1e-05, %v652_v59 }
 0x110   : > { %v2924_v39 = vpack.c.bf16 %v830_v47, %v829_v46  ;;  %v757_v41 = vmul.f32 %v3198_v60, %v3785_v16  ;;  %v758_v40 = vmul.f32 %v3198_v60, %v3787_v17  ;;  %v683_v12 = vadd.f32 1e-05, %v651_v48  ;;  %v617_v21 = vpop.xlane.xlu1 %616  ;;  %v614_v3 = vpop.xlane.xlu0 %613  ;;  %v4378_v47 = vld [vmem:[#allocation11_spill] sm:$0xff]  ;;  %v4379_v60 = vld [vmem:[#allocation12_spill] sm:$0xff] }
 0x111   : > { %1070 = vst [vmem:[#allocation2 + $0x58] sm:$0xff] %v2925_v52  ;;  %v835_v4 = vmul.f32 %v3932_v29, %v759_v43  ;;  %v836_v22 = vmul.f32 %v3934_v28, %v760_v35  ;;  %3211 = vrsqrt.f32 %v684_v36  ;;  %v654_v42 = vmul.f32 0.00390625, %v617_v21  ;;  %v4380_v35 = vld [vmem:[#allocation13_spill] sm:$0xff] }
 0x112   : > { %v3200_v5 = vpop.eup %3199  ;;  %1069 = vst [vmem:[#allocation2 + $0x38] sm:$0xff] %v2924_v39  ;;  %v833_v62 = vmul.f32 %v3932_v29, %v757_v41  ;;  %v834_v63 = vmul.f32 %v3934_v28, %v758_v40  ;;  %3213 = vrsqrt.f32 %v683_v12  ;;  %v653_v16 = vmul.f32 0.00390625, %v614_v3  ;;  %v4381_v39 = vld [vmem:[#allocation14_spill] sm:$0xff] }
 0x113   : > { %v3202_v2 = vpop.eup %3201  ;;  %v2927_v17 = vpack.c.bf16 %v836_v22, %v835_v4  ;;  %v763_v7 = vmul.f32 %v3200_v5, %v3799_v32  ;;  %v764_v19 = vmul.f32 %v3200_v5, %v3801_v33  ;;  %v686_v6 = vadd.f32 1e-05, %v654_v42  ;;  %v4382_v5 = vld [vmem:[#allocation15_spill] sm:$0xff] }
 0x114   : > { %v2926_v20 = vpack.c.bf16 %v834_v63, %v833_v62  ;;  %v761_v1 = vmul.f32 %v3202_v2, %v4372_v56  ;;  %v762_v25 = vmul.f32 %v3202_v2, %v4373_v61  ;;  %v685_v26 = vadd.f32 1e-05, %v653_v16  ;;  %v623_v44 = vpop.xlane.xlu1 %622  ;;  %v620_v49 = vpop.xlane.xlu0 %619  ;;  %v4383_v63 = vld [vmem:[#allocation16_spill] sm:$0xff] }
 0x115   : > { %1072 = vst [vmem:[#allocation2 + $0xc8] sm:$0xff] %v2927_v17  ;;  %v839_v50 = vmul.f32 %v3932_v29, %v763_v7  ;;  %v840_v30 = vmul.f32 %v3934_v28, %v764_v19  ;;  %3215 = vrsqrt.f32 %v686_v6  ;;  %v656_v51 = vmul.f32 0.00390625, %v623_v44  ;;  %v4384_v17 = vld [vmem:[#allocation17_spill] sm:$0xff] }
 0x116   : > { %v3204_v45 = vpop.eup %3203  ;;  %1071 = vst [vmem:[#allocation2 + $0x40] sm:$0xff] %v2926_v20  ;;  %v837_v32 = vmul.f32 %v3932_v29, %v761_v1  ;;  %v838_v33 = vmul.f32 %v3934_v28, %v762_v25  ;;  %3217 = vrsqrt.f32 %v685_v26  ;;  %v655_v31 = vmul.f32 0.00390625, %v620_v49  ;;  %v4385_v49 = vld [vmem:[#allocation18_spill] sm:$0xff] }
 0x117   : > { %v3206_v53 = vpop.eup %3205  ;;  %v2929_v24 = vpack.c.bf16 %v840_v30, %v839_v50  ;;  %v767_v34 = vmul.f32 %v3204_v45, %v4374_v27  ;;  %v768_v37 = vmul.f32 %v3204_v45, %v4375_v55  ;;  %v688_v23 = vadd.f32 1e-05, %v656_v51  ;;  %v4386_v51 = vld [vmem:[#allocation19_spill] sm:$0xff]  ;;  %v4387_v45 = vld [vmem:[#allocation20_spill] sm:$0xff]  ;;  %v4388_v55 = vld [vmem:[#allocation21_spill] sm:$0xff] }
 0x118   : > { %v2928_v15 = vpack.c.bf16 %v838_v33, %v837_v32  ;;  %v765_v54 = vmul.f32 %v3206_v53, %v4376_v13  ;;  %v766_v8 = vmul.f32 %v3206_v53, %v4377_v0  ;;  %v687_v9 = vadd.f32 1e-05, %v655_v31 }
 0x119   : > { %1074 = vst [vmem:[#allocation2 + $0x90] sm:$0xff] %v2929_v24  ;;  %v843_v10 = vmul.f32 %v3932_v29, %v767_v34  ;;  %v844_v18 = vmul.f32 %v3934_v28, %v768_v37  ;;  %3219 = vrsqrt.f32 %v688_v23  ;;  %v4389_v23 = vld [vmem:[#allocation22_spill] sm:$0xff] }
 0x11a   : > { %v3208_v57 = vpop.eup %3207  ;;  %1073 = vst [vmem:[#allocation2 + $0xe0] sm:$0xff] %v2928_v15  ;;  %v841_v58 = vmul.f32 %v3932_v29, %v765_v54  ;;  %v842_v59 = vmul.f32 %v3934_v28, %v766_v8  ;;  %3221 = vrsqrt.f32 %v687_v9  ;;  %v4390_v54 = vld [vmem:[#allocation23_spill] sm:$0xff]  ;;  %v4391_v8 = vld [vmem:[#allocation24_spill] sm:$0xff] }
 0x11b   : > { %v3210_v11 = vpop.eup %3209  ;;  %v2931_v46 = vpack.c.bf16 %v844_v18, %v843_v10  ;;  %v771_v48 = vmul.f32 %v3208_v57, %v4378_v47  ;;  %v772_v52 = vmul.f32 %v3208_v57, %v4379_v60 }
 0x11c   : > { %v2930_v43 = vpack.c.bf16 %v842_v59, %v841_v58  ;;  %v769_v36 = vmul.f32 %v3210_v11, %v4380_v35  ;;  %v770_v41 = vmul.f32 %v3210_v11, %v4381_v39 }
 0x11d   : > { %1076 = vst [vmem:[#allocation2 + $0xc0] sm:$0xff] %v2931_v46  ;;  %v847_v40 = vmul.f32 %v3932_v29, %v771_v48  ;;  %v848_v12 = vmul.f32 %v3934_v28, %v772_v52 }
 0x11e   : > { %v3212_v21 = vpop.eup %3211  ;;  %1075 = vst [vmem:[#allocation2 + $0x70] sm:$0xff] %v2930_v43  ;;  %v845_v3 = vmul.f32 %v3932_v29, %v769_v36  ;;  %v846_v4 = vmul.f32 %v3934_v28, %v770_v41 }
 0x11f   : > { %v3214_v22 = vpop.eup %3213  ;;  %v2933_v42 = vpack.c.bf16 %v848_v12, %v847_v40  ;;  %v775_v62 = vmul.f32 %v3212_v21, %v4382_v5  ;;  %v776_v16 = vmul.f32 %v3212_v21, %v4383_v63 }
 0x120   : > { %v2932_v2 = vpack.c.bf16 %v846_v4, %v845_v3  ;;  %v773_v7 = vmul.f32 %v3214_v22, %v4384_v17  ;;  %v774_v19 = vmul.f32 %v3214_v22, %v3869_v14 }
 0x121   : > { %1078 = vst [vmem:[#allocation2 + $0xd0] sm:$0xff] %v2933_v42  ;;  %v851_v6 = vmul.f32 %v3932_v29, %v775_v62  ;;  %v852_v20 = vmul.f32 %v3934_v28, %v776_v16 }
 0x122   : > { %v3216_v56 = vpop.eup %3215  ;;  %1077 = vst [vmem:[#allocation2 + $0xa8] sm:$0xff] %v2932_v2  ;;  %v849_v1 = vmul.f32 %v3932_v29, %v773_v7  ;;  %v850_v61 = vmul.f32 %v3934_v28, %v774_v19 }
 0x123   : > { %v3218_v25 = vpop.eup %3217  ;;  %v2935_v26 = vpack.c.bf16 %v852_v20, %v851_v6  ;;  %v779_v44 = vmul.f32 %v3216_v56, %v3887_v38  ;;  %v780_v50 = vmul.f32 %v3216_v56, %v4385_v49 }
 0x124   : > { %v2934_v30 = vpack.c.bf16 %v850_v61, %v849_v1  ;;  %v777_v14 = vmul.f32 %v3218_v25, %v4386_v51  ;;  %v778_v32 = vmul.f32 %v3218_v25, %v4387_v45 }
 0x125   : > { %1080 = vst [vmem:[#allocation2 + $0x28] sm:$0xff] %v2935_v26  ;;  %v855_v33 = vmul.f32 %v3932_v29, %v779_v44  ;;  %v856_v31 = vmul.f32 %v3934_v28, %v780_v50 }
 0x126   : > { %v3220_v53 = vpop.eup %3219  ;;  %1079 = vst [vmem:[#allocation2 + $0x10] sm:$0xff] %v2934_v30  ;;  %v853_v24 = vmul.f32 %v3932_v29, %v777_v14  ;;  %v854_v27 = vmul.f32 %v3934_v28, %v778_v32 }
 0x127   : > { %v3222_v34 = vpop.eup %3221  ;;  %v2937_v38 = vpack.c.bf16 %v856_v31, %v855_v33  ;;  %v783_v37 = vmul.f32 %v3220_v53, %v4388_v55  ;;  %v784_v15 = vmul.f32 %v3220_v53, %v4389_v23 }
 0x128   : > { %v2936_v13 = vpack.c.bf16 %v854_v27, %v853_v24  ;;  %v781_v0 = vmul.f32 %v3222_v34, %v4390_v54  ;;  %v782_v9 = vmul.f32 %v3222_v34, %v4391_v8 }
 0x129   : > { %1082 = vst [vmem:[#allocation2 + $0xf8] sm:$0xff] %v2937_v38  ;;  %v859_v10 = vmul.f32 %v3932_v29, %v783_v37  ;;  %v860_v18 = vmul.f32 %v3934_v28, %v784_v15 }
 0x12a   : > { %1081 = vst [vmem:[#allocation2 + $0xa0] sm:$0xff] %v2936_v13  ;;  %v857_v57 = vmul.f32 %v3932_v29, %v781_v0  ;;  %v858_v58 = vmul.f32 %v3934_v28, %v782_v9 }
 0x12b   : > { %v2939_v59 = vpack.c.bf16 %v860_v18, %v859_v10 }
 0x12c   : > { %v2938_v11 = vpack.c.bf16 %v858_v58, %v857_v57 }
 0x12d   : > { %1084 = vst [vmem:[#allocation2 + $0x98] sm:$0xff] %v2939_v59 }
 0x12e   : > { %1083 = vst [vmem:[#allocation2 + $0x20] sm:$0xff] %v2938_v11 }
 0x12f PF: > { %v3223_v46 = vld [vmem:[%s3572_s5 + $0xac] ss:$12 sps:$4 sm:$0xff]   ;;  %v3225_v47 = vld [vmem:[%s3572_s5 + $0xa8] ss:$12 sps:$4 sm:$0xff]   ;;  %v3228_v28 = vld [vmem:[%s3572_s5 + $0x90] ss:$12 sps:$4 sm:$0xff]  }
 0x130   : > { %1597 = vmatprep.subr.bf16.mxu0 %v3223_v46  ;;  %v3226_v29 = vld [vmem:[%s3572_s5 + $0x94] ss:$12 sps:$4 sm:$0xff]   ;;  %v3229_v48 = vld [vmem:[%s3572_s5 + $0x7c] ss:$12 sps:$4 sm:$0xff]   ;;  %v3231_v60 = vld [vmem:[%s3572_s5 + $0x78] ss:$12 sps:$4 sm:$0xff]  }
 0x131   : > { %1598 = vmatpush1.bf16.msra.mxu0 %v3225_v47  ;;  %v3232_v52 = vld [vmem:[%s3572_s5 + $0x64] ss:$12 sps:$4 sm:$0xff]   ;;  %v3234_v35 = vld [vmem:[%s3572_s5 + $0x60] ss:$12 sps:$4 sm:$0xff]   ;;  %v3237_v12 = vld [vmem:[%s3572_s5 + $0x48] ss:$12 sps:$4 sm:$0xff]  }
 0x132   : > { %1599 = vmatprep.subr.bf16.mxu0 %v3226_v29  ;;  %v3243_v43 = vld [vmem:[%s3572_s5 + $0x170] ss:$12 sps:$4 sm:$0xff]   ;;  %v3235_v39 = vld [vmem:[%s3572_s5 + $0x4c] ss:$12 sps:$4 sm:$0xff]   ;;  %v3238_v21 = vld [vmem:[%s3572_s5 + $0x34] ss:$12 sps:$4 sm:$0xff]  }
 0x133   : > { %3005 = vmatprep.subr.bf16.mxu1 %v3243_v43  ;;  %v3245_v36 = vld [vmem:[%s3572_s5 + $0xb0] ss:$12 sps:$4 sm:$0xff]   ;;  %v3248_v41 = vld [vmem:[%s3572_s5 + $0x158] ss:$12 sps:$4 sm:$0xff]   ;;  %v3253_v3 = vld [vmem:[%s3572_s5 + $0x140] ss:$12 sps:$4 sm:$0xff]  }
 0x134   : > { %3006 = vmatpush3.bf16.msra.mxu1 %v3245_v36  ;;  %v3250_v40 = vld [vmem:[%s3572_s5 + $0x98] ss:$12 sps:$4 sm:$0xff]   ;;  %v3255_v4 = vld [vmem:[%s3572_s5 + $0x80] ss:$12 sps:$4 sm:$0xff]   ;;  %v3240_v22 = vld [vmem:[%s3572_s5 + $0x30] ss:$12 sps:$4 sm:$0xff]  }
 0x135   : > { %1600 = vmatpush1.bf16.msra.mxu0 %v3228_v28  ;;  %3007 = vmatprep.subr.bf16.mxu1 %v3248_v41  ;;  %v3258_v42 = vld [vmem:[%s3572_s5 + $0x128] ss:$12 sps:$4 sm:$0xff]   ;;  %v3244_v63 = vld [vmem:[%s3572_s5 + $0x18] ss:$12 sps:$4 sm:$0xff]   ;;  %v3263_v16 = vld [vmem:[%s3572_s5 + $0x110] ss:$12 sps:$4 sm:$0xff]  }
 0x136   : > { %1601 = vmatprep.subr.bf16.mxu0 %v3229_v48  ;;  %v3241_v5 = vld [vmem:[%s3572_s5 + $0x1c] ss:$12 sps:$4 sm:$0xff]   ;;  %v3246_v2 = vld [vmem:[%s3572_s5 + $0x4] ss:$12 sps:$4 sm:$0xff]   ;;  %v3249_v19 = vld [vmem:[%s3572_s5] ss:$12 sps:$4 sm:$0xff]  }
 0x137   : > { %v3260_v62 = vld [vmem:[%s3572_s5 + $0x68] ss:$12 sps:$4 sm:$0xff]   ;;  %v3265_v17 = vld [vmem:[%s3572_s5 + $0x50] ss:$12 sps:$4 sm:$0xff]   ;;  %v3268_v7 = vld [vmem:[%s3572_s5 + $0xf8] ss:$12 sps:$4 sm:$0xff]  }
 0x138   : > { %3008 = vmatpush3.bf16.msra.mxu1 %v3250_v40  ;;  %v3251_v6 = vld [vmem:[%s3572_s5 + $0x16c] ss:$12 sps:$4 sm:$0xff]   ;;  %v3254_v1 = vld [vmem:[%s3572_s5 + $0x168] ss:$12 sps:$4 sm:$0xff]   ;;  %v3259_v44 = vld [vmem:[%s3572_s5 + $0x150] ss:$12 sps:$4 sm:$0xff]  }
 0x139   : > { %1602 = vmatpush1.bf16.msra.mxu0 %v3231_v60  ;;  %3009 = vmatprep.subr.bf16.mxu1 %v3253_v3  ;;  %v3270_v20 = vld [vmem:[%s3572_s5 + $0x38] ss:$12 sps:$4 sm:$0xff]   ;;  %v3273_v56 = vld [vmem:[%s3572_s5 + $0xe0] ss:$12 sps:$4 sm:$0xff]   ;;  %v3278_v26 = vld [vmem:[%s3572_s5 + $0xc8] ss:$12 sps:$4 sm:$0xff]  }
 0x13a   : > { %1603 = vmatprep.subr.bf16.mxu0 %v3232_v52  ;;  %v3256_v61 = vld [vmem:[%s3572_s5 + $0x154] ss:$12 sps:$4 sm:$0xff]   ;;  %v3261_v50 = vld [vmem:[%s3572_s5 + $0x13c] ss:$12 sps:$4 sm:$0xff]   ;;  %v3264_v51 = vld [vmem:[%s3572_s5 + $0x138] ss:$12 sps:$4 sm:$0xff]  }
 0x13b   : > { %v3275_v25 = vld [vmem:[%s3572_s5 + $0x20] ss:$12 sps:$4 sm:$0xff]   ;;  %v3283_v49 = vld [vmem:[#allocation2 + $0xb4] ss:$-176 sps:$4 sm:$0xff]   ;;  %v1087_v14 = vld [vmem:[#allocation2 + $0xd8] sm:$0xff] }
 0x13c   : > { %3010 = vmatpush3.bf16.msra.mxu1 %v3255_v4  ;;  %v3280_v30 = vld [vmem:[%s3572_s5 + $0x8] ss:$12 sps:$4 sm:$0xff]   ;;  %1822 = vmatprep.mubr.bf16.mxu1 %v3283_v49  ;;  %v1088_v45 = vld [vmem:[#allocation2 + $0x18] sm:$0xff]  ;;  %v3266_v32 = vld [vmem:[%s3572_s5 + $0x124] ss:$12 sps:$4 sm:$0xff]  }
 0x13d   : > { %1604 = vmatpush1.bf16.msra.mxu0 %v3234_v35  ;;  %3011 = vmatprep.subr.bf16.mxu1 %v3258_v42  ;;  %v3281_v33 = vld [vmem:[#allocation2 + $0xb0] ss:$-176 sps:$4 sm:$0xff]   ;;  %v2699_v31 = vcombine.high %v1087_v14, %v1088_v45  ;;  %v3271_v24 = vld [vmem:[%s3572_s5 + $0x10c] ss:$12 sps:$4 sm:$0xff]   ;;  %v3274_v27 = vld [vmem:[%s3572_s5 + $0x108] ss:$12 sps:$4 sm:$0xff]   ;;  %v2698_v38 = vcombine.low %v1087_v14, %v1088_v45 }
 0x13e   : > { %1605 = vmatprep.subr.bf16.mxu0 %v3235_v39  ;;  %1629 = vmatprep.mubr.bf16.mxu0 %v3283_v49  ;;  %v3269_v53 = vld [vmem:[%s3572_s5 + $0x120] ss:$12 sps:$4 sm:$0xff]   ;;  %v3279_v37 = vld [vmem:[%s3572_s5 + $0xf0] ss:$12 sps:$4 sm:$0xff]   ;;  %v3286_v15 = vld [vmem:[%s3572_s5 + $0xd8] ss:$12 sps:$4 sm:$0xff]  }
 0x13f   : > { %v3276_v34 = vld [vmem:[%s3572_s5 + $0xf4] ss:$12 sps:$4 sm:$0xff]   ;;  %v3284_v23 = vld [vmem:[%s3572_s5 + $0xdc] ss:$12 sps:$4 sm:$0xff]   ;;  %v3287_v13 = vld [vmem:[%s3572_s5 + $0xc4] ss:$12 sps:$4 sm:$0xff]  }
 0x140   : > { %3012 = vmatpush3.bf16.msra.mxu1 %v3260_v62  ;;  %v3290_v55 = vld [vmem:[#allocation2 + $0x54] ss:$24 sps:$4 sm:$0xff]   ;;  %v3292_v54 = vld [vmem:[#allocation2 + $0x50] ss:$24 sps:$4 sm:$0xff]   ;;  %v1101_v47 = vld [vmem:[#allocation2 + $0x38] sm:$0xff] }
 0x141   : > { %1606 = vmatpush1.bf16.msra.mxu0 %v3237_v12  ;;  %3013 = vmatprep.subr.bf16.mxu1 %v3263_v16  ;;  %v3293_v0 = vld [vmem:[#allocation2 + $0x34] ss:$24 sps:$4 sm:$0xff]   ;;  %v3295_v9 = vld [vmem:[#allocation2 + $0x30] ss:$24 sps:$4 sm:$0xff]   ;;  %v1102_v29 = vld [vmem:[#allocation2 + $0x58] sm:$0xff] }
 0x142   : > { %1607 = vmatprep.subr.bf16.mxu0 %v3238_v21  ;;  %v3289_v8 = vld [vmem:[%s3572_s5 + $0xc0] ss:$12 sps:$4 sm:$0xff]   ;;  %v3301_v58 = vld [vmem:[#allocation2 + $0xe8] ss:$-48 sps:$4 sm:$0xff]   ;;  %v3302_v59 = vld [vmem:[#allocation2 + $0x64] ss:$144 sps:$4 sm:$0xff]   ;;  %v2713_v48 = vcombine.high %v1101_v47, %v1102_v29  ;;  %v2712_v60 = vcombine.low %v1101_v47, %v1102_v29 }
 0x143   : > { %v3296_v10 = vld [vmem:[#allocation2 + $0x84] ss:$8 sps:$4 sm:$0xff]   ;;  %v3298_v18 = vld [vmem:[#allocation2 + $0x80] ss:$8 sps:$4 sm:$0xff]   ;;  %s3004_s5 = smul.u32 (%p3424_p6), 12, %s3359_s14 }
 0x144   : > { %3014 = vmatpush3.bf16.msra.mxu1 %v3265_v17  ;;  %v3299_v57 = vld [vmem:[#allocation2 + $0xec] ss:$-48 sps:$4 sm:$0xff]   ;;  %v3304_v11 = vld [vmem:[#allocation2 + $0x60] ss:$144 sps:$4 sm:$0xff]   ;;  %v3307_v28 = vld [vmem:[#allocation2 + $0x8] ss:$112 sps:$4 sm:$0xff]  }
 0x145   : > { %1608 = vmatpush1.bf16.msra.mxu0 %v3240_v22  ;;  %3015 = vmatprep.subr.bf16.mxu1 %v3268_v7  ;;  %v3305_v46 = vld [vmem:[#allocation2 + $0xc] ss:$112 sps:$4 sm:$0xff]   ;;  %v3310_v43 = vld [vmem:[#allocation2 + $0x40] ss:$136 sps:$4 sm:$0xff]   ;;  %v3311_v35 = vld [vmem:[#allocation2 + $0xe4] ss:$-80 sps:$4 sm:$0xff]   ;;  %s4188_s27 = scalar_lea.vmem (%p3424_p6), %s4330_s3, %s3004_s5 }
 0x146   : > { %1609 = vmatprep.subr.bf16.mxu0 %v3241_v5  ;;  %v3308_v52 = vld [vmem:[#allocation2 + $0x44] ss:$136 sps:$4 sm:$0xff]   ;;  %v3313_v36 = vld [vmem:[#allocation2 + $0xe0] ss:$-80 sps:$4 sm:$0xff]  }
 0x147   : > { %v3314_v39 = vld [vmem:[#allocation2 + $0x74] ss:$80 sps:$4 sm:$0xff]   ;;  %v3316_v41 = vld [vmem:[#allocation2 + $0x70] ss:$80 sps:$4 sm:$0xff]  }
 0x148   : > { %3016 = vmatpush3.bf16.msra.mxu1 %v3270_v20  ;;  %v3317_v40 = vld [vmem:[#allocation2 + $0xac] ss:$40 sps:$4 sm:$0xff]   ;;  %v3319_v12 = vld [vmem:[#allocation2 + $0xa8] ss:$40 sps:$4 sm:$0xff]   ;;  %v3323_v4 = vld [vmem:[#allocation2 + $0xa4] ss:$88 sps:$4 sm:$0xff]  }
 0x149   : > { %1610 = vmatpush1.bf16.msra.mxu0 %v3244_v63  ;;  %3017 = vmatprep.subr.bf16.mxu1 %v3273_v56  ;;  %v3320_v21 = vld [vmem:[#allocation2 + $0x14] ss:$24 sps:$4 sm:$0xff]   ;;  %v3322_v3 = vld [vmem:[#allocation2 + $0x10] ss:$24 sps:$4 sm:$0xff]   ;;  %v3325_v22 = vld [vmem:[#allocation2 + $0xa0] ss:$88 sps:$4 sm:$0xff]  }
 0x14a   : > { %1611 = vmatprep.subr.bf16.mxu0 %v3246_v2  ;;  %v3326_v42 = vld [vmem:[#allocation2 + $0x24] ss:$120 sps:$4 sm:$0xff]   ;;  %v3328_v5 = vld [vmem:[#allocation2 + $0x20] ss:$120 sps:$4 sm:$0xff]  }
 0x14c   : > { %3018 = vmatpush3.bf16.msra.mxu1 %v3275_v25 }
 0x14d   : > { %1612 = vmatpush1.bf16.msra.mxu0 %v3249_v19  ;;  %3019 = vmatprep.subr.bf16.mxu1 %v3278_v26 }
 0x14e   : > { %1613 = vmatprep.subr.bf16.mxu0 %v3251_v6 }
 0x150   : > { %3020 = vmatpush3.bf16.msra.mxu1 %v3280_v30 }
 0x151   : > { %1614 = vmatpush2.bf16.msra.mxu0 %v3254_v1 }
 0x152   : > { %1615 = vmatprep.subr.bf16.mxu0 %v3256_v61 }
 0x153   : > { %1823 = vmatmul.mubr.bf16.vlgmr.msra.gmra.mxu1 %v3281_v33 }
 0x154   : > { %1830 = vmatprep.mubr.bf16.mxu1 %v2699_v31 }
 0x155   : > { %1616 = vmatpush2.bf16.msra.mxu0 %v3259_v44 }
 0x156   : > { %1617 = vmatprep.subr.bf16.mxu0 %v3261_v50 }
 0x159   : > { %1618 = vmatpush2.bf16.msra.mxu0 %v3264_v51 }
 0x15a   : > { %1619 = vmatprep.subr.bf16.mxu0 %v3266_v32 }
 0x15b   : > { %1831 = vmatmul.mubr.bf16.gmra.mxu1 %v2698_v38 }
 0x15c   : > { %1838 = vmatprep.mubr.bf16.mxu1 %v3290_v55 }
 0x15d   : > { %1620 = vmatpush2.bf16.msra.mxu0 %v3269_v53 }
 0x15e   : > { %1621 = vmatprep.subr.bf16.mxu0 %v3271_v24 }
 0x161   : > { %1622 = vmatpush2.bf16.msra.mxu0 %v3274_v27 }
 0x162   : > { %1623 = vmatprep.subr.bf16.mxu0 %v3276_v34 }
 0x163   : > { %1839 = vmatmul.mubr.bf16.gmra.mxu1 %v3292_v54 }
 0x164   : > { %1846 = vmatprep.mubr.bf16.mxu1 %v3293_v0 }
 0x165   : > { %1624 = vmatpush2.bf16.msra.mxu0 %v3279_v37 }
 0x166   : > { %1625 = vmatprep.subr.bf16.mxu0 %v3284_v23 }
 0x169   : > { %1626 = vmatpush2.bf16.msra.mxu0 %v3286_v15 }
 0x16a   : > { %1627 = vmatprep.subr.bf16.mxu0 %v3287_v13 }
 0x16b   : > { %1847 = vmatmul.mubr.bf16.gmra.mxu1 %v3295_v9 }
 0x16c   : > { %1854 = vmatprep.mubr.bf16.mxu1 %v3296_v10 }
 0x16d   : > { %1628 = vmatpush2.bf16.msra.mxu0 %v3289_v8 }
 0x170   : > { %1630 = vmatmul.mubr.bf16.vlgmr.msra.gmra.mxu0 %v3281_v33 }
 0x171   : > { %1639 = vmatprep.mubr.bf16.mxu0 %v2699_v31 }
 0x173   : > { %1855 = vmatmul.mubr.bf16.gmra.mxu1 %v3298_v18 }
 0x174   : > { %1862 = vmatprep.mubr.bf16.mxu1 %v3299_v57 }
 0x178   : > { %1640 = vmatmul.mubr.bf16.gmra.mxu0 %v2698_v38 }
 0x179   : > { %1649 = vmatprep.mubr.bf16.mxu0 %v3290_v55 }
 0x17b   : > { %1863 = vmatmul.mubr.bf16.gmra.mxu1 %v3301_v58 }
 0x17c   : > { %1870 = vmatprep.mubr.bf16.mxu1 %v3302_v59 }
 0x180   : > { %1650 = vmatmul.mubr.bf16.gmra.mxu0 %v3292_v54 }
 0x181   : > { %1659 = vmatprep.mubr.bf16.mxu0 %v3293_v0 }
 0x183   : > { %1871 = vmatmul.mubr.bf16.gmra.mxu1 %v3304_v11 }
 0x184   : > { %1878 = vmatprep.mubr.bf16.mxu1 %v3305_v46 }
 0x188   : > { %1660 = vmatmul.mubr.bf16.gmra.mxu0 %v3295_v9 }
 0x189   : > { %1669 = vmatprep.mubr.bf16.mxu0 %v3296_v10 }
 0x18b   : > { %1879 = vmatmul.mubr.bf16.gmra.mxu1 %v3307_v28 }
 0x18c   : > { %1886 = vmatprep.mubr.bf16.mxu1 %v2713_v48 }
 0x190   : > { %1670 = vmatmul.mubr.bf16.gmra.mxu0 %v3298_v18 }
 0x191   : > { %1679 = vmatprep.mubr.bf16.mxu0 %v3299_v57 }
 0x193   : > { %1887 = vmatmul.mubr.bf16.gmra.mxu1 %v2712_v60 }
 0x194   : > { %1894 = vmatprep.mubr.bf16.mxu1 %v3308_v52 }
 0x198   : > { %1680 = vmatmul.mubr.bf16.gmra.mxu0 %v3301_v58 }
 0x199   : > { %1689 = vmatprep.mubr.bf16.mxu0 %v3302_v59 }
 0x19b   : > { %1895 = vmatmul.mubr.bf16.gmra.mxu1 %v3310_v43 }
 0x19c   : > { %1902 = vmatprep.mubr.bf16.mxu1 %v3311_v35 }
 0x1a0   : > { %1690 = vmatmul.mubr.bf16.gmra.mxu0 %v3304_v11 }
 0x1a1   : > { %1699 = vmatprep.mubr.bf16.mxu0 %v3305_v46 }
 0x1a3   : > { %1903 = vmatmul.mubr.bf16.gmra.mxu1 %v3313_v36 }
 0x1a4   : > { %1910 = vmatprep.mubr.bf16.mxu1 %v3314_v39 }
 0x1a8   : > { %1700 = vmatmul.mubr.bf16.gmra.mxu0 %v3307_v28 }
 0x1a9   : > { %1709 = vmatprep.mubr.bf16.mxu0 %v2713_v48 }
 0x1ab   : > { %1911 = vmatmul.mubr.bf16.gmra.mxu1 %v3316_v41 }
 0x1ac   : > { %1918 = vmatprep.mubr.bf16.mxu1 %v3317_v40 }
 0x1b0   : > { %1710 = vmatmul.mubr.bf16.gmra.mxu0 %v2712_v60 }
 0x1b1   : > { %1719 = vmatprep.mubr.bf16.mxu0 %v3308_v52 }
 0x1b3   : > { %1919 = vmatmul.mubr.bf16.gmra.mxu1 %v3319_v12 }
 0x1b4   : > { %1926 = vmatprep.mubr.bf16.mxu1 %v3320_v21 }
 0x1b8   : > { %1720 = vmatmul.mubr.bf16.gmra.mxu0 %v3310_v43 }
 0x1b9   : > { %1729 = vmatprep.mubr.bf16.mxu0 %v3311_v35 }
 0x1bb   : > { %1927 = vmatmul.mubr.bf16.gmra.mxu1 %v3322_v3 }
 0x1bc   : > { %1934 = vmatprep.mubr.bf16.mxu1 %v3323_v4 }
 0x1c0   : > { %1730 = vmatmul.mubr.bf16.gmra.mxu0 %v3313_v36 }
 0x1c1   : > { %1739 = vmatprep.mubr.bf16.mxu0 %v3314_v39 }
 0x1c3   : > { %1935 = vmatmul.mubr.bf16.gmra.mxu1 %v3325_v22 }
 0x1c4   : > { %1942 = vmatprep.mubr.bf16.mxu1 %v3326_v42 }
 0x1c8   : > { %1740 = vmatmul.mubr.bf16.gmra.mxu0 %v3316_v41 }
 0x1c9   : > { %1749 = vmatprep.mubr.bf16.mxu0 %v3317_v40 }
 0x1cb   : > { %1943 = vmatmul.mubr.bf16.gmra.mxu1 %v3328_v5 }
 0x1d0   : > { %1750 = vmatmul.mubr.bf16.gmra.mxu0 %v3319_v12 }
 0x1d1   : > { %1759 = vmatprep.mubr.bf16.mxu0 %v3320_v21 }
 0x1d8   : > { %1760 = vmatmul.mubr.bf16.gmra.mxu0 %v3322_v3 }
 0x1d9   : > { %1769 = vmatprep.mubr.bf16.mxu0 %v3323_v4 }
 0x1e0   : > { %1770 = vmatmul.mubr.bf16.gmra.mxu0 %v3325_v22 }
 0x1e1   : > { %1779 = vmatprep.mubr.bf16.mxu0 %v3326_v42 }
 0x1e8   : > { %1780 = vmatmul.mubr.bf16.gmra.mxu0 %v3328_v5 }
 0x213   : > { %v3021_v62 = vpop.f32.mrf.mxu1 }
 0x215   : > { %v3022_v63 = vpop.f32.mrf.mxu1 }
 0x216   : > { %v3023_v16 = vadd.f32 %v3022_v63, %v3021_v62 }
 0x217   : > { %v3024_v2 = vpop.f32.mrf.mxu1 }
 0x218   : > { %v2941_v17 = vpack.c.bf16 %v3023_v16, %v3023_v16 }
 0x219   : > { %v3025_v7 = vpop.f32.mrf.mxu1 }
 0x21a   : > { %2272 = vst [vmem:[%s3574_s6 + $0x8] sm:$0xf] %v2941_v17  ;;  %v3026_v19 = vadd.f32 %v3025_v7, %v3024_v2 }
 0x21b   : > { %v3027_v6 = vpop.f32.mrf.mxu1 }
 0x21c   : > { %v2943_v20 = vpack.c.bf16 %v3026_v19, %v3026_v19 }
 0x21d   : > { %v3028_v56 = vpop.f32.mrf.mxu1 }
 0x21e   : > { %2274 = vst [vmem:[%s3574_s6 + $0x14] sm:$0xf] %v2943_v20  ;;  %v3029_v1 = vadd.f32 %v3028_v56, %v3027_v6 }
 0x21f   : > { %v3030_v61 = vpop.f32.mrf.mxu1 }
 0x220   : > { %v2945_v25 = vpack.c.bf16 %v3029_v1, %v3029_v1 }
 0x221   : > { %v3031_v26 = vpop.f32.mrf.mxu1 }
 0x222   : > { %2276 = vst [vmem:[%s3574_s6 + $0x20] sm:$0xf] %v2945_v25  ;;  %v3032_v44 = vadd.f32 %v3031_v26, %v3030_v61 }
 0x223   : > { %v3033_v49 = vpop.f32.mrf.mxu1 }
 0x224   : > { %v2947_v50 = vpack.c.bf16 %v3032_v44, %v3032_v44 }
 0x225   : > { %v3034_v30 = vpop.f32.mrf.mxu1 }
 0x226   : > { %2278 = vst [vmem:[%s3574_s6 + $0x2c] sm:$0xf] %v2947_v50  ;;  %v3035_v51 = vadd.f32 %v3034_v30, %v3033_v49 }
 0x227   : > { %v3036_v14 = vpop.f32.mrf.mxu1 }
 0x228   : > { %v2949_v45 = vpack.c.bf16 %v3035_v51, %v3035_v51 }
 0x229   : > { %v3037_v33 = vpop.f32.mrf.mxu1 }
 0x22a   : > { %2280 = vst [vmem:[%s3574_s6 + $0x38] sm:$0xf] %v2949_v45  ;;  %v3038_v31 = vadd.f32 %v3037_v33, %v3036_v14 }
 0x22b   : > { %v3039_v24 = vpop.f32.mrf.mxu1 }
 0x22c   : > { %v2951_v34 = vpack.c.bf16 %v3038_v31, %v3038_v31 }
 0x22d   : > { %v3040_v55 = vpop.f32.mrf.mxu1 }
 0x22e   : > { %2282 = vst [vmem:[%s3574_s6 + $0x44] sm:$0xf] %v2951_v34  ;;  %v3041_v37 = vadd.f32 %v3040_v55, %v3039_v24 }
 0x22f   : > { %v3042_v15 = vpop.f32.mrf.mxu1 }
 0x230   : > { %v1631_v32 = vpop.f32.mrf.mxu0  ;;  %v2953_v54 = vpack.c.bf16 %v3041_v37, %v3041_v37 }
 0x231   : > { %v3043_v8 = vpop.f32.mrf.mxu1 }
 0x232   : > { %v1633_v53 = vpop.f32.mrf.mxu0  ;;  %2284 = vst [vmem:[%s3574_s6 + $0x50] sm:$0xf] %v2953_v54  ;;  %v3044_v9 = vadd.f32 %v3043_v8, %v3042_v15 }
 0x233   : > { %v2940_v27 = vpack.c.bf16 %v1633_v53, %v1631_v32  ;;  %v3045_v18 = vpop.f32.mrf.mxu1 }
 0x234   : > { %v1635_v38 = vpop.f32.mrf.mxu0  ;;  %v2955_v58 = vpack.c.bf16 %v3044_v9, %v3044_v9 }
 0x235   : > { %2271 = vst [vmem:[%s3574_s6] sm:$0xff] %v2940_v27  ;;  %v3046_v11 = vpop.f32.mrf.mxu1 }
 0x236   : > { %v1637_v23 = vpop.f32.mrf.mxu0  ;;  %2286 = vst [vmem:[%s3574_s6 + $0x5c] sm:$0xf] %v2955_v58  ;;  %v3047_v46 = vadd.f32 %v3046_v11, %v3045_v18 }
 0x237   : > { %v2942_v13 = vpack.c.bf16 %v1637_v23, %v1635_v38  ;;  %v3048_v29 = vpop.f32.mrf.mxu1 }
 0x238   : > { %v1641_v0 = vpop.f32.mrf.mxu0  ;;  %v2957_v48 = vpack.c.bf16 %v3047_v46, %v3047_v46 }
 0x239   : > { %2273 = vst [vmem:[%s3574_s6 + $0xc] sm:$0xff] %v2942_v13  ;;  %v3049_v52 = vpop.f32.mrf.mxu1 }
 0x23a   : > { %v1643_v10 = vpop.f32.mrf.mxu0  ;;  %2288 = vst [vmem:[%s3574_s6 + $0x68] sm:$0xf] %v2957_v48  ;;  %v3050_v43 = vadd.f32 %v3049_v52, %v3048_v29 }
 0x23b   : > { %v2944_v57 = vpack.c.bf16 %v1643_v10, %v1641_v0  ;;  %v3051_v36 = vpop.f32.mrf.mxu1 }
 0x23c   : > { %v1645_v59 = vpop.f32.mrf.mxu0  ;;  %v2959_v41 = vpack.c.bf16 %v3050_v43, %v3050_v43 }
 0x23d   : > { %2275 = vst [vmem:[%s3574_s6 + $0x18] sm:$0xff] %v2944_v57  ;;  %v3052_v12 = vpop.f32.mrf.mxu1 }
 0x23e   : > { %v1647_v47 = vpop.f32.mrf.mxu0  ;;  %2290 = vst [vmem:[%s3574_s6 + $0x74] sm:$0xf] %v2959_v41  ;;  %v3053_v21 = vadd.f32 %v3052_v12, %v3051_v36 }
 0x23f   : > { %v2946_v28 = vpack.c.bf16 %v1647_v47, %v1645_v59  ;;  %v3054_v4 = vpop.f32.mrf.mxu1 }
 0x240   : > { %v1651_v60 = vpop.f32.mrf.mxu0  ;;  %v2961_v42 = vpack.c.bf16 %v3053_v21, %v3053_v21 }
 0x241   : > { %2277 = vst [vmem:[%s3574_s6 + $0x24] sm:$0xff] %v2946_v28  ;;  %v3055_v62 = vpop.f32.mrf.mxu1 }
 0x242   : > { %v1653_v35 = vpop.f32.mrf.mxu0  ;;  %2292 = vst [vmem:[%s3574_s6 + $0x80] sm:$0xf] %v2961_v42  ;;  %v3056_v63 = vadd.f32 %v3055_v62, %v3054_v4 }
 0x243   : > { %v2948_v39 = vpack.c.bf16 %v1653_v35, %v1651_v60  ;;  %v3057_v2 = vpop.f32.mrf.mxu1 }
 0x244   : > { %v1655_v40 = vpop.f32.mrf.mxu0  ;;  %v2963_v7 = vpack.c.bf16 %v3056_v63, %v3056_v63 }
 0x245   : > { %2279 = vst [vmem:[%s3574_s6 + $0x30] sm:$0xff] %v2948_v39  ;;  %v3058_v6 = vpop.f32.mrf.mxu1 }
 0x246   : > { %v1657_v3 = vpop.f32.mrf.mxu0  ;;  %2294 = vst [vmem:[%s3574_s6 + $0x8c] sm:$0xf] %v2963_v7  ;;  %v3059_v20 = vadd.f32 %v3058_v6, %v3057_v2 }
 0x247   : > { %v2950_v22 = vpack.c.bf16 %v1657_v3, %v1655_v40  ;;  %v3060_v1 = vpop.f32.mrf.mxu1 }
 0x248   : > { %v1661_v5 = vpop.f32.mrf.mxu0  ;;  %v2965_v25 = vpack.c.bf16 %v3059_v20, %v3059_v20 }
 0x249   : > { %2281 = vst [vmem:[%s3574_s6 + $0x3c] sm:$0xff] %v2950_v22  ;;  %v3061_v44 = vpop.f32.mrf.mxu1 }
 0x24a   : > { %v1663_v16 = vpop.f32.mrf.mxu0  ;;  %2296 = vst [vmem:[%s3574_s6 + $0x98] sm:$0xf] %v2965_v25  ;;  %v3062_v49 = vadd.f32 %v3061_v44, %v3060_v1 }
 0x24b   : > { %v2952_v17 = vpack.c.bf16 %v1663_v16, %v1661_v5  ;;  %v3063_v30 = vpop.f32.mrf.mxu1 }
 0x24c   : > { %v1665_v19 = vpop.f32.mrf.mxu0  ;;  %v2967_v14 = vpack.c.bf16 %v3062_v49, %v3062_v49 }
 0x24d   : > { %2283 = vst [vmem:[%s3574_s6 + $0x48] sm:$0xff] %v2952_v17  ;;  %v3064_v32 = vpop.f32.mrf.mxu1 }
 0x24e   : > { %v1667_v56 = vpop.f32.mrf.mxu0  ;;  %2298 = vst [vmem:[%s3574_s6 + $0xa4] sm:$0xf] %v2967_v14  ;;  %v3065_v33 = vadd.f32 %v3064_v32, %v3063_v30 }
 0x24f   : > { %v2954_v61 = vpack.c.bf16 %v1667_v56, %v1665_v19  ;;  %v3066_v53 = vpop.f32.mrf.mxu1 }
 0x250   : > { %v1671_v26 = vpop.f32.mrf.mxu0  ;;  %v2969_v27 = vpack.c.bf16 %v3065_v33, %v3065_v33 }
 0x251   : > { %2285 = vst [vmem:[%s3574_s6 + $0x54] sm:$0xff] %v2954_v61  ;;  %v3067_v38 = vpop.f32.mrf.mxu1 }
 0x252   : > { %v1673_v50 = vpop.f32.mrf.mxu0  ;;  %2300 = vst [vmem:[%s3574_s6 + $0xb0] sm:$0xf] %v2969_v27  ;;  %v3068_v55 = vadd.f32 %v3067_v38, %v3066_v53 }
 0x253   : > { %v2956_v51 = vpack.c.bf16 %v1673_v50, %v1671_v26  ;;  %v3069_v23 = vpop.f32.mrf.mxu1 }
 0x254   : > { %v1675_v45 = vpop.f32.mrf.mxu0  ;;  %v2971_v13 = vpack.c.bf16 %v3068_v55, %v3068_v55 }
 0x255   : > { %2287 = vst [vmem:[%s3574_s6 + $0x60] sm:$0xff] %v2956_v51  ;;  %v3070_v0 = vpop.f32.mrf.mxu1 }
 0x256   : > { %v1677_v31 = vpop.f32.mrf.mxu0  ;;  %2302 = vst [vmem:[%s3574_s6 + $0xbc] sm:$0xf] %v2971_v13  ;;  %v3071_v8 = vadd.f32 %v3070_v0, %v3069_v23 }
 0x257   : > { %v2958_v24 = vpack.c.bf16 %v1677_v31, %v1675_v45  ;;  %v3072_v10 = vpop.f32.mrf.mxu1 }
 0x258   : > { %v1681_v34 = vpop.f32.mrf.mxu0  ;;  %v2973_v57 = vpack.c.bf16 %v3071_v8, %v3071_v8 }
 0x259   : > { %2289 = vst [vmem:[%s3574_s6 + $0x6c] sm:$0xff] %v2958_v24  ;;  %v3073_v59 = vpop.f32.mrf.mxu1 }
 0x25a   : > { %v1683_v37 = vpop.f32.mrf.mxu0  ;;  %2304 = vst [vmem:[%s3574_s6 + $0xc8] sm:$0xf] %v2973_v57  ;;  %v3074_v11 = vadd.f32 %v3073_v59, %v3072_v10 }
 0x25b   : > { %v2960_v15 = vpack.c.bf16 %v1683_v37, %v1681_v34  ;;  %v3075_v47 = vpop.f32.mrf.mxu1 }
 0x25c   : > { %v1685_v54 = vpop.f32.mrf.mxu0  ;;  %v2975_v28 = vpack.c.bf16 %v3074_v11, %v3074_v11 }
 0x25d   : > { %2291 = vst [vmem:[%s3574_s6 + $0x78] sm:$0xff] %v2960_v15  ;;  %v3076_v60 = vpop.f32.mrf.mxu1 }
 0x25e   : > { %v1687_v9 = vpop.f32.mrf.mxu0  ;;  %2306 = vst [vmem:[%s3574_s6 + $0xd4] sm:$0xf] %v2975_v28  ;;  %v3077_v52 = vadd.f32 %v3076_v60, %v3075_v47 }
 0x25f   : > { %v2962_v18 = vpack.c.bf16 %v1687_v9, %v1685_v54  ;;  %v3078_v35 = vpop.f32.mrf.mxu1 }
 0x260   : > { %v1691_v58 = vpop.f32.mrf.mxu0  ;;  %v2977_v39 = vpack.c.bf16 %v3077_v52, %v3077_v52 }
 0x261   : > { %2293 = vst [vmem:[%s3574_s6 + $0x84] sm:$0xff] %v2962_v18  ;;  %v3079_v40 = vpop.f32.mrf.mxu1 }
 0x262   : > { %v1693_v46 = vpop.f32.mrf.mxu0  ;;  %2308 = vst [vmem:[%s3574_s6 + $0xe0] sm:$0xf] %v2977_v39  ;;  %v3080_v12 = vadd.f32 %v3079_v40, %v3078_v35 }
 0x263   : > { %v2964_v29 = vpack.c.bf16 %v1693_v46, %v1691_v58  ;;  %v3081_v3 = vpop.f32.mrf.mxu1 }
 0x264   : > { %v1695_v48 = vpop.f32.mrf.mxu0  ;;  %v2979_v22 = vpack.c.bf16 %v3080_v12, %v3080_v12 }
 0x265   : > { %2295 = vst [vmem:[%s3574_s6 + $0x90] sm:$0xff] %v2964_v29  ;;  %v3082_v5 = vpop.f32.mrf.mxu1 }
 0x266   : > { %v1697_v43 = vpop.f32.mrf.mxu0  ;;  %2310 = vst [vmem:[%s3574_s6 + $0xec] sm:$0xf] %v2979_v22  ;;  %v3083_v62 = vadd.f32 %v3082_v5, %v3081_v3 }
 0x267   : > { %v2966_v36 = vpack.c.bf16 %v1697_v43, %v1695_v48  ;;  %v3084_v16 = vpop.f32.mrf.mxu1 }
 0x268   : > { %v1701_v41 = vpop.f32.mrf.mxu0  ;;  %v2981_v17 = vpack.c.bf16 %v3083_v62, %v3083_v62 }
 0x269   : > { %2297 = vst [vmem:[%s3574_s6 + $0x9c] sm:$0xff] %v2966_v36  ;;  %v3085_v19 = vpop.f32.mrf.mxu1 }
 0x26a   : > { %v1703_v21 = vpop.f32.mrf.mxu0  ;;  %2312 = vst [vmem:[%s3574_s6 + $0xf8] sm:$0xf] %v2981_v17  ;;  %v3086_v6 = vadd.f32 %v3085_v19, %v3084_v16 }
 0x26b   : > { %v2968_v4 = vpack.c.bf16 %v1703_v21, %v1701_v41  ;;  %v3087_v56 = vpop.f32.mrf.mxu1 }
 0x26c   : > { %v1705_v42 = vpop.f32.mrf.mxu0  ;;  %v2983_v61 = vpack.c.bf16 %v3086_v6, %v3086_v6 }
 0x26d   : > { %2299 = vst [vmem:[%s3574_s6 + $0xa8] sm:$0xff] %v2968_v4  ;;  %v3088_v26 = vpop.f32.mrf.mxu1 }
 0x26e   : > { %v1707_v63 = vpop.f32.mrf.mxu0  ;;  %2314 = vst [vmem:[%s3574_s6 + $0x104] sm:$0xf] %v2983_v61  ;;  %v3089_v44 = vadd.f32 %v3088_v26, %v3087_v56 }
 0x26f   : > { %v2970_v2 = vpack.c.bf16 %v1707_v63, %v1705_v42  ;;  %v3090_v50 = vpop.f32.mrf.mxu1 }
 0x270   : > { %v1711_v7 = vpop.f32.mrf.mxu0  ;;  %v2985_v51 = vpack.c.bf16 %v3089_v44, %v3089_v44 }
 0x271   : > { %2301 = vst [vmem:[%s3574_s6 + $0xb4] sm:$0xff] %v2970_v2  ;;  %v3091_v45 = vpop.f32.mrf.mxu1 }
 0x272   : > { %v1713_v20 = vpop.f32.mrf.mxu0  ;;  %2316 = vst [vmem:[%s3574_s6 + $0x110] sm:$0xf] %v2985_v51  ;;  %v3092_v32 = vadd.f32 %v3091_v45, %v3090_v50 }
 0x273   : > { %v2972_v1 = vpack.c.bf16 %v1713_v20, %v1711_v7  ;;  %v3093_v31 = vpop.f32.mrf.mxu1 }
 0x274   : > { %v1715_v25 = vpop.f32.mrf.mxu0  ;;  %v2987_v24 = vpack.c.bf16 %v3092_v32, %v3092_v32 }
 0x275   : > { %2303 = vst [vmem:[%s3574_s6 + $0xc0] sm:$0xff] %v2972_v1  ;;  %v3094_v34 = vpop.f32.mrf.mxu1 }
 0x276   : > { %v1717_v49 = vpop.f32.mrf.mxu0  ;;  %2318 = vst [vmem:[%s3574_s6 + $0x11c] sm:$0xf] %v2987_v24  ;;  %v3095_v38 = vadd.f32 %v3094_v34, %v3093_v31 }
 0x277   : > { %v2974_v30 = vpack.c.bf16 %v1717_v49, %v1715_v25  ;;  %v3096_v37 = vpop.f32.mrf.mxu1 }
 0x278   : > { %v1721_v14 = vpop.f32.mrf.mxu0  ;;  %v2989_v15 = vpack.c.bf16 %v3095_v38, %v3095_v38 }
 0x279   : > { %2305 = vst [vmem:[%s3574_s6 + $0xcc] sm:$0xff] %v2974_v30  ;;  %v3097_v54 = vpop.f32.mrf.mxu1 }
 0x27a   : > { %v1723_v33 = vpop.f32.mrf.mxu0  ;;  %2320 = vst [vmem:[%s3574_s6 + $0x128] sm:$0xf] %v2989_v15  ;;  %v3098_v0 = vadd.f32 %v3097_v54, %v3096_v37  ;;  %v2362_v15 = vld [vmem:[%s3574_s6] sm:$0xff] (%p3424_p6)  ;;  %v2366_v54 = vld [vmem:[%s3574_s6 + $0x18] sm:$0xff] (%p3424_p6) }
 0x27b   : > { %v2976_v53 = vpack.c.bf16 %v1723_v33, %v1721_v14  ;;  %v3099_v9 = vpop.f32.mrf.mxu1  ;;  %2363 = vst [vmem:[%s4188_s27] sm:$0xff] (%p3424_p6), %v2362_v15  ;;  %2367 = vst [vmem:[%s4188_s27 + $0x30] sm:$0xff] (%p3424_p6), %v2366_v54 }
 0x27c   : > { %v1725_v27 = vpop.f32.mrf.mxu0  ;;  %v2991_v18 = vpack.c.bf16 %v3098_v0, %v3098_v0  ;;  %v2368_v0 = vld [vmem:[%s3574_s6 + $0x24] sm:$0xff] (%p3424_p6) }
 0x27d   : > { %2307 = vst [vmem:[%s3574_s6 + $0xd8] sm:$0xff] %v2976_v53  ;;  %v3100_v58 = vpop.f32.mrf.mxu1  ;;  %2369 = vst [vmem:[%s4188_s27 + $0x48] sm:$0xff] (%p3424_p6), %v2368_v0 }
 0x27e   : > { %v1727_v55 = vpop.f32.mrf.mxu0  ;;  %2322 = vst [vmem:[%s3574_s6 + $0x134] sm:$0xf] %v2991_v18  ;;  %v3101_v59 = vadd.f32 %v3100_v58, %v3099_v9  ;;  %v2372_v9 = vld [vmem:[%s3574_s6 + $0x3c] sm:$0xff] (%p3424_p6)  ;;  %v2376_v18 = vld [vmem:[%s3574_s6 + $0x54] sm:$0xff] (%p3424_p6)  ;;  %v2380_v58 = vld [vmem:[%s3574_s6 + $0x6c] sm:$0xff] (%p3424_p6) }
 0x27f   : > { %v2978_v23 = vpack.c.bf16 %v1727_v55, %v1725_v27  ;;  %v3102_v46 = vpop.f32.mrf.mxu1  ;;  %2373 = vst [vmem:[%s4188_s27 + $0x78] sm:$0xff] (%p3424_p6), %v2372_v9  ;;  %2377 = vst [vmem:[%s4188_s27 + $0xa8] sm:$0xff] (%p3424_p6), %v2376_v18 }
 0x280   : > { %v1731_v13 = vpop.f32.mrf.mxu0  ;;  %v2993_v29 = vpack.c.bf16 %v3101_v59, %v3101_v59  ;;  %v2382_v59 = vld [vmem:[%s3574_s6 + $0x78] sm:$0xff] (%p3424_p6)  ;;  %2381 = vst [vmem:[%s4188_s27 + $0xd8] sm:$0xff] (%p3424_p6), %v2380_v58 }
 0x281   : > { %2309 = vst [vmem:[%s3574_s6 + $0xe4] sm:$0xff] %v2978_v23  ;;  %v3103_v48 = vpop.f32.mrf.mxu1  ;;  %2383 = vst [vmem:[%s4188_s27 + $0xf0] sm:$0xff] (%p3424_p6), %v2382_v59 }
 0x282   : > { %v1733_v8 = vpop.f32.mrf.mxu0  ;;  %2324 = vst [vmem:[%s3574_s6 + $0x140] sm:$0xf] %v2993_v29  ;;  %v3104_v60 = vadd.f32 %v3103_v48, %v3102_v46  ;;  %v2386_v46 = vld [vmem:[%s3574_s6 + $0x90] sm:$0xff] (%p3424_p6)  ;;  %v2390_v29 = vld [vmem:[%s3574_s6 + $0xa8] sm:$0xff] (%p3424_p6)  ;;  %v2394_v48 = vld [vmem:[%s3574_s6 + $0xc0] sm:$0xff] (%p3424_p6) }
 0x283   : > { %v2980_v10 = vpack.c.bf16 %v1733_v8, %v1731_v13  ;;  %v3105_v43 = vpop.f32.mrf.mxu1  ;;  %v2364_v13 = vld [vmem:[%s3574_s6 + $0xc] sm:$0xff] (%p3424_p6)  ;;  %2387 = vst [vmem:[%s4188_s27 + $0x120] sm:$0xff] (%p3424_p6), %v2386_v46  ;;  %2391 = vst [vmem:[%s4188_s27 + $0x150] sm:$0xff] (%p3424_p6), %v2390_v29 }
 0x284   : > { %v1735_v57 = vpop.f32.mrf.mxu0  ;;  %v2995_v36 = vpack.c.bf16 %v3104_v60, %v3104_v60  ;;  %v2370_v8 = vld [vmem:[%s3574_s6 + $0x30] sm:$0xff] (%p3424_p6)  ;;  %2365 = vst [vmem:[%s4188_s27 + $0x18] sm:$0xff] (%p3424_p6), %v2364_v13  ;;  %2395 = vst [vmem:[%s4188_s27 + $0x180] sm:$0xff] (%p3424_p6), %v2394_v48 }
 0x285   : > { %2311 = vst [vmem:[%s3574_s6 + $0xf0] sm:$0xff] %v2980_v10  ;;  %v3106_v41 = vpop.f32.mrf.mxu1  ;;  %v2374_v10 = vld [vmem:[%s3574_s6 + $0x48] sm:$0xff] (%p3424_p6)  ;;  %2371 = vst [vmem:[%s4188_s27 + $0x60] sm:$0xff] (%p3424_p6), %v2370_v8 }
 0x286   : > { %v1737_v11 = vpop.f32.mrf.mxu0  ;;  %2326 = vst [vmem:[%s3574_s6 + $0x14c] sm:$0xf] %v2995_v36  ;;  %v3107_v40 = vadd.f32 %v3106_v41, %v3105_v43  ;;  %2375 = vst [vmem:[%s4188_s27 + $0x90] sm:$0xff] (%p3424_p6), %v2374_v10  ;;  %v2396_v60 = vld [vmem:[%s3574_s6 + $0xcc] sm:$0xff] (%p3424_p6) }
 0x287   : > { %v2982_v47 = vpack.c.bf16 %v1737_v11, %v1735_v57  ;;  %v3108_v21 = vpop.f32.mrf.mxu1  ;;  %v2378_v57 = vld [vmem:[%s3574_s6 + $0x60] sm:$0xff] (%p3424_p6)  ;;  %2397 = vst [vmem:[%s4188_s27 + $0x198] sm:$0xff] (%p3424_p6), %v2396_v60 }
 0x288   : > { %v1741_v28 = vpop.f32.mrf.mxu0  ;;  %v2997_v4 = vpack.c.bf16 %v3107_v40, %v3107_v40  ;;  %2379 = vst [vmem:[%s4188_s27 + $0xc0] sm:$0xff] (%p3424_p6), %v2378_v57  ;;  %v2384_v11 = vld [vmem:[%s3574_s6 + $0x84] sm:$0xff] (%p3424_p6) }
 0x289   : > { %2313 = vst [vmem:[%s3574_s6 + $0xfc] sm:$0xff] %v2982_v47  ;;  %v3109_v42 = vpop.f32.mrf.mxu1  ;;  %2385 = vst [vmem:[%s4188_s27 + $0x108] sm:$0xff] (%p3424_p6), %v2384_v11  ;;  %v2388_v47 = vld [vmem:[%s3574_s6 + $0x9c] sm:$0xff] (%p3424_p6)  ;;  %v2400_v43 = vld [vmem:[%s3574_s6 + $0xe4] sm:$0xff] (%p3424_p6) }
 0x28a   : > { %v1743_v52 = vpop.f32.mrf.mxu0  ;;  %2328 = vst [vmem:[%s3574_s6 + $0x158] sm:$0xf] %v2997_v4  ;;  %v3110_v5 = vadd.f32 %v3109_v42, %v3108_v21  ;;  %2389 = vst [vmem:[%s4188_s27 + $0x138] sm:$0xff] (%p3424_p6), %v2388_v47 }
 0x28b   : > { %v2984_v35 = vpack.c.bf16 %v1743_v52, %v1741_v28  ;;  %v3111_v63 = vpop.f32.mrf.mxu1  ;;  %v2392_v28 = vld [vmem:[%s3574_s6 + $0xb4] sm:$0xff] (%p3424_p6)  ;;  %2401 = vst [vmem:[%s4188_s27 + $0x1c8] sm:$0xff] (%p3424_p6), %v2400_v43 }
 0x28c   : > { %v1745_v39 = vpop.f32.mrf.mxu0  ;;  %v2999_v2 = vpack.c.bf16 %v3110_v5, %v3110_v5  ;;  %2393 = vst [vmem:[%s4188_s27 + $0x168] sm:$0xff] (%p3424_p6), %v2392_v28  ;;  %v2398_v52 = vld [vmem:[%s3574_s6 + $0xd8] sm:$0xff] (%p3424_p6) }
 0x28d   : > { %2315 = vst [vmem:[%s3574_s6 + $0x108] sm:$0xff] %v2984_v35  ;;  %v3112_v7 = vpop.f32.mrf.mxu1  ;;  %v2402_v35 = vld [vmem:[%s3574_s6 + $0xf0] sm:$0xff] (%p3424_p6)  ;;  %2399 = vst [vmem:[%s4188_s27 + $0x1b0] sm:$0xff] (%p3424_p6), %v2398_v52 }
 0x28e   : > { %v1747_v12 = vpop.f32.mrf.mxu0  ;;  %2330 = vst [vmem:[%s3574_s6 + $0x164] sm:$0xf] %v2999_v2  ;;  %v3113_v19 = vadd.f32 %v3112_v7, %v3111_v63  ;;  %2403 = vst [vmem:[%s4188_s27 + $0x1e0] sm:$0xff] (%p3424_p6), %v2402_v35  ;;  %v2843_v63 = vld [vmem:[%s3574_s6 + $0x14] sm:$0xf] (%p3424_p6) }
 0x28f   : > { %v2986_v3 = vpack.c.bf16 %v1747_v12, %v1745_v39  ;;  %v3114_v20 = vpop.f32.mrf.mxu1  ;;  %v2847_v2 = vld [vmem:[%s3574_s6 + $0x2c] sm:$0xf] (%p3424_p6)  ;;  %2844 = vst [vmem:[%s4188_s27 + $0x20] sm:$0xf] (%p3424_p6), %v2843_v63  ;;  %v2851_v7 = vld [vmem:[%s3574_s6 + $0x44] sm:$0xf] (%p3424_p6) }
 0x290   : > { %v1751_v22 = vpop.f32.mrf.mxu0  ;;  %v3001_v1 = vpack.c.bf16 %v3113_v19, %v3113_v19  ;;  %v2404_v36 = vld [vmem:[%s3574_s6 + $0xfc] sm:$0xff] (%p3424_p6)  ;;  %2848 = vst [vmem:[%s4188_s27 + $0x50] sm:$0xf] (%p3424_p6), %v2847_v2  ;;  %v2853_v19 = vld [vmem:[%s3574_s6 + $0x50] sm:$0xf] (%p3424_p6) }
 0x291   : > { %2317 = vst [vmem:[%s3574_s6 + $0x114] sm:$0xff] %v2986_v3  ;;  %v3115_v25 = vpop.f32.mrf.mxu1  ;;  %2405 = vst [vmem:[%s4188_s27 + $0x1f8] sm:$0xff] (%p3424_p6), %v2404_v36 }
 0x292   : > { %v1753_v62 = vpop.f32.mrf.mxu0  ;;  %2332 = vst [vmem:[%s3574_s6 + $0x170] sm:$0xf] %v3001_v1  ;;  %v3116_v26 = vadd.f32 %v3115_v25, %v3114_v20  ;;  %2852 = vst [vmem:[%s4188_s27 + $0x80] sm:$0xf] (%p3424_p6), %v2851_v7  ;;  %v2857_v20 = vld [vmem:[%s3574_s6 + $0x68] sm:$0xf] (%p3424_p6) }
 0x293   : > { %v2988_v16 = vpack.c.bf16 %v1753_v62, %v1751_v22  ;;  %v2841_v62 = vld [vmem:[%s3574_s6 + $0x8] sm:$0xf] (%p3424_p6)  ;;  %2854 = vst [vmem:[%s4188_s27 + $0x98] sm:$0xf] (%p3424_p6), %v2853_v19  ;;  %2858 = vst [vmem:[%s4188_s27 + $0xc8] sm:$0xf] (%p3424_p6), %v2857_v20 }
 0x294   : > { %v1755_v17 = vpop.f32.mrf.mxu0  ;;  %v3003_v50 = vpack.c.bf16 %v3116_v26, %v3116_v26  ;;  %v2406_v39 = vld [vmem:[%s3574_s6 + $0x108] sm:$0xff] (%p3424_p6)  ;;  %2842 = vst [vmem:[%s4188_s27 + $0x8] sm:$0xf] (%p3424_p6), %v2841_v62  ;;  %v2861_v1 = vld [vmem:[%s3574_s6 + $0x80] sm:$0xf] (%p3424_p6) }
 0x295   : > { %2319 = vst [vmem:[%s3574_s6 + $0x120] sm:$0xff] %v2988_v16  ;;  %2407 = vst [vmem:[%s4188_s27 + $0x210] sm:$0xff] (%p3424_p6), %v2406_v39  ;;  %v2845_v16 = vld [vmem:[%s3574_s6 + $0x20] sm:$0xf] (%p3424_p6)  ;;  %v2865_v25 = vld [vmem:[%s3574_s6 + $0x98] sm:$0xf] (%p3424_p6) }
 0x296   : > { %v1757_v6 = vpop.f32.mrf.mxu0  ;;  %2334 = vst [vmem:[%s3574_s6 + $0x17c] sm:$0xf] %v3003_v50  ;;  %2846 = vst [vmem:[%s4188_s27 + $0x38] sm:$0xf] (%p3424_p6), %v2845_v16  ;;  %v2867_v26 = vld [vmem:[%s3574_s6 + $0xa4] sm:$0xf] (%p3424_p6) }
 0x297   : > { %v2990_v56 = vpack.c.bf16 %v1757_v6, %v1755_v17  ;;  %v2849_v17 = vld [vmem:[%s3574_s6 + $0x38] sm:$0xf] (%p3424_p6)  ;;  %v2855_v6 = vld [vmem:[%s3574_s6 + $0x5c] sm:$0xf] (%p3424_p6)  ;;  %2862 = vst [vmem:[%s4188_s27 + $0xf8] sm:$0xf] (%p3424_p6), %v2861_v1 }
 0x298   : > { %v1761_v61 = vpop.f32.mrf.mxu0  ;;  %v2408_v41 = vld [vmem:[%s3574_s6 + $0x114] sm:$0xff] (%p3424_p6)  ;;  %2850 = vst [vmem:[%s4188_s27 + $0x68] sm:$0xf] (%p3424_p6), %v2849_v17  ;;  %2856 = vst [vmem:[%s4188_s27 + $0xb0] sm:$0xf] (%p3424_p6), %v2855_v6 }
 0x299   : > { %2321 = vst [vmem:[%s3574_s6 + $0x12c] sm:$0xff] %v2990_v56  ;;  %2409 = vst [vmem:[%s4188_s27 + $0x228] sm:$0xff] (%p3424_p6), %v2408_v41  ;;  %v2859_v56 = vld [vmem:[%s3574_s6 + $0x74] sm:$0xf] (%p3424_p6)  ;;  %v2873_v50 = vld [vmem:[%s3574_s6 + $0xc8] sm:$0xf] (%p3424_p6) }
 0x29a   : > { %v1763_v44 = vpop.f32.mrf.mxu0  ;;  %2860 = vst [vmem:[%s4188_s27 + $0xe0] sm:$0xf] (%p3424_p6), %v2859_v56  ;;  %2866 = vst [vmem:[%s4188_s27 + $0x128] sm:$0xf] (%p3424_p6), %v2865_v25 }
 0x29b   : > { %v2992_v49 = vpack.c.bf16 %v1763_v44, %v1761_v61  ;;  %v2863_v61 = vld [vmem:[%s3574_s6 + $0x8c] sm:$0xf] (%p3424_p6)  ;;  %v2869_v44 = vld [vmem:[%s3574_s6 + $0xb0] sm:$0xf] (%p3424_p6)  ;;  %2868 = vst [vmem:[%s4188_s27 + $0x140] sm:$0xf] (%p3424_p6), %v2867_v26 }
 0x29c   : > { %v1765_v30 = vpop.f32.mrf.mxu0  ;;  %v2410_v40 = vld [vmem:[%s3574_s6 + $0x120] sm:$0xff] (%p3424_p6)  ;;  %2864 = vst [vmem:[%s4188_s27 + $0x110] sm:$0xf] (%p3424_p6), %v2863_v61  ;;  %2870 = vst [vmem:[%s4188_s27 + $0x158] sm:$0xf] (%p3424_p6), %v2869_v44 }
 0x29d   : > { %2323 = vst [vmem:[%s3574_s6 + $0x138] sm:$0xff] %v2992_v49  ;;  %2411 = vst [vmem:[%s4188_s27 + $0x240] sm:$0xff] (%p3424_p6), %v2410_v40  ;;  %v2871_v49 = vld [vmem:[%s3574_s6 + $0xbc] sm:$0xf] (%p3424_p6) }
 0x29e   : > { %v1767_v51 = vpop.f32.mrf.mxu0  ;;  %2872 = vst [vmem:[%s4188_s27 + $0x170] sm:$0xf] (%p3424_p6), %v2871_v49  ;;  %2874 = vst [vmem:[%s4188_s27 + $0x188] sm:$0xf] (%p3424_p6), %v2873_v50 }
 0x29f   : > { %v2994_v14 = vpack.c.bf16 %v1767_v51, %v1765_v30  ;;  %v2875_v30 = vld [vmem:[%s3574_s6 + $0xd4] sm:$0xf] (%p3424_p6)  ;;  %v2877_v51 = vld [vmem:[%s3574_s6 + $0xe0] sm:$0xf] (%p3424_p6) }
 0x2a0   : > { %v1771_v45 = vpop.f32.mrf.mxu0  ;;  %v2412_v12 = vld [vmem:[%s3574_s6 + $0x12c] sm:$0xff] (%p3424_p6)  ;;  %2876 = vst [vmem:[%s4188_s27 + $0x1a0] sm:$0xf] (%p3424_p6), %v2875_v30  ;;  %2878 = vst [vmem:[%s4188_s27 + $0x1b8] sm:$0xf] (%p3424_p6), %v2877_v51 }
 0x2a1   : > { %2325 = vst [vmem:[%s3574_s6 + $0x144] sm:$0xff] %v2994_v14  ;;  %2413 = vst [vmem:[%s4188_s27 + $0x258] sm:$0xff] (%p3424_p6), %v2412_v12  ;;  %v2879_v14 = vld [vmem:[%s3574_s6 + $0xec] sm:$0xf] (%p3424_p6) }
 0x2a2   : > { %v1773_v32 = vpop.f32.mrf.mxu0  ;;  %2880 = vst [vmem:[%s4188_s27 + $0x1d0] sm:$0xf] (%p3424_p6), %v2879_v14 }
 0x2a3   : > { %v2996_v33 = vpack.c.bf16 %v1773_v32, %v1771_v45  ;;  %v2881_v45 = vld [vmem:[%s3574_s6 + $0xf8] sm:$0xf] (%p3424_p6)  ;;  %v2883_v32 = vld [vmem:[%s3574_s6 + $0x104] sm:$0xf] (%p3424_p6) }
 0x2a4   : > { %v1775_v31 = vpop.f32.mrf.mxu0  ;;  %v2414_v21 = vld [vmem:[%s3574_s6 + $0x138] sm:$0xff] (%p3424_p6)  ;;  %2882 = vst [vmem:[%s4188_s27 + $0x1e8] sm:$0xf] (%p3424_p6), %v2881_v45  ;;  %2884 = vst [vmem:[%s4188_s27 + $0x200] sm:$0xf] (%p3424_p6), %v2883_v32 }
 0x2a5   : > { %2327 = vst [vmem:[%s3574_s6 + $0x150] sm:$0xff] %v2996_v33  ;;  %2415 = vst [vmem:[%s4188_s27 + $0x270] sm:$0xff] (%p3424_p6), %v2414_v21  ;;  %v2885_v33 = vld [vmem:[%s3574_s6 + $0x110] sm:$0xf] (%p3424_p6) }
 0x2a6   : > { %v1777_v53 = vpop.f32.mrf.mxu0  ;;  %2886 = vst [vmem:[%s4188_s27 + $0x218] sm:$0xf] (%p3424_p6), %v2885_v33 }
 0x2a7   : > { %v2998_v24 = vpack.c.bf16 %v1777_v53, %v1775_v31  ;;  %v2887_v31 = vld [vmem:[%s3574_s6 + $0x11c] sm:$0xf] (%p3424_p6)  ;;  %v2889_v53 = vld [vmem:[%s3574_s6 + $0x128] sm:$0xf] (%p3424_p6) }
 0x2a8   : > { %v1781_v27 = vpop.f32.mrf.mxu0  ;;  %v2416_v3 = vld [vmem:[%s3574_s6 + $0x144] sm:$0xff] (%p3424_p6)  ;;  %2888 = vst [vmem:[%s4188_s27 + $0x230] sm:$0xf] (%p3424_p6), %v2887_v31  ;;  %2890 = vst [vmem:[%s4188_s27 + $0x248] sm:$0xf] (%p3424_p6), %v2889_v53 }
 0x2a9   : > { %2329 = vst [vmem:[%s3574_s6 + $0x15c] sm:$0xff] %v2998_v24  ;;  %2417 = vst [vmem:[%s4188_s27 + $0x288] sm:$0xff] (%p3424_p6), %v2416_v3  ;;  %v2891_v24 = vld [vmem:[%s3574_s6 + $0x134] sm:$0xf] (%p3424_p6) }
 0x2aa   : > { %v1783_v34 = vpop.f32.mrf.mxu0  ;;  %2892 = vst [vmem:[%s4188_s27 + $0x260] sm:$0xf] (%p3424_p6), %v2891_v24 }
 0x2ab   : > { %v3000_v38 = vpack.c.bf16 %v1783_v34, %v1781_v27  ;;  %v2893_v27 = vld [vmem:[%s3574_s6 + $0x140] sm:$0xf] (%p3424_p6)  ;;  %v2895_v34 = vld [vmem:[%s3574_s6 + $0x14c] sm:$0xf] (%p3424_p6) }
 0x2ac   : > { %v1785_v55 = vpop.f32.mrf.mxu0  ;;  %v2418_v4 = vld [vmem:[%s3574_s6 + $0x150] sm:$0xff] (%p3424_p6)  ;;  %2894 = vst [vmem:[%s4188_s27 + $0x278] sm:$0xf] (%p3424_p6), %v2893_v27  ;;  %2896 = vst [vmem:[%s4188_s27 + $0x290] sm:$0xf] (%p3424_p6), %v2895_v34 }
 0x2ad   : > { %2331 = vst [vmem:[%s3574_s6 + $0x168] sm:$0xff] %v3000_v38  ;;  %2341 = sbr.rel (!%p3424_p6) target bundleno = 698 (0x2ba), region = 66  ;;  %2419 = vst [vmem:[%s4188_s27 + $0x2a0] sm:$0xff] (%p3424_p6), %v2418_v4  ;;  %v2897_v38 = vld [vmem:[%s3574_s6 + $0x158] sm:$0xf] (%p3424_p6) }
 0x2ae   : > { %v1787_v37 = vpop.f32.mrf.mxu0  ;;  %2898 = vst [vmem:[%s4188_s27 + $0x2a8] sm:$0xf] (%p3424_p6), %v2897_v38 }
 0x2af   : > { %v3002_v23 = vpack.c.bf16 %v1787_v37, %v1785_v55  ;;  %v2899_v55 = vld [vmem:[%s3574_s6 + $0x164] sm:$0xf] (%p3424_p6)  ;;  %v2901_v37 = vld [vmem:[%s3574_s6 + $0x170] sm:$0xf] (%p3424_p6) }
 0x2b0   : > { %v2420_v22 = vld [vmem:[%s3574_s6 + $0x15c] sm:$0xff] (%p3424_p6)  ;;  %2900 = vst [vmem:[%s4188_s27 + $0x2c0] sm:$0xf] (%p3424_p6), %v2899_v55  ;;  %2902 = vst [vmem:[%s4188_s27 + $0x2d8] sm:$0xf] (%p3424_p6), %v2901_v37 }
 0x2b1   : > { %2333 = vst [vmem:[%s3574_s6 + $0x174] sm:$0xff] %v3002_v23  ;;  %2421 = vst [vmem:[%s4188_s27 + $0x2b8] sm:$0xff] (%p3424_p6), %v2420_v22  ;;  %v2903_v23 = vld [vmem:[%s3574_s6 + $0x17c] sm:$0xf] (%p3424_p6) }
 0x2b2   : > { %2904 = vst [vmem:[%s4188_s27 + $0x2f0] sm:$0xf] %v2903_v23 }
 0x2b4   : > { %v2422_v42 = vld [vmem:[%s3574_s6 + $0x168] sm:$0xff] }
 0x2b5   : > { %2423 = vst [vmem:[%s4188_s27 + $0x2d0] sm:$0xff] %v2422_v42 }
 0x2b8   : > { %v2424_v5 = vld [vmem:[%s3574_s6 + $0x174] sm:$0xff] }
 0x2b9   : > { %2425 = vst [vmem:[%s4188_s27 + $0x2e8] sm:$0xff] %v2424_v5 }
 0x2ba PF: > { %s13_s16 = sadd.s32 1, %s3367_s16   ;;  %s4392_s12 = smov %s3355_s13 }
 0x2bb   : > { %p10_p12 = scmp.ge.s32.totalorder %s13_s16, 4   ;;  %s4393_s13 = smov %s3429_s22 }
 0x2bc   : > { %s4394_s14 = smov %s3363_s15  ;;  %s4395_s15 = smov %s4397_s17 }
 0x2bd   :  { %12 = sbr.rel (!%p10_p12) target bundleno = 3 (0x3), region = 138 }

// kernel: _lambda_.10
= control target key start
LH: loop header
LB: loop body
LE: loop exit
PB: predicated region body
PF: predicated region fallthrough
CT: control target
= control target key end

     0   :  { %s2563_s12 = smov 0   ;;  %s2565_s13 = smov 0   ;;  %s3209_s0 = inlined_call_operand.vmem [shape: bf16[2,128,256], index: 0, kind: input, shape index: {}]   ;;  %s3210_s1 = inlined_call_operand.vmem [shape: bf16[2,128,256], index: 1, kind: input, shape index: {}]   ;;  %s3211_s2 = inlined_call_operand.vmem [shape: bf16[2,128,256], index: 2, kind: input, shape index: {}]   ;;  %s3212_s3 = inlined_call_operand.vmem [shape: bf16[2,128,256], index: 3, kind: output, shape index: {}]  }
   0x1   :  { %s2567_s14 = smov 0   ;;  %s2569_s15 = smov 0  }
   0x2   :  { %s2571_s16 = smov 0   ;;  %s2573_s17 = smov 0  }
   0x3   :  { %s2575_s18 = smov 0  }
   0x4 LB: > { %s35_s19 = sadd.s32 1, %s2530_s16  ;;  %s39_s20 = sadd.s32 1, %s2534_s17  ;;  %s2538_s18 = sphi %s2575_s18, %s13_s18   ;;  %s2534_s17 = sphi %s2573_s17, %s3234_s17   ;;  %s2530_s16 = sphi %s2571_s16, %s3233_s16   ;;  %s2526_s15 = sphi %s2569_s15, %s3232_s15   ;;  %s2522_s14 = sphi %s2567_s14, %s3231_s14   ;;  %s2518_s13 = sphi %s2565_s13, %s3230_s13   ;;  %s2514_s12 = sphi %s2563_s12, %s3229_s12  }
   0x5   : > { %p37_p0 = scmp.ge.s32.totalorder %s35_s19, 2  ;;  %s2081_s21 = sadd.s32 4294967295, %s2538_s18  }
   0x6   : > { %p57_p1 = scmp.ne.s32.totalorder %s2518_s13, %s2514_s12  ;;  %p58_p2 = scmp.eq.s32.totalorder %s2538_s18, 0 }
   0x7   : > { %s3236_s19 = smov (%p37_p0, %s35_s19), 0  ;;  %s3238_s20 = smov (!%p37_p0, %s39_s20), %s2534_s17 }
   0x8   : > { %p41_p3 = scmp.ge.s32.totalorder %s3238_s20, 2  ;;  %p151_p4 = scmp.eq.s32.totalorder %s2081_s21, 3 }
   0x9   : > { %s46_s22 = ssub.s32 %s2530_s16, %s3236_s19  ;;  %p2609_p5 = por %p58_p2, %p57_p1 }
   0xa   : > { %s3240_s20 = smov (%p41_p3, %s3238_s20), 0  ;;  %p2615_p6 = por %p151_p4, %p57_p1 }
   0xb   : > { %s43_s25 = ssub.s32 %s2534_s17, %s3240_s20  ;;  %s50_s27 = sadd.s32 1, %s2518_s13 }
   0xc   : > { %s47_s26 = sor.u32 %s46_s22, %s43_s25  ;;  %p2084_p8 = scmp.ge.s32.totalorder %s2538_s18, 4 }
   0xd   : > { %p48_p7 = scmp.eq.s32.totalorder %s47_s26, 0 }
   0xe   : > { %173 = sbr.rel (%p2084_p8) target bundleno = 67 (0x43), region = 16 }
   0xf   : > { %s2623_s28 = scalar_select %p48_p7, %s2518_s13, %s50_s27  }
  0x13   : > { %176 = sbr.rel (!%p2609_p5) target bundleno = 35 (0x23), region = 20  ;;  %s178_s29 = sand.u32 (%p2609_p5), 1, %s2518_s13  }
  0x14   : > { %s2086_s30 = sshll.u32 (%p2609_p5), %s2534_s17, 5  ;;  %s2085_s4 = sshll.u32 (%p2609_p5), %s178_s29, 6 }
  0x15   : > { %s185_s5 = sadd.s32 (%p2609_p5), %s2530_s16, %s2086_s30  ;;  %s180_s10 = scalar_lea.vmem (%p2609_p5), [#allocation5], %s2085_s4 }
  0x16   : > { %s2087_s6 = sshll.u32 (%p2609_p5), %s185_s5, 2 }
  0x17   : > { %s2634_s9 = scalar_lea.vmem (%p2609_p5), %s3209_s0, %s2087_s6 }
  0x18   : > { %v204_v0 = vld [vmem:[%s2634_s9] sm:$0xf]  ;;  %v206_v1 = vld [vmem:[%s2634_s9 + $0x8] sm:$0xf]  ;;  %v208_v2 = vld [vmem:[%s2634_s9 + $0x10] sm:$0xf] }
  0x19   : > { %205 = vst [vmem:[%s180_s10] sm:$0xf] %v204_v0  ;;  %207 = vst [vmem:[%s180_s10 + $0x4] sm:$0xf] %v206_v1  ;;  %v210_v3 = vld [vmem:[%s2634_s9 + $0x18] sm:$0xf] }
  0x1a   : > { %209 = vst [vmem:[%s180_s10 + $0x8] sm:$0xf] %v208_v2  ;;  %v212_v4 = vld [vmem:[%s2634_s9 + $0x20] sm:$0xf]  ;;  %v214_v5 = vld [vmem:[%s2634_s9 + $0x28] sm:$0xf] }
  0x1b   : > { %211 = vst [vmem:[%s180_s10 + $0xc] sm:$0xf] %v210_v3  ;;  %213 = vst [vmem:[%s180_s10 + $0x10] sm:$0xf] %v212_v4  ;;  %v216_v6 = vld [vmem:[%s2634_s9 + $0x30] sm:$0xf] }
  0x1c   : > { %215 = vst [vmem:[%s180_s10 + $0x14] sm:$0xf] %v214_v5  ;;  %v218_v7 = vld [vmem:[%s2634_s9 + $0x38] sm:$0xf]  ;;  %v220_v8 = vld [vmem:[%s2634_s9 + $0x40] sm:$0xf] }
  0x1d   : > { %217 = vst [vmem:[%s180_s10 + $0x18] sm:$0xf] %v216_v6  ;;  %219 = vst [vmem:[%s180_s10 + $0x1c] sm:$0xf] %v218_v7  ;;  %v222_v9 = vld [vmem:[%s2634_s9 + $0x48] sm:$0xf] }
  0x1e   : > { %221 = vst [vmem:[%s180_s10 + $0x20] sm:$0xf] %v220_v8  ;;  %v224_v10 = vld [vmem:[%s2634_s9 + $0x50] sm:$0xf]  ;;  %v226_v11 = vld [vmem:[%s2634_s9 + $0x58] sm:$0xf] }
  0x1f   : > { %223 = vst [vmem:[%s180_s10 + $0x24] sm:$0xf] %v222_v9  ;;  %225 = vst [vmem:[%s180_s10 + $0x28] sm:$0xf] %v224_v10  ;;  %v228_v12 = vld [vmem:[%s2634_s9 + $0x60] sm:$0xf] }
  0x20   : > { %227 = vst [vmem:[%s180_s10 + $0x2c] sm:$0xf] %v226_v11  ;;  %v230_v13 = vld [vmem:[%s2634_s9 + $0x68] sm:$0xf]  ;;  %v232_v14 = vld [vmem:[%s2634_s9 + $0x70] sm:$0xf] }
  0x21   : > { %229 = vst [vmem:[%s180_s10 + $0x30] sm:$0xf] %v228_v12  ;;  %231 = vst [vmem:[%s180_s10 + $0x34] sm:$0xf] %v230_v13  ;;  %v234_v15 = vld [vmem:[%s2634_s9 + $0x78] sm:$0xf] }
  0x22   : > { %233 = vst [vmem:[%s180_s10 + $0x38] sm:$0xf] %v232_v14  ;;  %235 = vst [vmem:[%s180_s10 + $0x3c] sm:$0xf] %v234_v15 }
  0x23 PF: > { %291 = sbr.rel (!%p2609_p5) target bundleno = 51 (0x33), region = 61  ;;  %s293_s11 = sand.u32 (%p2609_p5), 1, %s2518_s13  }
  0x24   : > { %s2089_s21 = sshll.u32 (%p2609_p5), %s2534_s17, 5  ;;  %s2088_s22 = sshll.u32 (%p2609_p5), %s293_s11, 6 }
  0x25   : > { %s300_s25 = sadd.s32 (%p2609_p5), %s2530_s16, %s2089_s21  ;;  %s295_s4 = scalar_lea.vmem (%p2609_p5), [#allocation6], %s2088_s22 }
  0x26   : > { %s2090_s26 = sshll.u32 (%p2609_p5), %s300_s25, 2 }
  0x27   : > { %s2660_s30 = scalar_lea.vmem (%p2609_p5), %s3210_s1, %s2090_s26 }
  0x28   : > { %v319_v16 = vld [vmem:[%s2660_s30] sm:$0xf]  ;;  %v321_v17 = vld [vmem:[%s2660_s30 + $0x8] sm:$0xf]  ;;  %v323_v18 = vld [vmem:[%s2660_s30 + $0x10] sm:$0xf] }
  0x29   : > { %320 = vst [vmem:[%s295_s4] sm:$0xf] %v319_v16  ;;  %322 = vst [vmem:[%s295_s4 + $0x4] sm:$0xf] %v321_v17  ;;  %v325_v19 = vld [vmem:[%s2660_s30 + $0x18] sm:$0xf] }
  0x2a   : > { %324 = vst [vmem:[%s295_s4 + $0x8] sm:$0xf] %v323_v18  ;;  %v327_v20 = vld [vmem:[%s2660_s30 + $0x20] sm:$0xf]  ;;  %v329_v21 = vld [vmem:[%s2660_s30 + $0x28] sm:$0xf] }
  0x2b   : > { %326 = vst [vmem:[%s295_s4 + $0xc] sm:$0xf] %v325_v19  ;;  %328 = vst [vmem:[%s295_s4 + $0x10] sm:$0xf] %v327_v20  ;;  %v331_v22 = vld [vmem:[%s2660_s30 + $0x30] sm:$0xf] }
  0x2c   : > { %330 = vst [vmem:[%s295_s4 + $0x14] sm:$0xf] %v329_v21  ;;  %v333_v23 = vld [vmem:[%s2660_s30 + $0x38] sm:$0xf]  ;;  %v335_v24 = vld [vmem:[%s2660_s30 + $0x40] sm:$0xf] }
  0x2d   : > { %332 = vst [vmem:[%s295_s4 + $0x18] sm:$0xf] %v331_v22  ;;  %334 = vst [vmem:[%s295_s4 + $0x1c] sm:$0xf] %v333_v23  ;;  %v337_v25 = vld [vmem:[%s2660_s30 + $0x48] sm:$0xf] }
  0x2e   : > { %336 = vst [vmem:[%s295_s4 + $0x20] sm:$0xf] %v335_v24  ;;  %v339_v26 = vld [vmem:[%s2660_s30 + $0x50] sm:$0xf]  ;;  %v341_v27 = vld [vmem:[%s2660_s30 + $0x58] sm:$0xf] }
  0x2f   : > { %338 = vst [vmem:[%s295_s4 + $0x24] sm:$0xf] %v337_v25  ;;  %340 = vst [vmem:[%s295_s4 + $0x28] sm:$0xf] %v339_v26  ;;  %v343_v28 = vld [vmem:[%s2660_s30 + $0x60] sm:$0xf] }
  0x30   : > { %342 = vst [vmem:[%s295_s4 + $0x2c] sm:$0xf] %v341_v27  ;;  %v345_v29 = vld [vmem:[%s2660_s30 + $0x68] sm:$0xf]  ;;  %v347_v30 = vld [vmem:[%s2660_s30 + $0x70] sm:$0xf] }
  0x31   : > { %344 = vst [vmem:[%s295_s4 + $0x30] sm:$0xf] %v343_v28  ;;  %346 = vst [vmem:[%s295_s4 + $0x34] sm:$0xf] %v345_v29  ;;  %v349_v31 = vld [vmem:[%s2660_s30 + $0x78] sm:$0xf] }
  0x32   : > { %348 = vst [vmem:[%s295_s4 + $0x38] sm:$0xf] %v347_v30  ;;  %350 = vst [vmem:[%s295_s4 + $0x3c] sm:$0xf] %v349_v31 }
  0x33 PF: > { %406 = sbr.rel (!%p2609_p5) target bundleno = 67 (0x43), region = 102  ;;  %s408_s5 = sand.u32 (%p2609_p5), 1, %s2518_s13  }
  0x34   : > { %s2092_s6 = sshll.u32 (%p2609_p5), %s2534_s17, 5  ;;  %s2091_s7 = sshll.u32 (%p2609_p5), %s408_s5, 6 }
  0x35   : > { %s415_s8 = sadd.s32 (%p2609_p5), %s2530_s16, %s2092_s6  ;;  %s410_s23 = scalar_lea.vmem (%p2609_p5), [#allocation7], %s2091_s7 }
  0x36   : > { %s2093_s9 = sshll.u32 (%p2609_p5), %s415_s8, 2 }
  0x37   : > { %s2686_s21 = scalar_lea.vmem (%p2609_p5), %s3211_s2, %s2093_s9 }
  0x38   : > { %v434_v32 = vld [vmem:[%s2686_s21] sm:$0xf]  ;;  %v436_v33 = vld [vmem:[%s2686_s21 + $0x8] sm:$0xf]  ;;  %v438_v34 = vld [vmem:[%s2686_s21 + $0x10] sm:$0xf] }
  0x39   : > { %435 = vst [vmem:[%s410_s23] sm:$0xf] %v434_v32  ;;  %437 = vst [vmem:[%s410_s23 + $0x4] sm:$0xf] %v436_v33  ;;  %v440_v35 = vld [vmem:[%s2686_s21 + $0x18] sm:$0xf] }
  0x3a   : > { %439 = vst [vmem:[%s410_s23 + $0x8] sm:$0xf] %v438_v34  ;;  %v442_v36 = vld [vmem:[%s2686_s21 + $0x20] sm:$0xf]  ;;  %v444_v37 = vld [vmem:[%s2686_s21 + $0x28] sm:$0xf] }
  0x3b   : > { %441 = vst [vmem:[%s410_s23 + $0xc] sm:$0xf] %v440_v35  ;;  %443 = vst [vmem:[%s410_s23 + $0x10] sm:$0xf] %v442_v36  ;;  %v446_v38 = vld [vmem:[%s2686_s21 + $0x30] sm:$0xf] }
  0x3c   : > { %445 = vst [vmem:[%s410_s23 + $0x14] sm:$0xf] %v444_v37  ;;  %v448_v39 = vld [vmem:[%s2686_s21 + $0x38] sm:$0xf]  ;;  %v450_v40 = vld [vmem:[%s2686_s21 + $0x40] sm:$0xf] }
  0x3d   : > { %447 = vst [vmem:[%s410_s23 + $0x18] sm:$0xf] %v446_v38  ;;  %449 = vst [vmem:[%s410_s23 + $0x1c] sm:$0xf] %v448_v39  ;;  %v452_v41 = vld [vmem:[%s2686_s21 + $0x48] sm:$0xf] }
  0x3e   : > { %451 = vst [vmem:[%s410_s23 + $0x20] sm:$0xf] %v450_v40  ;;  %v454_v42 = vld [vmem:[%s2686_s21 + $0x50] sm:$0xf]  ;;  %v456_v43 = vld [vmem:[%s2686_s21 + $0x58] sm:$0xf] }
  0x3f   : > { %453 = vst [vmem:[%s410_s23 + $0x24] sm:$0xf] %v452_v41  ;;  %455 = vst [vmem:[%s410_s23 + $0x28] sm:$0xf] %v454_v42  ;;  %v458_v44 = vld [vmem:[%s2686_s21 + $0x60] sm:$0xf] }
  0x40   : > { %457 = vst [vmem:[%s410_s23 + $0x2c] sm:$0xf] %v456_v43  ;;  %v460_v45 = vld [vmem:[%s2686_s21 + $0x68] sm:$0xf]  ;;  %v462_v46 = vld [vmem:[%s2686_s21 + $0x70] sm:$0xf] }
  0x41   : > { %459 = vst [vmem:[%s410_s23 + $0x30] sm:$0xf] %v458_v44  ;;  %461 = vst [vmem:[%s410_s23 + $0x34] sm:$0xf] %v460_v45  ;;  %v464_v47 = vld [vmem:[%s2686_s21 + $0x78] sm:$0xf] }
  0x42   : > { %463 = vst [vmem:[%s410_s23 + $0x38] sm:$0xf] %v462_v46  ;;  %465 = vst [vmem:[%s410_s23 + $0x3c] sm:$0xf] %v464_v47 }
  0x43 PF: > { %p2094_p9 = scmp.ge.s32.totalorder %s2538_s18, 1  ;;  %p520_p10 = scmp.lt.s32.totalorder %s2538_s18, 5 }
  0x45   : > { %p521_p11 = pnand %p2094_p9, %p520_p10 }
  0x46   : > { %s527_s22 = sand.u32 (!%p521_p11), 1, %s2514_s12  }
  0x47   : > { %524 = sbr.rel (%p521_p11) target bundleno = 969 (0x3c9), region = 143  ;;  %s2707_s25 = sshll.u32 (!%p521_p11), %s527_s22, 6 }
  0x48   : > { %s536_s26 = scalar_lea.vmem (!%p521_p11), [#allocation6], %s2707_s25  ;;  %s2711_s27 = scalar_lea.vmem (!%p521_p11), [#allocation5], %s2707_s25 }
  0x49   : > { %s2842_s12 = scalar_lea.vmem (!%p521_p11), [#allocation7], %s2707_s25  ;;  %s3149_s29 = scalar_lea.vmem (!%p521_p11), [#allocation8], %s2707_s25 }
  0x4c   : > { %v2364_v48 = vld [vmem:[%s536_s26 + $0x38] sm:$0xff]   ;;  %v2365_v49 = vld [vmem:[%s536_s26 + $0x30] sm:$0xff]   ;;  %v2366_v50 = vld [vmem:[%s536_s26 + $0x28] sm:$0xff]   ;;  %vm580_vm0 = vcmask 7168   ;;  %v2540_v0 = vmov -1e+30   ;;  %v877_v1 = vlaneseq }
  0x4d   : > { %2239 = vmatprep.subr.bf16.mxu0 %v2364_v48  ;;  %v2372_v51 = vld [vmem:[%s2711_s27] sm:$0xff]   ;;  %v2368_v53 = vld [vmem:[%s536_s26 + $0x18] sm:$0xff]   ;;  %v2369_v54 = vld [vmem:[%s536_s26 + $0x10] sm:$0xff]   ;;  %583 = vst.msk [vmem:[#allocation2 + $0x10] sm:$0xff] %vm580_vm0, %v2540_v0  ;;  %v2541_v34 = vmov 0   ;;  %s2140_s30 = sshll.u32 (%p2615_p6), %s2526_s15, 5 }
  0x4e   : > { %2240 = vmatpush3.bf16.xpose.msra.mxu0 %v2364_v48  ;;  %2255 = vmatprep.mubr.bf16.mxu0 %v2372_v51  ;;  %v2367_v52 = vld [vmem:[%s536_s26 + $0x20] sm:$0xff]   ;;  %v2370_v55 = vld [vmem:[%s536_s26 + $0x8] sm:$0xff]   ;;  %v2374_v58 = vld [vmem:[%s2711_s27 + $0x10] sm:$0xff]   ;;  %581 = vst.msk [vmem:[#allocation2] sm:$0xff] %vm580_vm0, %v2540_v0  ;;  %v2737_v2 = vshrl.u32 %v877_v1, 7  ;;  %v2740_v4 = vand.u32 127, %v877_v1  ;;  %s1851_s4 = sadd.s32 (%p2615_p6), %s2522_s14, %s2140_s30 }
  0x4f   : > { %2241 = vmatprep.subr.bf16.mxu0 %v2365_v49  ;;  %v2371_v56 = vld [vmem:[%s536_s26] sm:$0xff]   ;;  %v2373_v57 = vld [vmem:[%s2711_s27 + $0x8] sm:$0xff]   ;;  %v2375_v59 = vld [vmem:[%s2711_s27 + $0x18] sm:$0xff]   ;;  %582 = vst.msk [vmem:[#allocation2 + $0x8] sm:$0xff] %vm580_vm0, %v2540_v0  ;;  %2363 = vset.pattern.permute.xlu1 %v2541_v34  ;;  %s2141_s24 = sshll.u32 (%p2615_p6), %s1851_s4, 2 }
  0x50   : > { %v2376_v60 = vld [vmem:[%s2711_s27 + $0x20] sm:$0xff]   ;;  %v2377_v61 = vld [vmem:[%s2711_s27 + $0x28] sm:$0xff]   ;;  %v2378_v62 = vld [vmem:[%s2711_s27 + $0x30] sm:$0xff]   ;;  %584 = vst.msk [vmem:[#allocation2 + $0x18] sm:$0xff] %vm580_vm0, %v2540_v0  ;;  %v880_v3 = vadd.s32 16, %v2737_v2  ;;  %v881_v6 = vadd.s32 24, %v2737_v2  ;;  %vm915_vm2 = vcmp.le.s32.totalorder %v2740_v4, %v2737_v2  ;;  %2362 = vset.pattern.permute.xlu0 %v2541_v34  ;;  %s1853_s7 = scalar_lea.vmem (%p2615_p6), %s3212_s3, %s2141_s24 }
  0x51   : > { %v2379_v63 = vld [vmem:[%s2711_s27 + $0x38] sm:$0xff]   ;;  %585 = vst.msk [vmem:[#allocation2 + $0x20] sm:$0xff] %vm580_vm0, %v2540_v0  ;;  %586 = vst.msk [vmem:[#allocation2 + $0x28] sm:$0xff] %vm580_vm0, %v2540_v0  ;;  %v879_v9 = vadd.s32 8, %v2737_v2  ;;  %v882_v16 = vadd.s32 32, %v2737_v2  ;;  %v885_v20 = vadd.s32 56, %v2737_v2 }
  0x52   : > { %587 = vst.msk [vmem:[#allocation2 + $0x30] sm:$0xff] %vm580_vm0, %v2540_v0  ;;  %588 = vst.msk [vmem:[#allocation2 + $0x38] sm:$0xff] %vm580_vm0, %v2540_v0  ;;  %vm917_vm1 = vcmp.le.s32.totalorder %v2740_v4, %v880_v3  ;;  %vm918_vm3 = vcmp.le.s32.totalorder %v2740_v4, %v881_v6  ;;  %v884_v23 = vadd.s32 48, %v2737_v2  ;;  %v883_v26 = vadd.s32 40, %v2737_v2  ;;  %v2380_v6 = vld [vmem:[%s2842_s12 + $0x38] sm:$0xff]  }
  0x53   : > { %589 = vst.msk [vmem:[#allocation2 + $0x40] sm:$0xff] %vm580_vm0, %v2540_v0  ;;  %590 = vst.msk [vmem:[#allocation2 + $0x48] sm:$0xff] %vm580_vm0, %v2540_v0  ;;  %vm916_vm4 = vcmp.le.s32.totalorder %v2740_v4, %v879_v9  ;;  %vm919_vm5 = vcmp.le.s32.totalorder %v2740_v4, %v882_v16  ;;  %vm922_vm6 = vcmp.le.s32.totalorder %v2740_v4, %v885_v20  ;;  %v886_v31 = vadd.s32 64, %v2737_v2  ;;  %v2384_v34 = vld [vmem:[%s2842_s12 + $0x18] sm:$0xff]  }
  0x54   : > { %591 = vst.msk [vmem:[#allocation2 + $0x50] sm:$0xff] %vm580_vm0, %v2540_v0  ;;  %592 = vst.msk [vmem:[#allocation2 + $0x58] sm:$0xff] %vm580_vm0, %v2540_v0  ;;  %vm921_vm7 = vcmp.le.s32.totalorder %v2740_v4, %v884_v23  ;;  %vm920_vm8 = vcmp.le.s32.totalorder %v2740_v4, %v883_v26  ;;  %v889_v36 = vadd.s32 88, %v2737_v2  ;;  %v888_v37 = vadd.s32 80, %v2737_v2  ;;  %2271 = vmatprep.subr.bf16.mxu1 %v2380_v6 }
  0x55   : > { %593 = vst.msk [vmem:[#allocation2 + $0x60] sm:$0xff] %vm580_vm0, %v2540_v0  ;;  %594 = vst.msk [vmem:[#allocation2 + $0x68] sm:$0xff] %vm580_vm0, %v2540_v0  ;;  %vm923_vm9 = vcmp.le.s32.totalorder %v2740_v4, %v886_v31  ;;  %v887_v44 = vadd.s32 72, %v2737_v2  ;;  %v890_v48 = vadd.s32 96, %v2737_v2  ;;  %2272 = vmatpush3.bf16.msra.mxu1 %v2380_v6 }
  0x56   : > { %2242 = vmatpush3.bf16.xpose.msra.mxu0 %v2365_v49  ;;  %595 = vst.msk [vmem:[#allocation2 + $0x70] sm:$0xff] %vm580_vm0, %v2540_v0  ;;  %596 = vst.msk [vmem:[#allocation2 + $0x78] sm:$0xff] %vm580_vm0, %v2540_v0  ;;  %vm926_vm10 = vcmp.le.s32.totalorder %v2740_v4, %v889_v36  ;;  %vm925_vm11 = vcmp.le.s32.totalorder %v2740_v4, %v888_v37  ;;  %v2864_v20 = vld [vmem:[#allocation2 + $0x8] sm:$0xff] }
  0x57   : > { %2243 = vmatprep.subr.bf16.mxu0 %v2366_v50  ;;  %vm924_vm12 = vcmp.le.s32.totalorder %v2740_v4, %v887_v44  ;;  %vm927_vm13 = vcmp.le.s32.totalorder %v2740_v4, %v890_v48  ;;  %v2385_v44 = vld [vmem:[%s2842_s12 + $0x10] sm:$0xff]  }
  0x59   : > { %v2896_v37 = vld [vmem:[#allocation2 + $0x30] sm:$0xff] }
  0x5a   : > { %v2945_v6 = vld [vmem:[#allocation2 + $0x48] sm:$0xff] }
  0x5e   : > { %2244 = vmatpush3.bf16.xpose.msra.mxu0 %v2366_v50 }
  0x5f   : > { %2245 = vmatprep.subr.bf16.mxu0 %v2367_v52 }
  0x66   : > { %2246 = vmatpush3.bf16.xpose.msra.mxu0 %v2367_v52 }
  0x67   : > { %2247 = vmatprep.subr.bf16.mxu0 %v2368_v53 }
  0x6e   : > { %2248 = vmatpush3.bf16.xpose.msra.mxu0 %v2368_v53  ;;  %v893_v53 = vadd.s32 120, %v2737_v2 }
  0x6f   : > { %2249 = vmatprep.subr.bf16.mxu0 %v2369_v54 }
  0x70   : > { %vm930_vm14 = vcmp.le.s32.totalorder %v2740_v4, %v893_v53 }
  0x76   : > { %2250 = vmatpush3.bf16.xpose.msra.mxu0 %v2369_v54  ;;  %v892_v54 = vadd.s32 112, %v2737_v2 }
  0x77   : > { %2251 = vmatprep.subr.bf16.mxu0 %v2370_v55 }
  0x78   : > { %vm929_vm15 = vcmp.le.s32.totalorder %v2740_v4, %v892_v54 }
  0x7e   : > { %2252 = vmatpush3.bf16.xpose.msra.mxu0 %v2370_v55 }
  0x7f   : > { %2253 = vmatprep.subr.bf16.mxu0 %v2371_v56 }
  0x86   : > { %2254 = vmatpush3.bf16.xpose.msra.mxu0 %v2371_v56  ;;  %v2542_v56 = vmov 0.0  }
  0x87   : > { %599 = vst.msk [vmem:[#allocation3 + $0x10] sm:$0xff] %vm580_vm0, %v2542_v56  ;;  %597 = vst.msk [vmem:[#allocation3] sm:$0xff] %vm580_vm0, %v2542_v56 }
  0x88   : > { %598 = vst.msk [vmem:[#allocation3 + $0x8] sm:$0xff] %vm580_vm0, %v2542_v56  ;;  %600 = vst.msk [vmem:[#allocation3 + $0x18] sm:$0xff] %vm580_vm0, %v2542_v56 }
  0x89   : > { %601 = vst.msk [vmem:[#allocation3 + $0x20] sm:$0xff] %vm580_vm0, %v2542_v56  ;;  %602 = vst.msk [vmem:[#allocation3 + $0x28] sm:$0xff] %vm580_vm0, %v2542_v56 }
  0x8a   : > { %603 = vst.msk [vmem:[#allocation3 + $0x30] sm:$0xff] %vm580_vm0, %v2542_v56  ;;  %604 = vst.msk [vmem:[#allocation3 + $0x38] sm:$0xff] %vm580_vm0, %v2542_v56 }
  0x8b   : > { %605 = vst.msk [vmem:[#allocation3 + $0x40] sm:$0xff] %vm580_vm0, %v2542_v56  ;;  %606 = vst.msk [vmem:[#allocation3 + $0x48] sm:$0xff] %vm580_vm0, %v2542_v56 }
  0x8c   : > { %607 = vst.msk [vmem:[#allocation3 + $0x50] sm:$0xff] %vm580_vm0, %v2542_v56  ;;  %608 = vst.msk [vmem:[#allocation3 + $0x58] sm:$0xff] %vm580_vm0, %v2542_v56 }
  0x8d   : > { %2256 = vmatmul.mubr.bf16.vlgmr.msra.gmra.mxu0 %v2373_v57  ;;  %609 = vst.msk [vmem:[#allocation3 + $0x60] sm:$0xff] %vm580_vm0, %v2542_v56  ;;  %610 = vst.msk [vmem:[#allocation3 + $0x68] sm:$0xff] %vm580_vm0, %v2542_v56 }
  0x8e   : > { %2259 = vmatprep.mubr.bf16.mxu0 %v2374_v58  ;;  %611 = vst.msk [vmem:[#allocation3 + $0x70] sm:$0xff] %vm580_vm0, %v2542_v56  ;;  %612 = vst.msk [vmem:[#allocation3 + $0x78] sm:$0xff] %vm580_vm0, %v2542_v56  ;;  %v2386_v56 = vld [vmem:[%s2842_s12 + $0x8] sm:$0xff]  }
  0x95   : > { %2260 = vmatmul.mubr.bf16.gmra.mxu0 %v2375_v59 }
  0x96   : > { %2263 = vmatprep.mubr.bf16.mxu0 %v2376_v60 }
  0x9d   : > { %2264 = vmatmul.mubr.bf16.gmra.mxu0 %v2377_v61  ;;  %v891_v61 = vadd.s32 104, %v2737_v2 }
  0x9e   : > { %2267 = vmatprep.mubr.bf16.mxu0 %v2378_v62 }
  0xa5   : > { %2268 = vmatmul.mubr.bf16.gmra.mxu0 %v2379_v63 }
 0x14d   : > { %v2257_v5 = vpop.f32.mrf.mxu0 }
 0x14e   : > { %v863_v7 = vmul.f32 0.088388346, %v2257_v5 }
 0x14f   : > { %v798_v8 = vpop.f32.mrf.mxu0 }
 0x150   : > { %v861_v10 = vmul.f32 0.088388346, %v798_v8  ;;  %v2747_v11 = vsel %vm917_vm1, %v863_v7, -1e+30  ;;  %vm928_vm1 = vcmp.le.s32.totalorder %v2740_v4, %v891_v61  ;;  %v2845_v7 = vld [vmem:[#allocation2 + $0x10] sm:$0xff] }
 0x151   : > { %967 = vmax.xlane.f32.xlu1 %v2747_v11  ;;  %v2258_v12 = vpop.f32.mrf.mxu0  ;;  %v2381_v8 = vld [vmem:[%s2842_s12 + $0x30] sm:$0xff]  }
 0x152   : > { %v864_v13 = vmul.f32 0.088388346, %v2258_v12  ;;  %v2751_v14 = vsel %vm915_vm2, %v861_v10, -1e+30  ;;  %v2848_v10 = vld [vmem:[#allocation2] sm:$0xff]  ;;  %2273 = vmatprep.subr.bf16.mxu1 %v2381_v8  ;;  %v2935_v61 = vld [vmem:[#allocation2 + $0x50] sm:$0xff] }
 0x153   : > { %963 = vmax.xlane.f32.xlu0 %v2751_v14  ;;  %v801_v15 = vpop.f32.mrf.mxu0  ;;  %2274 = vmatpush3.bf16.msra.mxu1 %v2381_v8  ;;  %v2387_v8 = vld [vmem:[%s2842_s12] sm:$0xff]  }
 0x154   : > { %v862_v17 = vmul.f32 0.088388346, %v801_v15  ;;  %v2756_v18 = vsel %vm918_vm3, %v864_v13, -1e+30  ;;  %v2853_v13 = vld [vmem:[#allocation2 + $0x18] sm:$0xff]  ;;  %v2382_v15 = vld [vmem:[%s2842_s12 + $0x28] sm:$0xff]  }
 0x155   : > { %969 = vmax.xlane.f32.xlu1 %v2756_v18  ;;  %v2261_v19 = vpop.f32.mrf.mxu0  ;;  %2275 = vmatprep.subr.bf16.mxu1 %v2382_v15 }
 0x156   : > { %v2760_v21 = vsel %vm916_vm4, %v862_v17, -1e+30  ;;  %v867_v27 = vmul.f32 0.088388346, %v2261_v19 }
 0x157   : > { %965 = vmax.xlane.f32.xlu0 %v2760_v21  ;;  %v814_v22 = vpop.f32.mrf.mxu0  ;;  %2276 = vmatpush3.bf16.msra.mxu1 %v2382_v15 }
 0x158   : > { %v865_v24 = vmul.f32 0.088388346, %v814_v22  ;;  %v2778_v38 = vsel %vm921_vm7, %v867_v27, -1e+30 }
 0x159   : > { %v2262_v25 = vpop.f32.mrf.mxu0 }
 0x15a   : > { %v868_v28 = vmul.f32 0.088388346, %v2262_v25  ;;  %v2767_v29 = vsel %vm919_vm5, %v865_v24, -1e+30  ;;  %v2383_v25 = vld [vmem:[%s2842_s12 + $0x20] sm:$0xff]  }
 0x15b   : > { %971 = vmax.xlane.f32.xlu0 %v2767_v29  ;;  %v817_v30 = vpop.f32.mrf.mxu0  ;;  %2277 = vmatprep.subr.bf16.mxu1 %v2383_v25 }
 0x15c   : > { %v866_v32 = vmul.f32 0.088388346, %v817_v30  ;;  %v2772_v33 = vsel %vm922_vm6, %v868_v28, -1e+30  ;;  %v2883_v28 = vld [vmem:[#allocation2 + $0x20] sm:$0xff]  ;;  %2278 = vmatpush3.bf16.msra.mxu1 %v2383_v25 }
 0x15d   : > { %977 = vmax.xlane.f32.xlu1 %v2772_v33  ;;  %v2265_v35 = vpop.f32.mrf.mxu0  ;;  %2279 = vmatprep.subr.bf16.mxu1 %v2384_v34 }
 0x15e   : > { %v871_v40 = vmul.f32 0.088388346, %v2265_v35  ;;  %v2782_v42 = vsel %vm920_vm8, %v866_v32, -1e+30  ;;  %v2889_v32 = vld [vmem:[#allocation2 + $0x38] sm:$0xff] }
 0x15f   : > { %975 = vmax.xlane.f32.xlu0 %v2778_v38  ;;  %v830_v39 = vpop.f32.mrf.mxu0 }
 0x160   : > { %v869_v41 = vmul.f32 0.088388346, %v830_v39  ;;  %v2794_v51 = vsel %vm925_vm11, %v871_v40, -1e+30  ;;  %2280 = vmatpush3.bf16.msra.mxu1 %v2384_v34  ;;  %v2965_v34 = vld [vmem:[#allocation2 + $0x78] sm:$0xff] }
 0x161   : > { %973 = vmax.xlane.f32.xlu1 %v2782_v42  ;;  %v2266_v43 = vpop.f32.mrf.mxu0  ;;  %2281 = vmatprep.subr.bf16.mxu1 %v2385_v44 }
 0x162   : > { %v872_v45 = vmul.f32 0.088388346, %v2266_v43  ;;  %v2788_v46 = vsel %vm923_vm9, %v869_v41, -1e+30  ;;  %v2905_v43 = vld [vmem:[#allocation2 + $0x28] sm:$0xff] }
 0x163   : > { %979 = vmax.xlane.f32.xlu0 %v2788_v46  ;;  %v833_v47 = vpop.f32.mrf.mxu0 }
 0x164   : > { %v870_v49 = vmul.f32 0.088388346, %v833_v47  ;;  %v2792_v50 = vsel %vm926_vm10, %v872_v45, -1e+30  ;;  %2282 = vmatpush3.bf16.msra.mxu1 %v2385_v44 }
 0x165   : > { %985 = vmax.xlane.f32.xlu1 %v2792_v50  ;;  %v2269_v52 = vpop.f32.mrf.mxu0  ;;  %2283 = vmatprep.subr.bf16.mxu1 %v2386_v56 }
 0x166   : > { %v875_v57 = vmul.f32 0.088388346, %v2269_v52  ;;  %v2820_v59 = vsel %vm924_vm12, %v870_v49, -1e+30  ;;  %v2915_v49 = vld [vmem:[#allocation2 + $0x40] sm:$0xff] }
 0x167   : > { %983 = vmax.xlane.f32.xlu0 %v2794_v51  ;;  %v846_v55 = vpop.f32.mrf.mxu0 }
 0x168   : > { %v873_v58 = vmul.f32 0.088388346, %v846_v55  ;;  %v2833_v5 = vsel %vm929_vm15, %v875_v57, -1e+30  ;;  %v2925_v55 = vld [vmem:[#allocation2 + $0x58] sm:$0xff]  ;;  %2284 = vmatpush3.bf16.msra.mxu1 %v2386_v56 }
 0x169   : > { %981 = vmax.xlane.f32.xlu1 %v2820_v59  ;;  %v2270_v60 = vpop.f32.mrf.mxu0  ;;  %2285 = vmatprep.subr.bf16.mxu1 %v2387_v8 }
 0x16a   : > { %v876_v62 = vmul.f32 0.088388346, %v2270_v60  ;;  %v2828_v63 = vsel %vm927_vm13, %v873_v58, -1e+30 }
 0x16b   : > { %987 = vmax.xlane.f32.xlu0 %v2828_v63  ;;  %v849_v0 = vpop.f32.mrf.mxu0 }
 0x16c   : > { %v874_v1 = vmul.f32 0.088388346, %v849_v0  ;;  %v2831_v3 = vsel %vm930_vm14, %v876_v62, -1e+30  ;;  %2286 = vmatpush3.bf16.msra.mxu1 %v2387_v8 }
 0x16d   : > { %993 = vmax.xlane.f32.xlu1 %v2831_v3 }
 0x16e   : > { %v2838_v2 = vsel %vm928_vm1, %v874_v1, -1e+30 }
 0x16f   : > { %991 = vmax.xlane.f32.xlu0 %v2833_v5 }
 0x171   : > { %989 = vmax.xlane.f32.xlu1 %v2838_v2 }
 0x1da   : > { %v968_v9 = vpop.xlane.xlu1 %967 }
 0x1db   : > { %v2851_v4 = vmax.f32 %v2845_v7, %v968_v9 }
 0x1dc   : > { %v964_v12 = vpop.xlane.xlu0 %963 }
 0x1dd   : > { %v1013_v16 = vsub.f32 %v2845_v7, %v2851_v4  ;;  %1599 = vst.msk [vmem:[#allocation2 + $0x10] sm:$0xff] %vm580_vm0, %v2851_v4  ;;  %v2861_v17 = vmax.f32 %v2848_v10, %v964_v12  ;;  %1071 = vperm.xlu1 %2363, %v2851_v4  }
 0x1de   : > { %v970_v19 = vpop.xlane.xlu1 %969 }
 0x1df   : > { %1597 = vst.msk [vmem:[#allocation2] sm:$0xff] %vm580_vm0, %v2861_v17  ;;  %v2871_v23 = vmax.f32 %v2853_v13, %v970_v19  ;;  %1061 = vperm.xlu0 %2362, %v2861_v17   ;;  %v2955_v19 = vld [vmem:[#allocation2 + $0x60] sm:$0xff] }
 0x1e0   : > { %v966_v24 = vpop.xlane.xlu0 %965 }
 0x1e1   : > { %1600 = vst.msk [vmem:[#allocation2 + $0x18] sm:$0xff] %vm580_vm0, %v2871_v23  ;;  %v2880_v27 = vmax.f32 %v2864_v20, %v966_v24  ;;  %1076 = vperm.xlu1 %2363, %v2871_v23  }
 0x1e3   : > { %v1012_v30 = vsub.f32 %v2864_v20, %v2880_v27  ;;  %1598 = vst.msk [vmem:[#allocation2 + $0x8] sm:$0xff] %vm580_vm0, %v2880_v27  ;;  %v3217_v20 = vsub.f32 %v2853_v13, %v2871_v23 }
 0x1e4   : > { %v972_v31 = vpop.xlane.xlu0 %971 }
 0x1e5   : > { %v2893_v35 = vmax.f32 %v2883_v28, %v972_v31  ;;  %1066 = vperm.xlu1 %2363, %v2880_v27   ;;  %v1033_v27 = vmul.f32 1.442695, %v3217_v20 }
 0x1e6   : > { %v978_v36 = vpop.xlane.xlu1 %977 }
 0x1e7   : > { %1601 = vst.msk [vmem:[#allocation2 + $0x20] sm:$0xff] %vm580_vm0, %v2893_v35  ;;  %v2903_v40 = vmax.f32 %v2889_v32, %v978_v36 }
 0x1e8   : > { %v976_v41 = vpop.xlane.xlu0 %975 }
 0x1e9   : > { %1604 = vst.msk [vmem:[#allocation2 + $0x38] sm:$0xff] %vm580_vm0, %v2903_v40  ;;  %v2913_v47 = vmax.f32 %v2896_v37, %v976_v41  ;;  %v3221_v13 = vsub.f32 %v2889_v32, %v2903_v40 }
 0x1ea   : > { %v974_v48 = vpop.xlane.xlu1 %973 }
 0x1eb   : > { %1603 = vst.msk [vmem:[#allocation2 + $0x30] sm:$0xff] %vm580_vm0, %v2913_v47  ;;  %v2922_v53 = vmax.f32 %v2905_v43, %v974_v48  ;;  %1091 = vperm.xlu1 %2363, %v2913_v47   ;;  %v2975_v48 = vld [vmem:[#allocation2 + $0x70] sm:$0xff]  ;;  %v3218_v7 = vsub.f32 %v2896_v37, %v2913_v47  ;;  %v1041_v23 = vmul.f32 1.442695, %v3221_v13  ;;  %v1192_v13 = vld [vmem:[#allocation3 + $0x28] sm:$0xff] }
 0x1ec   : > { %v980_v54 = vpop.xlane.xlu0 %979 }
 0x1ed   : > { %1602 = vst.msk [vmem:[#allocation2 + $0x28] sm:$0xff] %vm580_vm0, %v2922_v53  ;;  %v2933_v58 = vmax.f32 %v2915_v49, %v980_v54  ;;  %v1039_v4 = vmul.f32 1.442695, %v3218_v7 }
 0x1ee   : > { %v986_v60 = vpop.xlane.xlu1 %985 }
 0x1ef   : > { %1605 = vst.msk [vmem:[#allocation2 + $0x40] sm:$0xff] %vm580_vm0, %v2933_v58  ;;  %v2942_v0 = vmax.f32 %v2925_v55, %v986_v60  ;;  %1081 = vperm.xlu1 %2363, %v2893_v35  }
 0x1f0   : > { %v984_v1 = vpop.xlane.xlu0 %983 }
 0x1f1   : > { %1608 = vst.msk [vmem:[#allocation2 + $0x58] sm:$0xff] %vm580_vm0, %v2942_v0  ;;  %v2953_v12 = vmax.f32 %v2935_v61, %v984_v1  ;;  %v2985_v1 = vld [vmem:[#allocation2 + $0x68] sm:$0xff] }
 0x1f2   : > { %v982_v15 = vpop.xlane.xlu1 %981 }
 0x1f3   : > { %1607 = vst.msk [vmem:[#allocation2 + $0x50] sm:$0xff] %vm580_vm0, %v2953_v12  ;;  %v2962_v25 = vmax.f32 %v2945_v6, %v982_v15  ;;  %1086 = vperm.xlu1 %2363, %v2922_v53  }
 0x1f4   : > { %v988_v31 = vpop.xlane.xlu0 %987 }
 0x1f5   : > { %1606 = vst.msk [vmem:[#allocation2 + $0x48] sm:$0xff] %vm580_vm0, %v2962_v25  ;;  %v2972_v41 = vmax.f32 %v2955_v19, %v988_v31  ;;  %1106 = vperm.xlu0 %2362, %v2962_v25   ;;  %v3223_v47 = vsub.f32 %v2945_v6, %v2962_v25 }
 0x1f6   : > { %v994_v44 = vpop.xlane.xlu1 %993 }
 0x1f7   : > { %1609 = vst.msk [vmem:[#allocation2 + $0x60] sm:$0xff] %vm580_vm0, %v2972_v41  ;;  %v2982_v56 = vmax.f32 %v2965_v34, %v994_v44  ;;  %1096 = vperm.xlu1 %2363, %v2903_v40   ;;  %v3224_v32 = vsub.f32 %v2955_v19, %v2972_v41 }
 0x1f8   : > { %v992_v60 = vpop.xlane.xlu0 %991 }
 0x1f9   : > { %1612 = vst.msk [vmem:[#allocation2 + $0x78] sm:$0xff] %vm580_vm0, %v2982_v56  ;;  %v2992_v15 = vmax.f32 %v2975_v48, %v992_v60  ;;  %1116 = vperm.xlu0 %2362, %v2942_v0   ;;  %v1051_v40 = vmul.f32 1.442695, %v3224_v32  ;;  %v1198_v32 = vld [vmem:[#allocation3 + $0x58] sm:$0xff] }
 0x1fa   : > { %v990_v31 = vpop.xlane.xlu1 %989 }
 0x1fb   : > { %1611 = vst.msk [vmem:[#allocation2 + $0x70] sm:$0xff] %vm580_vm0, %v2992_v15  ;;  %v3000_v9 = vmax.f32 %v2985_v1, %v990_v31  ;;  %1101 = vperm.xlu1 %2363, %v2933_v58   ;;  %v3226_v6 = vsub.f32 %v2975_v48, %v2992_v15 }
 0x1fd   : > { %1610 = vst.msk [vmem:[#allocation2 + $0x68] sm:$0xff] %vm580_vm0, %v3000_v9  ;;  %1126 = vperm.xlu0 %2362, %v3000_v9   ;;  %v1055_v25 = vmul.f32 1.442695, %v3226_v6  ;;  %v3227_v19 = vsub.f32 %v2985_v1, %v3000_v9 }
 0x1ff   : > { %1111 = vperm.xlu1 %2363, %v2953_v12  }
 0x201   : > { %1136 = vperm.xlu0 %2362, %v2982_v56  }
 0x203   : > { %1121 = vperm.xlu1 %2363, %v2972_v41   ;;  %v1053_v41 = vmul.f32 1.442695, %v3227_v19 }
 0x207   : > { %1131 = vperm.xlu1 %2363, %v2992_v15  }
 0x258   : > { %v1072_v60 = vpop.permute.xlu1 %1071 }
 0x259   : > { %v1141_v31 = vsub.f32 %v2747_v11, %v1072_v60 }
 0x25a   : > { %v1062_v44 = vpop.permute.xlu0 %1061 }
 0x25b   : > { %v1159_v54 = vmul.f32 1.442695, %v1141_v31  ;;  %v1139_v8 = vsub.f32 %v2751_v14, %v1062_v44 }
 0x25c   : > { %v1077_v36 = vpop.permute.xlu1 %1076 }
 0x25d   : > { %2388 = vpow2.f32 %v1159_v54  ;;  %v1155_v24 = vmul.f32 1.442695, %v1139_v8  ;;  %v1142_v45 = vsub.f32 %v2756_v18, %v1077_v36 }
 0x25f   : > { %2390 = vpow2.f32 %v1155_v24  ;;  %v1161_v62 = vmul.f32 1.442695, %v1142_v45 }
 0x260   : > { %v1067_v57 = vpop.permute.xlu1 %1066 }
 0x261   : > { %v1140_v52 = vsub.f32 %v2760_v21, %v1067_v57  ;;  %2392 = vpow2.f32 %v1161_v62 }
 0x263   : > { %v1157_v26 = vmul.f32 1.442695, %v1140_v52 }
 0x265   : > { %2394 = vpow2.f32 %v1157_v26 }
 0x266   : > { %v1092_v39 = vpop.permute.xlu1 %1091 }
 0x267   : > { %v1145_v11 = vsub.f32 %v2778_v38, %v1092_v39 }
 0x269   : > { %v1167_v60 = vmul.f32 1.442695, %v1145_v11 }
 0x26a   : > { %v2389_v31 = vpop.eup %2388  ;;  %v1082_v22 = vpop.permute.xlu1 %1081 }
 0x26b   : > { %2396 = vpow2.f32 %v1167_v60  ;;  %v1143_v14 = vsub.f32 %v2767_v29, %v1082_v22  ;;  %1223 = vadd.xlane.f32.xlu0 %v2389_v31 }
 0x26c   : > { %v2391_v54 = vpop.eup %2390 }
 0x26d   : > { %v1163_v18 = vmul.f32 1.442695, %v1143_v14  ;;  %1219 = vadd.xlane.f32.xlu1 %v2391_v54 }
 0x26e   : > { %v1087_v45 = vpop.permute.xlu1 %1086  ;;  %v2393_v57 = vpop.eup %2392 }
 0x26f   : > { %2398 = vpow2.f32 %v1163_v18  ;;  %v1144_v21 = vsub.f32 %v2782_v42, %v1087_v45  ;;  %v1397_v36 = vpack.c.bf16 %v2393_v57, %v2389_v31 }
 0x270   : > { %v1107_v52 = vpop.permute.xlu0 %1106 }
 0x271   : > { %v1165_v26 = vmul.f32 1.442695, %v1144_v21  ;;  %1225 = vadd.xlane.f32.xlu1 %v2393_v57  ;;  %v1148_v38 = vsub.f32 %v2820_v59, %v1107_v52 }
 0x272   : > { %v2395_v62 = vpop.eup %2394  ;;  %v1097_v39 = vpop.permute.xlu1 %1096 }
 0x273   : > { %2400 = vpow2.f32 %v1165_v26  ;;  %v1146_v24 = vsub.f32 %v2772_v33, %v1097_v39  ;;  %1221 = vadd.xlane.f32.xlu0 %v2395_v62  ;;  %v1396_v29 = vpack.c.bf16 %v2395_v62, %v2391_v54  ;;  %v1173_v44 = vmul.f32 1.442695, %v1148_v38 }
 0x274   : > { %v1117_v22 = vpop.permute.xlu0 %1116 }
 0x275   : > { %v1169_v8 = vmul.f32 1.442695, %v1146_v24  ;;  %2287 = vmatprep.mubr.bf16.mxu1 %v1396_v29  ;;  %v1150_v42 = vsub.f32 %v2792_v50, %v1117_v22 }
 0x276   : > { %2288 = vmatmul.mubr.bf16.vlgmr.msra.gmra.mxu1 %v1397_v36  ;;  %v1102_v11 = vpop.permute.xlu1 %1101 }
 0x277   : > { %2402 = vpow2.f32 %v1169_v8  ;;  %v1147_v60 = vsub.f32 %v2788_v46, %v1102_v11  ;;  %v1177_v33 = vmul.f32 1.442695, %v1150_v42 }
 0x278   : > { %v2397_v14 = vpop.eup %2396  ;;  %v1127_v59 = vpop.permute.xlu0 %1126  ;;  %2404 = vpow2.f32 %v1173_v44 }
 0x279   : > { %v1171_v18 = vmul.f32 1.442695, %v1147_v60  ;;  %1231 = vadd.xlane.f32.xlu0 %v2397_v14  ;;  %v1152_v54 = vsub.f32 %v2838_v2, %v1127_v59 }
 0x27a   : > { %v1112_v45 = vpop.permute.xlu1 %1111 }
 0x27b   : > { %2406 = vpow2.f32 %v1171_v18  ;;  %v1149_v31 = vsub.f32 %v2794_v51, %v1112_v45  ;;  %v1181_v52 = vmul.f32 1.442695, %v1152_v54  ;;  %v1029_v45 = vmul.f32 1.442695, %v1012_v30 }
 0x27c   : > { %v2399_v21 = vpop.eup %2398  ;;  %v1137_v57 = vpop.permute.xlu0 %1136  ;;  %2408 = vpow2.f32 %v1177_v33 }
 0x27d   : > { %v1175_v50 = vmul.f32 1.442695, %v1149_v31  ;;  %1227 = vadd.xlane.f32.xlu0 %v2399_v21  ;;  %v1154_v46 = vsub.f32 %v2831_v3, %v1137_v57  ;;  %v1031_v31 = vmul.f32 1.442695, %v1013_v16 }
 0x27e   : > { %v1122_v26 = vpop.permute.xlu1 %1121 }
 0x27f   : > { %2410 = vpow2.f32 %v1175_v50  ;;  %v1151_v62 = vsub.f32 %v2828_v63, %v1122_v26  ;;  %v1185_v2 = vmul.f32 1.442695, %v1154_v46  ;;  %v3216_v50 = vsub.f32 %v2883_v28, %v2893_v35 }
 0x280   : > { %v2401_v38 = vpop.eup %2400  ;;  %2412 = vpow2.f32 %v1181_v52  ;;  %v3222_v35 = vsub.f32 %v2935_v61, %v2953_v12  ;;  %v3225_v61 = vsub.f32 %v2925_v55, %v2942_v0  ;;  %v3228_v0 = vsub.f32 %v2965_v34, %v2982_v56 }
 0x281   : > { %v1179_v39 = vmul.f32 1.442695, %v1151_v62  ;;  %v1398_v24 = vpack.c.bf16 %v2401_v38, %v2399_v21  ;;  %v3215_v21 = vsub.f32 %v2848_v10, %v2861_v17  ;;  %v1035_v52 = vmul.f32 1.442695, %v3216_v50 }
 0x282   : > { %v1132_v29 = vpop.permute.xlu1 %1131  ;;  %v3219_v10 = vsub.f32 %v2905_v43, %v2922_v53  ;;  %v3220_v17 = vsub.f32 %v2915_v49, %v2933_v58  ;;  %v1047_v37 = vmul.f32 1.442695, %v3222_v35  ;;  %v1045_v49 = vmul.f32 1.442695, %v3223_v47 }
 0x283   : > { %2414 = vpow2.f32 %v1179_v39  ;;  %v1153_v51 = vsub.f32 %v2833_v5, %v1132_v29  ;;  %2291 = vmatprep.mubr.bf16.mxu1 %v1398_v24  ;;  %v1027_v57 = vmul.f32 1.442695, %v3215_v21  ;;  %v1049_v12 = vmul.f32 1.442695, %v3225_v61  ;;  %v1187_v29 = vld [vmem:[#allocation3] sm:$0xff] }
 0x284   : > { %v2403_v22 = vpop.eup %2402  ;;  %2416 = vpow2.f32 %v1185_v2  ;;  %v1037_v16 = vmul.f32 1.442695, %v3219_v10  ;;  %v1043_v28 = vmul.f32 1.442695, %v3220_v17  ;;  %v1189_v2 = vld [vmem:[#allocation3 + $0x10] sm:$0xff]  ;;  %v1194_v10 = vld [vmem:[#allocation3 + $0x38] sm:$0xff] }
 0x285   : > { %v1183_v36 = vmul.f32 1.442695, %v1153_v51  ;;  %1233 = vadd.xlane.f32.xlu1 %v2403_v22  ;;  %v1399_v8 = vpack.c.bf16 %v2403_v22, %v2397_v14  ;;  %v2405_v3 = vpop.eup %2404 }
 0x287   : > { %2418 = vpow2.f32 %v1183_v36  ;;  %2292 = vmatmul.mubr.bf16.gmra.mxu1 %v1399_v8 }
 0x288   : > { %v2407_v44 = vpop.eup %2406  ;;  %2420 = vpow2.f32 %v1029_v45 }
 0x289   : > { %1229 = vadd.xlane.f32.xlu1 %v2401_v38  ;;  %v1400_v63 = vpack.c.bf16 %v2405_v3, %v2407_v44  ;;  %v2409_v42 = vpop.eup %2408  ;;  %2422 = vpow2.f32 %v1031_v31  ;;  %v1057_v38 = vmul.f32 1.442695, %v3228_v0 }
 0x28a   : > { %2424 = vpow2.f32 %v1027_v57  ;;  %v1191_v57 = vld [vmem:[#allocation3 + $0x20] sm:$0xff] }
 0x28b   : > { %2295 = vmatprep.mubr.bf16.mxu1 %v1400_v63  ;;  %2426 = vpow2.f32 %v1035_v52 }
 0x28c   : > { %v2411_v11 = vpop.eup %2410  ;;  %2428 = vpow2.f32 %v1033_v27 }
 0x28d   : > { %1241 = vadd.xlane.f32.xlu1 %v2409_v42  ;;  %1239 = vadd.xlane.f32.xlu0 %v2411_v11  ;;  %v1401_v60 = vpack.c.bf16 %v2409_v42, %v2411_v11  ;;  %v2413_v59 = vpop.eup %2412  ;;  %2430 = vpow2.f32 %v1039_v4  ;;  %v1188_v42 = vld [vmem:[#allocation3 + $0x8] sm:$0xff] }
 0x28e   : > { %2432 = vpow2.f32 %v1037_v16 }
 0x28f   : > { %2296 = vmatmul.mubr.bf16.gmra.mxu1 %v1401_v60  ;;  %2434 = vpow2.f32 %v1043_v28 }
 0x290   : > { %v2415_v5 = vpop.eup %2414  ;;  %2436 = vpow2.f32 %v1041_v23 }
 0x291   : > { %1237 = vadd.xlane.f32.xlu1 %v2405_v3  ;;  %1235 = vadd.xlane.f32.xlu0 %v2407_v44  ;;  %v1402_v18 = vpack.c.bf16 %v2413_v59, %v2415_v5  ;;  %v2417_v14 = vpop.eup %2416  ;;  %2438 = vpow2.f32 %v1047_v37  ;;  %v1190_v44 = vld [vmem:[#allocation3 + $0x18] sm:$0xff] }
 0x292   : > { %2440 = vpow2.f32 %v1045_v49 }
 0x293   : > { %2299 = vmatprep.mubr.bf16.mxu1 %v1402_v18  ;;  %2442 = vpow2.f32 %v1051_v40 }
 0x294   : > { %v2419_v33 = vpop.eup %2418  ;;  %2444 = vpow2.f32 %v1049_v12 }
 0x295   : > { %1249 = vadd.xlane.f32.xlu1 %v2417_v14  ;;  %1243 = vadd.xlane.f32.xlu0 %v2415_v5  ;;  %v1403_v54 = vpack.c.bf16 %v2417_v14, %v2419_v33  ;;  %v3052_v30 = vpop.eup %2420  ;;  %2446 = vpow2.f32 %v1055_v25  ;;  %v1195_v25 = vld [vmem:[#allocation3 + $0x40] sm:$0xff] }
 0x296   : > { %v2423_v43 = vpop.eup %2422  ;;  %2448 = vpow2.f32 %v1053_v41  ;;  %v1204_v5 = vmul.f32 %v3052_v30, %v1188_v42  ;;  %v1200_v42 = vld [vmem:[#allocation3 + $0x68] sm:$0xff] }
 0x297   : > { %2300 = vmatmul.mubr.bf16.gmra.mxu1 %v1403_v54  ;;  %v2425_v53 = vpop.eup %2424  ;;  %2450 = vpow2.f32 %v1057_v38  ;;  %v1205_v51 = vmul.f32 %v2423_v43, %v1189_v2  ;;  %v1199_v2 = vld [vmem:[#allocation3 + $0x60] sm:$0xff] }
 0x298   : > { %v3067_v58 = vpop.eup %2426  ;;  %v1203_v8 = vmul.f32 %v2425_v53, %v1187_v29  ;;  %v1202_v29 = vld [vmem:[#allocation3 + $0x78] sm:$0xff] }
 0x299   : > { %1245 = vadd.xlane.f32.xlu1 %v2413_v59  ;;  %1247 = vadd.xlane.f32.xlu0 %v2419_v33  ;;  %v2429_v46 = vpop.eup %2428  ;;  %v1193_v33 = vld [vmem:[#allocation3 + $0x30] sm:$0xff]  ;;  %v1207_v20 = vmul.f32 %v3067_v58, %v1191_v57 }
 0x29a   : > { %v2431_v26 = vpop.eup %2430  ;;  %v1206_v11 = vmul.f32 %v2429_v46, %v1190_v44 }
 0x29b   : > { %v3079_v62 = vpop.eup %2432  ;;  %v1209_v31 = vmul.f32 %v2431_v26, %v1193_v33 }
 0x29c   : > { %v3082_v55 = vpop.eup %2434 }
 0x29d   : > { %v2437_v48 = vpop.eup %2436  ;;  %v1211_v0 = vmul.f32 %v3082_v55, %v1195_v25 }
 0x29e   : > { %v3088_v15 = vpop.eup %2438  ;;  %v1210_v28 = vmul.f32 %v2437_v48, %v1194_v10 }
 0x29f   : > { %v3090_v9 = vpop.eup %2440 }
 0x2a0   : > { %v3094_v1 = vpop.eup %2442 }
 0x2a1   : > { %v3096_v39 = vpop.eup %2444 }
 0x2a2   : > { %v3100_v34 = vpop.eup %2446  ;;  %v1214_v61 = vmul.f32 %v3096_v39, %v1198_v32 }
 0x2a3   : > { %v3102_v56 = vpop.eup %2448 }
 0x2a4   : > { %v3106_v24 = vpop.eup %2450 }
 0x2aa   : > { %1307 = vperm.xlu1 %2363, %v3052_v30  }
 0x2ae   : > { %1312 = vperm.xlu1 %2363, %v2423_v43   ;;  %v1208_v43 = vmul.f32 %v3079_v62, %v1192_v13 }
 0x2af   : > { %1302 = vperm.xlu0 %2362, %v2425_v53   ;;  %v1197_v53 = vld [vmem:[#allocation3 + $0x50] sm:$0xff] }
 0x2b2   : > { %1322 = vperm.xlu1 %2363, %v3067_v58   ;;  %v1213_v58 = vmul.f32 %v3088_v15, %v1197_v53 }
 0x2b3   : > { %1317 = vperm.xlu0 %2362, %v2429_v46  }
 0x2b6   : > { %1332 = vperm.xlu1 %2363, %v2431_v26   ;;  %v1196_v26 = vld [vmem:[#allocation3 + $0x48] sm:$0xff] }
 0x2b7   : > { %1327 = vperm.xlu0 %2362, %v3079_v62   ;;  %v1212_v38 = vmul.f32 %v3090_v9, %v1196_v26 }
 0x2ba   : > { %1342 = vperm.xlu1 %2363, %v3082_v55   ;;  %v1218_v55 = vmul.f32 %v3106_v24, %v1202_v29 }
 0x2bb   : > { %1337 = vperm.xlu0 %2362, %v2437_v48  }
 0x2be   : > { %1352 = vperm.xlu1 %2363, %v3088_v15  }
 0x2bf   : > { %1347 = vperm.xlu0 %2362, %v3090_v9  }
 0x2c2   : > { %1362 = vperm.xlu1 %2363, %v3094_v1  }
 0x2c3   : > { %1357 = vperm.xlu0 %2362, %v3096_v39  }
 0x2c6   : > { %1372 = vperm.xlu1 %2363, %v3100_v34  }
 0x2c7   : > { %1367 = vperm.xlu0 %2362, %v3102_v56  }
 0x2cb   : > { %1377 = vperm.xlu0 %2362, %v3106_v24  }
 0x2f4   : > { %v1224_v22 = vpop.xlane.xlu0 %1223 }
 0x2f5   : > { %v1253_v36 = vadd.f32 %v1224_v22, %v1205_v51 }
 0x2f6   : > { %v1220_v3 = vpop.xlane.xlu1 %1219 }
 0x2f7   : > { %1270 = vst.msk [vmem:[#allocation3 + $0x10] sm:$0xff] %vm580_vm0, %v1253_v36  ;;  %v1251_v63 = vadd.f32 %v1220_v3, %v1203_v8  ;;  %v1215_v8 = vmul.f32 %v3094_v1, %v1199_v2  ;;  %v1216_v1 = vmul.f32 %v3102_v56, %v1200_v42 }
 0x2f9   : > { %1268 = vst.msk [vmem:[#allocation3] sm:$0xff] %vm580_vm0, %v1251_v63  ;;  %v1201_v63 = vld [vmem:[#allocation3 + $0x70] sm:$0xff] }
 0x2fa   : > { %v1226_v60 = vpop.xlane.xlu1 %1225 }
 0x2fb   : > { %v1254_v59 = vadd.f32 %v1226_v60, %v1206_v11 }
 0x2fc   : > { %v1222_v18 = vpop.xlane.xlu0 %1221 }
 0x2fd   : > { %1271 = vst.msk [vmem:[#allocation3 + $0x18] sm:$0xff] %vm580_vm0, %v1254_v59  ;;  %v1252_v14 = vadd.f32 %v1222_v18, %v1204_v5  ;;  %v1217_v18 = vmul.f32 %v3100_v34, %v1201_v63 }
 0x2fe   : > { %v1634_v54 = vld [vmem:[#allocation3 + $0x10] sm:$0xff] }
 0x2ff   : > { %1269 = vst.msk [vmem:[#allocation3 + $0x8] sm:$0xff] %vm580_vm0, %v1252_v14  ;;  %2452 = vrcp.f32 %v1634_v54 }
 0x300   : > { %v1632_v45 = vld [vmem:[#allocation3] sm:$0xff] }
 0x301   : > { %2454 = vrcp.f32 %v1632_v45 }
 0x302   : > { %v1232_v21 = vpop.xlane.xlu0 %1231 }
 0x303   : > { %v1257_v50 = vadd.f32 %v1232_v21, %v1209_v31 }
 0x304   : > { %v1635_v52 = vld [vmem:[#allocation3 + $0x18] sm:$0xff] }
 0x305   : > { %1274 = vst.msk [vmem:[#allocation3 + $0x30] sm:$0xff] %vm580_vm0, %v1257_v50  ;;  %2456 = vrcp.f32 %v1635_v52 }
 0x306   : > { %v1228_v27 = vpop.xlane.xlu0 %1227  ;;  %v1633_v7 = vld [vmem:[#allocation3 + $0x8] sm:$0xff] }
 0x307   : > { %v1255_v4 = vadd.f32 %v1228_v27, %v1207_v20  ;;  %2458 = vrcp.f32 %v1633_v7 }
 0x309   : > { %1272 = vst.msk [vmem:[#allocation3 + $0x20] sm:$0xff] %vm580_vm0, %v1255_v4 }
 0x30c   : > { %v2453_v16 = vpop.eup %2452  ;;  %v1638_v17 = vld [vmem:[#allocation3 + $0x30] sm:$0xff] }
 0x30d   : > { %1676 = vperm.xlu1 %2363, %v2453_v16   ;;  %2460 = vrcp.f32 %v1638_v17 }
 0x30e   : > { %v1234_v30 = vpop.xlane.xlu1 %1233  ;;  %v2455_v35 = vpop.eup %2454 }
 0x30f   : > { %v1258_v23 = vadd.f32 %v1234_v30, %v1210_v28 }
 0x310   : > { %v1636_v37 = vld [vmem:[#allocation3 + $0x20] sm:$0xff] }
 0x311   : > { %1275 = vst.msk [vmem:[#allocation3 + $0x38] sm:$0xff] %vm580_vm0, %v1258_v23  ;;  %1666 = vperm.xlu1 %2363, %v2455_v35   ;;  %2462 = vrcp.f32 %v1636_v37 }
 0x312   : > { %v2457_v47 = vpop.eup %2456  ;;  %v1230_v49 = vpop.xlane.xlu1 %1229 }
 0x313   : > { %v1256_v40 = vadd.f32 %v1230_v49, %v1208_v43  ;;  %1681 = vperm.xlu0 %2362, %v2457_v47  }
 0x314   : > { %v2459_v12 = vpop.eup %2458 }
 0x315   : > { %1273 = vst.msk [vmem:[#allocation3 + $0x28] sm:$0xff] %vm580_vm0, %v1256_v40 }
 0x316   : > { %v1240_v46 = vpop.xlane.xlu0 %1239  ;;  %v1242_v6 = vpop.xlane.xlu1 %1241 }
 0x317   : > { %v1261_v19 = vadd.f32 %v1240_v46, %v1213_v58  ;;  %v1262_v41 = vadd.f32 %v1242_v6, %v1214_v61  ;;  %1671 = vperm.xlu0 %2362, %v2459_v12  }
 0x318   : > { %v1639_v62 = vld [vmem:[#allocation3 + $0x38] sm:$0xff] }
 0x319   : > { %1278 = vst.msk [vmem:[#allocation3 + $0x50] sm:$0xff] %vm580_vm0, %v1261_v19  ;;  %1279 = vst.msk [vmem:[#allocation3 + $0x58] sm:$0xff] %vm580_vm0, %v1262_v41  ;;  %2464 = vrcp.f32 %v1639_v62 }
 0x31a   : > { %v2461_v48 = vpop.eup %2460  ;;  %v1236_v15 = vpop.xlane.xlu0 %1235 }
 0x31b   : > { %v1238_v39 = vpop.xlane.xlu1 %1237  ;;  %v1259_v51 = vadd.f32 %v1236_v15, %v1211_v0  ;;  %1696 = vperm.xlu1 %2363, %v2461_v48  }
 0x31c   : > { %v1260_v22 = vadd.f32 %v1238_v39, %v1212_v38  ;;  %v1637_v36 = vld [vmem:[#allocation3 + $0x28] sm:$0xff] }
 0x31d   : > { %1276 = vst.msk [vmem:[#allocation3 + $0x40] sm:$0xff] %vm580_vm0, %v1259_v51  ;;  %2466 = vrcp.f32 %v1637_v36 }
 0x31e   : > { %1277 = vst.msk [vmem:[#allocation3 + $0x48] sm:$0xff] %vm580_vm0, %v1260_v22  ;;  %v2463_v9 = vpop.eup %2462  ;;  %v1244_v3 = vpop.xlane.xlu0 %1243 }
 0x31f   : > { %v1250_v44 = vpop.xlane.xlu1 %1249  ;;  %v1263_v11 = vadd.f32 %v1244_v3, %v1215_v8  ;;  %1686 = vperm.xlu1 %2363, %v2463_v9  }
 0x320   : > { %v1266_v60 = vadd.f32 %v1250_v44, %v1218_v55  ;;  %v1642_v59 = vld [vmem:[#allocation3 + $0x50] sm:$0xff]  ;;  %v1643_v5 = vld [vmem:[#allocation3 + $0x58] sm:$0xff] }
 0x321   : > { %1280 = vst.msk [vmem:[#allocation3 + $0x60] sm:$0xff] %vm580_vm0, %v1263_v11  ;;  %2468 = vrcp.f32 %v1642_v59 }
 0x322   : > { %1283 = vst.msk [vmem:[#allocation3 + $0x78] sm:$0xff] %vm580_vm0, %v1266_v60  ;;  %v1248_v24 = vpop.xlane.xlu0 %1247  ;;  %2470 = vrcp.f32 %v1643_v5 }
 0x323   : > { %v1246_v14 = vpop.xlane.xlu1 %1245  ;;  %v1265_v33 = vadd.f32 %v1248_v24, %v1217_v18 }
 0x324   : > { %v1264_v54 = vadd.f32 %v1246_v14, %v1216_v1  ;;  %v1640_v45 = vld [vmem:[#allocation3 + $0x40] sm:$0xff] }
 0x325   : > { %v1641_v31 = vld [vmem:[#allocation3 + $0x48] sm:$0xff]  ;;  %1282 = vst.msk [vmem:[#allocation3 + $0x70] sm:$0xff] %vm580_vm0, %v1265_v33  ;;  %2472 = vrcp.f32 %v1640_v45 }
 0x326   : > { %1281 = vst.msk [vmem:[#allocation3 + $0x68] sm:$0xff] %vm580_vm0, %v1264_v54  ;;  %v2465_v21 = vpop.eup %2464  ;;  %2474 = vrcp.f32 %v1641_v31 }
 0x327   : > { %1701 = vperm.xlu0 %2362, %v2465_v21   ;;  %v1308_v30 = vpop.permute.xlu1 %1307 }
 0x328   : > { %v1644_v57 = vld [vmem:[#allocation3 + $0x60] sm:$0xff]  ;;  %v1381_v51 = vmul.f32 0.0, %v1308_v30 }
 0x329   : > { %2476 = vrcp.f32 %v1644_v57  ;;  %v1647_v27 = vld [vmem:[#allocation3 + $0x78] sm:$0xff] }
 0x32a   : > { %v2467_v34 = vpop.eup %2466  ;;  %v1303_v13 = vpop.permute.xlu0 %1302 }
 0x32b   : > { %1691 = vperm.xlu0 %2362, %v2467_v34   ;;  %v1313_v23 = vpop.permute.xlu1 %1312  ;;  %v1380_v22 = vmul.f32 0.0, %v1303_v13 }
 0x32c   : > { %v1646_v56 = vld [vmem:[#allocation3 + $0x70] sm:$0xff]  ;;  %v1382_v38 = vmul.f32 0.0, %v1313_v23 }
 0x32d   : > { %v1645_v50 = vld [vmem:[#allocation3 + $0x68] sm:$0xff]  ;;  %2478 = vrcp.f32 %v1646_v56 }
 0x32e   : > { %v2469_v52 = vpop.eup %2468  ;;  %2480 = vrcp.f32 %v1645_v50  ;;  %v1318_v35 = vpop.permute.xlu0 %1317 }
 0x32f   : > { %v2471_v20 = vpop.eup %2470  ;;  %1716 = vperm.xlu1 %2363, %v2469_v52   ;;  %2482 = vrcp.f32 %v1647_v27  ;;  %v1323_v37 = vpop.permute.xlu1 %1322  ;;  %v1383_v48 = vmul.f32 0.0, %v1318_v35 }
 0x330   : > { %1721 = vperm.xlu0 %2362, %v2471_v20   ;;  %v1384_v57 = vmul.f32 0.0, %v1323_v37 }
 0x332   : > { %v2473_v7 = vpop.eup %2472  ;;  %v1328_v43 = vpop.permute.xlu0 %1327 }
 0x333   : > { %v2475_v4 = vpop.eup %2474  ;;  %1706 = vperm.xlu1 %2363, %v2473_v7   ;;  %v1333_v47 = vpop.permute.xlu1 %1332  ;;  %v1385_v34 = vmul.f32 0.0, %v1328_v43 }
 0x334   : > { %1711 = vperm.xlu0 %2362, %v2475_v4   ;;  %v1386_v14 = vmul.f32 0.0, %v1333_v47 }
 0x336   : > { %v2477_v10 = vpop.eup %2476  ;;  %v1338_v49 = vpop.permute.xlu0 %1337 }
 0x337   : > { %1726 = vperm.xlu1 %2363, %v2477_v10   ;;  %v3136_v53 = vpop.permute.xlu1 %1342  ;;  %v2289_v40 = vpop.f32.mrf.mxu1  ;;  %v1387_v33 = vmul.f32 0.0, %v1338_v49 }
 0x338   : > { %v1567_v39 = vadd.f32 %v2289_v40, %v1382_v38  ;;  %v1388_v43 = vmul.f32 0.0, %v3136_v53 }
 0x339   : > { %v1502_v61 = vpop.f32.mrf.mxu1 }
 0x33a   : > { %v2479_v16 = vpop.eup %2478  ;;  %v3138_v32 = vpop.permute.xlu0 %1347  ;;  %v1565_v3 = vadd.f32 %v1502_v61, %v1380_v22 }
 0x33b   : > { %v2481_v17 = vpop.eup %2480  ;;  %1736 = vperm.xlu1 %2363, %v2479_v16   ;;  %v1353_v58 = vpop.permute.xlu1 %1352 }
 0x33c   : > { %1731 = vperm.xlu0 %2362, %v2481_v17   ;;  %v2483_v28 = vpop.eup %2482  ;;  %v2290_v6 = vpop.f32.mrf.mxu1  ;;  %v1390_v16 = vmul.f32 0.0, %v1353_v58 }
 0x33d   : > { %v1568_v2 = vadd.f32 %v2290_v6, %v1383_v48  ;;  %v1389_v6 = vmul.f32 0.0, %v3138_v32 }
 0x33e   : > { %v1358_v12 = vpop.permute.xlu0 %1357  ;;  %v1505_v26 = vpop.f32.mrf.mxu1 }
 0x33f   : > { %v3140_v46 = vpop.permute.xlu1 %1362  ;;  %v1566_v44 = vadd.f32 %v1505_v26, %v1381_v51  ;;  %v1391_v13 = vmul.f32 0.0, %v1358_v12 }
 0x340   : > { %1741 = vperm.xlu0 %2362, %v2483_v28   ;;  %v1392_v51 = vmul.f32 0.0, %v3140_v46 }
 0x342   : > { %v3142_v25 = vpop.permute.xlu0 %1367 }
 0x343   : > { %v3144_v19 = vpop.permute.xlu1 %1372  ;;  %v1393_v22 = vmul.f32 0.0, %v3142_v25 }
 0x346   : > { %v3146_v62 = vpop.permute.xlu0 %1377 }
 0x347   : > { %v2293_v41 = vpop.f32.mrf.mxu1 }
 0x348   : > { %v1571_v45 = vadd.f32 %v2293_v41, %v1386_v14 }
 0x349   : > { %v1518_v15 = vpop.f32.mrf.mxu1 }
 0x34a   : > { %v1569_v27 = vadd.f32 %v1518_v15, %v1384_v57 }
 0x34b   : > { %v2294_v36 = vpop.f32.mrf.mxu1 }
 0x34c   : > { %v1572_v31 = vadd.f32 %v2294_v36, %v1387_v33 }
 0x34d   : > { %v1521_v11 = vpop.f32.mrf.mxu1 }
 0x34e   : > { %v1570_v7 = vadd.f32 %v1521_v11, %v1385_v34 }
 0x34f   : > { %v2297_v18 = vpop.f32.mrf.mxu1 }
 0x350   : > { %v1575_v23 = vadd.f32 %v2297_v18, %v1390_v16 }
 0x351   : > { %v1534_v1 = vpop.f32.mrf.mxu1 }
 0x352   : > { %v1573_v26 = vadd.f32 %v1534_v1, %v1388_v43 }
 0x353   : > { %v2298_v54 = vpop.f32.mrf.mxu1 }
 0x354   : > { %v1576_v47 = vadd.f32 %v2298_v54, %v1391_v13 }
 0x355   : > { %v1537_v56 = vpop.f32.mrf.mxu1 }
 0x356   : > { %v1574_v41 = vadd.f32 %v1537_v56, %v1389_v6 }
 0x357   : > { %v2301_v17 = vpop.f32.mrf.mxu1 }
 0x359   : > { %v1550_v49 = vpop.f32.mrf.mxu1 }
 0x35a   : > { %v1577_v32 = vadd.f32 %v1550_v49, %v1392_v51 }
 0x35b   : > { %v2302_v12 = vpop.f32.mrf.mxu1 }
 0x388   : > { %v1677_v0 = vpop.permute.xlu1 %1676 }
 0x389   : > { %v1746_v8 = vmul.f32 %v1677_v0, %v1567_v39 }
 0x38c   : > { %v1667_v9 = vpop.permute.xlu1 %1666 }
 0x38d   : > { %v1744_v60 = vmul.f32 %v1667_v9, %v1565_v3  ;;  %v1395_v9 = vmul.f32 0.0, %v3146_v62 }
 0x38e   : > { %v1682_v29 = vpop.permute.xlu0 %1681 }
 0x38f   : > { %v1747_v55 = vmul.f32 %v1682_v29, %v1568_v2  ;;  %v1553_v29 = vpop.f32.mrf.mxu1  ;;  %v1580_v11 = vadd.f32 %v2302_v12, %v1395_v9 }
 0x390   : > { %v1578_v36 = vadd.f32 %v1553_v29, %v1393_v22 }
 0x391   : > { %v2168_v63 = vpack.c.bf16 %v1747_v55, %v1746_v8  ;;  %v1394_v55 = vmul.f32 0.0, %v3144_v19 }
 0x392   : > { %v1672_v42 = vpop.permute.xlu0 %1671 }
 0x393   : > { %2200 = vst [vmem:[%s3149_s29 + $0x8] sm:$0xff] %v2168_v63   ;;  %v1745_v59 = vmul.f32 %v1672_v42, %v1566_v44  ;;  %v1579_v42 = vadd.f32 %v2301_v17, %v1394_v55 }
 0x395   : > { %v2163_v5 = vpack.c.bf16 %v1745_v59, %v1744_v60 }
 0x396   : > { %v1697_v24 = vpop.permute.xlu1 %1696 }
 0x397   : > { %2164 = vst [vmem:[%s3149_s29] sm:$0xff] %v2163_v5   ;;  %v1750_v50 = vmul.f32 %v1697_v24, %v1571_v45 }
 0x39a   : > { %v1687_v20 = vpop.permute.xlu1 %1686  ;;  %v1874_v18 = vld [vmem:[%s3149_s29 + $0x8] sm:$0xf] (%p2615_p6)  ;;  %v1876_v1 = vld [vmem:[%s3149_s29 + $0xc] sm:$0xf] (%p2615_p6) }
 0x39b   : > { %v1748_v28 = vmul.f32 %v1687_v20, %v1569_v27  ;;  %1875 = vst [vmem:[%s1853_s7 + $0x10] sm:$0xf] (%p2615_p6), %v1874_v18  ;;  %1877 = vst [vmem:[%s1853_s7 + $0x18] sm:$0xf] (%p2615_p6), %v1876_v1 }
 0x39e   : > { %v1870_v19 = vld [vmem:[%s3149_s29] sm:$0xf] (%p2615_p6)  ;;  %v1872_v62 = vld [vmem:[%s3149_s29 + $0x4] sm:$0xf] (%p2615_p6) }
 0x39f   : > { %1871 = vst [vmem:[%s1853_s7] sm:$0xf] (%p2615_p6), %v1870_v19  ;;  %1873 = vst [vmem:[%s1853_s7 + $0x8] sm:$0xf] (%p2615_p6), %v1872_v62 }
 0x3a2   : > { %v1702_v21 = vpop.permute.xlu0 %1701 }
 0x3a3   : > { %v1751_v52 = vmul.f32 %v1702_v21, %v1572_v31 }
 0x3a5   : > { %v2178_v4 = vpack.c.bf16 %v1751_v52, %v1750_v50 }
 0x3a6   : > { %v1692_v10 = vpop.permute.xlu0 %1691 }
 0x3a7   : > { %2202 = vst [vmem:[%s3149_s29 + $0x18] sm:$0xff] %v2178_v4   ;;  %v1749_v30 = vmul.f32 %v1692_v10, %v1570_v7 }
 0x3a9   : > { %v2173_v35 = vpack.c.bf16 %v1749_v30, %v1748_v28 }
 0x3aa   : > { %v1717_v37 = vpop.permute.xlu1 %1716 }
 0x3ab   : > { %2201 = vst [vmem:[%s3149_s29 + $0x10] sm:$0xff] %v2173_v35   ;;  %v1722_v40 = vpop.permute.xlu0 %1721  ;;  %v1754_v61 = vmul.f32 %v1717_v37, %v1575_v23 }
 0x3ac   : > { %v1755_v58 = vmul.f32 %v1722_v40, %v1576_v47 }
 0x3ae   : > { %v2188_v0 = vpack.c.bf16 %v1755_v58, %v1754_v61  ;;  %v1707_v38 = vpop.permute.xlu1 %1706  ;;  %v1882_v33 = vld [vmem:[%s3149_s29 + $0x18] sm:$0xf] (%p2615_p6)  ;;  %v1884_v54 = vld [vmem:[%s3149_s29 + $0x1c] sm:$0xf] (%p2615_p6) }
 0x3af   : > { %v1712_v48 = vpop.permute.xlu0 %1711  ;;  %v1752_v15 = vmul.f32 %v1707_v38, %v1573_v26  ;;  %1883 = vst [vmem:[%s1853_s7 + $0x30] sm:$0xf] (%p2615_p6), %v1882_v33  ;;  %1885 = vst [vmem:[%s1853_s7 + $0x38] sm:$0xf] (%p2615_p6), %v1884_v54 }
 0x3b0   : > { %2204 = vst [vmem:[%s3149_s29 + $0x28] sm:$0xff] %v2188_v0   ;;  %v1753_v39 = vmul.f32 %v1712_v48, %v1574_v41 }
 0x3b2   : > { %v2183_v2 = vpack.c.bf16 %v1753_v39, %v1752_v15  ;;  %v1727_v53 = vpop.permute.xlu1 %1726  ;;  %v1878_v24 = vld [vmem:[%s3149_s29 + $0x10] sm:$0xf] (%p2615_p6)  ;;  %v1880_v14 = vld [vmem:[%s3149_s29 + $0x14] sm:$0xf] (%p2615_p6) }
 0x3b3   : > { %v1756_v3 = vmul.f32 %v1727_v53, %v1577_v32  ;;  %1879 = vst [vmem:[%s1853_s7 + $0x20] sm:$0xf] (%p2615_p6), %v1878_v24  ;;  %1881 = vst [vmem:[%s1853_s7 + $0x28] sm:$0xf] (%p2615_p6), %v1880_v14 }
 0x3b4   : > { %2203 = vst [vmem:[%s3149_s29 + $0x20] sm:$0xff] %v2183_v2  }
 0x3b6   : > { %v1737_v63 = vpop.permute.xlu1 %1736 }
 0x3b7   : > { %v1732_v8 = vpop.permute.xlu0 %1731  ;;  %v1758_v46 = vmul.f32 %v1737_v63, %v1579_v42  ;;  %v1890_v21 = vld [vmem:[%s3149_s29 + $0x28] sm:$0xf] (%p2615_p6)  ;;  %v1892_v57 = vld [vmem:[%s3149_s29 + $0x2c] sm:$0xf] (%p2615_p6) }
 0x3b8   : > { %v1757_v44 = vmul.f32 %v1732_v8, %v1578_v36  ;;  %1891 = vst [vmem:[%s1853_s7 + $0x50] sm:$0xf] (%p2615_p6), %v1890_v21  ;;  %1893 = vst [vmem:[%s1853_s7 + $0x58] sm:$0xf] (%p2615_p6), %v1892_v57 }
 0x3ba   : > { %v2193_v60 = vpack.c.bf16 %v1757_v44, %v1756_v3 }
 0x3bb   : > { %v1742_v59 = vpop.permute.xlu0 %1741  ;;  %v1886_v45 = vld [vmem:[%s3149_s29 + $0x20] sm:$0xf] (%p2615_p6)  ;;  %v1888_v31 = vld [vmem:[%s3149_s29 + $0x24] sm:$0xf] (%p2615_p6) }
 0x3bc   : > { %2205 = vst [vmem:[%s3149_s29 + $0x30] sm:$0xff] %v2193_v60   ;;  %v1759_v5 = vmul.f32 %v1742_v59, %v1580_v11  ;;  %1846 = sbr.rel (!%p2615_p6) target bundleno = 969 (0x3c9), region = 171  ;;  %1887 = vst [vmem:[%s1853_s7 + $0x40] sm:$0xf] (%p2615_p6), %v1886_v45 }
 0x3bd   : > { %1889 = vst [vmem:[%s1853_s7 + $0x48] sm:$0xf] (%p2615_p6), %v1888_v31 }
 0x3be   : > { %v2198_v25 = vpack.c.bf16 %v1759_v5, %v1758_v46 }
 0x3c0   : > { %2206 = vst [vmem:[%s3149_s29 + $0x38] sm:$0xff] %v2198_v25  }
 0x3c3   : > { %v1894_v34 = vld [vmem:[%s3149_s29 + $0x30] sm:$0xf]  ;;  %v1896_v56 = vld [vmem:[%s3149_s29 + $0x34] sm:$0xf] }
 0x3c4   : > { %1895 = vst [vmem:[%s1853_s7 + $0x60] sm:$0xf] %v1894_v34  ;;  %1897 = vst [vmem:[%s1853_s7 + $0x68] sm:$0xf] %v1896_v56 }
 0x3c7   : > { %v1898_v50 = vld [vmem:[%s3149_s29 + $0x38] sm:$0xf]  ;;  %v1900_v52 = vld [vmem:[%s3149_s29 + $0x3c] sm:$0xf] }
 0x3c8   : > { %1899 = vst [vmem:[%s1853_s7 + $0x70] sm:$0xf] %v1898_v50  ;;  %1901 = vst [vmem:[%s1853_s7 + $0x78] sm:$0xf] %v1900_v52 }
 0x3c9 PF: > { %s13_s18 = sadd.s32 1, %s2538_s18   ;;  %s3229_s12 = smov %s2518_s13 }
 0x3ca   : > { %p10_p12 = scmp.ge.s32.totalorder %s13_s18, 6   ;;  %s3230_s13 = smov %s2623_s28 }
 0x3cb   : > { %s3231_s14 = smov %s2530_s16  ;;  %s3232_s15 = smov %s2534_s17 }
 0x3cc   : > { %s3233_s16 = smov %s3236_s19  ;;  %s3234_s17 = smov %s3240_s20 }
 0x3cd   :  { %12 = sbr.rel (!%p10_p12) target bundleno = 4 (0x4), region = 259 }

// kernel: _lambda_.11
= control target key start
LH: loop header
LB: loop body
LE: loop exit
PB: predicated region body
PF: predicated region fallthrough
CT: control target
= control target key end

     0   :  { %s1966_s1 = inlined_call_operand.vmem [shape: bf16[256,256], index: 1, kind: input, shape index: {}]   ;;  %s1967_s0 = inlined_call_operand.vmem [shape: bf16[256,256], index: 0, kind: input, shape index: {}]   ;;  %s1968_s2 = inlined_call_operand.vmem [shape: bf16[256,256], index: 2, kind: input, shape index: {}]   ;;  %s1969_s3 = inlined_call_operand.vmem [shape: bf16[256,256], index: 3, kind: output, shape index: {}]  }
   0x1   :  { %v1466_v0 = vld [vmem:[%s1966_s1 + $0x74] ss:$8 sps:$4 sm:$0xff]   ;;  %v1468_v1 = vld [vmem:[%s1966_s1 + $0x70] ss:$8 sps:$4 sm:$0xff]   ;;  %v1469_v2 = vld [vmem:[%s1966_s1 + $0x64] ss:$8 sps:$4 sm:$0xff]  }
   0x2   :  { %530 = vmatprep.subr.bf16.mxu0 %v1466_v0  ;;  %1434 = vmatprep.subr.bf16.mxu1 %v1466_v0  ;;  %v1471_v3 = vld [vmem:[%s1966_s1 + $0x60] ss:$8 sps:$4 sm:$0xff]   ;;  %v1472_v4 = vld [vmem:[%s1966_s1 + $0x54] ss:$8 sps:$4 sm:$0xff]   ;;  %v1474_v5 = vld [vmem:[%s1966_s1 + $0x50] ss:$8 sps:$4 sm:$0xff]  }
   0x3   :  { %531 = vmatpush1.bf16.msra.mxu0 %v1468_v1  ;;  %1450 = vmatpush1.bf16.msra.mxu1 %v1468_v1  ;;  %v1475_v6 = vld [vmem:[%s1966_s1 + $0x44] ss:$8 sps:$4 sm:$0xff]   ;;  %v1477_v7 = vld [vmem:[%s1966_s1 + $0x40] ss:$8 sps:$4 sm:$0xff]   ;;  %v1478_v8 = vld [vmem:[%s1966_s1 + $0x34] ss:$8 sps:$4 sm:$0xff]  }
   0x4   :  { %532 = vmatprep.subr.bf16.mxu0 %v1469_v2  ;;  %1435 = vmatprep.subr.bf16.mxu1 %v1469_v2  ;;  %v1480_v9 = vld [vmem:[%s1966_s1 + $0x30] ss:$8 sps:$4 sm:$0xff]   ;;  %v1481_v10 = vld [vmem:[%s1966_s1 + $0x24] ss:$8 sps:$4 sm:$0xff]   ;;  %v1483_v11 = vld [vmem:[%s1966_s1 + $0x20] ss:$8 sps:$4 sm:$0xff]  }
   0x5   :  { %v1484_v12 = vld [vmem:[%s1966_s1 + $0x14] ss:$8 sps:$4 sm:$0xff]   ;;  %v1516_v13 = vld [vmem:[%s1967_s0 + $0x4] ss:$8 sps:$4 sm:$0xff]   ;;  %v1486_v14 = vld [vmem:[%s1966_s1 + $0x10] ss:$8 sps:$4 sm:$0xff]  }
   0x6   :  { %v1519_v15 = vld [vmem:[%s1967_s0 + $0x84] ss:$8 sps:$4 sm:$0xff]   ;;  %562 = vmatprep.mubr.bf16.mxu0 %v1516_v13  ;;  %v1489_v17 = vld [vmem:[%s1966_s1] ss:$8 sps:$4 sm:$0xff]   ;;  %v1490_v18 = vld [vmem:[%s1966_s1 + $0xf4] ss:$8 sps:$4 sm:$0xff]  }
   0x7   :  { %533 = vmatpush1.bf16.msra.mxu0 %v1471_v3  ;;  %1451 = vmatpush1.bf16.msra.mxu1 %v1471_v3  ;;  %v1487_v16 = vld [vmem:[%s1966_s1 + $0x4] ss:$8 sps:$4 sm:$0xff]   ;;  %v1492_v19 = vld [vmem:[%s1966_s1 + $0xf0] ss:$8 sps:$4 sm:$0xff]   ;;  %v1495_v21 = vld [vmem:[%s1966_s1 + $0xe0] ss:$8 sps:$4 sm:$0xff]  }
   0x8   :  { %534 = vmatprep.subr.bf16.mxu0 %v1472_v4  ;;  %1436 = vmatprep.subr.bf16.mxu1 %v1472_v4  ;;  %v1493_v20 = vld [vmem:[%s1966_s1 + $0xe4] ss:$8 sps:$4 sm:$0xff]   ;;  %v1496_v22 = vld [vmem:[%s1966_s1 + $0xd4] ss:$8 sps:$4 sm:$0xff]   ;;  %v1498_v23 = vld [vmem:[%s1966_s1 + $0xd0] ss:$8 sps:$4 sm:$0xff]  }
   0x9   :  { %642 = vmatprep.mubr.bf16.mxu1 %v1519_v15  ;;  %v1499_v24 = vld [vmem:[%s1966_s1 + $0xc4] ss:$8 sps:$4 sm:$0xff]   ;;  %v1501_v25 = vld [vmem:[%s1966_s1 + $0xc0] ss:$8 sps:$4 sm:$0xff]   ;;  %v1502_v26 = vld [vmem:[%s1966_s1 + $0xb4] ss:$8 sps:$4 sm:$0xff]  }
   0xa   :  { %v1504_v27 = vld [vmem:[%s1966_s1 + $0xb0] ss:$8 sps:$4 sm:$0xff]   ;;  %v1505_v28 = vld [vmem:[%s1966_s1 + $0xa4] ss:$8 sps:$4 sm:$0xff]   ;;  %v1507_v29 = vld [vmem:[%s1966_s1 + $0xa0] ss:$8 sps:$4 sm:$0xff]  }
   0xb   :  { %535 = vmatpush1.bf16.msra.mxu0 %v1474_v5  ;;  %1452 = vmatpush1.bf16.msra.mxu1 %v1474_v5  ;;  %v1508_v30 = vld [vmem:[%s1966_s1 + $0x94] ss:$8 sps:$4 sm:$0xff]   ;;  %v1510_v31 = vld [vmem:[%s1966_s1 + $0x90] ss:$8 sps:$4 sm:$0xff]   ;;  %v1511_v32 = vld [vmem:[%s1966_s1 + $0x84] ss:$8 sps:$4 sm:$0xff]  }
   0xc   :  { %536 = vmatprep.subr.bf16.mxu0 %v1475_v6  ;;  %1437 = vmatprep.subr.bf16.mxu1 %v1475_v6  ;;  %v1513_v33 = vld [vmem:[%s1966_s1 + $0x80] ss:$8 sps:$4 sm:$0xff]   ;;  %v1520_v36 = vld [vmem:[%s1967_s0 + $0x14] ss:$8 sps:$4 sm:$0xff]   ;;  %v1524_v38 = vld [vmem:[%s1967_s0 + $0x10] ss:$8 sps:$4 sm:$0xff]  }
   0xd   :  { %v1514_v34 = vld [vmem:[%s1967_s0] ss:$8 sps:$4 sm:$0xff]   ;;  %v1522_v37 = vld [vmem:[%s1967_s0 + $0x94] ss:$8 sps:$4 sm:$0xff]   ;;  %v1525_v39 = vld [vmem:[%s1967_s0 + $0x90] ss:$8 sps:$4 sm:$0xff]  }
   0xe   :  { %v1517_v35 = vld [vmem:[%s1967_s0 + $0x80] ss:$8 sps:$4 sm:$0xff]   ;;  %v1526_v40 = vld [vmem:[%s1967_s0 + $0x24] ss:$8 sps:$4 sm:$0xff]   ;;  %v1532_v44 = vld [vmem:[%s1967_s0 + $0x34] ss:$8 sps:$4 sm:$0xff]  }
   0xf   :  { %537 = vmatpush1.bf16.msra.mxu0 %v1477_v7  ;;  %1453 = vmatpush1.bf16.msra.mxu1 %v1477_v7  ;;  %v1528_v41 = vld [vmem:[%s1967_s0 + $0xa4] ss:$8 sps:$4 sm:$0xff]   ;;  %v1530_v42 = vld [vmem:[%s1967_s0 + $0x20] ss:$8 sps:$4 sm:$0xff]   ;;  %v1534_v45 = vld [vmem:[%s1967_s0 + $0xb4] ss:$8 sps:$4 sm:$0xff]  }
  0x10   :  { %538 = vmatprep.subr.bf16.mxu0 %v1478_v8  ;;  %1438 = vmatprep.subr.bf16.mxu1 %v1478_v8  ;;  %v1531_v43 = vld [vmem:[%s1967_s0 + $0xa0] ss:$8 sps:$4 sm:$0xff]   ;;  %v1536_v46 = vld [vmem:[%s1967_s0 + $0x30] ss:$8 sps:$4 sm:$0xff]   ;;  %v1538_v48 = vld [vmem:[%s1967_s0 + $0x44] ss:$8 sps:$4 sm:$0xff]  }
  0x11   :  { %v1537_v47 = vld [vmem:[%s1967_s0 + $0xb0] ss:$8 sps:$4 sm:$0xff]   ;;  %v1540_v49 = vld [vmem:[%s1967_s0 + $0xc4] ss:$8 sps:$4 sm:$0xff]   ;;  %v1542_v50 = vld [vmem:[%s1967_s0 + $0x40] ss:$8 sps:$4 sm:$0xff]  }
  0x12   :  { %v1543_v51 = vld [vmem:[%s1967_s0 + $0xc0] ss:$8 sps:$4 sm:$0xff]   ;;  %v1544_v52 = vld [vmem:[%s1967_s0 + $0x54] ss:$8 sps:$4 sm:$0xff]   ;;  %v1548_v54 = vld [vmem:[%s1967_s0 + $0x50] ss:$8 sps:$4 sm:$0xff]  }
  0x13   :  { %539 = vmatpush1.bf16.msra.mxu0 %v1480_v9  ;;  %1454 = vmatpush1.bf16.msra.mxu1 %v1480_v9  ;;  %v1546_v53 = vld [vmem:[%s1967_s0 + $0xd4] ss:$8 sps:$4 sm:$0xff]   ;;  %v1549_v55 = vld [vmem:[%s1967_s0 + $0xd0] ss:$8 sps:$4 sm:$0xff]   ;;  %v1550_v56 = vld [vmem:[%s1967_s0 + $0x64] ss:$8 sps:$4 sm:$0xff]  }
  0x14   :  { %540 = vmatprep.subr.bf16.mxu0 %v1481_v10  ;;  %1439 = vmatprep.subr.bf16.mxu1 %v1481_v10  ;;  %v1552_v57 = vld [vmem:[%s1967_s0 + $0xe4] ss:$8 sps:$4 sm:$0xff]   ;;  %v1554_v58 = vld [vmem:[%s1967_s0 + $0x60] ss:$8 sps:$4 sm:$0xff]   ;;  %v1556_v60 = vld [vmem:[%s1967_s0 + $0x74] ss:$8 sps:$4 sm:$0xff]  }
  0x15   :  { %v1555_v59 = vld [vmem:[%s1967_s0 + $0xe0] ss:$8 sps:$4 sm:$0xff]   ;;  %v1558_v61 = vld [vmem:[%s1967_s0 + $0xf4] ss:$8 sps:$4 sm:$0xff]   ;;  %v1560_v62 = vld [vmem:[%s1967_s0 + $0x70] ss:$8 sps:$4 sm:$0xff]  }
  0x16   :  { %v1561_v63 = vld [vmem:[%s1967_s0 + $0xf0] ss:$8 sps:$4 sm:$0xff]   ;;  %v918_v0 = vld [vmem:[%s1968_s2] sm:$0xff]  ;;  %v919_v6 = vld [vmem:[%s1968_s2 + $0x8] sm:$0xff] }
  0x17   :  { %541 = vmatpush1.bf16.msra.mxu0 %v1483_v11  ;;  %1455 = vmatpush1.bf16.msra.mxu1 %v1483_v11  ;;  %v934_v1 = vld [vmem:[%s1968_s2 + $0x80] sm:$0xff]  ;;  %v950_v2 = vunpack.c.l.bf16 %v918_v0  ;;  %v951_v4 = vunpack.c.h.bf16 %v918_v0  ;;  %v935_v7 = vld [vmem:[%s1968_s2 + $0x88] sm:$0xff] }
  0x18   :  { %542 = vmatprep.subr.bf16.mxu0 %v1484_v12  ;;  %1440 = vmatprep.subr.bf16.mxu1 %v1484_v12  ;;  %v982_v3 = vunpack.c.l.bf16 %v934_v1  ;;  %v983_v5 = vunpack.c.h.bf16 %v934_v1  ;;  %v952_v12 = vunpack.c.l.bf16 %v919_v6  ;;  %v984_v13 = vunpack.c.l.bf16 %v935_v7 }
  0x19   :  { %v985_v15 = vunpack.c.h.bf16 %v935_v7 }
  0x1b   :  { %543 = vmatpush1.bf16.msra.mxu0 %v1486_v14  ;;  %1456 = vmatpush1.bf16.msra.mxu1 %v1486_v14  ;;  %v953_v14 = vunpack.c.h.bf16 %v919_v6 }
  0x1c   :  { %544 = vmatprep.subr.bf16.mxu0 %v1487_v16  ;;  %1441 = vmatprep.subr.bf16.mxu1 %v1487_v16 }
  0x1f   :  { %545 = vmatpush1.bf16.msra.mxu0 %v1489_v17  ;;  %1457 = vmatpush1.bf16.msra.mxu1 %v1489_v17 }
  0x20   :  { %546 = vmatprep.subr.bf16.mxu0 %v1490_v18  ;;  %1442 = vmatprep.subr.bf16.mxu1 %v1490_v18 }
  0x23   :  { %547 = vmatpush2.bf16.msra.mxu0 %v1492_v19  ;;  %1458 = vmatpush2.bf16.msra.mxu1 %v1492_v19 }
  0x24   :  { %548 = vmatprep.subr.bf16.mxu0 %v1493_v20  ;;  %1443 = vmatprep.subr.bf16.mxu1 %v1493_v20  ;;  %v920_v20 = vld [vmem:[%s1968_s2 + $0x10] sm:$0xff] }
  0x27   :  { %549 = vmatpush2.bf16.msra.mxu0 %v1495_v21  ;;  %1459 = vmatpush2.bf16.msra.mxu1 %v1495_v21  ;;  %v936_v21 = vld [vmem:[%s1968_s2 + $0x90] sm:$0xff] }
  0x28   :  { %550 = vmatprep.subr.bf16.mxu0 %v1496_v22  ;;  %1444 = vmatprep.subr.bf16.mxu1 %v1496_v22 }
  0x2b   :  { %551 = vmatpush2.bf16.msra.mxu0 %v1498_v23  ;;  %1460 = vmatpush2.bf16.msra.mxu1 %v1498_v23 }
  0x2c   :  { %552 = vmatprep.subr.bf16.mxu0 %v1499_v24  ;;  %1445 = vmatprep.subr.bf16.mxu1 %v1499_v24 }
  0x2f   :  { %553 = vmatpush2.bf16.msra.mxu0 %v1501_v25  ;;  %1461 = vmatpush2.bf16.msra.mxu1 %v1501_v25 }
  0x30   :  { %554 = vmatprep.subr.bf16.mxu0 %v1502_v26  ;;  %1446 = vmatprep.subr.bf16.mxu1 %v1502_v26 }
  0x33   :  { %555 = vmatpush2.bf16.msra.mxu0 %v1504_v27  ;;  %1462 = vmatpush2.bf16.msra.mxu1 %v1504_v27 }
  0x34   :  { %556 = vmatprep.subr.bf16.mxu0 %v1505_v28  ;;  %1447 = vmatprep.subr.bf16.mxu1 %v1505_v28  ;;  %v954_v28 = vunpack.c.l.bf16 %v920_v20 }
  0x37   :  { %557 = vmatpush2.bf16.msra.mxu0 %v1507_v29  ;;  %1463 = vmatpush2.bf16.msra.mxu1 %v1507_v29  ;;  %v986_v29 = vunpack.c.l.bf16 %v936_v21 }
  0x38   :  { %558 = vmatprep.subr.bf16.mxu0 %v1508_v30  ;;  %1448 = vmatprep.subr.bf16.mxu1 %v1508_v30  ;;  %v955_v30 = vunpack.c.h.bf16 %v920_v20  ;;  %v924_v20 = vld [vmem:[%s1968_s2 + $0x30] sm:$0xff] }
  0x3b   :  { %559 = vmatpush2.bf16.msra.mxu0 %v1510_v31  ;;  %1464 = vmatpush2.bf16.msra.mxu1 %v1510_v31  ;;  %v987_v31 = vunpack.c.h.bf16 %v936_v21  ;;  %v940_v21 = vld [vmem:[%s1968_s2 + $0xb0] sm:$0xff] }
  0x3c   :  { %560 = vmatprep.subr.bf16.mxu0 %v1511_v32  ;;  %1449 = vmatprep.subr.bf16.mxu1 %v1511_v32 }
  0x3f   :  { %561 = vmatpush2.bf16.msra.mxu0 %v1513_v33  ;;  %1465 = vmatpush2.bf16.msra.mxu1 %v1513_v33 }
  0x42   :  { %563 = vmatmul.mubr.bf16.vlgmr.msra.gmra.mxu0 %v1514_v34  ;;  %643 = vmatmul.mubr.bf16.vlgmr.msra.gmra.mxu1 %v1517_v35 }
  0x43   :  { %572 = vmatprep.mubr.bf16.mxu0 %v1520_v36  ;;  %652 = vmatprep.mubr.bf16.mxu1 %v1522_v37  ;;  %v921_v36 = vld [vmem:[%s1968_s2 + $0x18] sm:$0xff] }
  0x44   :  { %v937_v37 = vld [vmem:[%s1968_s2 + $0x98] sm:$0xff] }
  0x4a   :  { %573 = vmatmul.mubr.bf16.gmra.mxu0 %v1524_v38  ;;  %653 = vmatmul.mubr.bf16.gmra.mxu1 %v1525_v39 }
  0x4b   :  { %582 = vmatprep.mubr.bf16.mxu0 %v1526_v40  ;;  %662 = vmatprep.mubr.bf16.mxu1 %v1528_v41 }
  0x52   :  { %583 = vmatmul.mubr.bf16.gmra.mxu0 %v1530_v42  ;;  %663 = vmatmul.mubr.bf16.gmra.mxu1 %v1531_v43 }
  0x53   :  { %592 = vmatprep.mubr.bf16.mxu0 %v1532_v44  ;;  %672 = vmatprep.mubr.bf16.mxu1 %v1534_v45  ;;  %v956_v44 = vunpack.c.l.bf16 %v921_v36  ;;  %v988_v45 = vunpack.c.l.bf16 %v937_v37 }
  0x5a   :  { %593 = vmatmul.mubr.bf16.gmra.mxu0 %v1536_v46  ;;  %673 = vmatmul.mubr.bf16.gmra.mxu1 %v1537_v47  ;;  %v957_v46 = vunpack.c.h.bf16 %v921_v36  ;;  %v989_v47 = vunpack.c.h.bf16 %v937_v37  ;;  %v925_v36 = vld [vmem:[%s1968_s2 + $0x38] sm:$0xff] }
  0x5b   :  { %602 = vmatprep.mubr.bf16.mxu0 %v1538_v48  ;;  %682 = vmatprep.mubr.bf16.mxu1 %v1540_v49  ;;  %v941_v37 = vld [vmem:[%s1968_s2 + $0xb8] sm:$0xff] }
  0x62   :  { %603 = vmatmul.mubr.bf16.gmra.mxu0 %v1542_v50  ;;  %683 = vmatmul.mubr.bf16.gmra.mxu1 %v1543_v51 }
  0x63   :  { %612 = vmatprep.mubr.bf16.mxu0 %v1544_v52  ;;  %692 = vmatprep.mubr.bf16.mxu1 %v1546_v53  ;;  %v922_v52 = vld [vmem:[%s1968_s2 + $0x20] sm:$0xff] }
  0x64   :  { %v938_v53 = vld [vmem:[%s1968_s2 + $0xa0] sm:$0xff] }
  0x6a   :  { %613 = vmatmul.mubr.bf16.gmra.mxu0 %v1548_v54  ;;  %693 = vmatmul.mubr.bf16.gmra.mxu1 %v1549_v55 }
  0x6b   :  { %622 = vmatprep.mubr.bf16.mxu0 %v1550_v56  ;;  %702 = vmatprep.mubr.bf16.mxu1 %v1552_v57 }
  0x72   :  { %623 = vmatmul.mubr.bf16.gmra.mxu0 %v1554_v58  ;;  %703 = vmatmul.mubr.bf16.gmra.mxu1 %v1555_v59 }
  0x73   :  { %632 = vmatprep.mubr.bf16.mxu0 %v1556_v60  ;;  %712 = vmatprep.mubr.bf16.mxu1 %v1558_v61  ;;  %v958_v60 = vunpack.c.l.bf16 %v922_v52  ;;  %v990_v61 = vunpack.c.l.bf16 %v938_v53 }
  0x7a   :  { %633 = vmatmul.mubr.bf16.gmra.mxu0 %v1560_v62  ;;  %713 = vmatmul.mubr.bf16.gmra.mxu1 %v1561_v63  ;;  %v959_v62 = vunpack.c.h.bf16 %v922_v52  ;;  %v991_v63 = vunpack.c.h.bf16 %v938_v53  ;;  %v926_v52 = vld [vmem:[%s1968_s2 + $0x40] sm:$0xff] }
  0x7b   :  { %v942_v53 = vld [vmem:[%s1968_s2 + $0xc0] sm:$0xff] }
 0x102   :  { %v564_v8 = vpop.f32.mrf.mxu0  ;;  %v644_v9 = vpop.f32.mrf.mxu1 }
 0x103   :  { %v1014_v16 = vadd.f32 %v950_v2, %v564_v8  ;;  %v1046_v17 = vadd.f32 %v982_v3, %v644_v9 }
 0x104   :  { %v566_v10 = vpop.f32.mrf.mxu0  ;;  %v646_v11 = vpop.f32.mrf.mxu1 }
 0x105   :  { %v1015_v18 = vadd.f32 %v951_v4, %v566_v10  ;;  %v1047_v19 = vadd.f32 %v983_v5, %v646_v11  ;;  %v923_v4 = vld [vmem:[%s1968_s2 + $0x28] sm:$0xff] }
 0x106   :  { %v568_v22 = vpop.f32.mrf.mxu0  ;;  %v648_v23 = vpop.f32.mrf.mxu1  ;;  %v939_v5 = vld [vmem:[%s1968_s2 + $0xa8] sm:$0xff] }
 0x107   :  { %v1402_v24 = vpack.c.bf16 %v1015_v18, %v1014_v16  ;;  %v1418_v25 = vpack.c.bf16 %v1047_v19, %v1046_v17  ;;  %v1016_v32 = vadd.f32 %v952_v12, %v568_v22  ;;  %v1048_v33 = vadd.f32 %v984_v13, %v648_v23 }
 0x108   :  { %v570_v26 = vpop.f32.mrf.mxu0  ;;  %v650_v27 = vpop.f32.mrf.mxu1  ;;  %v960_v12 = vunpack.c.l.bf16 %v923_v4  ;;  %v992_v13 = vunpack.c.l.bf16 %v939_v5 }
 0x109   :  { %1270 = vst [vmem:[%s1969_s3] sm:$0xff] %v1402_v24  ;;  %1286 = vst [vmem:[%s1969_s3 + $0x80] sm:$0xff] %v1418_v25  ;;  %v1017_v34 = vadd.f32 %v953_v14, %v570_v26  ;;  %v1049_v35 = vadd.f32 %v985_v15, %v650_v27  ;;  %v961_v14 = vunpack.c.h.bf16 %v923_v4  ;;  %v993_v15 = vunpack.c.h.bf16 %v939_v5  ;;  %v927_v4 = vld [vmem:[%s1968_s2 + $0x48] sm:$0xff] }
 0x10a   :  { %v574_v38 = vpop.f32.mrf.mxu0  ;;  %v654_v39 = vpop.f32.mrf.mxu1  ;;  %v943_v5 = vld [vmem:[%s1968_s2 + $0xc8] sm:$0xff] }
 0x10b   :  { %v1403_v40 = vpack.c.bf16 %v1017_v34, %v1016_v32  ;;  %v1419_v41 = vpack.c.bf16 %v1049_v35, %v1048_v33  ;;  %v1018_v48 = vadd.f32 %v954_v28, %v574_v38  ;;  %v1050_v49 = vadd.f32 %v986_v29, %v654_v39 }
 0x10c   :  { %v576_v42 = vpop.f32.mrf.mxu0  ;;  %v656_v43 = vpop.f32.mrf.mxu1  ;;  %v962_v28 = vunpack.c.l.bf16 %v924_v20  ;;  %v994_v29 = vunpack.c.l.bf16 %v940_v21 }
 0x10d   :  { %1271 = vst [vmem:[%s1969_s3 + $0x8] sm:$0xff] %v1403_v40  ;;  %1287 = vst [vmem:[%s1969_s3 + $0x88] sm:$0xff] %v1419_v41  ;;  %v1019_v50 = vadd.f32 %v955_v30, %v576_v42  ;;  %v1051_v51 = vadd.f32 %v987_v31, %v656_v43  ;;  %v963_v30 = vunpack.c.h.bf16 %v924_v20  ;;  %v995_v31 = vunpack.c.h.bf16 %v940_v21  ;;  %v928_v20 = vld [vmem:[%s1968_s2 + $0x50] sm:$0xff] }
 0x10e   :  { %v578_v54 = vpop.f32.mrf.mxu0  ;;  %v658_v55 = vpop.f32.mrf.mxu1  ;;  %v944_v21 = vld [vmem:[%s1968_s2 + $0xd0] sm:$0xff] }
 0x10f   :  { %v1404_v56 = vpack.c.bf16 %v1019_v50, %v1018_v48  ;;  %v1420_v57 = vpack.c.bf16 %v1051_v51, %v1050_v49  ;;  %v1020_v0 = vadd.f32 %v956_v44, %v578_v54  ;;  %v1052_v1 = vadd.f32 %v988_v45, %v658_v55 }
 0x110   :  { %v580_v58 = vpop.f32.mrf.mxu0  ;;  %v660_v59 = vpop.f32.mrf.mxu1  ;;  %v964_v44 = vunpack.c.l.bf16 %v925_v36  ;;  %v996_v45 = vunpack.c.l.bf16 %v941_v37 }
 0x111   :  { %1272 = vst [vmem:[%s1969_s3 + $0x10] sm:$0xff] %v1404_v56  ;;  %1288 = vst [vmem:[%s1969_s3 + $0x90] sm:$0xff] %v1420_v57  ;;  %v1021_v2 = vadd.f32 %v957_v46, %v580_v58  ;;  %v1053_v3 = vadd.f32 %v989_v47, %v660_v59  ;;  %v965_v46 = vunpack.c.h.bf16 %v925_v36  ;;  %v997_v47 = vunpack.c.h.bf16 %v941_v37  ;;  %v929_v36 = vld [vmem:[%s1968_s2 + $0x58] sm:$0xff] }
 0x112   :  { %v584_v6 = vpop.f32.mrf.mxu0  ;;  %v664_v7 = vpop.f32.mrf.mxu1  ;;  %v945_v37 = vld [vmem:[%s1968_s2 + $0xd8] sm:$0xff] }
 0x113   :  { %v1405_v8 = vpack.c.bf16 %v1021_v2, %v1020_v0  ;;  %v1421_v9 = vpack.c.bf16 %v1053_v3, %v1052_v1  ;;  %v1022_v16 = vadd.f32 %v958_v60, %v584_v6  ;;  %v1054_v17 = vadd.f32 %v990_v61, %v664_v7 }
 0x114   :  { %v586_v10 = vpop.f32.mrf.mxu0  ;;  %v666_v11 = vpop.f32.mrf.mxu1  ;;  %v966_v60 = vunpack.c.l.bf16 %v926_v52  ;;  %v998_v61 = vunpack.c.l.bf16 %v942_v53 }
 0x115   :  { %1273 = vst [vmem:[%s1969_s3 + $0x18] sm:$0xff] %v1405_v8  ;;  %1289 = vst [vmem:[%s1969_s3 + $0x98] sm:$0xff] %v1421_v9  ;;  %v1023_v18 = vadd.f32 %v959_v62, %v586_v10  ;;  %v1055_v19 = vadd.f32 %v991_v63, %v666_v11  ;;  %v967_v62 = vunpack.c.h.bf16 %v926_v52  ;;  %v999_v63 = vunpack.c.h.bf16 %v942_v53  ;;  %v930_v52 = vld [vmem:[%s1968_s2 + $0x60] sm:$0xff] }
 0x116   :  { %v588_v22 = vpop.f32.mrf.mxu0  ;;  %v668_v23 = vpop.f32.mrf.mxu1  ;;  %v946_v53 = vld [vmem:[%s1968_s2 + $0xe0] sm:$0xff] }
 0x117   :  { %v1406_v24 = vpack.c.bf16 %v1023_v18, %v1022_v16  ;;  %v1422_v25 = vpack.c.bf16 %v1055_v19, %v1054_v17  ;;  %v1024_v32 = vadd.f32 %v960_v12, %v588_v22  ;;  %v1056_v33 = vadd.f32 %v992_v13, %v668_v23 }
 0x118   :  { %v590_v26 = vpop.f32.mrf.mxu0  ;;  %v670_v27 = vpop.f32.mrf.mxu1  ;;  %v968_v12 = vunpack.c.l.bf16 %v927_v4  ;;  %v1000_v13 = vunpack.c.l.bf16 %v943_v5 }
 0x119   :  { %1274 = vst [vmem:[%s1969_s3 + $0x20] sm:$0xff] %v1406_v24  ;;  %1290 = vst [vmem:[%s1969_s3 + $0xa0] sm:$0xff] %v1422_v25  ;;  %v1025_v34 = vadd.f32 %v961_v14, %v590_v26  ;;  %v1057_v35 = vadd.f32 %v993_v15, %v670_v27  ;;  %v969_v14 = vunpack.c.h.bf16 %v927_v4  ;;  %v1001_v15 = vunpack.c.h.bf16 %v943_v5  ;;  %v931_v4 = vld [vmem:[%s1968_s2 + $0x68] sm:$0xff] }
 0x11a   :  { %v594_v38 = vpop.f32.mrf.mxu0  ;;  %v674_v39 = vpop.f32.mrf.mxu1  ;;  %v947_v5 = vld [vmem:[%s1968_s2 + $0xe8] sm:$0xff] }
 0x11b   :  { %v1407_v40 = vpack.c.bf16 %v1025_v34, %v1024_v32  ;;  %v1423_v41 = vpack.c.bf16 %v1057_v35, %v1056_v33  ;;  %v1026_v48 = vadd.f32 %v962_v28, %v594_v38  ;;  %v1058_v49 = vadd.f32 %v994_v29, %v674_v39 }
 0x11c   :  { %v596_v42 = vpop.f32.mrf.mxu0  ;;  %v676_v43 = vpop.f32.mrf.mxu1  ;;  %v970_v28 = vunpack.c.l.bf16 %v928_v20  ;;  %v1002_v29 = vunpack.c.l.bf16 %v944_v21 }
 0x11d   :  { %1275 = vst [vmem:[%s1969_s3 + $0x28] sm:$0xff] %v1407_v40  ;;  %1291 = vst [vmem:[%s1969_s3 + $0xa8] sm:$0xff] %v1423_v41  ;;  %v1027_v50 = vadd.f32 %v963_v30, %v596_v42  ;;  %v1059_v51 = vadd.f32 %v995_v31, %v676_v43  ;;  %v971_v30 = vunpack.c.h.bf16 %v928_v20  ;;  %v1003_v31 = vunpack.c.h.bf16 %v944_v21  ;;  %v932_v20 = vld [vmem:[%s1968_s2 + $0x70] sm:$0xff] }
 0x11e   :  { %v598_v54 = vpop.f32.mrf.mxu0  ;;  %v678_v55 = vpop.f32.mrf.mxu1  ;;  %v948_v21 = vld [vmem:[%s1968_s2 + $0xf0] sm:$0xff] }
 0x11f   :  { %v1408_v56 = vpack.c.bf16 %v1027_v50, %v1026_v48  ;;  %v1424_v57 = vpack.c.bf16 %v1059_v51, %v1058_v49  ;;  %v1028_v0 = vadd.f32 %v964_v44, %v598_v54  ;;  %v1060_v1 = vadd.f32 %v996_v45, %v678_v55 }
 0x120   :  { %v600_v58 = vpop.f32.mrf.mxu0  ;;  %v680_v59 = vpop.f32.mrf.mxu1  ;;  %v972_v44 = vunpack.c.l.bf16 %v929_v36  ;;  %v1004_v45 = vunpack.c.l.bf16 %v945_v37 }
 0x121   :  { %1276 = vst [vmem:[%s1969_s3 + $0x30] sm:$0xff] %v1408_v56  ;;  %1292 = vst [vmem:[%s1969_s3 + $0xb0] sm:$0xff] %v1424_v57  ;;  %v1029_v2 = vadd.f32 %v965_v46, %v600_v58  ;;  %v1061_v3 = vadd.f32 %v997_v47, %v680_v59  ;;  %v973_v46 = vunpack.c.h.bf16 %v929_v36  ;;  %v1005_v47 = vunpack.c.h.bf16 %v945_v37  ;;  %v933_v36 = vld [vmem:[%s1968_s2 + $0x78] sm:$0xff] }
 0x122   :  { %v604_v6 = vpop.f32.mrf.mxu0  ;;  %v684_v7 = vpop.f32.mrf.mxu1  ;;  %v949_v37 = vld [vmem:[%s1968_s2 + $0xf8] sm:$0xff] }
 0x123   :  { %v1409_v8 = vpack.c.bf16 %v1029_v2, %v1028_v0  ;;  %v1425_v9 = vpack.c.bf16 %v1061_v3, %v1060_v1  ;;  %v1030_v16 = vadd.f32 %v966_v60, %v604_v6  ;;  %v1062_v17 = vadd.f32 %v998_v61, %v684_v7 }
 0x124   :  { %v606_v10 = vpop.f32.mrf.mxu0  ;;  %v686_v11 = vpop.f32.mrf.mxu1  ;;  %v974_v60 = vunpack.c.l.bf16 %v930_v52  ;;  %v1006_v61 = vunpack.c.l.bf16 %v946_v53 }
 0x125   :  { %1277 = vst [vmem:[%s1969_s3 + $0x38] sm:$0xff] %v1409_v8  ;;  %1293 = vst [vmem:[%s1969_s3 + $0xb8] sm:$0xff] %v1425_v9  ;;  %v1031_v18 = vadd.f32 %v967_v62, %v606_v10  ;;  %v1063_v19 = vadd.f32 %v999_v63, %v686_v11  ;;  %v975_v62 = vunpack.c.h.bf16 %v930_v52  ;;  %v1007_v63 = vunpack.c.h.bf16 %v946_v53 }
 0x126   :  { %v608_v22 = vpop.f32.mrf.mxu0  ;;  %v688_v23 = vpop.f32.mrf.mxu1 }
 0x127   :  { %v1410_v24 = vpack.c.bf16 %v1031_v18, %v1030_v16  ;;  %v1426_v25 = vpack.c.bf16 %v1063_v19, %v1062_v17  ;;  %v1032_v32 = vadd.f32 %v968_v12, %v608_v22  ;;  %v1064_v33 = vadd.f32 %v1000_v13, %v688_v23 }
 0x128   :  { %v610_v26 = vpop.f32.mrf.mxu0  ;;  %v690_v27 = vpop.f32.mrf.mxu1  ;;  %v976_v12 = vunpack.c.l.bf16 %v931_v4  ;;  %v1008_v13 = vunpack.c.l.bf16 %v947_v5 }
 0x129   :  { %1278 = vst [vmem:[%s1969_s3 + $0x40] sm:$0xff] %v1410_v24  ;;  %1294 = vst [vmem:[%s1969_s3 + $0xc0] sm:$0xff] %v1426_v25  ;;  %v1033_v34 = vadd.f32 %v969_v14, %v610_v26  ;;  %v1065_v35 = vadd.f32 %v1001_v15, %v690_v27  ;;  %v977_v14 = vunpack.c.h.bf16 %v931_v4  ;;  %v1009_v15 = vunpack.c.h.bf16 %v947_v5 }
 0x12a   :  { %v614_v38 = vpop.f32.mrf.mxu0  ;;  %v694_v39 = vpop.f32.mrf.mxu1 }
 0x12b   :  { %v1411_v40 = vpack.c.bf16 %v1033_v34, %v1032_v32  ;;  %v1427_v41 = vpack.c.bf16 %v1065_v35, %v1064_v33  ;;  %v1034_v48 = vadd.f32 %v970_v28, %v614_v38  ;;  %v1066_v49 = vadd.f32 %v1002_v29, %v694_v39 }
 0x12c   :  { %v616_v42 = vpop.f32.mrf.mxu0  ;;  %v696_v43 = vpop.f32.mrf.mxu1  ;;  %v978_v28 = vunpack.c.l.bf16 %v932_v20  ;;  %v1010_v29 = vunpack.c.l.bf16 %v948_v21 }
 0x12d   :  { %1279 = vst [vmem:[%s1969_s3 + $0x48] sm:$0xff] %v1411_v40  ;;  %1295 = vst [vmem:[%s1969_s3 + $0xc8] sm:$0xff] %v1427_v41  ;;  %v1035_v50 = vadd.f32 %v971_v30, %v616_v42  ;;  %v1067_v51 = vadd.f32 %v1003_v31, %v696_v43  ;;  %v979_v30 = vunpack.c.h.bf16 %v932_v20  ;;  %v1011_v31 = vunpack.c.h.bf16 %v948_v21 }
 0x12e   :  { %v618_v54 = vpop.f32.mrf.mxu0  ;;  %v698_v55 = vpop.f32.mrf.mxu1 }
 0x12f   :  { %v1412_v56 = vpack.c.bf16 %v1035_v50, %v1034_v48  ;;  %v1428_v57 = vpack.c.bf16 %v1067_v51, %v1066_v49  ;;  %v1036_v0 = vadd.f32 %v972_v44, %v618_v54  ;;  %v1068_v1 = vadd.f32 %v1004_v45, %v698_v55 }
 0x130   :  { %v620_v58 = vpop.f32.mrf.mxu0  ;;  %v700_v59 = vpop.f32.mrf.mxu1  ;;  %v980_v44 = vunpack.c.l.bf16 %v933_v36  ;;  %v1012_v45 = vunpack.c.l.bf16 %v949_v37 }
 0x131   :  { %1280 = vst [vmem:[%s1969_s3 + $0x50] sm:$0xff] %v1412_v56  ;;  %1296 = vst [vmem:[%s1969_s3 + $0xd0] sm:$0xff] %v1428_v57  ;;  %v1037_v2 = vadd.f32 %v973_v46, %v620_v58  ;;  %v1069_v3 = vadd.f32 %v1005_v47, %v700_v59  ;;  %v981_v46 = vunpack.c.h.bf16 %v933_v36  ;;  %v1013_v47 = vunpack.c.h.bf16 %v949_v37 }
 0x132   :  { %v624_v6 = vpop.f32.mrf.mxu0  ;;  %v704_v7 = vpop.f32.mrf.mxu1 }
 0x133   :  { %v1413_v8 = vpack.c.bf16 %v1037_v2, %v1036_v0  ;;  %v1429_v9 = vpack.c.bf16 %v1069_v3, %v1068_v1  ;;  %v1038_v16 = vadd.f32 %v974_v60, %v624_v6  ;;  %v1070_v17 = vadd.f32 %v1006_v61, %v704_v7 }
 0x134   :  { %v626_v10 = vpop.f32.mrf.mxu0  ;;  %v706_v11 = vpop.f32.mrf.mxu1 }
 0x135   :  { %1281 = vst [vmem:[%s1969_s3 + $0x58] sm:$0xff] %v1413_v8  ;;  %1297 = vst [vmem:[%s1969_s3 + $0xd8] sm:$0xff] %v1429_v9  ;;  %v1039_v18 = vadd.f32 %v975_v62, %v626_v10  ;;  %v1071_v19 = vadd.f32 %v1007_v63, %v706_v11 }
 0x136   :  { %v628_v22 = vpop.f32.mrf.mxu0  ;;  %v708_v23 = vpop.f32.mrf.mxu1 }
 0x137   :  { %v1414_v24 = vpack.c.bf16 %v1039_v18, %v1038_v16  ;;  %v1430_v25 = vpack.c.bf16 %v1071_v19, %v1070_v17  ;;  %v1040_v32 = vadd.f32 %v976_v12, %v628_v22  ;;  %v1072_v33 = vadd.f32 %v1008_v13, %v708_v23 }
 0x138   :  { %v630_v26 = vpop.f32.mrf.mxu0  ;;  %v710_v27 = vpop.f32.mrf.mxu1 }
 0x139   :  { %1282 = vst [vmem:[%s1969_s3 + $0x60] sm:$0xff] %v1414_v24  ;;  %1298 = vst [vmem:[%s1969_s3 + $0xe0] sm:$0xff] %v1430_v25  ;;  %v1041_v34 = vadd.f32 %v977_v14, %v630_v26  ;;  %v1073_v35 = vadd.f32 %v1009_v15, %v710_v27 }
 0x13a   :  { %v634_v38 = vpop.f32.mrf.mxu0  ;;  %v714_v39 = vpop.f32.mrf.mxu1 }
 0x13b   :  { %v1415_v40 = vpack.c.bf16 %v1041_v34, %v1040_v32  ;;  %v1431_v41 = vpack.c.bf16 %v1073_v35, %v1072_v33  ;;  %v1042_v48 = vadd.f32 %v978_v28, %v634_v38  ;;  %v1074_v49 = vadd.f32 %v1010_v29, %v714_v39 }
 0x13c   :  { %v636_v42 = vpop.f32.mrf.mxu0  ;;  %v716_v43 = vpop.f32.mrf.mxu1 }
 0x13d   :  { %1283 = vst [vmem:[%s1969_s3 + $0x68] sm:$0xff] %v1415_v40  ;;  %1299 = vst [vmem:[%s1969_s3 + $0xe8] sm:$0xff] %v1431_v41  ;;  %v1043_v50 = vadd.f32 %v979_v30, %v636_v42  ;;  %v1075_v51 = vadd.f32 %v1011_v31, %v716_v43 }
 0x13e   :  { %v638_v52 = vpop.f32.mrf.mxu0  ;;  %v718_v53 = vpop.f32.mrf.mxu1 }
 0x13f   :  { %v1416_v54 = vpack.c.bf16 %v1043_v50, %v1042_v48  ;;  %v1432_v55 = vpack.c.bf16 %v1075_v51, %v1074_v49  ;;  %v1044_v58 = vadd.f32 %v980_v44, %v638_v52  ;;  %v1076_v59 = vadd.f32 %v1012_v45, %v718_v53 }
 0x140   :  { %v640_v56 = vpop.f32.mrf.mxu0  ;;  %v720_v57 = vpop.f32.mrf.mxu1 }
 0x141   :  { %1284 = vst [vmem:[%s1969_s3 + $0x70] sm:$0xff] %v1416_v54  ;;  %1300 = vst [vmem:[%s1969_s3 + $0xf0] sm:$0xff] %v1432_v55  ;;  %v1045_v60 = vadd.f32 %v981_v46, %v640_v56  ;;  %v1077_v61 = vadd.f32 %v1013_v47, %v720_v57 }
 0x143   :  { %v1417_v62 = vpack.c.bf16 %v1045_v60, %v1044_v58  ;;  %v1433_v63 = vpack.c.bf16 %v1077_v61, %v1076_v59 }
 0x145   :  { %1285 = vst [vmem:[%s1969_s3 + $0x78] sm:$0xff] %v1417_v62  ;;  %1301 = vst [vmem:[%s1969_s3 + $0xf8] sm:$0xff] %v1433_v63 }

// kernel: _lambda_.12
= control target key start
LH: loop header
LB: loop body
LE: loop exit
PB: predicated region body
PF: predicated region fallthrough
CT: control target
= control target key end

     0   :  { %s5761_s0 = inlined_call_operand.vmem [shape: bf16[256,256], index: 0, kind: input, shape index: {}]   ;;  %s5762_s2 = inlined_call_operand.vmem [shape: bf16[256,256], index: 2, kind: input, shape index: {}]   ;;  %s5763_s3 = inlined_call_operand.vmem [shape: bf16[256,256], index: 3, kind: input, shape index: {}]   ;;  %s5764_s1 = inlined_call_operand.vmem [shape: f32[1,256], index: 1, kind: input, shape index: {}]   ;;  %s5765_s4 = inlined_call_operand.vmem [shape: bf16[256,256], index: 4, kind: input, shape index: {}]   ;;  %s5766_s5 = inlined_call_operand.vmem [shape: bf16[256,256], index: 5, kind: output, shape index: {}]  }
   0x1   :  { %v42_v0 = vld [vmem:[%s5761_s0 + $0x90] sm:$0xff]  ;;  %v40_v1 = vld [vmem:[%s5761_s0 + $0x80] sm:$0xff]  ;;  %v43_v2 = vld [vmem:[%s5761_s0 + $0x98] sm:$0xff] }
   0x2   :  { %v4230_v3 = vunpack.c.l.bf16 %v42_v0  ;;  %v4232_v4 = vunpack.c.h.bf16 %v42_v0  ;;  %v4234_v5 = vunpack.c.l.bf16 %v40_v1  ;;  %v4236_v6 = vunpack.c.h.bf16 %v40_v1  ;;  %v41_v7 = vld [vmem:[%s5761_s0 + $0x88] sm:$0xff]  ;;  %v44_v17 = vld [vmem:[%s5761_s0 + $0xa0] sm:$0xff]  ;;  %v47_v22 = vld [vmem:[%s5761_s0 + $0xb8] sm:$0xff] }
   0x3   :  { %v4241_v8 = vunpack.c.l.bf16 %v43_v2  ;;  %v4243_v9 = vunpack.c.h.bf16 %v43_v2  ;;  %v4245_v10 = vunpack.c.l.bf16 %v41_v7  ;;  %v4247_v11 = vunpack.c.h.bf16 %v41_v7  ;;  %v45_v12 = vld [vmem:[%s5761_s0 + $0xa8] sm:$0xff]  ;;  %v46_v27 = vld [vmem:[%s5761_s0 + $0xb0] sm:$0xff]  ;;  %v24_v41 = vld [vmem:[%s5761_s0] sm:$0xff] }
   0x4   :  { %v156_v13 = vmul.f32 %v4230_v3, %v4230_v3  ;;  %v157_v14 = vmul.f32 %v4232_v4, %v4232_v4  ;;  %v152_v15 = vmul.f32 %v4234_v5, %v4234_v5  ;;  %v153_v16 = vmul.f32 %v4236_v6, %v4236_v6  ;;  %v25_v32 = vld [vmem:[%s5761_s0 + $0x8] sm:$0xff]  ;;  %v48_v49 = vld [vmem:[%s5761_s0 + $0xc0] sm:$0xff]  ;;  %v3727_v54 = vld [vmem:[%s5762_s2 + $0x74] ss:$8 sps:$4 sm:$0xff]  }
   0x5   :  { %v158_v18 = vmul.f32 %v4241_v8, %v4241_v8  ;;  %v159_v19 = vmul.f32 %v4243_v9, %v4243_v9  ;;  %v154_v20 = vmul.f32 %v4245_v10, %v4245_v10  ;;  %v155_v21 = vmul.f32 %v4247_v11, %v4247_v11  ;;  %v49_v48 = vld [vmem:[%s5761_s0 + $0xc8] sm:$0xff]  ;;  %v3729_v55 = vld [vmem:[%s5762_s2 + $0x70] ss:$8 sps:$4 sm:$0xff]   ;;  %3695 = vmatprep.subr.bf16.mxu1 %v3727_v54 }
   0x6   :  { %v238_v23 = vadd.f32 %v157_v14, %v156_v13  ;;  %v232_v24 = vadd.f32 %v153_v16, %v152_v15  ;;  %v4274_v25 = vunpack.c.l.bf16 %v45_v12  ;;  %v4276_v26 = vunpack.c.h.bf16 %v45_v12  ;;  %v3730_v56 = vld [vmem:[%s5762_s2 + $0x64] ss:$8 sps:$4 sm:$0xff]   ;;  %1189 = vmatprep.subr.bf16.mxu0 %v3727_v54  ;;  %v27_v0 = vld [vmem:[%s5761_s0 + $0x18] sm:$0xff]  ;;  %3711 = vmatpush1.bf16.msra.mxu1 %v3729_v55  ;;  %v3732_v1 = vld [vmem:[%s5762_s2 + $0x60] ss:$8 sps:$4 sm:$0xff]  }
   0x7   :  { %v241_v28 = vadd.f32 %v159_v19, %v158_v18  ;;  %v235_v29 = vadd.f32 %v155_v21, %v154_v20  ;;  %v4281_v30 = vunpack.c.l.bf16 %v44_v17  ;;  %v4283_v31 = vunpack.c.h.bf16 %v44_v17  ;;  %1190 = vmatpush1.bf16.msra.mxu0 %v3729_v55  ;;  %v26_v13 = vld [vmem:[%s5761_s0 + $0x10] sm:$0xff]  ;;  %3696 = vmatprep.subr.bf16.mxu1 %v3730_v56  ;;  %v51_v21 = vld [vmem:[%s5761_s0 + $0xd8] sm:$0xff] }
   0x8   :  { %239 = vadd.xlane.f32.xlu1 %v238_v23  ;;  %233 = vadd.xlane.f32.xlu0 %v232_v24  ;;  %v162_v33 = vmul.f32 %v4274_v25, %v4274_v25  ;;  %v163_v34 = vmul.f32 %v4276_v26, %v4276_v26  ;;  %v4292_v35 = vunpack.c.l.bf16 %v47_v22  ;;  %v4294_v36 = vunpack.c.h.bf16 %v47_v22  ;;  %v3733_v14 = vld [vmem:[%s5762_s2 + $0x54] ss:$8 sps:$4 sm:$0xff]   ;;  %v3735_v22 = vld [vmem:[%s5762_s2 + $0x50] ss:$8 sps:$4 sm:$0xff]  }
   0x9   :  { %v160_v37 = vmul.f32 %v4281_v30, %v4281_v30  ;;  %v161_v38 = vmul.f32 %v4283_v31, %v4283_v31  ;;  %v4300_v39 = vunpack.c.l.bf16 %v46_v27  ;;  %v4302_v40 = vunpack.c.h.bf16 %v46_v27  ;;  %1191 = vmatprep.subr.bf16.mxu0 %v3730_v56  ;;  %v3739_v54 = vld [vmem:[%s5762_s2 + $0x34] ss:$8 sps:$4 sm:$0xff]  }
   0xa   :  { %v166_v42 = vmul.f32 %v4292_v35, %v4292_v35  ;;  %v167_v43 = vmul.f32 %v4294_v36, %v4294_v36  ;;  %v4311_v44 = vunpack.c.l.bf16 %v25_v32  ;;  %v247_v45 = vadd.f32 %v163_v34, %v162_v33  ;;  %3712 = vmatpush1.bf16.msra.mxu1 %v3732_v1 }
   0xb   :  { %v164_v46 = vmul.f32 %v4300_v39, %v4300_v39  ;;  %v165_v47 = vmul.f32 %v4302_v40, %v4302_v40  ;;  %v244_v50 = vadd.f32 %v161_v38, %v160_v37  ;;  %v4323_v51 = vunpack.c.h.bf16 %v25_v32  ;;  %1192 = vmatpush1.bf16.msra.mxu0 %v3732_v1  ;;  %3697 = vmatprep.subr.bf16.mxu1 %v3733_v14  ;;  %v3736_v32 = vld [vmem:[%s5762_s2 + $0x44] ss:$8 sps:$4 sm:$0xff]  }
   0xc   :  { %242 = vadd.xlane.f32.xlu1 %v241_v28  ;;  %236 = vadd.xlane.f32.xlu0 %v235_v29  ;;  %v4325_v52 = vunpack.c.l.bf16 %v24_v41  ;;  %v4327_v53 = vunpack.c.h.bf16 %v24_v41  ;;  %v253_v57 = vadd.f32 %v167_v43, %v166_v42  ;;  %v122_v58 = vmul.f32 %v4311_v44, %v4311_v44  ;;  %v50_v29 = vld [vmem:[%s5761_s0 + $0xd0] sm:$0xff]  ;;  %v29_v43 = vld [vmem:[%s5761_s0 + $0x28] sm:$0xff] }
   0xd   :  { %v4340_v59 = vunpack.c.l.bf16 %v49_v48  ;;  %v250_v60 = vadd.f32 %v165_v47, %v164_v46  ;;  %v4342_v61 = vunpack.c.h.bf16 %v49_v48  ;;  %v4344_v62 = vunpack.c.l.bf16 %v48_v49  ;;  %1193 = vmatprep.subr.bf16.mxu0 %v3733_v14 }
   0xe   :  { %v4346_v63 = vunpack.c.h.bf16 %v48_v49  ;;  %v123_v2 = vmul.f32 %v4323_v51, %v4323_v51  ;;  %v120_v7 = vmul.f32 %v4325_v52, %v4325_v52  ;;  %v121_v12 = vmul.f32 %v4327_v53, %v4327_v53  ;;  %3713 = vmatpush1.bf16.msra.mxu1 %v3735_v22 }
   0xf   :  { %v170_v15 = vmul.f32 %v4340_v59, %v4340_v59  ;;  %v4368_v16 = vunpack.c.l.bf16 %v27_v0  ;;  %v4370_v17 = vunpack.c.h.bf16 %v27_v0  ;;  %v171_v18 = vmul.f32 %v4342_v61, %v4342_v61  ;;  %1194 = vmatpush1.bf16.msra.mxu0 %v3735_v22  ;;  %3698 = vmatprep.subr.bf16.mxu1 %v3736_v32 }
  0x10   :  { %248 = vadd.xlane.f32.xlu1 %v247_v45  ;;  %245 = vadd.xlane.f32.xlu0 %v244_v50  ;;  %v168_v19 = vmul.f32 %v4344_v62, %v4344_v62  ;;  %v169_v20 = vmul.f32 %v4346_v63, %v4346_v63  ;;  %v187_v23 = vadd.f32 %v123_v2, %v122_v58  ;;  %v4384_v27 = vunpack.c.l.bf16 %v26_v13  ;;  %v3738_v45 = vld [vmem:[%s5762_s2 + $0x40] ss:$8 sps:$4 sm:$0xff]  }
  0x11   :  { %v184_v24 = vadd.f32 %v121_v12, %v120_v7  ;;  %v4386_v28 = vunpack.c.h.bf16 %v26_v13  ;;  %v126_v33 = vmul.f32 %v4368_v16, %v4368_v16  ;;  %v127_v34 = vmul.f32 %v4370_v17, %v4370_v17  ;;  %v28_v50 = vld [vmem:[%s5761_s0 + $0x20] sm:$0xff]  ;;  %1195 = vmatprep.subr.bf16.mxu0 %v3736_v32  ;;  %v53_v58 = vld [vmem:[%s5761_s0 + $0xe8] sm:$0xff]  ;;  %v3741_v12 = vld [vmem:[%s5762_s2 + $0x30] ss:$8 sps:$4 sm:$0xff]  }
  0x12   :  { %v4398_v37 = vunpack.c.l.bf16 %v51_v21  ;;  %v259_v38 = vadd.f32 %v171_v18, %v170_v15  ;;  %v256_v41 = vadd.f32 %v169_v20, %v168_v19  ;;  %v4400_v42 = vunpack.c.h.bf16 %v51_v21  ;;  %v52_v7 = vld [vmem:[%s5761_s0 + $0xe0] sm:$0xff]  ;;  %3714 = vmatpush1.bf16.msra.mxu1 %v3738_v45 }
  0x13   :  { %v124_v46 = vmul.f32 %v4384_v27, %v4384_v27  ;;  %v125_v47 = vmul.f32 %v4386_v28, %v4386_v28  ;;  %v4412_v48 = vunpack.c.l.bf16 %v50_v29  ;;  %v4414_v49 = vunpack.c.h.bf16 %v50_v29  ;;  %v3742_v13 = vld [vmem:[%s5762_s2 + $0x24] ss:$8 sps:$4 sm:$0xff]   ;;  %1196 = vmatpush1.bf16.msra.mxu0 %v3738_v45  ;;  %3699 = vmatprep.subr.bf16.mxu1 %v3739_v54  ;;  %v3744_v29 = vld [vmem:[%s5762_s2 + $0x20] ss:$8 sps:$4 sm:$0xff]   ;;  %v3745_v45 = vld [vmem:[%s5762_s2 + $0x14] ss:$8 sps:$4 sm:$0xff]  }
  0x14   :  { %254 = vadd.xlane.f32.xlu1 %v253_v57  ;;  %251 = vadd.xlane.f32.xlu0 %v250_v60  ;;  %v193_v55 = vadd.f32 %v127_v34, %v126_v33  ;;  %v174_v56 = vmul.f32 %v4398_v37, %v4398_v37  ;;  %v4424_v57 = vunpack.c.l.bf16 %v29_v43  ;;  %v175_v60 = vmul.f32 %v4400_v42, %v4400_v42 }
  0x15   :  { %v4431_v0 = vunpack.c.h.bf16 %v29_v43  ;;  %v4433_v1 = vunpack.c.l.bf16 %v28_v50  ;;  %v4435_v2 = vunpack.c.h.bf16 %v28_v50  ;;  %v190_v14 = vadd.f32 %v125_v47, %v124_v46  ;;  %1197 = vmatprep.subr.bf16.mxu0 %v3739_v54  ;;  %v30_v43 = vld [vmem:[%s5761_s0 + $0x30] sm:$0xff] }
  0x16   :  { %v172_v15 = vmul.f32 %v4412_v48, %v4412_v48  ;;  %v173_v18 = vmul.f32 %v4414_v49, %v4414_v49  ;;  %v130_v19 = vmul.f32 %v4424_v57, %v4424_v57  ;;  %v4452_v20 = vunpack.c.l.bf16 %v53_v58  ;;  %3715 = vmatpush1.bf16.msra.mxu1 %v3741_v12 }
  0x17   :  { %v4454_v21 = vunpack.c.h.bf16 %v53_v58  ;;  %v131_v22 = vmul.f32 %v4431_v0, %v4431_v0  ;;  %1198 = vmatpush1.bf16.msra.mxu0 %v3741_v12  ;;  %v265_v32 = vadd.f32 %v175_v60, %v174_v56  ;;  %v4465_v34 = vunpack.c.l.bf16 %v52_v7  ;;  %3700 = vmatprep.subr.bf16.mxu1 %v3742_v13  ;;  %v55_v58 = vld [vmem:[%s5761_s0 + $0xf8] sm:$0xff] }
  0x18   :  { %188 = vadd.xlane.f32.xlu1 %v187_v23  ;;  %185 = vadd.xlane.f32.xlu0 %v184_v24  ;;  %5810 = vst [vmem:[#allocation4_spill] sm:$0xff] %v4452_v20  ;;  %v128_v23 = vmul.f32 %v4433_v1, %v4433_v1  ;;  %v129_v24 = vmul.f32 %v4435_v2, %v4435_v2  ;;  %v3747_v60 = vld [vmem:[%s5762_s2 + $0x10] ss:$8 sps:$4 sm:$0xff]  }
  0x19   :  { %5811 = vst [vmem:[#allocation5_spill] sm:$0xff] %v4454_v21  ;;  %v262_v33 = vadd.f32 %v173_v18, %v172_v15  ;;  %5812 = vst [vmem:[#allocation6_spill] sm:$0xff] %v4465_v34  ;;  %1199 = vmatprep.subr.bf16.mxu0 %v3742_v13  ;;  %v178_v46 = vmul.f32 %v4452_v20, %v4452_v20  ;;  %v179_v47 = vmul.f32 %v4454_v21, %v4454_v21  ;;  %v54_v15 = vld [vmem:[%s5761_s0 + $0xf0] sm:$0xff]  ;;  %v3748_v18 = vld [vmem:[%s5762_s2 + $0x4] ss:$8 sps:$4 sm:$0xff]  }
  0x1a   :  { %v199_v50 = vadd.f32 %v131_v22, %v130_v19  ;;  %v196_v54 = vadd.f32 %v129_v24, %v128_v23  ;;  %3716 = vmatpush1.bf16.msra.mxu1 %v3744_v29  ;;  %v4496_v13 = vunpack.c.l.bf16 %v30_v43  ;;  %v4506_v22 = vunpack.c.l.bf16 %v55_v58 }
  0x1b   :  { %1200 = vmatpush1.bf16.msra.mxu0 %v3744_v29  ;;  %3701 = vmatprep.subr.bf16.mxu1 %v3745_v45  ;;  %v271_v19 = vadd.f32 %v179_v47, %v178_v46  ;;  %v4508_v23 = vunpack.c.h.bf16 %v55_v58  ;;  %v33_v47 = vld [vmem:[%s5761_s0 + $0x48] sm:$0xff]  ;;  %v32_v58 = vld [vmem:[%s5761_s0 + $0x40] sm:$0xff] }
  0x1c   :  { %260 = vadd.xlane.f32.xlu1 %v259_v38  ;;  %257 = vadd.xlane.f32.xlu0 %v256_v41  ;;  %v4467_v38 = vunpack.c.h.bf16 %v52_v7  ;;  %v31_v41 = vld [vmem:[%s5761_s0 + $0x38] sm:$0xff]  ;;  %v176_v7 = vmul.f32 %v4465_v34, %v4465_v34  ;;  %5815 = vst [vmem:[#allocation9_spill] sm:$0xff] %v4496_v13  ;;  %5817 = vst [vmem:[#allocation11_spill] sm:$0xff] %v4506_v22  ;;  %v4542_v20 = vunpack.c.l.bf16 %v33_v47 }
  0x1d   :  { %v4484_v56 = vunpack.c.h.bf16 %v31_v41  ;;  %1201 = vmatprep.subr.bf16.mxu0 %v3745_v45  ;;  %5818 = vst [vmem:[#allocation12_spill] sm:$0xff] %v4508_v23  ;;  %v132_v45 = vmul.f32 %v4496_v13, %v4496_v13  ;;  %v35_v34 = vld [vmem:[%s5761_s0 + $0x58] sm:$0xff] }
  0x1e   :  { %v177_v12 = vmul.f32 %v4467_v38, %v4467_v38  ;;  %3717 = vmatpush1.bf16.msra.mxu1 %v3747_v60  ;;  %5821 = vst [vmem:[#allocation15_spill] sm:$0xff] %v4542_v20 }
  0x1f   :  { %5814 = vst [vmem:[#allocation8_spill] sm:$0xff] %v4484_v56  ;;  %v135_v29 = vmul.f32 %v4484_v56, %v4484_v56  ;;  %1202 = vmatpush1.bf16.msra.mxu0 %v3747_v60  ;;  %3702 = vmatprep.subr.bf16.mxu1 %v3748_v18  ;;  %v183_v60 = vmul.f32 %v4508_v23, %v4508_v23  ;;  %v34_v23 = vld [vmem:[%s5761_s0 + $0x50] sm:$0xff] }
  0x20   :  { %194 = vadd.xlane.f32.xlu1 %v193_v55  ;;  %191 = vadd.xlane.f32.xlu0 %v190_v14  ;;  %v4482_v55 = vunpack.c.l.bf16 %v31_v41  ;;  %v4498_v14 = vunpack.c.h.bf16 %v30_v43  ;;  %v3750_v41 = vld [vmem:[%s5762_s2] ss:$8 sps:$4 sm:$0xff]   ;;  %v268_v43 = vadd.f32 %v177_v12, %v176_v7  ;;  %v4574_v21 = vunpack.c.l.bf16 %v34_v23 }
  0x21   :  { %1203 = vmatprep.subr.bf16.mxu0 %v3748_v18  ;;  %v3753_v18 = vld [vmem:[%s5762_s2 + $0xf0] ss:$8 sps:$4 sm:$0xff]   ;;  %v4576_v13 = vunpack.c.h.bf16 %v34_v23 }
  0x22   :  { %5813 = vst [vmem:[#allocation7_spill] sm:$0xff] %v4482_v55  ;;  %5816 = vst [vmem:[#allocation10_spill] sm:$0xff] %v4498_v14  ;;  %v134_v24 = vmul.f32 %v4482_v55, %v4482_v55  ;;  %v133_v46 = vmul.f32 %v4498_v14, %v4498_v14  ;;  %3718 = vmatpush1.bf16.msra.mxu1 %v3750_v41  ;;  %v3762_v55 = vld [vmem:[%s5762_s2 + $0xc0] ss:$8 sps:$4 sm:$0xff]  }
  0x23   :  { %1204 = vmatpush1.bf16.msra.mxu0 %v3750_v41  ;;  %5827 = vst [vmem:[#allocation21_spill] sm:$0xff] %v4574_v21  ;;  %5828 = vst [vmem:[#allocation22_spill] sm:$0xff] %v4576_v13 }
  0x24   :  { %266 = vadd.xlane.f32.xlu1 %v265_v32  ;;  %263 = vadd.xlane.f32.xlu0 %v262_v33  ;;  %v4514_v32 = vunpack.c.l.bf16 %v54_v15  ;;  %v4516_v33 = vunpack.c.h.bf16 %v54_v15  ;;  %v205_v7 = vadd.f32 %v135_v29, %v134_v24  ;;  %v202_v24 = vadd.f32 %v133_v46, %v132_v45  ;;  %v3756_v46 = vld [vmem:[%s5762_s2 + $0xe0] ss:$8 sps:$4 sm:$0xff]  }
  0x25   :  { %v4550_v29 = vunpack.c.h.bf16 %v33_v47  ;;  %v4567_v45 = vunpack.c.h.bf16 %v35_v34 }
  0x26   :  { %5819 = vst [vmem:[#allocation13_spill] sm:$0xff] %v4514_v32  ;;  %5820 = vst [vmem:[#allocation14_spill] sm:$0xff] %v4516_v33  ;;  %v180_v12 = vmul.f32 %v4514_v32, %v4514_v32  ;;  %v181_v15 = vmul.f32 %v4516_v33, %v4516_v33  ;;  %v4554_v32 = vunpack.c.h.bf16 %v32_v58  ;;  %v37_v33 = vld [vmem:[%s5761_s0 + $0x68] sm:$0xff] }
  0x27   :  { %5822 = vst [vmem:[#allocation16_spill] sm:$0xff] %v4550_v29  ;;  %5826 = vst [vmem:[#allocation20_spill] sm:$0xff] %v4567_v45 }
  0x28   :  { %200 = vadd.xlane.f32.xlu1 %v199_v50  ;;  %197 = vadd.xlane.f32.xlu0 %v196_v54  ;;  %v3751_v50 = vld [vmem:[%s5762_s2 + $0xf4] ss:$8 sps:$4 sm:$0xff]   ;;  %v182_v54 = vmul.f32 %v4506_v22, %v4506_v22  ;;  %v4552_v22 = vunpack.c.l.bf16 %v32_v58  ;;  %5824 = vst [vmem:[#allocation18_spill] sm:$0xff] %v4554_v32  ;;  %v274_v47 = vadd.f32 %v181_v15, %v180_v12 }
  0x29   :  { %3703 = vmatprep.subr.bf16.mxu1 %v3751_v50  ;;  %1205 = vmatprep.subr.bf16.mxu0 %v3751_v50  ;;  %v138_v58 = vmul.f32 %v4542_v20, %v4542_v20  ;;  %v36_v50 = vld [vmem:[%s5761_s0 + $0x60] sm:$0xff]  ;;  %v137_v23 = vmul.f32 %v4554_v32, %v4554_v32  ;;  %v143_v15 = vmul.f32 %v4567_v45, %v4567_v45  ;;  %v38_v45 = vld [vmem:[%s5761_s0 + $0x70] sm:$0xff] }
  0x2a   :  { %5823 = vst [vmem:[#allocation17_spill] sm:$0xff] %v4552_v22  ;;  %v277_v41 = vadd.f32 %v183_v60, %v182_v54  ;;  %3719 = vmatpush2.bf16.msra.mxu1 %v3753_v18  ;;  %1206 = vmatpush2.bf16.msra.mxu0 %v3753_v18  ;;  %v139_v54 = vmul.f32 %v4550_v29, %v4550_v29  ;;  %v4594_v18 = vunpack.c.l.bf16 %v37_v33  ;;  %v3760_v32 = vld [vmem:[%s5762_s2 + $0xc4] ss:$8 sps:$4 sm:$0xff]   ;;  %v4616_v14 = vunpack.c.h.bf16 %v36_v50 }
  0x2b   :  { %v136_v60 = vmul.f32 %v4552_v22, %v4552_v22  ;;  %v140_v22 = vmul.f32 %v4574_v21, %v4574_v21  ;;  %v4614_v21 = vunpack.c.l.bf16 %v36_v50 }
  0x2c   :  { %272 = vadd.xlane.f32.xlu1 %v271_v19  ;;  %269 = vadd.xlane.f32.xlu0 %v268_v43  ;;  %v3754_v19 = vld [vmem:[%s5762_s2 + $0xe4] ss:$8 sps:$4 sm:$0xff]   ;;  %v4565_v43 = vunpack.c.l.bf16 %v35_v34  ;;  %v3757_v34 = vld [vmem:[%s5762_s2 + $0xd4] ss:$8 sps:$4 sm:$0xff]   ;;  %v211_v20 = vadd.f32 %v139_v54, %v138_v58  ;;  %v4638_v54 = vunpack.c.h.bf16 %v38_v45 }
  0x2d   :  { %3704 = vmatprep.subr.bf16.mxu1 %v3754_v19  ;;  %1207 = vmatprep.subr.bf16.mxu0 %v3754_v19  ;;  %v141_v19 = vmul.f32 %v4576_v13, %v4576_v13  ;;  %v208_v29 = vadd.f32 %v137_v23, %v136_v60  ;;  %v146_v13 = vmul.f32 %v4594_v18, %v4594_v18  ;;  %v3763_v58 = vld [vmem:[%s5762_s2 + $0xb4] ss:$8 sps:$4 sm:$0xff]  }
  0x2e   :  { %5825 = vst [vmem:[#allocation19_spill] sm:$0xff] %v4565_v43  ;;  %v142_v12 = vmul.f32 %v4565_v43, %v4565_v43  ;;  %v4606_v43 = vunpack.c.h.bf16 %v37_v33  ;;  %3720 = vmatpush2.bf16.msra.mxu1 %v3756_v46  ;;  %1208 = vmatpush2.bf16.msra.mxu0 %v3756_v46  ;;  %v144_v50 = vmul.f32 %v4614_v21, %v4614_v21 }
  0x2f   :  { %3705 = vmatprep.subr.bf16.mxu1 %v3757_v34  ;;  %1209 = vmatprep.subr.bf16.mxu0 %v3757_v34  ;;  %v214_v56 = vadd.f32 %v141_v19, %v140_v22  ;;  %v145_v22 = vmul.f32 %v4616_v14, %v4616_v14  ;;  %v4636_v34 = vunpack.c.l.bf16 %v38_v45  ;;  %v3772_v19 = vld [vmem:[%s5762_s2 + $0x84] ss:$8 sps:$4 sm:$0xff]  }
  0x30   :  { %206 = vadd.xlane.f32.xlu1 %v205_v7  ;;  %203 = vadd.xlane.f32.xlu0 %v202_v24  ;;  %v39_v7 = vld [vmem:[%s5761_s0 + $0x78] sm:$0xff]  ;;  %v217_v33 = vadd.f32 %v143_v15, %v142_v12 }
  0x31   :  { %v3759_v24 = vld [vmem:[%s5762_s2 + $0xd0] ss:$8 sps:$4 sm:$0xff]   ;;  %v4625_v46 = vunpack.c.l.bf16 %v39_v7  ;;  %5830 = vst [vmem:[#allocation24_spill] sm:$0xff] %v4636_v34  ;;  %v220_v12 = vadd.f32 %v145_v22, %v144_v50  ;;  %v148_v45 = vmul.f32 %v4636_v34, %v4636_v34 }
  0x32   :  { %3721 = vmatpush2.bf16.msra.mxu1 %v3759_v24  ;;  %1210 = vmatpush2.bf16.msra.mxu0 %v3759_v24  ;;  %v3771_v24 = vld [vmem:[%s5762_s2 + $0x90] ss:$8 sps:$4 sm:$0xff]  }
  0x33   :  { %5829 = vst [vmem:[#allocation23_spill] sm:$0xff] %v4625_v46  ;;  %3706 = vmatprep.subr.bf16.mxu1 %v3760_v32  ;;  %1211 = vmatprep.subr.bf16.mxu0 %v3760_v32  ;;  %v150_v23 = vmul.f32 %v4625_v46, %v4625_v46  ;;  %v3766_v32 = vld [vmem:[%s5762_s2 + $0xa4] ss:$8 sps:$4 sm:$0xff]  }
  0x34   :  { %278 = vadd.xlane.f32.xlu1 %v277_v41  ;;  %275 = vadd.xlane.f32.xlu0 %v274_v47  ;;  %v147_v41 = vmul.f32 %v4606_v43, %v4606_v43  ;;  %v4627_v47 = vunpack.c.h.bf16 %v39_v7  ;;  %v3769_v7 = vld [vmem:[%s5762_s2 + $0x94] ss:$8 sps:$4 sm:$0xff]  }
  0x36   :  { %v223_v60 = vadd.f32 %v147_v41, %v146_v13  ;;  %3722 = vmatpush2.bf16.msra.mxu1 %v3762_v55  ;;  %1212 = vmatpush2.bf16.msra.mxu0 %v3762_v55  ;;  %v149_v13 = vmul.f32 %v4638_v54, %v4638_v54  ;;  %v3768_v55 = vld [vmem:[%s5762_s2 + $0xa0] ss:$8 sps:$4 sm:$0xff]   ;;  %v3777_v41 = vld [vmem:[%s5763_s3 + $0x74] ss:$8 sps:$4 sm:$0xff]  }
  0x37   :  { %3707 = vmatprep.subr.bf16.mxu1 %v3763_v58  ;;  %1213 = vmatprep.subr.bf16.mxu0 %v3763_v58 }
  0x38   :  { %212 = vadd.xlane.f32.xlu1 %v211_v20  ;;  %209 = vadd.xlane.f32.xlu0 %v208_v29  ;;  %v151_v20 = vmul.f32 %v4627_v47, %v4627_v47  ;;  %v3765_v29 = vld [vmem:[%s5762_s2 + $0xb0] ss:$8 sps:$4 sm:$0xff]   ;;  %v226_v15 = vadd.f32 %v149_v13, %v148_v45 }
  0x3a   :  { %3723 = vmatpush2.bf16.msra.mxu1 %v3765_v29  ;;  %1214 = vmatpush2.bf16.msra.mxu0 %v3765_v29 }
  0x3b   :  { %3708 = vmatprep.subr.bf16.mxu1 %v3766_v32  ;;  %1215 = vmatprep.subr.bf16.mxu0 %v3766_v32 }
  0x3c   :  { %218 = vadd.xlane.f32.xlu1 %v217_v33  ;;  %215 = vadd.xlane.f32.xlu0 %v214_v56  ;;  %v229_v56 = vadd.f32 %v151_v20, %v150_v23  ;;  %v3774_v33 = vld [vmem:[%s5762_s2 + $0x80] ss:$8 sps:$4 sm:$0xff]  }
  0x3e   :  { %3724 = vmatpush2.bf16.msra.mxu1 %v3768_v55  ;;  %1216 = vmatpush2.bf16.msra.mxu0 %v3768_v55 }
  0x3f   :  { %3709 = vmatprep.subr.bf16.mxu1 %v3769_v7  ;;  %1217 = vmatprep.subr.bf16.mxu0 %v3769_v7  ;;  %v443_v7 = vlaneseq }
  0x40   :  { %224 = vadd.xlane.f32.xlu1 %v223_v60  ;;  %221 = vadd.xlane.f32.xlu0 %v220_v12 }
  0x42   :  { %3725 = vmatpush2.bf16.msra.mxu1 %v3771_v24  ;;  %1218 = vmatpush2.bf16.msra.mxu0 %v3771_v24 }
  0x43   :  { %3710 = vmatprep.subr.bf16.mxu1 %v3772_v19  ;;  %1219 = vmatprep.subr.bf16.mxu0 %v3772_v19 }
  0x44   :  { %230 = vadd.xlane.f32.xlu1 %v229_v56  ;;  %227 = vadd.xlane.f32.xlu0 %v226_v15 }
  0x46   :  { %3726 = vmatpush2.bf16.msra.mxu1 %v3774_v33  ;;  %1220 = vmatpush2.bf16.msra.mxu0 %v3774_v33 }
  0x47   :  { %1574 = vmatprep.subr.bf16.mxu1 %v3777_v41 }
  0x91   :  { %v240_v58 = vpop.xlane.xlu1 %239  ;;  %v234_v50 = vpop.xlane.xlu0 %233 }
  0x92   :  { %v299_v22 = vmul.f32 0.00390625, %v240_v58  ;;  %v297_v60 = vmul.f32 0.00390625, %v234_v50 }
  0x94   :  { %v331_v23 = vadd.f32 1e-05, %v299_v22  ;;  %v329_v20 = vadd.f32 1e-05, %v297_v60  ;;  %v444_v22 = vshrl.u32 %v443_v7, 7 }
  0x95   :  { %v243_v29 = vpop.xlane.xlu1 %242  ;;  %v237_v12 = vpop.xlane.xlu0 %236 }
  0x96   :  { %3871 = vrsqrt.f32 %v331_v23  ;;  %v300_v45 = vmul.f32 0.00390625, %v243_v29  ;;  %v298_v13 = vmul.f32 0.00390625, %v237_v12  ;;  %v449_v46 = vsub.s32 1, %v444_v22 }
  0x97   :  { %3873 = vrsqrt.f32 %v329_v20 }
  0x98   :  { %v332_v32 = vadd.f32 1e-05, %v300_v45  ;;  %v330_v55 = vadd.f32 1e-05, %v298_v13  ;;  %v445_v13 = vsub.s32 0, %v444_v22 }
  0x99   :  { %v249_v56 = vpop.xlane.xlu1 %248  ;;  %v246_v15 = vpop.xlane.xlu0 %245 }
  0x9a   :  { %3875 = vrsqrt.f32 %v332_v32  ;;  %v302_v24 = vmul.f32 0.00390625, %v249_v56  ;;  %v301_v19 = vmul.f32 0.00390625, %v246_v15 }
  0x9b   :  { %3877 = vrsqrt.f32 %v330_v55  ;;  %v441_v55 = vld [vmem:[%s5764_s1] sm:$0x3] }
  0x9c   :  { %v334_v33 = vadd.f32 1e-05, %v302_v24  ;;  %v333_v41 = vadd.f32 1e-05, %v301_v19  ;;  %v4679_v22 = vrot.slane %v441_v55, %v449_v46 }
  0x9d   :  { %v255_v58 = vpop.xlane.xlu1 %254  ;;  %v252_v50 = vpop.xlane.xlu0 %251 }
  0x9e   :  { %3879 = vrsqrt.f32 %v334_v33  ;;  %v304_v60 = vmul.f32 0.00390625, %v255_v58  ;;  %v303_v23 = vmul.f32 0.00390625, %v252_v50 }
  0x9f   :  { %3881 = vrsqrt.f32 %v333_v41 }
  0xa0   :  { %v336_v29 = vadd.f32 1e-05, %v304_v60  ;;  %v335_v20 = vadd.f32 1e-05, %v303_v23  ;;  %v4677_v60 = vrot.slane %v441_v55, %v445_v13 }
  0xa1   :  { %v189_v12 = vpop.xlane.xlu1 %188  ;;  %v186_v45 = vpop.xlane.xlu0 %185 }
  0xa2   :  { %3883 = vrsqrt.f32 %v336_v29  ;;  %v282_v32 = vmul.f32 0.00390625, %v189_v12  ;;  %v281_v56 = vmul.f32 0.00390625, %v186_v45 }
  0xa3   :  { %v3872_v15 = vpop.eup %3871  ;;  %3885 = vrsqrt.f32 %v335_v20 }
  0xa4   :  { %v3874_v7 = vpop.eup %3873  ;;  %v314_v24 = vadd.f32 1e-05, %v282_v32  ;;  %v313_v19 = vadd.f32 1e-05, %v281_v56  ;;  %v414_v33 = vmul.f32 %v3872_v15, %v4232_v4  ;;  %v413_v32 = vmul.f32 %v3872_v15, %v4230_v3 }
  0xa5   :  { %v261_v41 = vpop.xlane.xlu1 %260  ;;  %v258_v58 = vpop.xlane.xlu0 %257  ;;  %v410_v50 = vmul.f32 %v3874_v7, %v4236_v6  ;;  %v409_v23 = vmul.f32 %v3874_v7, %v4234_v5 }
  0xa6   :  { %3887 = vrsqrt.f32 %v314_v24  ;;  %v306_v29 = vmul.f32 0.00390625, %v261_v41  ;;  %v305_v12 = vmul.f32 0.00390625, %v258_v58  ;;  %v490_v20 = vmul.f32 %v4679_v22, %v414_v33 }
  0xa7   :  { %v3876_v45 = vpop.eup %3875  ;;  %3889 = vrsqrt.f32 %v313_v19  ;;  %v486_v7 = vmul.f32 %v4679_v22, %v410_v50  ;;  %v485_v19 = vmul.f32 %v4677_v60, %v409_v23  ;;  %v489_v58 = vmul.f32 %v4677_v60, %v413_v32 }
  0xa8   :  { %v3878_v4 = vpop.eup %3877  ;;  %v338_v56 = vadd.f32 1e-05, %v306_v29  ;;  %v337_v34 = vadd.f32 1e-05, %v305_v12  ;;  %v416_v6 = vmul.f32 %v3876_v45, %v4243_v9  ;;  %v415_v13 = vmul.f32 %v3876_v45, %v4241_v8 }
  0xa9   :  { %v195_v46 = vpop.xlane.xlu1 %194  ;;  %v192_v55 = vpop.xlane.xlu0 %191  ;;  %v412_v5 = vmul.f32 %v3878_v4, %v4247_v11  ;;  %v411_v24 = vmul.f32 %v3878_v4, %v4245_v10 }
  0xaa   :  { %3891 = vrsqrt.f32 %v338_v56  ;;  %v284_v33 = vmul.f32 0.00390625, %v195_v46  ;;  %v283_v3 = vmul.f32 0.00390625, %v192_v55  ;;  %v492_v15 = vmul.f32 %v4679_v22, %v416_v6 }
  0xab   :  { %v3880_v41 = vpop.eup %3879  ;;  %3893 = vrsqrt.f32 %v337_v34  ;;  %v488_v9 = vmul.f32 %v4679_v22, %v412_v5  ;;  %v487_v8 = vmul.f32 %v4677_v60, %v411_v24  ;;  %v491_v10 = vmul.f32 %v4677_v60, %v415_v13  ;;  %v3775_v34 = vld [vmem:[%s5763_s3 + $0x70] ss:$8 sps:$4 sm:$0xff]  }
  0xac   :  { %v3882_v11 = vpop.eup %3881  ;;  %v316_v29 = vadd.f32 1e-05, %v284_v33  ;;  %v315_v50 = vadd.f32 1e-05, %v283_v3  ;;  %v420_v23 = vmul.f32 %v3880_v41, %v4276_v26  ;;  %v4703_v6 = vpack.c.bf16 %v492_v15, %v490_v20  ;;  %v3780_v26 = vld [vmem:[%s5763_s3 + $0x64] ss:$8 sps:$4 sm:$0xff]  }
  0xad   :  { %v267_v12 = vpop.xlane.xlu1 %266  ;;  %v264_v45 = vpop.xlane.xlu0 %263  ;;  %v4696_v4 = vpack.c.bf16 %v488_v9, %v486_v7  ;;  %v4701_v56 = vpack.c.bf16 %v487_v8, %v485_v19  ;;  %v418_v32 = vmul.f32 %v3882_v11, %v4283_v31  ;;  %v417_v20 = vmul.f32 %v3882_v11, %v4281_v30  ;;  %v3778_v30 = vld [vmem:[%s5763_s3 + $0x60] ss:$8 sps:$4 sm:$0xff]  }
  0xae   :  { %3895 = vrsqrt.f32 %v316_v29  ;;  %v308_v46 = vmul.f32 0.00390625, %v267_v12  ;;  %v307_v55 = vmul.f32 0.00390625, %v264_v45  ;;  %v496_v13 = vmul.f32 %v4679_v22, %v420_v23 }
  0xaf   :  { %v3884_v5 = vpop.eup %3883  ;;  %3897 = vrsqrt.f32 %v315_v50  ;;  %1301 = vmatprep.mubr.bf16.mxu1 %v4696_v4  ;;  %v494_v7 = vmul.f32 %v4679_v22, %v418_v32  ;;  %v419_v24 = vmul.f32 %v3880_v41, %v4274_v25  ;;  %v4715_v3 = vpack.c.bf16 %v491_v10, %v489_v58 }
  0xb0   :  { %v3886_v31 = vpop.eup %3885  ;;  %v340_v19 = vadd.f32 1e-05, %v308_v46  ;;  %v339_v33 = vadd.f32 1e-05, %v307_v55  ;;  %1302 = vmatmul.mubr.bf16.vlgmr.msra.gmra.mxu1 %v4701_v56  ;;  %v424_v15 = vmul.f32 %v3884_v5, %v4294_v36  ;;  %v493_v25 = vmul.f32 %v4677_v60, %v417_v20  ;;  %v3783_v36 = vld [vmem:[%s5763_s3 + $0x54] ss:$8 sps:$4 sm:$0xff]  }
  0xb1   :  { %1575 = vmatpush1.bf16.msra.mxu1 %v3775_v34  ;;  %v201_v9 = vpop.xlane.xlu1 %200  ;;  %v198_v8 = vpop.xlane.xlu0 %197  ;;  %1311 = vmatprep.mubr.bf16.mxu1 %v4703_v6  ;;  %v495_v41 = vmul.f32 %v4677_v60, %v419_v24  ;;  %v423_v11 = vmul.f32 %v3884_v5, %v4292_v35  ;;  %v422_v50 = vmul.f32 %v3886_v31, %v4302_v40  ;;  %v3781_v40 = vld [vmem:[%s5763_s3 + $0x50] ss:$8 sps:$4 sm:$0xff]  }
  0xb2   :  { %3899 = vrsqrt.f32 %v340_v19  ;;  %v286_v58 = vmul.f32 0.00390625, %v201_v9  ;;  %v285_v29 = vmul.f32 0.00390625, %v198_v8  ;;  %1576 = vmatprep.subr.bf16.mxu1 %v3780_v26  ;;  %v4729_v23 = vpack.c.bf16 %v496_v13, %v494_v7 }
  0xb3   :  { %v3888_v10 = vpop.eup %3887  ;;  %3901 = vrsqrt.f32 %v339_v33  ;;  %v500_v12 = vmul.f32 %v4679_v22, %v424_v15  ;;  %v421_v45 = vmul.f32 %v3886_v31, %v4300_v39  ;;  %v4740_v20 = vpack.c.bf16 %v495_v41, %v493_v25  ;;  %v3786_v31 = vld [vmem:[%s5763_s3 + $0x44] ss:$8 sps:$4 sm:$0xff]  }
  0xb4   :  { %v3890_v34 = vpop.eup %3889  ;;  %v318_v35 = vadd.f32 1e-05, %v286_v58  ;;  %v317_v32 = vadd.f32 1e-05, %v285_v29  ;;  %v380_v46 = vmul.f32 %v3888_v10, %v4323_v51  ;;  %v379_v55 = vmul.f32 %v3888_v10, %v4311_v44 }
  0xb5   :  { %1577 = vmatpush1.bf16.msra.mxu1 %v3778_v30  ;;  %v273_v26 = vpop.xlane.xlu1 %272  ;;  %v270_v5 = vpop.xlane.xlu0 %269  ;;  %v378_v13 = vmul.f32 %v3890_v34, %v4327_v53  ;;  %v377_v7 = vmul.f32 %v3890_v34, %v4325_v52  ;;  %v498_v39 = vmul.f32 %v4679_v22, %v422_v50  ;;  %v497_v25 = vmul.f32 %v4677_v60, %v421_v45  ;;  %v3789_v45 = vld [vmem:[%s5763_s3 + $0x34] ss:$8 sps:$4 sm:$0xff]  }
  0xb6   :  { %3903 = vrsqrt.f32 %v318_v35  ;;  %v310_v24 = vmul.f32 0.00390625, %v273_v26  ;;  %v309_v51 = vmul.f32 0.00390625, %v270_v5  ;;  %1578 = vmatprep.subr.bf16.mxu1 %v3783_v36  ;;  %v456_v44 = vmul.f32 %v4679_v22, %v380_v46  ;;  %v3784_v36 = vld [vmem:[%s5763_s3 + $0x40] ss:$8 sps:$4 sm:$0xff]  }
  0xb7   :  { %v3892_v19 = vpop.eup %3891  ;;  %3905 = vrsqrt.f32 %v317_v32  ;;  %v454_v53 = vmul.f32 %v4679_v22, %v378_v13  ;;  %v453_v52 = vmul.f32 %v4677_v60, %v377_v7  ;;  %v455_v33 = vmul.f32 %v4677_v60, %v379_v55 }
  0xb8   :  { %v3894_v15 = vpop.eup %3893  ;;  %v342_v9 = vadd.f32 1e-05, %v310_v24  ;;  %v341_v8 = vadd.f32 1e-05, %v309_v51  ;;  %1312 = vmatmul.mubr.bf16.gmra.mxu1 %v4715_v3  ;;  %v4751_v30 = vpack.c.bf16 %v500_v12, %v498_v39  ;;  %v499_v35 = vmul.f32 %v4677_v60, %v423_v11 }
  0xb9   :  { %1579 = vmatpush1.bf16.msra.mxu1 %v3781_v40  ;;  %v207_v41 = vpop.xlane.xlu1 %206  ;;  %v204_v58 = vpop.xlane.xlu0 %203  ;;  %v4754_v29 = vpack.c.bf16 %v456_v44, %v454_v53  ;;  %v4759_v50 = vpack.c.bf16 %v455_v33, %v453_v52  ;;  %1321 = vmatprep.mubr.bf16.mxu1 %v4729_v23  ;;  %v426_v10 = vmul.f32 %v3894_v15, %v4346_v63  ;;  %v3792_v53 = vld [vmem:[%s5763_s3 + $0x24] ss:$8 sps:$4 sm:$0xff]  }
  0xba   :  { %3907 = vrsqrt.f32 %v342_v9  ;;  %v288_v12 = vmul.f32 0.00390625, %v207_v41  ;;  %v287_v34 = vmul.f32 0.00390625, %v204_v58  ;;  %1580 = vmatprep.subr.bf16.mxu1 %v3786_v31  ;;  %v428_v46 = vmul.f32 %v3892_v19, %v4342_v61  ;;  %v3787_v61 = vld [vmem:[%s5763_s3 + $0x30] ss:$8 sps:$4 sm:$0xff]  }
  0xbb   :  { %v3896_v32 = vpop.eup %3895  ;;  %3909 = vrsqrt.f32 %v341_v8  ;;  %1221 = vmatprep.mubr.bf16.mxu0 %v4754_v29  ;;  %v502_v55 = vmul.f32 %v4679_v22, %v426_v10  ;;  %v425_v63 = vmul.f32 %v3894_v15, %v4344_v62  ;;  %v427_v44 = vmul.f32 %v3892_v19, %v4340_v59  ;;  %v3790_v10 = vld [vmem:[%s5763_s3 + $0x20] ss:$8 sps:$4 sm:$0xff]  }
  0xbc   :  { %v3898_v26 = vpop.eup %3897  ;;  %v320_v5 = vadd.f32 1e-05, %v288_v12  ;;  %v319_v40 = vadd.f32 1e-05, %v287_v34  ;;  %1222 = vmatmul.mubr.bf16.vlgmr.msra.gmra.mxu0 %v4759_v50  ;;  %v384_v13 = vmul.f32 %v3896_v32, %v4370_v17  ;;  %v383_v7 = vmul.f32 %v3896_v32, %v4368_v16 }
  0xbd   :  { %1581 = vmatpush1.bf16.msra.mxu1 %v3784_v36  ;;  %v279_v11 = vpop.xlane.xlu1 %278  ;;  %v276_v39 = vpop.xlane.xlu0 %275  ;;  %v382_v24 = vmul.f32 %v3898_v26, %v4386_v28  ;;  %v381_v62 = vmul.f32 %v3898_v26, %v4384_v27  ;;  %v504_v51 = vmul.f32 %v4679_v22, %v428_v46  ;;  %v4791_v9 = vpack.c.bf16 %v499_v35, %v497_v25  ;;  %v3795_v35 = vld [vmem:[%s5763_s3 + $0x14] ss:$8 sps:$4 sm:$0xff]  }
  0xbe   :  { %3911 = vrsqrt.f32 %v320_v5  ;;  %v312_v31 = vmul.f32 0.00390625, %v279_v11  ;;  %v311_v17 = vmul.f32 0.00390625, %v276_v39  ;;  %1582 = vmatprep.subr.bf16.mxu1 %v3789_v45  ;;  %v460_v16 = vmul.f32 %v4679_v22, %v384_v13  ;;  %v3793_v11 = vld [vmem:[%s5763_s3 + $0x10] ss:$8 sps:$4 sm:$0xff]  }
  0xbf   :  { %v4785_v52 = vpop.eup %3899  ;;  %3913 = vrsqrt.f32 %v319_v40  ;;  %v458_v28 = vmul.f32 %v4679_v22, %v382_v24  ;;  %v457_v27 = vmul.f32 %v4677_v60, %v381_v62  ;;  %v459_v33 = vmul.f32 %v4677_v60, %v383_v7 }
  0xc0   :  { %v3902_v59 = vpop.eup %3901  ;;  %v344_v19 = vadd.f32 1e-05, %v312_v31  ;;  %v343_v15 = vadd.f32 1e-05, %v311_v17  ;;  %1322 = vmatmul.mubr.bf16.gmra.mxu1 %v4740_v20  ;;  %v4793_v8 = vpack.c.bf16 %v504_v51, %v502_v55  ;;  %v501_v34 = vmul.f32 %v4677_v60, %v425_v63 }
  0xc1   :  { %1583 = vmatpush1.bf16.msra.mxu1 %v3787_v61  ;;  %v213_v41 = vpop.xlane.xlu1 %212  ;;  %v210_v58 = vpop.xlane.xlu0 %209  ;;  %v4795_v36 = vpack.c.bf16 %v460_v16, %v458_v28  ;;  %v4800_v12 = vpack.c.bf16 %v459_v33, %v457_v27  ;;  %1331 = vmatprep.mubr.bf16.mxu1 %v4751_v30  ;;  %v430_v32 = vmul.f32 %v3902_v59, %v4414_v49  ;;  %v3796_v33 = vld [vmem:[%s5763_s3] ss:$8 sps:$4 sm:$0xff]  }
  0xc2   :  { %3915 = vrsqrt.f32 %v344_v19  ;;  %v290_v25 = vmul.f32 0.00390625, %v213_v41  ;;  %v289_v45 = vmul.f32 0.00390625, %v210_v58  ;;  %1584 = vmatprep.subr.bf16.mxu1 %v3792_v53  ;;  %v503_v55 = vmul.f32 %v4677_v60, %v427_v44  ;;  %v3798_v44 = vld [vmem:[%s5763_s3 + $0x4] ss:$8 sps:$4 sm:$0xff]   ;;  %v3801_v58 = vld [vmem:[%s5763_s3 + $0xf4] ss:$8 sps:$4 sm:$0xff]  }
  0xc3   :  { %v3904_v46 = vpop.eup %3903  ;;  %3917 = vrsqrt.f32 %v343_v15  ;;  %1231 = vmatprep.mubr.bf16.mxu0 %v4795_v36  ;;  %v432_v26 = vmul.f32 %v4785_v52, %v4400_v42  ;;  %v429_v63 = vmul.f32 %v3902_v59, %v4412_v48  ;;  %v506_v24 = vmul.f32 %v4679_v22, %v430_v32 }
  0xc4   :  { %v3906_v5 = vpop.eup %3905  ;;  %v322_v40 = vadd.f32 1e-05, %v290_v25  ;;  %v321_v13 = vadd.f32 1e-05, %v289_v45  ;;  %1232 = vmatmul.mubr.bf16.gmra.mxu0 %v4800_v12  ;;  %v388_v7 = vmul.f32 %v3904_v46, %v4431_v0  ;;  %v387_v49 = vmul.f32 %v3904_v46, %v4424_v57 }
  0xc5   :  { %1585 = vmatpush1.bf16.msra.mxu1 %v3790_v10  ;;  %v219_v39 = vpop.xlane.xlu1 %218  ;;  %v216_v61 = vpop.xlane.xlu0 %215  ;;  %v386_v42 = vmul.f32 %v3906_v5, %v4435_v2  ;;  %v385_v48 = vmul.f32 %v3906_v5, %v4433_v1  ;;  %v508_v62 = vmul.f32 %v4679_v22, %v432_v26  ;;  %v431_v41 = vmul.f32 %v4785_v52, %v4398_v37 }
  0xc6   :  { %3919 = vrsqrt.f32 %v322_v40  ;;  %1586 = vmatprep.subr.bf16.mxu1 %v3795_v35  ;;  %v292_v0 = vmul.f32 0.00390625, %v219_v39  ;;  %v291_v51 = vmul.f32 0.00390625, %v216_v61  ;;  %v464_v57 = vmul.f32 %v4679_v22, %v388_v7  ;;  %v5832_v40 = vld [vmem:[#allocation7_spill] sm:$0xff] }
  0xc7   :  { %v4827_v31 = vpop.eup %3907  ;;  %3921 = vrsqrt.f32 %v321_v13  ;;  %v462_v2 = vmul.f32 %v4679_v22, %v386_v42  ;;  %v461_v1 = vmul.f32 %v4677_v60, %v385_v48  ;;  %v463_v17 = vmul.f32 %v4677_v60, %v387_v49  ;;  %v3799_v7 = vld [vmem:[%s5763_s3 + $0xf0] ss:$8 sps:$4 sm:$0xff]   ;;  %v5835_v48 = vld [vmem:[#allocation5_spill] sm:$0xff] }
  0xc8   :  { %v4832_v16 = vpop.eup %3909  ;;  %1332 = vmatmul.mubr.bf16.gmra.mxu1 %v4791_v9  ;;  %v324_v53 = vadd.f32 1e-05, %v292_v0  ;;  %v323_v28 = vadd.f32 1e-05, %v291_v51  ;;  %v4848_v10 = vpack.c.bf16 %v503_v55, %v501_v34  ;;  %v4851_v32 = vpack.c.bf16 %v508_v62, %v506_v24  ;;  %v5831_v34 = vld [vmem:[#allocation8_spill] sm:$0xff]  ;;  %v5833_v49 = vld [vmem:[#allocation10_spill] sm:$0xff] }
  0xc9   :  { %1587 = vmatpush1.bf16.msra.mxu1 %v3793_v11  ;;  %v4835_v27 = vpack.c.bf16 %v464_v57, %v462_v2  ;;  %v4840_v59 = vpack.c.bf16 %v463_v17, %v461_v1  ;;  %1341 = vmatprep.mubr.bf16.mxu1 %v4793_v8  ;;  %v225_v19 = vpop.xlane.xlu1 %224  ;;  %v222_v15 = vpop.xlane.xlu0 %221  ;;  %v505_v46 = vmul.f32 %v4677_v60, %v429_v63  ;;  %v5834_v63 = vld [vmem:[#allocation9_spill] sm:$0xff] }
  0xca   :  { %3923 = vrsqrt.f32 %v324_v53  ;;  %1588 = vmatprep.subr.bf16.mxu1 %v3798_v44  ;;  %v294_v25 = vmul.f32 0.00390625, %v225_v19  ;;  %v293_v45 = vmul.f32 0.00390625, %v222_v15  ;;  %v434_v37 = vmul.f32 %v4832_v16, %v4467_v38  ;;  %v3804_v0 = vld [vmem:[%s5763_s3 + $0xe4] ss:$8 sps:$4 sm:$0xff]   ;;  %v3802_v15 = vld [vmem:[%s5763_s3 + $0xe0] ss:$8 sps:$4 sm:$0xff]  }
  0xcb   :  { %v3912_v35 = vpop.eup %3911  ;;  %3925 = vrsqrt.f32 %v323_v28  ;;  %1241 = vmatprep.mubr.bf16.mxu0 %v4835_v27  ;;  %v507_v38 = vmul.f32 %v4677_v60, %v431_v41  ;;  %v436_v24 = vmul.f32 %v4827_v31, %v5835_v48 }
  0xcc   :  { %v3914_v52 = vpop.eup %3913  ;;  %1242 = vmatmul.mubr.bf16.gmra.mxu0 %v4840_v59  ;;  %v326_v26 = vadd.f32 1e-05, %v294_v25  ;;  %v325_v5 = vadd.f32 1e-05, %v293_v45  ;;  %v392_v55 = vmul.f32 %v3912_v35, %v5831_v34  ;;  %v391_v13 = vmul.f32 %v3912_v35, %v5832_v40  ;;  %v3807_v45 = vld [vmem:[%s5763_s3 + $0xd4] ss:$8 sps:$4 sm:$0xff]  }
  0xcd   :  { %1589 = vmatpush1.bf16.msra.mxu1 %v3796_v33  ;;  %v390_v11 = vmul.f32 %v3914_v52, %v5833_v49  ;;  %v389_v39 = vmul.f32 %v3914_v52, %v5834_v63  ;;  %v231_v61 = vpop.xlane.xlu1 %230  ;;  %v228_v42 = vpop.xlane.xlu0 %227  ;;  %v510_v33 = vmul.f32 %v4679_v22, %v434_v37  ;;  %v512_v25 = vmul.f32 %v4679_v22, %v436_v24  ;;  %v5836_v52 = vld [vmem:[#allocation6_spill] sm:$0xff]  ;;  %v5838_v40 = vld [vmem:[#allocation16_spill] sm:$0xff] }
  0xce   :  { %1590 = vmatprep.subr.bf16.mxu1 %v3801_v58  ;;  %3927 = vrsqrt.f32 %v326_v26  ;;  %v468_v62 = vmul.f32 %v4679_v22, %v392_v55  ;;  %v467_v51 = vmul.f32 %v4677_v60, %v391_v13  ;;  %v296_v57 = vmul.f32 0.00390625, %v231_v61 }
  0xcf   :  { %v4872_v44 = vpop.eup %3915  ;;  %3929 = vrsqrt.f32 %v325_v5  ;;  %v466_v2 = vmul.f32 %v4679_v22, %v390_v11  ;;  %v465_v1 = vmul.f32 %v4677_v60, %v389_v39  ;;  %v295_v17 = vmul.f32 0.00390625, %v228_v42  ;;  %v5837_v5 = vld [vmem:[#allocation4_spill] sm:$0xff]  ;;  %v5840_v11 = vld [vmem:[#allocation14_spill] sm:$0xff] }
  0xd0   :  { %v3918_v53 = vpop.eup %3917  ;;  %1342 = vmatmul.mubr.bf16.gmra.mxu1 %v4848_v10  ;;  %v328_v28 = vadd.f32 1e-05, %v296_v57  ;;  %v4891_v37 = vpack.c.bf16 %v507_v38, %v505_v46  ;;  %v433_v26 = vmul.f32 %v4832_v16, %v5836_v52  ;;  %v435_v34 = vmul.f32 %v4827_v31, %v5837_v5  ;;  %v5841_v39 = vld [vmem:[#allocation12_spill] sm:$0xff]  ;;  %v3805_v16 = vld [vmem:[%s5763_s3 + $0xd0] ss:$8 sps:$4 sm:$0xff]   ;;  %v5843_v31 = vld [vmem:[#allocation17_spill] sm:$0xff] }
  0xd1   :  { %1591 = vmatpush2.bf16.msra.mxu1 %v3799_v7  ;;  %v4878_v19 = vpack.c.bf16 %v468_v62, %v466_v2  ;;  %v4883_v41 = vpack.c.bf16 %v467_v51, %v465_v1  ;;  %1351 = vmatprep.mubr.bf16.mxu1 %v4851_v32  ;;  %v327_v58 = vadd.f32 1e-05, %v295_v17  ;;  %v5839_v7 = vld [vmem:[#allocation15_spill] sm:$0xff]  ;;  %v438_v63 = vmul.f32 %v3918_v53, %v5840_v11  ;;  %v5842_v38 = vld [vmem:[#allocation18_spill] sm:$0xff]  ;;  %v3810_v62 = vld [vmem:[%s5763_s3 + $0xc4] ss:$8 sps:$4 sm:$0xff]  }
  0xd2   :  { %1592 = vmatprep.subr.bf16.mxu1 %v3804_v0  ;;  %3931 = vrsqrt.f32 %v328_v28  ;;  %v440_v46 = vmul.f32 %v4872_v44, %v5841_v39  ;;  %v4908_v48 = vpack.c.bf16 %v512_v25, %v510_v33  ;;  %v509_v1 = vmul.f32 %v4677_v60, %v433_v26  ;;  %v5844_v33 = vld [vmem:[#allocation20_spill] sm:$0xff]  ;;  %v5848_v39 = vld [vmem:[#allocation13_spill] sm:$0xff] }
  0xd3   :  { %v3920_v35 = vpop.eup %3919  ;;  %1251 = vmatprep.mubr.bf16.mxu0 %v4878_v19  ;;  %3933 = vrsqrt.f32 %v327_v58  ;;  %v511_v17 = vmul.f32 %v4677_v60, %v435_v34  ;;  %v5845_v58 = vld [vmem:[#allocation19_spill] sm:$0xff]  ;;  %v3808_v26 = vld [vmem:[%s5763_s3 + $0xc0] ss:$8 sps:$4 sm:$0xff]   ;;  %v5846_v34 = vld [vmem:[#allocation22_spill] sm:$0xff] }
  0xd4   :  { %v3922_v55 = vpop.eup %3921  ;;  %1252 = vmatmul.mubr.bf16.gmra.mxu0 %v4883_v41  ;;  %v396_v13 = vmul.f32 %v3920_v35, %v5838_v40  ;;  %v395_v49 = vmul.f32 %v3920_v35, %v5839_v7  ;;  %v516_v35 = vmul.f32 %v4679_v22, %v440_v46  ;;  %v3813_v40 = vld [vmem:[%s5763_s3 + $0xb4] ss:$8 sps:$4 sm:$0xff]   ;;  %v5847_v7 = vld [vmem:[#allocation21_spill] sm:$0xff]  ;;  %v437_v46 = vmul.f32 %v3918_v53, %v5848_v39 }
  0xd5   :  { %1593 = vmatpush2.bf16.msra.mxu1 %v3802_v15  ;;  %v394_v61 = vmul.f32 %v3922_v55, %v5842_v38  ;;  %v393_v42 = vmul.f32 %v3922_v55, %v5843_v31  ;;  %v4944_v31 = vpack.c.bf16 %v511_v17, %v509_v1 }
  0xd6   :  { %1594 = vmatprep.subr.bf16.mxu1 %v3807_v45  ;;  %v472_v24 = vmul.f32 %v4679_v22, %v396_v13  ;;  %v471_v0 = vmul.f32 %v4677_v60, %v395_v49  ;;  %v514_v45 = vmul.f32 %v4679_v22, %v438_v63 }
  0xd7   :  { %v3924_v51 = vpop.eup %3923  ;;  %v470_v57 = vmul.f32 %v4679_v22, %v394_v61  ;;  %v469_v2 = vmul.f32 %v4677_v60, %v393_v42 }
  0xd8   :  { %v3926_v28 = vpop.eup %3925  ;;  %1352 = vmatmul.mubr.bf16.gmra.mxu1 %v4891_v37  ;;  %v400_v15 = vmul.f32 %v3924_v51, %v5844_v33  ;;  %v399_v25 = vmul.f32 %v3924_v51, %v5845_v58  ;;  %v4954_v51 = vpack.c.bf16 %v516_v35, %v514_v45 }
  0xd9   :  { %1595 = vmatpush2.bf16.msra.mxu1 %v3805_v16  ;;  %v4924_v52 = vpack.c.bf16 %v472_v24, %v470_v57  ;;  %v4929_v5 = vpack.c.bf16 %v471_v0, %v469_v2  ;;  %1361 = vmatprep.mubr.bf16.mxu1 %v4908_v48  ;;  %v398_v55 = vmul.f32 %v3926_v28, %v5846_v34  ;;  %v5849_v16 = vld [vmem:[#allocation11_spill] sm:$0xff]  ;;  %v3816_v57 = vld [vmem:[%s5763_s3 + $0xa4] ss:$8 sps:$4 sm:$0xff]  }
  0xda   :  { %1596 = vmatprep.subr.bf16.mxu1 %v3810_v62  ;;  %v476_v13 = vmul.f32 %v4679_v22, %v400_v15  ;;  %v397_v49 = vmul.f32 %v3926_v28, %v5847_v7  ;;  %v439_v38 = vmul.f32 %v4872_v44, %v5849_v16  ;;  %v475_v24 = vmul.f32 %v4677_v60, %v399_v25  ;;  %v3811_v0 = vld [vmem:[%s5763_s3 + $0xb0] ss:$8 sps:$4 sm:$0xff]   ;;  %v3814_v25 = vld [vmem:[%s5763_s3 + $0xa0] ss:$8 sps:$4 sm:$0xff]   ;;  %v3819_v34 = vld [vmem:[%s5763_s3 + $0x94] ss:$8 sps:$4 sm:$0xff]  }
  0xdb   :  { %v3928_v11 = vpop.eup %3927  ;;  %1261 = vmatprep.mubr.bf16.mxu0 %v4924_v52  ;;  %v474_v63 = vmul.f32 %v4679_v22, %v398_v55 }
  0xdc   :  { %v3930_v61 = vpop.eup %3929  ;;  %1262 = vmatmul.mubr.bf16.gmra.mxu0 %v4929_v5  ;;  %v473_v42 = vmul.f32 %v4677_v60, %v397_v49  ;;  %v404_v62 = vmul.f32 %v3928_v11, %v4606_v43  ;;  %v513_v43 = vmul.f32 %v4677_v60, %v437_v46  ;;  %v403_v58 = vmul.f32 %v3928_v11, %v4594_v18  ;;  %v5850_v49 = vld [vmem:[#allocation24_spill] sm:$0xff] }
  0xdd   :  { %1597 = vmatpush2.bf16.msra.mxu1 %v3808_v26  ;;  %v4952_v53 = vpack.c.bf16 %v476_v13, %v474_v63  ;;  %v402_v44 = vmul.f32 %v3930_v61, %v4616_v14  ;;  %v515_v14 = vmul.f32 %v4677_v60, %v439_v38  ;;  %v401_v15 = vmul.f32 %v3930_v61, %v4614_v21  ;;  %v3822_v13 = vld [vmem:[%s5763_s3 + $0x84] ss:$8 sps:$4 sm:$0xff]   ;;  %v5851_v63 = vld [vmem:[#allocation23_spill] sm:$0xff]  ;;  %v3820_v46 = vld [vmem:[%s5763_s3 + $0x80] ss:$8 sps:$4 sm:$0xff]  }
  0xde   :  { %1598 = vmatprep.subr.bf16.mxu1 %v3813_v40  ;;  %v480_v2 = vmul.f32 %v4679_v22, %v404_v62  ;;  %v4965_v33 = vpack.c.bf16 %v475_v24, %v473_v42  ;;  %v479_v55 = vmul.f32 %v4677_v60, %v403_v58  ;;  %v3838_v42 = vld [vmem:[%s5765_s4 + $0x20] ss:$8 sps:$4 sm:$0xff]   ;;  %v3843_v24 = vld [vmem:[%s5765_s4 + $0x14] ss:$8 sps:$4 sm:$0xff]   ;;  %v3841_v62 = vld [vmem:[%s5765_s4 + $0x10] ss:$8 sps:$4 sm:$0xff]  }
  0xdf   :  { %v3932_v1 = vpop.eup %3931  ;;  %1271 = vmatprep.mubr.bf16.mxu0 %v4952_v53  ;;  %v478_v17 = vmul.f32 %v4679_v22, %v402_v44  ;;  %v4980_v21 = vpack.c.bf16 %v515_v14, %v513_v43  ;;  %v477_v18 = vmul.f32 %v4677_v60, %v401_v15  ;;  %v3853_v44 = vld [vmem:[%s5765_s4 + $0xd0] ss:$8 sps:$4 sm:$0xff]  }
  0xe0   :  { %v3934_v28 = vpop.eup %3933  ;;  %1362 = vmatmul.mubr.bf16.gmra.mxu1 %v4944_v31  ;;  %v408_v26 = vmul.f32 %v3932_v1, %v4627_v47  ;;  %v407_v39 = vmul.f32 %v3932_v1, %v5851_v63 }
  0xe1   :  { %1599 = vmatpush2.bf16.msra.mxu1 %v3811_v0  ;;  %1371 = vmatprep.mubr.bf16.mxu1 %v4954_v51  ;;  %v3676_v45 = vpack.c.bf16 %v480_v2, %v478_v17  ;;  %v406_v35 = vmul.f32 %v3934_v28, %v4638_v54  ;;  %v3817_v54 = vld [vmem:[%s5763_s3 + $0x90] ss:$8 sps:$4 sm:$0xff]   ;;  %v3675_v7 = vpack.c.bf16 %v479_v55, %v477_v18  ;;  %v3846_v0 = vld [vmem:[%s5765_s4 + $0x4] ss:$8 sps:$4 sm:$0xff]  }
  0xe2   :  { %1600 = vmatprep.subr.bf16.mxu1 %v3816_v57  ;;  %v484_v40 = vmul.f32 %v4679_v22, %v408_v26  ;;  %v405_v11 = vmul.f32 %v3934_v28, %v5850_v49  ;;  %v483_v38 = vmul.f32 %v4677_v60, %v407_v39 }
  0xe3   :  { %v482_v47 = vmul.f32 %v4679_v22, %v406_v35 }
  0xe4   :  { %1272 = vmatmul.mubr.bf16.gmra.mxu0 %v4965_v33  ;;  %v481_v16 = vmul.f32 %v4677_v60, %v405_v11  ;;  %v3823_v60 = vld [vmem:[%s5765_s4 + $0x70] ss:$8 sps:$4 sm:$0xff]  }
  0xe5   :  { %1601 = vmatpush2.bf16.msra.mxu1 %v3814_v25  ;;  %1281 = vmatprep.mubr.bf16.mxu0 %v3676_v45  ;;  %v3678_v22 = vpack.c.bf16 %v484_v40, %v482_v47 }
  0xe6   :  { %1602 = vmatprep.subr.bf16.mxu1 %v3819_v34  ;;  %v3677_v61 = vpack.c.bf16 %v483_v38, %v481_v16 }
  0xe8   :  { %1372 = vmatmul.mubr.bf16.gmra.mxu1 %v4980_v21 }
  0xe9   :  { %1603 = vmatpush2.bf16.msra.mxu1 %v3817_v54  ;;  %1606 = vmatprep.mubr.bf16.mxu1 %v4754_v29  ;;  %v3825_v29 = vld [vmem:[%s5765_s4 + $0x74] ss:$8 sps:$4 sm:$0xff]  }
  0xea   :  { %1604 = vmatprep.subr.bf16.mxu1 %v3822_v13  ;;  %2567 = vmatprep.subr.bf16.mxu0 %v3825_v29 }
  0xeb   :  { %2568 = vmatpush1.bf16.msra.mxu0 %v3823_v60 }
  0xec   :  { %1282 = vmatmul.mubr.bf16.gmra.mxu0 %v3675_v7 }
  0xed   :  { %1605 = vmatpush2.bf16.msra.mxu1 %v3820_v46  ;;  %1291 = vmatprep.mubr.bf16.mxu0 %v3678_v22 }
  0xf0   :  { %1607 = vmatmul.mubr.bf16.vlgmr.msra.gmra.mxu1 %v4759_v50  ;;  %v3828_v50 = vld [vmem:[%s5765_s4 + $0x64] ss:$8 sps:$4 sm:$0xff]  }
  0xf1   :  { %1616 = vmatprep.mubr.bf16.mxu1 %v4795_v36  ;;  %v3826_v36 = vld [vmem:[%s5765_s4 + $0x60] ss:$8 sps:$4 sm:$0xff]   ;;  %2569 = vmatprep.subr.bf16.mxu0 %v3828_v50 }
  0xf2   :  { %2570 = vmatpush1.bf16.msra.mxu0 %v3826_v36 }
  0xf4   :  { %1292 = vmatmul.mubr.bf16.gmra.mxu0 %v3677_v61 }
  0xf8   :  { %1617 = vmatmul.mubr.bf16.gmra.mxu1 %v4800_v12  ;;  %v3831_v12 = vld [vmem:[%s5765_s4 + $0x54] ss:$8 sps:$4 sm:$0xff]  }
  0xf9   :  { %1626 = vmatprep.mubr.bf16.mxu1 %v4835_v27  ;;  %v3829_v27 = vld [vmem:[%s5765_s4 + $0x50] ss:$8 sps:$4 sm:$0xff]   ;;  %2571 = vmatprep.subr.bf16.mxu0 %v3831_v12 }
  0xfa   :  { %2572 = vmatpush1.bf16.msra.mxu0 %v3829_v27 }
 0x100   :  { %1627 = vmatmul.mubr.bf16.gmra.mxu1 %v4840_v59  ;;  %v3834_v59 = vld [vmem:[%s5765_s4 + $0x44] ss:$8 sps:$4 sm:$0xff]  }
 0x101   :  { %1636 = vmatprep.mubr.bf16.mxu1 %v4878_v19  ;;  %v3832_v19 = vld [vmem:[%s5765_s4 + $0x40] ss:$8 sps:$4 sm:$0xff]   ;;  %2573 = vmatprep.subr.bf16.mxu0 %v3834_v59 }
 0x102   :  { %2574 = vmatpush1.bf16.msra.mxu0 %v3832_v19 }
 0x108   :  { %1637 = vmatmul.mubr.bf16.gmra.mxu1 %v4883_v41  ;;  %v3837_v41 = vld [vmem:[%s5765_s4 + $0x34] ss:$8 sps:$4 sm:$0xff]  }
 0x109   :  { %1646 = vmatprep.mubr.bf16.mxu1 %v4924_v52  ;;  %v3835_v52 = vld [vmem:[%s5765_s4 + $0x30] ss:$8 sps:$4 sm:$0xff]   ;;  %2575 = vmatprep.subr.bf16.mxu0 %v3837_v41 }
 0x10a   :  { %2576 = vmatpush1.bf16.msra.mxu0 %v3835_v52 }
 0x110   :  { %1647 = vmatmul.mubr.bf16.gmra.mxu1 %v4929_v5  ;;  %v3840_v5 = vld [vmem:[%s5765_s4 + $0x24] ss:$8 sps:$4 sm:$0xff]  }
 0x111   :  { %1656 = vmatprep.mubr.bf16.mxu1 %v4952_v53  ;;  %2577 = vmatprep.subr.bf16.mxu0 %v3840_v5  ;;  %v3844_v53 = vld [vmem:[%s5765_s4] ss:$8 sps:$4 sm:$0xff]  }
 0x112   :  { %2578 = vmatpush1.bf16.msra.mxu0 %v3838_v42 }
 0x113   :  { %2579 = vmatprep.subr.bf16.mxu0 %v3843_v24 }
 0x116   :  { %2580 = vmatpush1.bf16.msra.mxu0 %v3841_v62 }
 0x117   :  { %2581 = vmatprep.subr.bf16.mxu0 %v3846_v0 }
 0x118   :  { %1657 = vmatmul.mubr.bf16.gmra.mxu1 %v4965_v33 }
 0x119   :  { %1666 = vmatprep.mubr.bf16.mxu1 %v3676_v45 }
 0x11a   :  { %2582 = vmatpush1.bf16.msra.mxu0 %v3844_v53 }
 0x120   :  { %1667 = vmatmul.mubr.bf16.gmra.mxu1 %v3675_v7 }
 0x121   :  { %1676 = vmatprep.mubr.bf16.mxu1 %v3678_v22 }
 0x128   :  { %1677 = vmatmul.mubr.bf16.gmra.mxu1 %v3677_v61 }
 0x129   :  { %1686 = vmatprep.mubr.bf16.mxu1 %v4696_v4  ;;  %v3849_v4 = vld [vmem:[%s5765_s4 + $0xf4] ss:$8 sps:$4 sm:$0xff]  }
 0x12a   :  { %2583 = vmatprep.subr.bf16.mxu0 %v3849_v4 }
 0x130   :  { %1687 = vmatmul.mubr.bf16.gmra.mxu1 %v4701_v56  ;;  %v3847_v56 = vld [vmem:[%s5765_s4 + $0xf0] ss:$8 sps:$4 sm:$0xff]  }
 0x131   :  { %1696 = vmatprep.mubr.bf16.mxu1 %v4703_v6  ;;  %2584 = vmatpush2.bf16.msra.mxu0 %v3847_v56  ;;  %v3852_v6 = vld [vmem:[%s5765_s4 + $0xe4] ss:$8 sps:$4 sm:$0xff]  }
 0x132   :  { %2585 = vmatprep.subr.bf16.mxu0 %v3852_v6 }
 0x138   :  { %1697 = vmatmul.mubr.bf16.gmra.mxu1 %v4715_v3  ;;  %v3850_v3 = vld [vmem:[%s5765_s4 + $0xe0] ss:$8 sps:$4 sm:$0xff]  }
 0x139   :  { %1706 = vmatprep.mubr.bf16.mxu1 %v4729_v23  ;;  %2586 = vmatpush2.bf16.msra.mxu0 %v3850_v3  ;;  %v3855_v23 = vld [vmem:[%s5765_s4 + $0xd4] ss:$8 sps:$4 sm:$0xff]  }
 0x13a   :  { %2587 = vmatprep.subr.bf16.mxu0 %v3855_v23 }
 0x13d   :  { %2588 = vmatpush2.bf16.msra.mxu0 %v3853_v44 }
 0x140   :  { %1707 = vmatmul.mubr.bf16.gmra.mxu1 %v4740_v20  ;;  %v3858_v20 = vld [vmem:[%s5765_s4 + $0xc4] ss:$8 sps:$4 sm:$0xff]  }
 0x141   :  { %1716 = vmatprep.mubr.bf16.mxu1 %v4751_v30  ;;  %v3856_v30 = vld [vmem:[%s5765_s4 + $0xc0] ss:$8 sps:$4 sm:$0xff]   ;;  %2589 = vmatprep.subr.bf16.mxu0 %v3858_v20 }
 0x142   :  { %2590 = vmatpush2.bf16.msra.mxu0 %v3856_v30 }
 0x148   :  { %1717 = vmatmul.mubr.bf16.gmra.mxu1 %v4791_v9  ;;  %v3861_v9 = vld [vmem:[%s5765_s4 + $0xb4] ss:$8 sps:$4 sm:$0xff]  }
 0x149   :  { %1726 = vmatprep.mubr.bf16.mxu1 %v4793_v8  ;;  %v3859_v8 = vld [vmem:[%s5765_s4 + $0xb0] ss:$8 sps:$4 sm:$0xff]   ;;  %2591 = vmatprep.subr.bf16.mxu0 %v3861_v9 }
 0x14a   :  { %2592 = vmatpush2.bf16.msra.mxu0 %v3859_v8 }
 0x150   :  { %1727 = vmatmul.mubr.bf16.gmra.mxu1 %v4848_v10  ;;  %v3864_v10 = vld [vmem:[%s5765_s4 + $0xa4] ss:$8 sps:$4 sm:$0xff]  }
 0x151   :  { %1736 = vmatprep.mubr.bf16.mxu1 %v4851_v32  ;;  %v3862_v32 = vld [vmem:[%s5765_s4 + $0xa0] ss:$8 sps:$4 sm:$0xff]   ;;  %2593 = vmatprep.subr.bf16.mxu0 %v3864_v10 }
 0x152   :  { %2594 = vmatpush2.bf16.msra.mxu0 %v3862_v32 }
 0x158   :  { %1737 = vmatmul.mubr.bf16.gmra.mxu1 %v4891_v37  ;;  %v3867_v37 = vld [vmem:[%s5765_s4 + $0x94] ss:$8 sps:$4 sm:$0xff]  }
 0x159   :  { %1746 = vmatprep.mubr.bf16.mxu1 %v4908_v48  ;;  %v3865_v48 = vld [vmem:[%s5765_s4 + $0x90] ss:$8 sps:$4 sm:$0xff]   ;;  %2595 = vmatprep.subr.bf16.mxu0 %v3867_v37 }
 0x15a   :  { %2596 = vmatpush2.bf16.msra.mxu0 %v3865_v48 }
 0x160   :  { %1747 = vmatmul.mubr.bf16.gmra.mxu1 %v4944_v31  ;;  %v3870_v31 = vld [vmem:[%s5765_s4 + $0x84] ss:$8 sps:$4 sm:$0xff]  }
 0x161   :  { %1756 = vmatprep.mubr.bf16.mxu1 %v4954_v51  ;;  %v3868_v51 = vld [vmem:[%s5765_s4 + $0x80] ss:$8 sps:$4 sm:$0xff]   ;;  %2597 = vmatprep.subr.bf16.mxu0 %v3870_v31 }
 0x162   :  { %2598 = vmatpush2.bf16.msra.mxu0 %v3868_v51 }
 0x168   :  { %1757 = vmatmul.mubr.bf16.gmra.mxu1 %v4980_v21 }
 0x170   :  { %v5124_v57 = vpop.f32.mrf.mxu1 }
 0x172   :  { %v5126_v2 = vpop.f32.mrf.mxu1 }
 0x174   :  { %v5128_v1 = vpop.f32.mrf.mxu1 }
 0x176   :  { %v5130_v43 = vpop.f32.mrf.mxu1 }
 0x178   :  { %v5132_v17 = vpop.f32.mrf.mxu1 }
 0x17a   :  { %v5134_v28 = vpop.f32.mrf.mxu1 }
 0x17c   :  { %v5136_v33 = vpop.f32.mrf.mxu0  ;;  %v5138_v14 = vpop.f32.mrf.mxu1 }
 0x17d   :  { %5852 = vst [vmem:[#allocation8_spill] sm:$0xff] %v5138_v14  ;;  %v3471_v22 = vmul.f32 -1.442695, %v5136_v33 }
 0x17e   :  { %v5140_v15 = vpop.f32.mrf.mxu0  ;;  %v5142_v58 = vpop.f32.mrf.mxu1 }
 0x17f   :  { %v3472_v7 = vmul.f32 -1.442695, %v5140_v15 }
 0x180   :  { %v5144_v25 = vpop.f32.mrf.mxu0  ;;  %v5146_v45 = vpop.f32.mrf.mxu1 }
 0x181   :  { %v3473_v63 = vmul.f32 -1.442695, %v5144_v25  ;;  %3935 = vpow2.f32 %v3472_v7  ;;  %v3503_v7 = vmul.f32 -1.442695, %v5124_v57 }
 0x182   :  { %v5148_v35 = vpop.f32.mrf.mxu0  ;;  %v5150_v26 = vpop.f32.mrf.mxu1 }
 0x183   :  { %v3474_v39 = vmul.f32 -1.442695, %v5148_v35  ;;  %3937 = vpow2.f32 %v3473_v63  ;;  %v3504_v63 = vmul.f32 -1.442695, %v5126_v2 }
 0x184   :  { %v5152_v34 = vpop.f32.mrf.mxu0  ;;  %v5154_v21 = vpop.f32.mrf.mxu1 }
 0x185   :  { %3939 = vpow2.f32 %v3474_v39  ;;  %v3475_v12 = vmul.f32 -1.442695, %v5152_v34 }
 0x186   :  { %v5156_v18 = vpop.f32.mrf.mxu0  ;;  %v5158_v55 = vpop.f32.mrf.mxu1  ;;  %3941 = vpow2.f32 %v3471_v22 }
 0x187   :  { %5853 = vst [vmem:[#allocation7_spill] sm:$0xff] %v5158_v55  ;;  %v3476_v29 = vmul.f32 -1.442695, %v5156_v18 }
 0x188   :  { %v5160_v54 = vpop.f32.mrf.mxu0  ;;  %v5162_v47 = vpop.f32.mrf.mxu1 }
 0x189   :  { %5854 = vst [vmem:[#allocation10_spill] sm:$0xff] %v5162_v47  ;;  %v3477_v50 = vmul.f32 -1.442695, %v5160_v54  ;;  %3943 = vpow2.f32 %v3476_v29 }
 0x18a   :  { %v5164_v40 = vpop.f32.mrf.mxu0  ;;  %v5166_v13 = vpop.f32.mrf.mxu1 }
 0x18b   :  { %5855 = vst [vmem:[#allocation9_spill] sm:$0xff] %v5166_v13  ;;  %v3478_v59 = vmul.f32 -1.442695, %v5164_v40  ;;  %3945 = vpow2.f32 %v3477_v50 }
 0x18c   :  { %v5169_v49 = vpop.f32.mrf.mxu0  ;;  %v5171_v11 = vpop.f32.mrf.mxu1  ;;  %3947 = vpow2.f32 %v3475_v12 }
 0x18d   :  { %5856 = vst [vmem:[#allocation5_spill] sm:$0xff] %v5171_v11  ;;  %3949 = vpow2.f32 %v3478_v59  ;;  %v3479_v5 = vmul.f32 -1.442695, %v5169_v49 }
 0x18e   :  { %v5175_v46 = vpop.f32.mrf.mxu1  ;;  %v5178_v16 = vpop.f32.mrf.mxu0 }
 0x18f   :  { %5857 = vst [vmem:[#allocation6_spill] sm:$0xff] %v5175_v46  ;;  %v3936_v24 = vpop.eup %3935  ;;  %v3480_v53 = vmul.f32 -1.442695, %v5178_v16  ;;  %3951 = vpow2.f32 %v3479_v5 }
 0x190   :  { %v5180_v38 = vpop.f32.mrf.mxu1  ;;  %v5185_v60 = vpop.f32.mrf.mxu0  ;;  %v1960_v6 = vadd.f32 1.0, %v3936_v24 }
 0x191   :  { %5858 = vst [vmem:[#allocation4_spill] sm:$0xff] %v5180_v38  ;;  %v3938_v0 = vpop.eup %3937  ;;  %v3481_v44 = vmul.f32 -1.442695, %v5185_v60  ;;  %3953 = vpow2.f32 %v3480_v53 }
 0x192   :  { %v5182_v61 = vpop.f32.mrf.mxu1  ;;  %v5194_v19 = vpop.f32.mrf.mxu0  ;;  %v1961_v30 = vadd.f32 1.0, %v3938_v0  ;;  %3955 = vrcp.f32 %v1960_v6  ;;  %v3505_v0 = vmul.f32 -1.442695, %v5128_v1 }
 0x193   :  { %5859 = vst [vmem:[#allocation16_spill] sm:$0xff] %v5182_v61  ;;  %v3940_v56 = vpop.eup %3939  ;;  %3957 = vpow2.f32 %v3481_v44  ;;  %v3482_v48 = vmul.f32 -1.442695, %v5194_v19  ;;  %v3506_v44 = vmul.f32 -1.442695, %v5130_v43 }
 0x194   :  { %v5188_v36 = vpop.f32.mrf.mxu1  ;;  %v5201_v42 = vpop.f32.mrf.mxu0  ;;  %v1962_v9 = vadd.f32 1.0, %v3940_v56  ;;  %3959 = vrcp.f32 %v1961_v30 }
 0x195   :  { %5860 = vst [vmem:[#allocation15_spill] sm:$0xff] %v5188_v36  ;;  %v3942_v23 = vpop.eup %3941 }
 0x196   :  { %v5191_v27 = vpop.f32.mrf.mxu1  ;;  %v5208_v3 = vpop.f32.mrf.mxu0  ;;  %v1959_v10 = vadd.f32 1.0, %v3942_v23  ;;  %3961 = vrcp.f32 %v1962_v9  ;;  %v3507_v9 = vmul.f32 -1.442695, %v5132_v17 }
 0x197   :  { %5861 = vst [vmem:[#allocation14_spill] sm:$0xff] %v5191_v27  ;;  %v3944_v37 = vpop.eup %3943 }
 0x198   :  { %v5196_v41 = vpop.f32.mrf.mxu1  ;;  %v5215_v32 = vpop.f32.mrf.mxu0  ;;  %3963 = vrcp.f32 %v1959_v10  ;;  %v1964_v29 = vadd.f32 1.0, %v3944_v37  ;;  %v3483_v10 = vmul.f32 -1.442695, %v5201_v42 }
 0x199   :  { %5862 = vst [vmem:[#allocation12_spill] sm:$0xff] %v5196_v41  ;;  %v3946_v51 = vpop.eup %3945  ;;  %3965 = vpow2.f32 %v3482_v48 }
 0x19a   :  { %v5198_v52 = vpop.f32.mrf.mxu1  ;;  %v3948_v22 = vpop.eup %3947  ;;  %v1965_v59 = vadd.f32 1.0, %v3946_v51  ;;  %3967 = vpow2.f32 %v3503_v7 }
 0x19b   :  { %5863 = vst [vmem:[#allocation18_spill] sm:$0xff] %v5198_v52  ;;  %v5224_v50 = vpop.f32.mrf.mxu0  ;;  %v3950_v12 = vpop.eup %3949  ;;  %3969 = vpow2.f32 %v3504_v63  ;;  %v1963_v56 = vadd.f32 1.0, %v3948_v22  ;;  %v3484_v22 = vmul.f32 -1.442695, %v5208_v3 }
 0x19c   :  { %v5203_v62 = vpop.f32.mrf.mxu1  ;;  %v1966_v24 = vadd.f32 1.0, %v3950_v12  ;;  %3971 = vrcp.f32 %v1964_v29  ;;  %v3952_v23 = vpop.eup %3951 }
 0x19d   :  { %5864 = vst [vmem:[#allocation17_spill] sm:$0xff] %v5203_v62  ;;  %v5231_v6 = vpop.f32.mrf.mxu0  ;;  %3973 = vrcp.f32 %v1965_v59  ;;  %v1967_v51 = vadd.f32 1.0, %v3952_v23  ;;  %v3486_v62 = vmul.f32 -1.442695, %v5224_v50 }
 0x19e   :  { %v5206_v4 = vpop.f32.mrf.mxu1  ;;  %3975 = vrcp.f32 %v1966_v24  ;;  %v3954_v48 = vpop.eup %3953 }
 0x19f   :  { %5865 = vst [vmem:[#allocation20_spill] sm:$0xff] %v5206_v4  ;;  %3977 = vpow2.f32 %v3505_v0  ;;  %v5240_v7 = vpop.f32.mrf.mxu0  ;;  %v3956_v63 = vpop.eup %3955 }
 0x1a0   :  { %v5211_v20 = vpop.f32.mrf.mxu1  ;;  %3979 = vrcp.f32 %v1963_v56  ;;  %v3958_v12 = vpop.eup %3957 }
 0x1a1   :  { %5866 = vst [vmem:[#allocation19_spill] sm:$0xff] %v5211_v20  ;;  %3981 = vpow2.f32 %v3506_v44  ;;  %v3960_v59 = vpop.eup %3959  ;;  %v1969_v24 = vadd.f32 1.0, %v3958_v12  ;;  %v3485_v20 = vmul.f32 -1.442695, %v5215_v32  ;;  %v5244_v56 = vpop.f32.mrf.mxu0 }
 0x1a2   :  { %v5213_v8 = vpop.f32.mrf.mxu1  ;;  %3983 = vpow2.f32 %v3507_v9  ;;  %v2153_v9 = vmul.f32 %v3960_v59, %v5144_v25  ;;  %v3510_v25 = vmul.f32 -1.442695, %v5142_v58 }
 0x1a3   :  { %5867 = vst [vmem:[#allocation22_spill] sm:$0xff] %v5213_v8  ;;  %3985 = vpow2.f32 %v3483_v10  ;;  %v2152_v10 = vmul.f32 %v3956_v63, %v5140_v15 }
 0x1a4   :  { %v5218_v31 = vpop.f32.mrf.mxu1  ;;  %3987 = vrcp.f32 %v1967_v51 }
 0x1a5   :  { %5868 = vst [vmem:[#allocation21_spill] sm:$0xff] %v5218_v31  ;;  %3989 = vpow2.f32 %v3484_v22  ;;  %v3508_v31 = vmul.f32 -1.442695, %v5134_v28 }
 0x1a6   :  { %v5222_v39 = vpop.f32.mrf.mxu1  ;;  %3991 = vrcp.f32 %v1969_v24 }
 0x1a7   :  { %5869 = vst [vmem:[#allocation13_spill] sm:$0xff] %v5222_v39  ;;  %v5253_v39 = vpop.f32.mrf.mxu0 }
 0x1a8   :  { %v5226_v5 = vpop.f32.mrf.mxu1 }
 0x1a9   :  { %5870 = vst [vmem:[#allocation11_spill] sm:$0xff] %v5226_v5  ;;  %v1968_v5 = vadd.f32 1.0, %v3954_v48 }
 0x1aa   :  { %v5229_v53 = vpop.f32.mrf.mxu1 }
 0x1ab   :  { %5871 = vst [vmem:[#allocation24_spill] sm:$0xff] %v5229_v53 }
 0x1ac   :  { %v5234_v30 = vpop.f32.mrf.mxu1 }
 0x1ad   :  { %5872 = vst [vmem:[#allocation23_spill] sm:$0xff] %v5234_v30  ;;  %v3962_v30 = vpop.eup %3961  ;;  %3993 = vrcp.f32 %v1968_v5 }
 0x1ae   :  { %v5238_v37 = vpop.f32.mrf.mxu1  ;;  %v3964_v23 = vpop.eup %3963  ;;  %v2154_v51 = vmul.f32 %v3962_v30, %v5148_v35  ;;  %3995 = vpow2.f32 %v3485_v20 }
 0x1af   :  { %5873 = vst [vmem:[#allocation25_spill] sm:$0xff] %v5238_v37  ;;  %v3966_v44 = vpop.eup %3965  ;;  %v3509_v37 = vmul.f32 -1.442695, %v5138_v14  ;;  %v2151_v22 = vmul.f32 %v3964_v23, %v5136_v33  ;;  %v5256_v14 = vpop.f32.mrf.mxu0 }
 0x1b0   :  { %v1608_v29 = vpop.f32.mrf.mxu1  ;;  %v3968_v48 = vpop.eup %3967  ;;  %v1970_v12 = vadd.f32 1.0, %v3966_v44 }
 0x1b1   :  { %v3970_v41 = vpop.eup %3969  ;;  %v1991_v5 = vadd.f32 1.0, %v3968_v48  ;;  %v2215_v30 = vmul.f32 %v2151_v22, %v1608_v29 }
 0x1b2   :  { %v1610_v0 = vpop.f32.mrf.mxu1  ;;  %v3972_v4 = vpop.eup %3971  ;;  %3997 = vrcp.f32 %v1970_v12  ;;  %v1992_v44 = vadd.f32 1.0, %v3970_v41 }
 0x1b3   :  { %v2216_v59 = vmul.f32 %v2152_v10, %v1610_v0  ;;  %v3974_v35 = vpop.eup %3973  ;;  %3999 = vpow2.f32 %v3508_v31  ;;  %v3511_v0 = vmul.f32 -1.442695, %v5146_v45  ;;  %v2156_v41 = vmul.f32 %v3972_v4, %v5156_v18 }
 0x1b4   :  { %v1612_v53 = vpop.f32.mrf.mxu1  ;;  %v3976_v24 = vpop.eup %3975  ;;  %4001 = vpow2.f32 %v3509_v37  ;;  %v2157_v37 = vmul.f32 %v3974_v35, %v5160_v54  ;;  %v3488_v10 = vmul.f32 -1.442695, %v5240_v7  ;;  %v3489_v54 = vmul.f32 -1.442695, %v5244_v56 }
 0x1b5   :  { %v2217_v52 = vmul.f32 %v2153_v9, %v1612_v53  ;;  %v3978_v23 = vpop.eup %3977  ;;  %4003 = vpow2.f32 %v3486_v62  ;;  %v2158_v29 = vmul.f32 %v3976_v24, %v5164_v40  ;;  %v3512_v35 = vmul.f32 -1.442695, %v5150_v26 }
 0x1b6   :  { %v1614_v8 = vpop.f32.mrf.mxu1  ;;  %v3980_v9 = vpop.eup %3979  ;;  %4005 = vpow2.f32 %v3510_v25 }
 0x1b7   :  { %v2218_v15 = vmul.f32 %v2154_v51, %v1614_v8  ;;  %v2343_v53 = vpack.c.bf16 %v2217_v52, %v2215_v30  ;;  %v3487_v8 = vmul.f32 -1.442695, %v5231_v6  ;;  %v3982_v31 = vpop.eup %3981  ;;  %4007 = vrcp.f32 %v1991_v5  ;;  %v5265_v25 = vpop.f32.mrf.mxu0 }
 0x1b8   :  { %v1618_v63 = vpop.f32.mrf.mxu1  ;;  %v3984_v62 = vpop.eup %3983  ;;  %4009 = vrcp.f32 %v1992_v44  ;;  %v1993_v52 = vadd.f32 1.0, %v3978_v23  ;;  %v2155_v22 = vmul.f32 %v3980_v9, %v5152_v34 }
 0x1b9   :  { %v2344_v33 = vpack.c.bf16 %v2218_v15, %v2216_v59  ;;  %v3986_v12 = vpop.eup %3985  ;;  %4011 = vpow2.f32 %v3487_v8  ;;  %v3490_v8 = vmul.f32 -1.442695, %v5253_v39 }
 0x1ba   :  { %v1620_v20 = vpop.f32.mrf.mxu1  ;;  %v3988_v18 = vpop.eup %3987  ;;  %4013 = vpow2.f32 %v3511_v0  ;;  %v2219_v30 = vmul.f32 %v2155_v22, %v1618_v63 }
 0x1bb   :  { %2599 = vmatprep.mubr.bf16.mxu0 %v2344_v33  ;;  %v2220_v59 = vmul.f32 %v2156_v41, %v1620_v20  ;;  %v3990_v4 = vpop.eup %3989  ;;  %v3513_v33 = vmul.f32 -1.442695, %v5154_v21  ;;  %4015 = vpow2.f32 %v3488_v10  ;;  %v5270_v20 = vpop.f32.mrf.mxu0 }
 0x1bc   :  { %v1622_v48 = vpop.f32.mrf.mxu1  ;;  %2600 = vmatmul.mubr.bf16.vlgmr.msra.gmra.mxu0 %v2343_v53  ;;  %v3992_v44 = vpop.eup %3991  ;;  %4017 = vrcp.f32 %v1993_v52  ;;  %v1972_v41 = vadd.f32 1.0, %v3990_v4 }
 0x1bd   :  { %v2221_v15 = vmul.f32 %v2157_v37, %v1622_v48  ;;  %v3994_v23 = vpop.eup %3993  ;;  %4019 = vpow2.f32 %v3489_v54  ;;  %v2161_v63 = vmul.f32 %v3992_v44, %v5185_v60  ;;  %v1994_v60 = vadd.f32 1.0, %v3982_v31 }
 0x1be   :  { %v1624_v51 = vpop.f32.mrf.mxu1  ;;  %v3996_v9 = vpop.eup %3995  ;;  %4021 = vpow2.f32 %v3512_v35  ;;  %v2160_v52 = vmul.f32 %v3994_v23, %v5178_v16  ;;  %v1995_v16 = vadd.f32 1.0, %v3984_v62 }
 0x1bf   :  { %v2222_v5 = vmul.f32 %v2158_v29, %v1624_v51  ;;  %v2345_v53 = vpack.c.bf16 %v2221_v15, %v2219_v30  ;;  %v3998_v48 = vpop.eup %3997  ;;  %v1973_v37 = vadd.f32 1.0, %v3996_v9  ;;  %4023 = vpow2.f32 %v3513_v33 }
 0x1c0   :  { %v1628_v40 = vpop.f32.mrf.mxu1  ;;  %v4000_v29 = vpop.eup %3999  ;;  %v2162_v10 = vmul.f32 %v3998_v48, %v5194_v19  ;;  %v1971_v51 = vadd.f32 1.0, %v3986_v12  ;;  %v2159_v15 = vmul.f32 %v3988_v18, %v5169_v49 }
 0x1c1   :  { %v2346_v24 = vpack.c.bf16 %v2222_v5, %v2220_v59  ;;  %v4002_v59 = vpop.eup %4001  ;;  %4025 = vrcp.f32 %v1973_v37  ;;  %v5277_v5 = vpop.f32.mrf.mxu0  ;;  %v1996_v23 = vadd.f32 1.0, %v4000_v29  ;;  %v3492_v29 = vmul.f32 -1.442695, %v5265_v25 }
 0x1c2   :  { %v1630_v34 = vpop.f32.mrf.mxu1  ;;  %v4004_v35 = vpop.eup %4003  ;;  %4027 = vpow2.f32 %v3490_v8  ;;  %v2223_v12 = vmul.f32 %v2159_v15, %v1628_v40  ;;  %v1997_v31 = vadd.f32 1.0, %v4002_v59  ;;  %v3491_v40 = vmul.f32 -1.442695, %v5256_v14 }
 0x1c3   :  { %2609 = vmatprep.mubr.bf16.mxu0 %v2346_v24  ;;  %v2224_v4 = vmul.f32 %v2160_v52, %v1630_v34  ;;  %v4006_v44 = vpop.eup %4005  ;;  %4029 = vrcp.f32 %v1972_v41  ;;  %v1974_v19 = vadd.f32 1.0, %v4004_v35  ;;  %v5287_v34 = vpop.f32.mrf.mxu0 }
 0x1c4   :  { %v1632_v0 = vpop.f32.mrf.mxu1  ;;  %2610 = vmatmul.mubr.bf16.gmra.mxu0 %v2345_v53  ;;  %v5281_v33 = vpop.eup %4007  ;;  %4031 = vrcp.f32 %v1971_v51  ;;  %v1998_v8 = vadd.f32 1.0, %v4006_v44 }
 0x1c5   :  { %v2225_v54 = vmul.f32 %v2161_v63, %v1632_v0  ;;  %v5285_v53 = vpop.eup %4009  ;;  %4033 = vrcp.f32 %v1974_v19  ;;  %v3514_v63 = vmul.f32 -1.442695, %v5158_v55  ;;  %v5292_v52 = vpop.f32.mrf.mxu0 }
 0x1c6   :  { %v1634_v22 = vpop.f32.mrf.mxu1  ;;  %4035 = vrcp.f32 %v1994_v60  ;;  %v4012_v0 = vpop.eup %4011 }
 0x1c7   :  { %v2226_v30 = vmul.f32 %v2162_v10, %v1634_v22  ;;  %v2347_v9 = vpack.c.bf16 %v2225_v54, %v2223_v12  ;;  %4037 = vrcp.f32 %v1995_v16  ;;  %v4014_v48 = vpop.eup %4013  ;;  %v1975_v51 = vadd.f32 1.0, %v4012_v0  ;;  %v5301_v44 = vpop.f32.mrf.mxu0 }
 0x1c8   :  { %v5279_v24 = vpop.f32.mrf.mxu1  ;;  %4039 = vrcp.f32 %v1996_v23  ;;  %v4016_v37 = vpop.eup %4015  ;;  %v1999_v23 = vadd.f32 1.0, %v4014_v48 }
 0x1c9   :  { %v2348_v49 = vpack.c.bf16 %v2226_v30, %v2224_v4  ;;  %4041 = vrcp.f32 %v1997_v31  ;;  %v5294_v10 = vpop.eup %4017  ;;  %v1976_v54 = vadd.f32 1.0, %v4016_v37  ;;  %v3493_v30 = vmul.f32 -1.442695, %v5270_v20 }
 0x1ca   :  { %v5283_v18 = vpop.f32.mrf.mxu1  ;;  %4043 = vrcp.f32 %v1998_v8  ;;  %v4020_v59 = vpop.eup %4019  ;;  %v3515_v31 = vmul.f32 -1.442695, %v5162_v47 }
 0x1cb   :  { %2619 = vmatprep.mubr.bf16.mxu0 %v2348_v49  ;;  %4045 = vpow2.f32 %v3491_v40  ;;  %v4022_v15 = vpop.eup %4021  ;;  %v1977_v35 = vadd.f32 1.0, %v4020_v59  ;;  %v3494_v40 = vmul.f32 -1.442695, %v5277_v5 }
 0x1cc   :  { %v1642_v62 = vpop.f32.mrf.mxu1  ;;  %2620 = vmatmul.mubr.bf16.gmra.mxu0 %v2347_v9  ;;  %4047 = vpow2.f32 %v3514_v63  ;;  %v4024_v4 = vpop.eup %4023 }
 0x1cd   :  { %4049 = vpow2.f32 %v3492_v29  ;;  %v5309_v63 = vpop.f32.mrf.mxu0  ;;  %v2000_v29 = vadd.f32 1.0, %v4022_v15  ;;  %v2001_v47 = vadd.f32 1.0, %v4024_v4  ;;  %v3495_v4 = vmul.f32 -1.442695, %v5287_v34 }
 0x1ce   :  { %v1644_v41 = vpop.f32.mrf.mxu1  ;;  %v4026_v16 = vpop.eup %4025  ;;  %4051 = vrcp.f32 %v1975_v51 }
 0x1cf   :  { %v4028_v12 = vpop.eup %4027  ;;  %4053 = vrcp.f32 %v1977_v35  ;;  %v2165_v51 = vmul.f32 %v4026_v16, %v5215_v32 }
 0x1d0   :  { %v5296_v22 = vpop.f32.mrf.mxu1  ;;  %v4030_v49 = vpop.eup %4029  ;;  %4055 = vrcp.f32 %v1976_v54  ;;  %v1978_v9 = vadd.f32 1.0, %v4028_v12  ;;  %v3516_v54 = vmul.f32 -1.442695, %v5166_v13 }
 0x1d1   :  { %v4032_v0 = vpop.eup %4031  ;;  %4057 = vpow2.f32 %v3493_v30  ;;  %v2164_v35 = vmul.f32 %v4030_v49, %v5208_v3  ;;  %v2229_v55 = vmul.f32 %v2165_v51, %v1642_v62 }
 0x1d2   :  { %v5298_v60 = vpop.f32.mrf.mxu1  ;;  %v4034_v37 = vpop.eup %4033  ;;  %4059 = vrcp.f32 %v1978_v9  ;;  %v2163_v15 = vmul.f32 %v4032_v0, %v5201_v42  ;;  %v3517_v9 = vmul.f32 -1.442695, %v5171_v11  ;;  %v3496_v0 = vmul.f32 -1.442695, %v5292_v52 }
 0x1d3   :  { %v5314_v59 = vpop.eup %4035  ;;  %4061 = vrcp.f32 %v1999_v23  ;;  %v2166_v30 = vmul.f32 %v4034_v37, %v5224_v50  ;;  %v5327_v23 = vpop.f32.mrf.mxu0  ;;  %v2228_v3 = vmul.f32 %v2164_v35, %v5283_v18  ;;  %v3518_v18 = vmul.f32 -1.442695, %v5175_v46 }
 0x1d4   :  { %v5303_v19 = vpop.f32.mrf.mxu1  ;;  %v5319_v12 = vpop.eup %4037  ;;  %4063 = vpow2.f32 %v3515_v31  ;;  %v2227_v42 = vmul.f32 %v2163_v15, %v5279_v24  ;;  %v3519_v24 = vmul.f32 -1.442695, %v5180_v38 }
 0x1d5   :  { %v5324_v16 = vpop.eup %4039  ;;  %4065 = vpow2.f32 %v3494_v40  ;;  %v2230_v49 = vmul.f32 %v2166_v30, %v1644_v41  ;;  %v5345_v35 = vpop.f32.mrf.mxu0 }
 0x1d6   :  { %v5306_v8 = vpop.f32.mrf.mxu1  ;;  %v5330_v50 = vpop.eup %4041  ;;  %4067 = vrcp.f32 %v2000_v29  ;;  %v2349_v41 = vpack.c.bf16 %v2229_v55, %v2227_v42 }
 0x1d7   :  { %v5336_v31 = vpop.eup %4043  ;;  %4069 = vpow2.f32 %v3516_v54  ;;  %v2350_v40 = vpack.c.bf16 %v2230_v49, %v2228_v3  ;;  %v3497_v54 = vmul.f32 -1.442695, %v5301_v44  ;;  %v3498_v49 = vmul.f32 -1.442695, %v5309_v63 }
 0x1d8   :  { %v5312_v48 = vpop.f32.mrf.mxu1  ;;  %v4046_v37 = vpop.eup %4045  ;;  %4071 = vrcp.f32 %v2001_v47 }
 0x1d9   :  { %v5342_v29 = vpop.eup %4047  ;;  %4073 = vpow2.f32 %v3517_v9  ;;  %2629 = vmatprep.mubr.bf16.mxu0 %v2350_v40  ;;  %v1979_v3 = vadd.f32 1.0, %v4046_v37  ;;  %v5353_v40 = vpop.f32.mrf.mxu0  ;;  %v3499_v37 = vmul.f32 -1.442695, %v5327_v23 }
 0x1da   :  { %v5322_v32 = vpop.f32.mrf.mxu1  ;;  %v4050_v30 = vpop.eup %4049  ;;  %4075 = vpow2.f32 %v3495_v4  ;;  %2630 = vmatmul.mubr.bf16.gmra.mxu0 %v2349_v41 }
 0x1db   :  { %v4052_v47 = vpop.eup %4051  ;;  %4077 = vpow2.f32 %v3496_v0  ;;  %v1980_v38 = vadd.f32 1.0, %v4050_v30  ;;  %v3500_v30 = vmul.f32 -1.442695, %v5345_v35 }
 0x1dc   :  { %v5334_v62 = vpop.f32.mrf.mxu1  ;;  %v4054_v55 = vpop.eup %4053  ;;  %4079 = vpow2.f32 %v3518_v18 }
 0x1dd   :  { %v4056_v42 = vpop.eup %4055  ;;  %4081 = vpow2.f32 %v3519_v24  ;;  %v2169_v13 = vmul.f32 %v4054_v55, %v5244_v56  ;;  %v5367_v56 = vpop.f32.mrf.mxu0 }
 0x1de   :  { %v5340_v51 = vpop.f32.mrf.mxu1  ;;  %v4058_v4 = vpop.eup %4057  ;;  %4083 = vpow2.f32 %v3497_v54  ;;  %v2168_v11 = vmul.f32 %v4056_v42, %v5240_v7 }
 0x1df   :  { %v4060_v41 = vpop.eup %4059  ;;  %4085 = vrcp.f32 %v1979_v3  ;;  %v1981_v0 = vadd.f32 1.0, %v4058_v4  ;;  %v2233_v3 = vmul.f32 %v2169_v13, %v5303_v19  ;;  %v3501_v4 = vmul.f32 -1.442695, %v5353_v40 }
 0x1e0   :  { %v5348_v15 = vpop.f32.mrf.mxu1  ;;  %v5359_v18 = vpop.eup %4061  ;;  %v2170_v24 = vmul.f32 %v4060_v41, %v5253_v39  ;;  %4087 = vpow2.f32 %v3498_v49  ;;  %v2232_v7 = vmul.f32 %v2168_v11, %v5298_v60  ;;  %v3520_v41 = vmul.f32 -1.442695, %v5182_v61 }
 0x1e1   :  { %5874 = vst [vmem:[#allocation26_spill] sm:$0xff] %v5348_v15  ;;  %v4064_v54 = vpop.eup %4063  ;;  %4089 = vrcp.f32 %v1980_v38  ;;  %v3502_v13 = vmul.f32 -1.442695, %v5367_v56  ;;  %v3521_v60 = vmul.f32 -1.442695, %v5188_v36 }
 0x1e2   :  { %v5351_v9 = vpop.f32.mrf.mxu1  ;;  %v4066_v55 = vpop.eup %4065  ;;  %4091 = vrcp.f32 %v1981_v0  ;;  %v2234_v39 = vmul.f32 %v2170_v24, %v5306_v8  ;;  %v3522_v61 = vmul.f32 -1.442695, %v5191_v27 }
 0x1e3   :  { %5875 = vst [vmem:[#allocation27_spill] sm:$0xff] %v5351_v9  ;;  %v2167_v9 = vmul.f32 %v4052_v47, %v5231_v6  ;;  %v5375_v42 = vpop.eup %4067  ;;  %v1982_v6 = vadd.f32 1.0, %v4066_v55  ;;  %4093 = vpow2.f32 %v3499_v37  ;;  %v2003_v55 = vadd.f32 1.0, %v4064_v54 }
 0x1e4   :  { %v5355_v46 = vpop.f32.mrf.mxu1  ;;  %v4070_v47 = vpop.eup %4069  ;;  %4095 = vpow2.f32 %v3500_v30  ;;  %v2352_v19 = vpack.c.bf16 %v2234_v39, %v2232_v7  ;;  %v2183_v54 = vmul.f32 %v5281_v33, %v5124_v57  ;;  %v2187_v33 = vmul.f32 %v5319_v12, %v5132_v17 }
 0x1e5   :  { %v2231_v38 = vmul.f32 %v2167_v9, %v5296_v22  ;;  %v5382_v11 = vpop.eup %4071  ;;  %4097 = vrcp.f32 %v1982_v6  ;;  %v2002_v9 = vadd.f32 1.0, %v5342_v29 }
 0x1e6   :  { %v5364_v15 = vpop.f32.mrf.mxu1  ;;  %v4074_v24 = vpop.eup %4073  ;;  %4099 = vpow2.f32 %v3501_v4  ;;  %2639 = vmatprep.mubr.bf16.mxu0 %v2352_v19 }
 0x1e7   :  { %v2351_v8 = vpack.c.bf16 %v2233_v3, %v2231_v38  ;;  %v4076_v22 = vpop.eup %4075  ;;  %4101 = vpow2.f32 %v3520_v41 }
 0x1e8   :  { %v5373_v49 = vpop.f32.mrf.mxu1  ;;  %v4078_v30 = vpop.eup %4077  ;;  %4103 = vpow2.f32 %v3502_v13  ;;  %v1983_v19 = vadd.f32 1.0, %v4076_v22  ;;  %v2185_v13 = vmul.f32 %v5294_v10, %v5128_v1 }
 0x1e9   :  { %5876 = vst [vmem:[#allocation28_spill] sm:$0xff] %v5373_v49  ;;  %2640 = vmatmul.mubr.bf16.gmra.mxu0 %v2351_v8  ;;  %v4080_v39 = vpop.eup %4079  ;;  %4105 = vpow2.f32 %v3521_v60  ;;  %v1984_v3 = vadd.f32 1.0, %v4078_v30  ;;  %v2004_v8 = vadd.f32 1.0, %v4070_v47  ;;  %v2005_v30 = vadd.f32 1.0, %v4074_v24 }
 0x1ea   :  { %v5380_v0 = vpop.f32.mrf.mxu1  ;;  %v4082_v6 = vpop.eup %4081  ;;  %4107 = vpow2.f32 %v3522_v61  ;;  %v2184_v61 = vmul.f32 %v5285_v53, %v5126_v2  ;;  %v2188_v2 = vmul.f32 %v5324_v16, %v5134_v28  ;;  %v2006_v53 = vadd.f32 1.0, %v4080_v39 }
 0x1eb   :  { %v4084_v4 = vpop.eup %4083  ;;  %4109 = vrcp.f32 %v2002_v9 }
 0x1ec   :  { %v5386_v37 = vpop.f32.mrf.mxu1  ;;  %v4086_v27 = vpop.eup %4085  ;;  %4111 = vrcp.f32 %v2003_v55  ;;  %v1985_v36 = vadd.f32 1.0, %v4084_v4  ;;  %v2186_v4 = vmul.f32 %v5314_v59, %v5130_v43 }
 0x1ed   :  { %v4088_v41 = vpop.eup %4087  ;;  %4113 = vrcp.f32 %v1984_v3  ;;  %v5877_v3 = vld [vmem:[#allocation8_spill] sm:$0xff] }
 0x1ee   :  { %v5389_v7 = vpop.f32.mrf.mxu1  ;;  %v4090_v60 = vpop.eup %4089  ;;  %4115 = vrcp.f32 %v1985_v36  ;;  %v1986_v22 = vadd.f32 1.0, %v4088_v41 }
 0x1ef   :  { %v4092_v55 = vpop.eup %4091  ;;  %4117 = vrcp.f32 %v1983_v19  ;;  %v2172_v39 = vmul.f32 %v4090_v60, %v5265_v25 }
 0x1f0   :  { %v1688_v38 = vpop.f32.mrf.mxu1  ;;  %v4094_v1 = vpop.eup %4093  ;;  %4119 = vrcp.f32 %v1986_v22  ;;  %v2173_v17 = vmul.f32 %v4092_v55, %v5270_v20  ;;  %v2007_v22 = vadd.f32 1.0, %v4082_v6 }
 0x1f1   :  { %v5399_v49 = vmul.f32 %v2183_v54, %v1688_v38  ;;  %v4096_v10 = vpop.eup %4095  ;;  %4121 = vrcp.f32 %v2004_v8  ;;  %v2189_v38 = vmul.f32 %v5330_v50, %v5877_v3  ;;  %v2236_v25 = vmul.f32 %v2172_v39, %v5322_v32 }
 0x1f2   :  { %v1690_v29 = vpop.f32.mrf.mxu1  ;;  %v4098_v24 = vpop.eup %4097  ;;  %4123 = vrcp.f32 %v2005_v30  ;;  %v1988_v28 = vadd.f32 1.0, %v4096_v10  ;;  %v2237_v50 = vmul.f32 %v2173_v17, %v5334_v62  ;;  %v2190_v30 = vmul.f32 %v5336_v31, %v5142_v58 }
 0x1f3   :  { %v5407_v47 = vmul.f32 %v2184_v61, %v1690_v29  ;;  %v4100_v16 = vpop.eup %4099  ;;  %v2174_v19 = vmul.f32 %v4098_v24, %v5277_v5  ;;  %v1987_v29 = vadd.f32 1.0, %v4094_v1  ;;  %4125 = vrcp.f32 %v2006_v53 }
 0x1f4   :  { %v1692_v9 = vpop.f32.mrf.mxu1  ;;  %v4102_v54 = vpop.eup %4101  ;;  %v1989_v8 = vadd.f32 1.0, %v4100_v16  ;;  %4127 = vrcp.f32 %v1988_v28  ;;  %v2192_v39 = vmul.f32 %v5375_v42, %v5150_v26 }
 0x1f5   :  { %v5401_v57 = vmul.f32 %v2185_v13, %v1692_v9  ;;  %v2171_v13 = vmul.f32 %v4086_v27, %v5256_v14  ;;  %v4104_v20 = vpop.eup %4103  ;;  %v2238_v5 = vmul.f32 %v2174_v19, %v5340_v51  ;;  %v2008_v31 = vadd.f32 1.0, %v4102_v54 }
 0x1f6   :  { %v1694_v36 = vpop.f32.mrf.mxu1  ;;  %v4106_v60 = vpop.eup %4105  ;;  %4129 = vrcp.f32 %v1989_v8  ;;  %v1990_v9 = vadd.f32 1.0, %v4104_v20  ;;  %v2193_v19 = vmul.f32 %v5382_v11, %v5154_v21  ;;  %v5879_v11 = vld [vmem:[#allocation27_spill] sm:$0xff] }
 0x1f7   :  { %v2359_v43 = vpack.c.bf16 %v5401_v57, %v5399_v49  ;;  %v5411_v59 = vmul.f32 %v2186_v4, %v1694_v36  ;;  %v2235_v55 = vmul.f32 %v2171_v13, %v5312_v48  ;;  %v4108_v27 = vpop.eup %4107  ;;  %4131 = vrcp.f32 %v1987_v29  ;;  %v5878_v13 = vld [vmem:[#allocation7_spill] sm:$0xff] }
 0x1f8   :  { %v1698_v12 = vpop.f32.mrf.mxu1  ;;  %v2354_v62 = vpack.c.bf16 %v2238_v5, %v2236_v25  ;;  %v4110_v58 = vpop.eup %4109  ;;  %4133 = vrcp.f32 %v1990_v9  ;;  %v2009_v36 = vadd.f32 1.0, %v4106_v60  ;;  %v5880_v60 = vld [vmem:[#allocation26_spill] sm:$0xff]  ;;  %v5900_v57 = vld [vmem:[#allocation23_spill] sm:$0xff] }
 0x1f9   :  { %v2360_v41 = vpack.c.bf16 %v5411_v59, %v5407_v47  ;;  %v5427_v4 = vmul.f32 %v2187_v33, %v1698_v12  ;;  %v2353_v32 = vpack.c.bf16 %v2237_v50, %v2235_v55  ;;  %v4112_v51 = vpop.eup %4111  ;;  %v2010_v33 = vadd.f32 1.0, %v4108_v27 }
 0x1fa   :  { %v1700_v61 = vpop.f32.mrf.mxu1  ;;  %2649 = vmatprep.mubr.bf16.mxu0 %v2354_v62  ;;  %v4114_v24 = vpop.eup %4113  ;;  %4135 = vrcp.f32 %v2007_v22  ;;  %v2191_v12 = vmul.f32 %v5359_v18, %v5146_v45  ;;  %v2194_v8 = vmul.f32 %v4110_v58, %v5878_v13  ;;  %v5881_v58 = vld [vmem:[#allocation20_spill] sm:$0xff] }
 0x1fb   :  { %v5431_v6 = vmul.f32 %v2188_v2, %v1700_v61  ;;  %2650 = vmatmul.mubr.bf16.gmra.mxu0 %v2353_v32  ;;  %4137 = vrcp.f32 %v2008_v31  ;;  %v2176_v50 = vmul.f32 %v4114_v24, %v5292_v52  ;;  %v3526_v31 = vmul.f32 -1.442695, %v5881_v58 }
 0x1fc   :  { %v1702_v14 = vpop.f32.mrf.mxu1  ;;  %4139 = vrcp.f32 %v2009_v36  ;;  %v5882_v36 = vld [vmem:[#allocation10_spill] sm:$0xff] }
 0x1fd   :  { %v5429_v1 = vmul.f32 %v2189_v38, %v1702_v14  ;;  %v4116_v38 = vpop.eup %4115  ;;  %4141 = vrcp.f32 %v2010_v33  ;;  %v2195_v24 = vmul.f32 %v4112_v51, %v5882_v36  ;;  %v5883_v33 = vld [vmem:[#allocation5_spill] sm:$0xff]  ;;  %v5893_v36 = vld [vmem:[#allocation22_spill] sm:$0xff] }
 0x1fe   :  { %v1704_v53 = vpop.f32.mrf.mxu1  ;;  %v4118_v28 = vpop.eup %4117  ;;  %v2177_v29 = vmul.f32 %v4116_v38, %v5301_v44  ;;  %v2240_v44 = vmul.f32 %v2176_v50, %v5879_v11  ;;  %v5884_v38 = vld [vmem:[#allocation18_spill] sm:$0xff]  ;;  %4143 = vpow2.f32 %v3526_v31 }
 0x1ff   :  { %v2361_v48 = vpack.c.bf16 %v5429_v1, %v5427_v4  ;;  %v5435_v10 = vmul.f32 %v2190_v30, %v1704_v53  ;;  %v4120_v16 = vpop.eup %4119  ;;  %v2175_v20 = vmul.f32 %v4118_v28, %v5287_v34  ;;  %v3524_v28 = vmul.f32 -1.442695, %v5884_v38 }
 0x200   :  { %v1708_v3 = vpop.f32.mrf.mxu1  ;;  %v4122_v54 = vpop.eup %4121  ;;  %v2178_v45 = vmul.f32 %v4120_v16, %v5309_v63  ;;  %v2241_v26 = vmul.f32 %v2177_v29, %v5355_v46 }
 0x201   :  { %v2362_v17 = vpack.c.bf16 %v5435_v10, %v5431_v6  ;;  %v4124_v61 = vpop.eup %4123  ;;  %v5451_v42 = vmul.f32 %v2191_v12, %v1708_v3  ;;  %v2239_v52 = vmul.f32 %v2175_v20, %v5880_v60  ;;  %4145 = vpow2.f32 %v3524_v28 }
 0x202   :  { %v1710_v2 = vpop.f32.mrf.mxu1  ;;  %v2242_v30 = vmul.f32 %v2178_v45, %v5364_v15  ;;  %v4126_v5 = vpop.eup %4125  ;;  %v2197_v3 = vmul.f32 %v4124_v61, %v5883_v33 }
 0x203   :  { %v5458_v22 = vmul.f32 %v2192_v39, %v1710_v2  ;;  %v4128_v46 = vpop.eup %4127  ;;  %v2355_v27 = vpack.c.bf16 %v2241_v26, %v2239_v52  ;;  %v5885_v2 = vld [vmem:[#allocation9_spill] sm:$0xff]  ;;  %v5886_v39 = vld [vmem:[#allocation6_spill] sm:$0xff] }
 0x204   :  { %v1712_v18 = vpop.f32.mrf.mxu1  ;;  %v2356_v9 = vpack.c.bf16 %v2242_v30, %v2240_v44  ;;  %v4130_v14 = vpop.eup %4129  ;;  %v2196_v16 = vmul.f32 %v4122_v54, %v5885_v2  ;;  %v2180_v29 = vmul.f32 %v4128_v46, %v5345_v35  ;;  %v5887_v35 = vld [vmem:[#allocation28_spill] sm:$0xff] }
 0x205   :  { %v5453_v21 = vmul.f32 %v2193_v19, %v1712_v18  ;;  %v4132_v15 = vpop.eup %4131  ;;  %v2181_v12 = vmul.f32 %v4130_v14, %v5353_v40  ;;  %v2198_v19 = vmul.f32 %v4126_v5, %v5886_v39  ;;  %v5890_v14 = vld [vmem:[#allocation15_spill] sm:$0xff] }
 0x206   :  { %v1714_v25 = vpop.f32.mrf.mxu1  ;;  %2659 = vmatprep.mubr.bf16.mxu0 %v2356_v9  ;;  %v4134_v53 = vpop.eup %4133  ;;  %v2179_v50 = vmul.f32 %v4132_v15, %v5327_v23  ;;  %v2244_v40 = vmul.f32 %v2180_v29, %v5380_v0  ;;  %v5889_v9 = vld [vmem:[#allocation4_spill] sm:$0xff]  ;;  %v5891_v15 = vld [vmem:[#allocation17_spill] sm:$0xff] }
 0x207   :  { %v2363_v63 = vpack.c.bf16 %v5453_v21, %v5451_v42  ;;  %v5462_v34 = vmul.f32 %v2194_v8, %v1714_v25  ;;  %2660 = vmatmul.mubr.bf16.gmra.mxu0 %v2355_v27  ;;  %v2182_v13 = vmul.f32 %v4134_v53, %v5367_v56  ;;  %v2245_v51 = vmul.f32 %v2181_v12, %v5386_v37  ;;  %v4136_v61 = vpop.eup %4135  ;;  %v5895_v12 = vld [vmem:[#allocation14_spill] sm:$0xff] }
 0x208   :  { %v1718_v55 = vpop.f32.mrf.mxu1  ;;  %v4138_v26 = vpop.eup %4137  ;;  %v2243_v11 = vmul.f32 %v2179_v50, %v5887_v35  ;;  %v3525_v31 = vmul.f32 -1.442695, %v5891_v15 }
 0x209   :  { %v2364_v62 = vpack.c.bf16 %v5462_v34, %v5458_v22  ;;  %v5477_v45 = vmul.f32 %v2195_v24, %v1718_v55  ;;  %v2246_v54 = vmul.f32 %v2182_v13, %v5389_v7  ;;  %v4140_v44 = vpop.eup %4139  ;;  %v5888_v7 = vld [vmem:[#allocation13_spill] sm:$0xff]  ;;  %v2199_v55 = vmul.f32 %v4136_v61, %v5889_v9 }
 0x20a   :  { %v1720_v32 = vpop.f32.mrf.mxu1  ;;  %v4142_v5 = vpop.eup %4141  ;;  %v2357_v60 = vpack.c.bf16 %v2245_v51, %v2243_v11  ;;  %v3530_v52 = vmul.f32 -1.442695, %v5888_v7  ;;  %v2201_v27 = vmul.f32 %v4140_v44, %v5890_v14  ;;  %v3528_v24 = vmul.f32 -1.442695, %v5893_v36  ;;  %v5899_v11 = vld [vmem:[#allocation19_spill] sm:$0xff] }
 0x20b   :  { %v5484_v56 = vmul.f32 %v2196_v16, %v1720_v32  ;;  %v2358_v30 = vpack.c.bf16 %v2246_v54, %v2244_v40  ;;  %v5892_v32 = vld [vmem:[#allocation12_spill] sm:$0xff]  ;;  %v2202_v2 = vmul.f32 %v4142_v5, %v5895_v12  ;;  %v4144_v61 = vpop.eup %4143  ;;  %v5897_v40 = vld [vmem:[#allocation21_spill] sm:$0xff]  ;;  %v3527_v44 = vmul.f32 -1.442695, %v5899_v11 }
 0x20c   :  { %v1722_v8 = vpop.f32.mrf.mxu1  ;;  %v3523_v53 = vmul.f32 -1.442695, %v5892_v32  ;;  %4147 = vpow2.f32 %v3530_v52  ;;  %v3529_v54 = vmul.f32 -1.442695, %v5897_v40 }
 0x20d   :  { %v5479_v18 = vmul.f32 %v2197_v3, %v1722_v8  ;;  %2669 = vmatprep.mubr.bf16.mxu0 %v2358_v30  ;;  %v5894_v3 = vld [vmem:[#allocation16_spill] sm:$0xff]  ;;  %4149 = vpow2.f32 %v3525_v31 }
 0x20e   :  { %v1724_v20 = vpop.f32.mrf.mxu1  ;;  %v2200_v28 = vmul.f32 %v4138_v26, %v5894_v3  ;;  %4151 = vpow2.f32 %v3528_v24  ;;  %v4146_v35 = vpop.eup %4145 }
 0x20f   :  { %v2365_v23 = vpack.c.bf16 %v5479_v18, %v5477_v45  ;;  %v5488_v37 = vmul.f32 %v2198_v19, %v1724_v20  ;;  %2670 = vmatmul.mubr.bf16.gmra.mxu0 %v2357_v60  ;;  %4153 = vpow2.f32 %v3523_v53  ;;  %v5898_v20 = vld [vmem:[#allocation24_spill] sm:$0xff]  ;;  %v2012_v5 = vadd.f32 1.0, %v4146_v35 }
 0x210   :  { %v1728_v25 = vpop.f32.mrf.mxu1  ;;  %2679 = vmatprep.mubr.bf16.mxu0 %v2360_v41  ;;  %v5896_v41 = vld [vmem:[#allocation25_spill] sm:$0xff]  ;;  %v3532_v26 = vmul.f32 -1.442695, %v5898_v20 }
 0x211   :  { %v2366_v0 = vpack.c.bf16 %v5488_v37, %v5484_v56  ;;  %v5503_v16 = vmul.f32 %v2199_v55, %v1728_v25  ;;  %v3534_v50 = vmul.f32 -1.442695, %v5896_v41  ;;  %v2014_v25 = vadd.f32 1.0, %v4144_v61 }
 0x212   :  { %v1730_v46 = vpop.f32.mrf.mxu1 }
 0x213   :  { %v5507_v29 = vmul.f32 %v2200_v28, %v1730_v46  ;;  %4155 = vpow2.f32 %v3534_v50 }
 0x214   :  { %v1732_v33 = vpop.f32.mrf.mxu1  ;;  %4157 = vpow2.f32 %v3529_v54 }
 0x215   :  { %v5505_v39 = vmul.f32 %v2201_v27, %v1732_v33  ;;  %4159 = vpow2.f32 %v3532_v26 }
 0x216   :  { %v1734_v19 = vpop.f32.mrf.mxu1  ;;  %4161 = vpow2.f32 %v3527_v44 }
 0x217   :  { %v2367_v13 = vpack.c.bf16 %v5505_v39, %v5503_v16  ;;  %v5511_v8 = vmul.f32 %v2202_v2, %v1734_v19  ;;  %2680 = vmatmul.mubr.bf16.gmra.mxu0 %v2359_v43  ;;  %4163 = vrcp.f32 %v2014_v25  ;;  %v3533_v43 = vmul.f32 -1.442695, %v5900_v57 }
 0x218   :  { %v5513_v47 = vpop.f32.mrf.mxu1  ;;  %2689 = vmatprep.mubr.bf16.mxu0 %v2362_v17  ;;  %4165 = vrcp.f32 %v2012_v5  ;;  %v5901_v17 = vld [vmem:[#allocation11_spill] sm:$0xff] }
 0x219   :  { %v2368_v59 = vpack.c.bf16 %v5511_v8, %v5507_v29  ;;  %v4148_v49 = vpop.eup %4147  ;;  %v3531_v52 = vmul.f32 -1.442695, %v5901_v17  ;;  %4167 = vpow2.f32 %v3533_v43 }
 0x21a   :  { %v5518_v51 = vpop.f32.mrf.mxu1  ;;  %v4150_v6 = vpop.eup %4149  ;;  %v2018_v55 = vadd.f32 1.0, %v4148_v49 }
 0x21b   :  { %v4152_v10 = vpop.eup %4151  ;;  %v2013_v14 = vadd.f32 1.0, %v4150_v6  ;;  %4169 = vpow2.f32 %v3531_v52 }
 0x21c   :  { %v5529_v30 = vpop.f32.mrf.mxu1  ;;  %v4154_v9 = vpop.eup %4153  ;;  %v2016_v27 = vadd.f32 1.0, %v4152_v10  ;;  %4171 = vrcp.f32 %v2018_v55 }
 0x21d   :  { %v2011_v31 = vadd.f32 1.0, %v4154_v9  ;;  %4173 = vrcp.f32 %v2013_v14 }
 0x21e   :  { %v1744_v60 = vpop.f32.mrf.mxu1  ;;  %4175 = vrcp.f32 %v2016_v27 }
 0x21f   :  { %2690 = vmatmul.mubr.bf16.gmra.mxu0 %v2361_v48  ;;  %4177 = vrcp.f32 %v2011_v31 }
 0x220   :  { %2699 = vmatprep.mubr.bf16.mxu0 %v2364_v62  ;;  %v5539_v46 = vpop.f32.mrf.mxu1  ;;  %v4156_v1 = vpop.eup %4155 }
 0x221   :  { %v4158_v48 = vpop.eup %4157  ;;  %v2022_v53 = vadd.f32 1.0, %v4156_v1 }
 0x222   :  { %v1750_v4 = vpop.f32.mrf.mxu1  ;;  %v4160_v22 = vpop.eup %4159  ;;  %v2017_v33 = vadd.f32 1.0, %v4158_v48 }
 0x223   :  { %v4162_v62 = vpop.eup %4161  ;;  %v2020_v3 = vadd.f32 1.0, %v4160_v22  ;;  %4179 = vrcp.f32 %v2022_v53  ;;  %v2956_v22 = vld [vmem:[%s5761_s0 + $0x8] sm:$0xff] }
 0x224   :  { %v1752_v34 = vpop.f32.mrf.mxu1  ;;  %v4164_v24 = vpop.eup %4163  ;;  %v2015_v12 = vadd.f32 1.0, %v4162_v62  ;;  %4181 = vrcp.f32 %v2017_v33  ;;  %v2989_v53 = vunpack.c.l.bf16 %v2956_v22  ;;  %v2957_v33 = vld [vmem:[%s5761_s0 + $0x10] sm:$0xff] }
 0x225   :  { %v4166_v28 = vpop.eup %4165  ;;  %v2206_v42 = vmul.f32 %v4164_v24, %v5881_v58  ;;  %4183 = vrcp.f32 %v2020_v3 }
 0x226   :  { %v1754_v2 = vpop.f32.mrf.mxu1  ;;  %v4168_v21 = vpop.eup %4167  ;;  %4185 = vrcp.f32 %v2015_v12 }
 0x227   :  { %2700 = vmatmul.mubr.bf16.gmra.mxu0 %v2363_v63  ;;  %v2204_v63 = vmul.f32 %v4166_v28, %v5884_v38  ;;  %v2270_v56 = vmul.f32 %v2206_v42, %v1744_v60  ;;  %v2021_v8 = vadd.f32 1.0, %v4168_v21  ;;  %v2991_v42 = vunpack.c.l.bf16 %v2957_v33 }
 0x228   :  { %2709 = vmatprep.mubr.bf16.mxu0 %v2366_v0  ;;  %v1758_v37 = vpop.f32.mrf.mxu1  ;;  %v4170_v0 = vpop.eup %4169  ;;  %v2992_v21 = vunpack.c.h.bf16 %v2957_v33 }
 0x229   :  { %v2268_v19 = vmul.f32 %v2204_v63, %v5518_v51  ;;  %v4172_v29 = vpop.eup %4171  ;;  %v2019_v54 = vadd.f32 1.0, %v4170_v0  ;;  %4187 = vrcp.f32 %v2021_v8 }
 0x22a   :  { %v4174_v58 = vpop.eup %4173  ;;  %v1760_v26 = vpop.f32.mrf.mxu1  ;;  %v2210_v18 = vmul.f32 %v4172_v29, %v5888_v7 }
 0x22b   :  { %v2370_v50 = vpack.c.bf16 %v2270_v56, %v2268_v19  ;;  %v4176_v61 = vpop.eup %4175  ;;  %v2205_v38 = vmul.f32 %v4174_v58, %v5891_v15  ;;  %4189 = vrcp.f32 %v2019_v54  ;;  %v2958_v56 = vld [vmem:[%s5761_s0 + $0x18] sm:$0xff] }
 0x22c   :  { %v4178_v45 = vpop.eup %4177  ;;  %v1762_v44 = vpop.f32.mrf.mxu1  ;;  %v2993_v8 = vunpack.c.l.bf16 %v2958_v56  ;;  %v2994_v58 = vunpack.c.h.bf16 %v2958_v56 }
 0x22d   :  { %v2203_v51 = vmul.f32 %v4178_v45, %v5892_v32  ;;  %v2269_v35 = vmul.f32 %v2205_v38, %v5529_v30 }
 0x22e   :  { %v1764_v16 = vpop.f32.mrf.mxu1 }
 0x22f   :  { %2710 = vmatmul.mubr.bf16.gmra.mxu0 %v2365_v23  ;;  %v2208_v23 = vmul.f32 %v4176_v61, %v5893_v36  ;;  %v2267_v7 = vmul.f32 %v2203_v51, %v5513_v47  ;;  %v2959_v61 = vld [vmem:[%s5761_s0 + $0x20] sm:$0xff]  ;;  %v2960_v51 = vld [vmem:[%s5761_s0 + $0x28] sm:$0xff] }
 0x230   :  { %2719 = vmatprep.mubr.bf16.mxu0 %v2368_v59  ;;  %v2274_v59 = vmul.f32 %v2210_v18, %v1754_v2  ;;  %v4180_v5 = vpop.eup %4179  ;;  %v2995_v38 = vunpack.c.l.bf16 %v2959_v61 }
 0x231   :  { %v2272_v25 = vmul.f32 %v2208_v23, %v1750_v4  ;;  %v4182_v15 = vpop.eup %4181  ;;  %v2369_v43 = vpack.c.bf16 %v2269_v35, %v2267_v7  ;;  %v2214_v36 = vmul.f32 %v4180_v5, %v5896_v41  ;;  %v2996_v23 = vunpack.c.h.bf16 %v2959_v61 }
 0x232   :  { %v4184_v49 = vpop.eup %4183  ;;  %v2997_v7 = vunpack.c.l.bf16 %v2960_v51 }
 0x233   :  { %v2372_v60 = vpack.c.bf16 %v2274_v59, %v2272_v25  ;;  %v4186_v39 = vpop.eup %4185  ;;  %v2212_v32 = vmul.f32 %v4184_v49, %v5898_v20  ;;  %v2278_v30 = vmul.f32 %v2214_v36, %v1764_v16 }
 0x234   :  { %v2207_v6 = vmul.f32 %v4186_v39, %v5899_v11  ;;  %v2955_v11 = vld [vmem:[%s5761_s0] sm:$0xff] }
 0x235   :  { %v2276_v52 = vmul.f32 %v2212_v32, %v1760_v26  ;;  %v2987_v1 = vunpack.c.l.bf16 %v2955_v11 }
 0x236   :  { %v2271_v47 = vmul.f32 %v2207_v6, %v5539_v46  ;;  %v4188_v9 = vpop.eup %4187  ;;  %v2988_v46 = vunpack.c.h.bf16 %v2955_v11  ;;  %v2963_v11 = vld [vmem:[%s5761_s0 + $0x40] sm:$0xff] }
 0x237   :  { %2720 = vmatmul.mubr.bf16.gmra.mxu0 %v2367_v13  ;;  %v2209_v13 = vmul.f32 %v4182_v15, %v5897_v40  ;;  %v2374_v55 = vpack.c.bf16 %v2278_v30, %v2276_v52  ;;  %v2213_v31 = vmul.f32 %v4188_v9, %v5900_v57  ;;  %v2998_v15 = vunpack.c.h.bf16 %v2960_v51 }
 0x238   :  { %2729 = vmatprep.mubr.bf16.mxu0 %v2370_v50  ;;  %v4190_v27 = vpop.eup %4189 }
 0x239   :  { %v2273_v10 = vmul.f32 %v2209_v13, %v1752_v34  ;;  %v2211_v41 = vmul.f32 %v4190_v27, %v5901_v17  ;;  %v2277_v40 = vmul.f32 %v2213_v31, %v1762_v44  ;;  %v2990_v17 = vunpack.c.h.bf16 %v2956_v22  ;;  %v2961_v13 = vld [vmem:[%s5761_s0 + $0x30] sm:$0xff]  ;;  %v2964_v22 = vld [vmem:[%s5761_s0 + $0x48] sm:$0xff] }
 0x23a   :  { %v2999_v32 = vunpack.c.l.bf16 %v2961_v13  ;;  %v3000_v30 = vunpack.c.h.bf16 %v2961_v13 }
 0x23b   :  { %v2371_v14 = vpack.c.bf16 %v2273_v10, %v2271_v47  ;;  %v2275_v20 = vmul.f32 %v2211_v41, %v1758_v37  ;;  %v2962_v10 = vld [vmem:[%s5761_s0 + $0x38] sm:$0xff] }
 0x23d   :  { %v2373_v4 = vpack.c.bf16 %v2277_v40, %v2275_v20 }
 0x23f   :  { %2730 = vmatmul.mubr.bf16.gmra.mxu0 %v2369_v43 }
 0x240   :  { %2739 = vmatprep.mubr.bf16.mxu0 %v2372_v60 }
 0x247   :  { %2740 = vmatmul.mubr.bf16.gmra.mxu0 %v2371_v14  ;;  %v3002_v14 = vunpack.c.h.bf16 %v2962_v10 }
 0x248   :  { %2749 = vmatprep.mubr.bf16.mxu0 %v2374_v55  ;;  %v3001_v55 = vunpack.c.l.bf16 %v2962_v10 }
 0x24f   :  { %2750 = vmatmul.mubr.bf16.gmra.mxu0 %v2373_v4 }
 0x27c   :  { %v2601_v48 = vpop.f32.mrf.mxu0 }
 0x27d   :  { %v3051_v34 = vadd.f32 %v2987_v1, %v2601_v48  ;;  %v3003_v1 = vunpack.c.l.bf16 %v2963_v11 }
 0x27e   :  { %v2603_v57 = vpop.f32.mrf.mxu0 }
 0x27f   :  { %v3052_v62 = vadd.f32 %v2988_v46, %v2603_v57  ;;  %v3004_v46 = vunpack.c.h.bf16 %v2963_v11 }
 0x280   :  { %v2605_v24 = vpop.f32.mrf.mxu0 }
 0x281   :  { %v3631_v3 = vpack.c.bf16 %v3052_v62, %v3051_v34  ;;  %v3053_v12 = vadd.f32 %v2989_v53, %v2605_v24  ;;  %v3005_v53 = vunpack.c.l.bf16 %v2964_v22 }
 0x282   :  { %v2607_v28 = vpop.f32.mrf.mxu0 }
 0x283   :  { %3307 = vst [vmem:[%s5766_s5] sm:$0xff] %v3631_v3  ;;  %v3054_v2 = vadd.f32 %v2990_v17, %v2607_v28  ;;  %v3006_v17 = vunpack.c.h.bf16 %v2964_v22 }
 0x284   :  { %v2611_v63 = vpop.f32.mrf.mxu0 }
 0x285   :  { %v3632_v37 = vpack.c.bf16 %v3054_v2, %v3053_v12  ;;  %v3055_v19 = vadd.f32 %v2991_v42, %v2611_v63  ;;  %v2965_v42 = vld [vmem:[%s5761_s0 + $0x50] sm:$0xff] }
 0x286   :  { %v2613_v0 = vpop.f32.mrf.mxu0  ;;  %v3008_v63 = vunpack.c.h.bf16 %v2965_v42 }
 0x287   :  { %3308 = vst [vmem:[%s5766_s5 + $0x8] sm:$0xff] %v3632_v37  ;;  %v3056_v29 = vadd.f32 %v2992_v21, %v2613_v0  ;;  %v3007_v21 = vunpack.c.l.bf16 %v2965_v42  ;;  %v2966_v37 = vld [vmem:[%s5761_s0 + $0x58] sm:$0xff] }
 0x288   :  { %v2615_v50 = vpop.f32.mrf.mxu0 }
 0x289   :  { %v3633_v54 = vpack.c.bf16 %v3056_v29, %v3055_v19  ;;  %v3057_v45 = vadd.f32 %v2993_v8, %v2615_v50  ;;  %v3009_v8 = vunpack.c.l.bf16 %v2966_v37 }
 0x28a   :  { %v2617_v26 = vpop.f32.mrf.mxu0 }
 0x28b   :  { %3309 = vst [vmem:[%s5766_s5 + $0x10] sm:$0xff] %v3633_v54  ;;  %v3058_v18 = vadd.f32 %v2994_v58, %v2617_v26  ;;  %v3010_v58 = vunpack.c.h.bf16 %v2966_v37 }
 0x28c   :  { %v2621_v59 = vpop.f32.mrf.mxu0 }
 0x28d   :  { %v3634_v35 = vpack.c.bf16 %v3058_v18, %v3057_v45  ;;  %v3059_v25 = vadd.f32 %v2995_v38, %v2621_v59  ;;  %v2967_v18 = vld [vmem:[%s5761_s0 + $0x60] sm:$0xff] }
 0x28e   :  { %v2623_v44 = vpop.f32.mrf.mxu0  ;;  %v3012_v59 = vunpack.c.h.bf16 %v2967_v18 }
 0x28f   :  { %3310 = vst [vmem:[%s5766_s5 + $0x18] sm:$0xff] %v3634_v35  ;;  %v3060_v5 = vadd.f32 %v2996_v23, %v2623_v44  ;;  %v3011_v23 = vunpack.c.l.bf16 %v2967_v18  ;;  %v2968_v35 = vld [vmem:[%s5761_s0 + $0x68] sm:$0xff] }
 0x290   :  { %v2625_v60 = vpop.f32.mrf.mxu0 }
 0x291   :  { %v3635_v49 = vpack.c.bf16 %v3060_v5, %v3059_v25  ;;  %v3061_v16 = vadd.f32 %v2997_v7, %v2625_v60  ;;  %v3013_v7 = vunpack.c.l.bf16 %v2968_v35 }
 0x292   :  { %v2627_v43 = vpop.f32.mrf.mxu0 }
 0x293   :  { %3311 = vst [vmem:[%s5766_s5 + $0x20] sm:$0xff] %v3635_v49  ;;  %v3062_v39 = vadd.f32 %v2998_v15, %v2627_v43  ;;  %v3014_v15 = vunpack.c.h.bf16 %v2968_v35  ;;  %v2969_v49 = vld [vmem:[%s5761_s0 + $0x70] sm:$0xff] }
 0x294   :  { %v3015_v13 = vunpack.c.l.bf16 %v2969_v49 }
 0x295   :  { %v3636_v36 = vpack.c.bf16 %v3062_v39, %v3061_v16 }
 0x297   :  { %3312 = vst [vmem:[%s5766_s5 + $0x28] sm:$0xff] %v3636_v36 }
 0x29a   :  { %v2631_v6 = vpop.f32.mrf.mxu0 }
 0x29b   :  { %v3063_v47 = vadd.f32 %v2999_v32, %v2631_v6  ;;  %v3016_v32 = vunpack.c.h.bf16 %v2969_v49  ;;  %v2970_v6 = vld [vmem:[%s5761_s0 + $0x78] sm:$0xff]  ;;  %v2977_v49 = vld [vmem:[%s5761_s0 + $0xb0] sm:$0xff] }
 0x29c   :  { %v2633_v52 = vpop.f32.mrf.mxu0 }
 0x29d   :  { %v3064_v9 = vadd.f32 %v3000_v30, %v2633_v52 }
 0x29e   :  { %v2635_v27 = vpop.f32.mrf.mxu0 }
 0x29f   :  { %v3637_v31 = vpack.c.bf16 %v3064_v9, %v3063_v47  ;;  %v3065_v40 = vadd.f32 %v3001_v55, %v2635_v27  ;;  %v3017_v55 = vunpack.c.l.bf16 %v2970_v6 }
 0x2a0   :  { %v2637_v41 = vpop.f32.mrf.mxu0 }
 0x2a1   :  { %3313 = vst [vmem:[%s5766_s5 + $0x30] sm:$0xff] %v3637_v31  ;;  %v3066_v20 = vadd.f32 %v3002_v14, %v2637_v41  ;;  %v3018_v14 = vunpack.c.h.bf16 %v2970_v6  ;;  %v2971_v31 = vld [vmem:[%s5761_s0 + $0x80] sm:$0xff]  ;;  %v2978_v6 = vld [vmem:[%s5761_s0 + $0xb8] sm:$0xff] }
 0x2a2   :  { %v3019_v11 = vunpack.c.l.bf16 %v2971_v31 }
 0x2a3   :  { %v3638_v4 = vpack.c.bf16 %v3066_v20, %v3065_v40 }
 0x2a5   :  { %3314 = vst [vmem:[%s5766_s5 + $0x38] sm:$0xff] %v3638_v4 }
 0x2a9   :  { %v2641_v48 = vpop.f32.mrf.mxu0 }
 0x2aa   :  { %v3067_v34 = vadd.f32 %v3003_v1, %v2641_v48  ;;  %v3020_v1 = vunpack.c.h.bf16 %v2971_v31  ;;  %v2972_v48 = vld [vmem:[%s5761_s0 + $0x88] sm:$0xff]  ;;  %v2979_v31 = vld [vmem:[%s5761_s0 + $0xc0] sm:$0xff] }
 0x2ab   :  { %v2643_v57 = vpop.f32.mrf.mxu0 }
 0x2ac   :  { %v3068_v62 = vadd.f32 %v3004_v46, %v2643_v57 }
 0x2ad   :  { %v2645_v24 = vpop.f32.mrf.mxu0 }
 0x2ae   :  { %v3639_v33 = vpack.c.bf16 %v3068_v62, %v3067_v34  ;;  %v3069_v28 = vadd.f32 %v3005_v53, %v2645_v24  ;;  %v3021_v53 = vunpack.c.l.bf16 %v2972_v48 }
 0x2af   :  { %v2647_v3 = vpop.f32.mrf.mxu0 }
 0x2b0   :  { %3315 = vst [vmem:[%s5766_s5 + $0x40] sm:$0xff] %v3639_v33  ;;  %v3070_v12 = vadd.f32 %v3006_v17, %v2647_v3  ;;  %v3022_v17 = vunpack.c.h.bf16 %v2972_v48  ;;  %v2973_v33 = vld [vmem:[%s5761_s0 + $0x90] sm:$0xff]  ;;  %v2980_v48 = vld [vmem:[%s5761_s0 + $0xc8] sm:$0xff] }
 0x2b1   :  { %v3023_v42 = vunpack.c.l.bf16 %v2973_v33 }
 0x2b2   :  { %v3640_v2 = vpack.c.bf16 %v3070_v12, %v3069_v28 }
 0x2b4   :  { %3316 = vst [vmem:[%s5766_s5 + $0x48] sm:$0xff] %v3640_v2 }
 0x2bb   :  { %v2651_v56 = vpop.f32.mrf.mxu0 }
 0x2bc   :  { %v3071_v19 = vadd.f32 %v3007_v21, %v2651_v56  ;;  %v3024_v21 = vunpack.c.h.bf16 %v2973_v33  ;;  %v2974_v56 = vld [vmem:[%s5761_s0 + $0x98] sm:$0xff]  ;;  %v2981_v33 = vld [vmem:[%s5761_s0 + $0xd0] sm:$0xff] }
 0x2bd   :  { %v2653_v0 = vpop.f32.mrf.mxu0 }
 0x2be   :  { %v3072_v29 = vadd.f32 %v3008_v63, %v2653_v0 }
 0x2bf   :  { %v2655_v50 = vpop.f32.mrf.mxu0 }
 0x2c0   :  { %v3641_v61 = vpack.c.bf16 %v3072_v29, %v3071_v19  ;;  %v3073_v26 = vadd.f32 %v3009_v8, %v2655_v50  ;;  %v3025_v8 = vunpack.c.l.bf16 %v2974_v56 }
 0x2c1   :  { %v2657_v54 = vpop.f32.mrf.mxu0 }
 0x2c2   :  { %3317 = vst [vmem:[%s5766_s5 + $0x50] sm:$0xff] %v3641_v61  ;;  %v3074_v45 = vadd.f32 %v3010_v58, %v2657_v54  ;;  %v3026_v58 = vunpack.c.h.bf16 %v2974_v56  ;;  %v2975_v61 = vld [vmem:[%s5761_s0 + $0xa0] sm:$0xff]  ;;  %v2982_v56 = vld [vmem:[%s5761_s0 + $0xd8] sm:$0xff] }
 0x2c4   :  { %v3642_v38 = vpack.c.bf16 %v3074_v45, %v3073_v26 }
 0x2c6   :  { %3318 = vst [vmem:[%s5766_s5 + $0x58] sm:$0xff] %v3642_v38  ;;  %v3027_v38 = vunpack.c.l.bf16 %v2975_v61 }
 0x2c7   :  { %v2661_v51 = vpop.f32.mrf.mxu0 }
 0x2c8   :  { %v3075_v25 = vadd.f32 %v3011_v23, %v2661_v51  ;;  %v3028_v23 = vunpack.c.h.bf16 %v2975_v61  ;;  %v2976_v51 = vld [vmem:[%s5761_s0 + $0xa8] sm:$0xff]  ;;  %v2983_v61 = vld [vmem:[%s5761_s0 + $0xe0] sm:$0xff] }
 0x2c9   :  { %v2663_v44 = vpop.f32.mrf.mxu0 }
 0x2ca   :  { %v3076_v5 = vadd.f32 %v3012_v59, %v2663_v44 }
 0x2cb   :  { %v2665_v60 = vpop.f32.mrf.mxu0 }
 0x2cc   :  { %v3643_v43 = vpack.c.bf16 %v3076_v5, %v3075_v25  ;;  %v3077_v39 = vadd.f32 %v3013_v7, %v2665_v60  ;;  %v3029_v7 = vunpack.c.l.bf16 %v2976_v51 }
 0x2cd   :  { %v2667_v16 = vpop.f32.mrf.mxu0 }
 0x2ce   :  { %3319 = vst [vmem:[%s5766_s5 + $0x60] sm:$0xff] %v3643_v43  ;;  %v3078_v36 = vadd.f32 %v3014_v15, %v2667_v16  ;;  %v3030_v15 = vunpack.c.h.bf16 %v2976_v51  ;;  %v2984_v51 = vld [vmem:[%s5761_s0 + $0xe8] sm:$0xff] }
 0x2cf   :  { %v2671_v30 = vpop.f32.mrf.mxu0 }
 0x2d0   :  { %v3644_v10 = vpack.c.bf16 %v3078_v36, %v3077_v39  ;;  %v3079_v47 = vadd.f32 %v3015_v13, %v2671_v30  ;;  %v3031_v13 = vunpack.c.l.bf16 %v2977_v49 }
 0x2d1   :  { %v2673_v52 = vpop.f32.mrf.mxu0 }
 0x2d2   :  { %3320 = vst [vmem:[%s5766_s5 + $0x68] sm:$0xff] %v3644_v10  ;;  %v3080_v9 = vadd.f32 %v3016_v32, %v2673_v52  ;;  %v3032_v32 = vunpack.c.h.bf16 %v2977_v49  ;;  %v2985_v49 = vld [vmem:[%s5761_s0 + $0xf0] sm:$0xff] }
 0x2d3   :  { %v2675_v27 = vpop.f32.mrf.mxu0 }
 0x2d4   :  { %v3645_v41 = vpack.c.bf16 %v3080_v9, %v3079_v47  ;;  %v3081_v20 = vadd.f32 %v3017_v55, %v2675_v27  ;;  %v3033_v55 = vunpack.c.l.bf16 %v2978_v6 }
 0x2d5   :  { %v2677_v40 = vpop.f32.mrf.mxu0 }
 0x2d6   :  { %3321 = vst [vmem:[%s5766_s5 + $0x70] sm:$0xff] %v3645_v41  ;;  %v3082_v4 = vadd.f32 %v3018_v14, %v2677_v40  ;;  %v3034_v14 = vunpack.c.h.bf16 %v2978_v6  ;;  %v2986_v6 = vld [vmem:[%s5761_s0 + $0xf8] sm:$0xff] }
 0x2d7   :  { %v2681_v46 = vpop.f32.mrf.mxu0 }
 0x2d8   :  { %v3646_v22 = vpack.c.bf16 %v3082_v4, %v3081_v20  ;;  %v3083_v34 = vadd.f32 %v3019_v11, %v2681_v46  ;;  %v3035_v11 = vunpack.c.l.bf16 %v2979_v31 }
 0x2d9   :  { %v2683_v57 = vpop.f32.mrf.mxu0 }
 0x2da   :  { %3322 = vst [vmem:[%s5766_s5 + $0x78] sm:$0xff] %v3646_v22  ;;  %v3084_v62 = vadd.f32 %v3020_v1, %v2683_v57  ;;  %v3036_v1 = vunpack.c.h.bf16 %v2979_v31 }
 0x2db   :  { %v2685_v24 = vpop.f32.mrf.mxu0 }
 0x2dc   :  { %v3647_v3 = vpack.c.bf16 %v3084_v62, %v3083_v34  ;;  %v3085_v12 = vadd.f32 %v3021_v53, %v2685_v24  ;;  %v3037_v53 = vunpack.c.l.bf16 %v2980_v48 }
 0x2dd   :  { %v2687_v28 = vpop.f32.mrf.mxu0 }
 0x2de   :  { %3323 = vst [vmem:[%s5766_s5 + $0x80] sm:$0xff] %v3647_v3  ;;  %v3086_v2 = vadd.f32 %v3022_v17, %v2687_v28  ;;  %v3038_v17 = vunpack.c.h.bf16 %v2980_v48 }
 0x2df   :  { %v2691_v63 = vpop.f32.mrf.mxu0 }
 0x2e0   :  { %v3648_v37 = vpack.c.bf16 %v3086_v2, %v3085_v12  ;;  %v3087_v19 = vadd.f32 %v3023_v42, %v2691_v63  ;;  %v3039_v42 = vunpack.c.l.bf16 %v2981_v33 }
 0x2e1   :  { %v2693_v0 = vpop.f32.mrf.mxu0 }
 0x2e2   :  { %3324 = vst [vmem:[%s5766_s5 + $0x88] sm:$0xff] %v3648_v37  ;;  %v3088_v29 = vadd.f32 %v3024_v21, %v2693_v0  ;;  %v3040_v21 = vunpack.c.h.bf16 %v2981_v33 }
 0x2e3   :  { %v2695_v50 = vpop.f32.mrf.mxu0 }
 0x2e4   :  { %v3649_v54 = vpack.c.bf16 %v3088_v29, %v3087_v19  ;;  %v3089_v45 = vadd.f32 %v3025_v8, %v2695_v50  ;;  %v3041_v8 = vunpack.c.l.bf16 %v2982_v56 }
 0x2e5   :  { %v2697_v26 = vpop.f32.mrf.mxu0 }
 0x2e6   :  { %3325 = vst [vmem:[%s5766_s5 + $0x90] sm:$0xff] %v3649_v54  ;;  %v3090_v18 = vadd.f32 %v3026_v58, %v2697_v26  ;;  %v3042_v58 = vunpack.c.h.bf16 %v2982_v56 }
 0x2e7   :  { %v2701_v59 = vpop.f32.mrf.mxu0 }
 0x2e8   :  { %v3650_v35 = vpack.c.bf16 %v3090_v18, %v3089_v45  ;;  %v3091_v25 = vadd.f32 %v3027_v38, %v2701_v59  ;;  %v3043_v38 = vunpack.c.l.bf16 %v2983_v61 }
 0x2e9   :  { %v2703_v44 = vpop.f32.mrf.mxu0 }
 0x2ea   :  { %3326 = vst [vmem:[%s5766_s5 + $0x98] sm:$0xff] %v3650_v35  ;;  %v3092_v5 = vadd.f32 %v3028_v23, %v2703_v44  ;;  %v3044_v23 = vunpack.c.h.bf16 %v2983_v61 }
 0x2eb   :  { %v2705_v60 = vpop.f32.mrf.mxu0 }
 0x2ec   :  { %v3651_v43 = vpack.c.bf16 %v3092_v5, %v3091_v25  ;;  %v3093_v39 = vadd.f32 %v3029_v7, %v2705_v60  ;;  %v3045_v7 = vunpack.c.l.bf16 %v2984_v51 }
 0x2ed   :  { %v2707_v16 = vpop.f32.mrf.mxu0 }
 0x2ee   :  { %3327 = vst [vmem:[%s5766_s5 + $0xa0] sm:$0xff] %v3651_v43  ;;  %v3094_v36 = vadd.f32 %v3030_v15, %v2707_v16  ;;  %v3046_v15 = vunpack.c.h.bf16 %v2984_v51 }
 0x2ef   :  { %v2711_v30 = vpop.f32.mrf.mxu0 }
 0x2f0   :  { %v3652_v10 = vpack.c.bf16 %v3094_v36, %v3093_v39  ;;  %v3095_v47 = vadd.f32 %v3031_v13, %v2711_v30  ;;  %v3047_v13 = vunpack.c.l.bf16 %v2985_v49 }
 0x2f1   :  { %v2713_v52 = vpop.f32.mrf.mxu0 }
 0x2f2   :  { %3328 = vst [vmem:[%s5766_s5 + $0xa8] sm:$0xff] %v3652_v10  ;;  %v3096_v9 = vadd.f32 %v3032_v32, %v2713_v52  ;;  %v3048_v32 = vunpack.c.h.bf16 %v2985_v49 }
 0x2f3   :  { %v2715_v27 = vpop.f32.mrf.mxu0 }
 0x2f4   :  { %v3653_v41 = vpack.c.bf16 %v3096_v9, %v3095_v47  ;;  %v3097_v20 = vadd.f32 %v3033_v55, %v2715_v27  ;;  %v3049_v55 = vunpack.c.l.bf16 %v2986_v6 }
 0x2f5   :  { %v2717_v40 = vpop.f32.mrf.mxu0 }
 0x2f6   :  { %3329 = vst [vmem:[%s5766_s5 + $0xb0] sm:$0xff] %v3653_v41  ;;  %v3098_v4 = vadd.f32 %v3034_v14, %v2717_v40  ;;  %v3050_v14 = vunpack.c.h.bf16 %v2986_v6 }
 0x2f7   :  { %v2721_v46 = vpop.f32.mrf.mxu0 }
 0x2f8   :  { %v3654_v22 = vpack.c.bf16 %v3098_v4, %v3097_v20  ;;  %v3099_v34 = vadd.f32 %v3035_v11, %v2721_v46 }
 0x2f9   :  { %v2723_v57 = vpop.f32.mrf.mxu0 }
 0x2fa   :  { %3330 = vst [vmem:[%s5766_s5 + $0xb8] sm:$0xff] %v3654_v22  ;;  %v3100_v62 = vadd.f32 %v3036_v1, %v2723_v57 }
 0x2fb   :  { %v2725_v24 = vpop.f32.mrf.mxu0 }
 0x2fc   :  { %v3655_v3 = vpack.c.bf16 %v3100_v62, %v3099_v34  ;;  %v3101_v12 = vadd.f32 %v3037_v53, %v2725_v24 }
 0x2fd   :  { %v2727_v28 = vpop.f32.mrf.mxu0 }
 0x2fe   :  { %3331 = vst [vmem:[%s5766_s5 + $0xc0] sm:$0xff] %v3655_v3  ;;  %v3102_v2 = vadd.f32 %v3038_v17, %v2727_v28 }
 0x2ff   :  { %v2731_v63 = vpop.f32.mrf.mxu0 }
 0x300   :  { %v3656_v37 = vpack.c.bf16 %v3102_v2, %v3101_v12  ;;  %v3103_v19 = vadd.f32 %v3039_v42, %v2731_v63 }
 0x301   :  { %v2733_v0 = vpop.f32.mrf.mxu0 }
 0x302   :  { %3332 = vst [vmem:[%s5766_s5 + $0xc8] sm:$0xff] %v3656_v37  ;;  %v3104_v29 = vadd.f32 %v3040_v21, %v2733_v0 }
 0x303   :  { %v2735_v50 = vpop.f32.mrf.mxu0 }
 0x304   :  { %v3657_v54 = vpack.c.bf16 %v3104_v29, %v3103_v19  ;;  %v3105_v45 = vadd.f32 %v3041_v8, %v2735_v50 }
 0x305   :  { %v2737_v26 = vpop.f32.mrf.mxu0 }
 0x306   :  { %3333 = vst [vmem:[%s5766_s5 + $0xd0] sm:$0xff] %v3657_v54  ;;  %v3106_v18 = vadd.f32 %v3042_v58, %v2737_v26 }
 0x307   :  { %v2741_v59 = vpop.f32.mrf.mxu0 }
 0x308   :  { %v3658_v35 = vpack.c.bf16 %v3106_v18, %v3105_v45  ;;  %v3107_v25 = vadd.f32 %v3043_v38, %v2741_v59 }
 0x309   :  { %v2743_v44 = vpop.f32.mrf.mxu0 }
 0x30a   :  { %3334 = vst [vmem:[%s5766_s5 + $0xd8] sm:$0xff] %v3658_v35  ;;  %v3108_v5 = vadd.f32 %v3044_v23, %v2743_v44 }
 0x30b   :  { %v2745_v60 = vpop.f32.mrf.mxu0 }
 0x30c   :  { %v3659_v43 = vpack.c.bf16 %v3108_v5, %v3107_v25  ;;  %v3109_v39 = vadd.f32 %v3045_v7, %v2745_v60 }
 0x30d   :  { %v2747_v16 = vpop.f32.mrf.mxu0 }
 0x30e   :  { %3335 = vst [vmem:[%s5766_s5 + $0xe0] sm:$0xff] %v3659_v43  ;;  %v3110_v36 = vadd.f32 %v3046_v15, %v2747_v16 }
 0x30f   :  { %v2751_v30 = vpop.f32.mrf.mxu0 }
 0x310   :  { %v3660_v10 = vpack.c.bf16 %v3110_v36, %v3109_v39  ;;  %v3111_v47 = vadd.f32 %v3047_v13, %v2751_v30 }
 0x311   :  { %v2753_v52 = vpop.f32.mrf.mxu0 }
 0x312   :  { %3336 = vst [vmem:[%s5766_s5 + $0xe8] sm:$0xff] %v3660_v10  ;;  %v3112_v9 = vadd.f32 %v3048_v32, %v2753_v52 }
 0x313   :  { %v2755_v27 = vpop.f32.mrf.mxu0 }
 0x314   :  { %v3661_v31 = vpack.c.bf16 %v3112_v9, %v3111_v47  ;;  %v3113_v40 = vadd.f32 %v3049_v55, %v2755_v27 }
 0x315   :  { %v2757_v41 = vpop.f32.mrf.mxu0 }
 0x316   :  { %3337 = vst [vmem:[%s5766_s5 + $0xf0] sm:$0xff] %v3661_v31  ;;  %v3114_v20 = vadd.f32 %v3050_v14, %v2757_v41 }
 0x318   :  { %v3662_v4 = vpack.c.bf16 %v3114_v20, %v3113_v40 }
 0x31a   :  { %3338 = vst [vmem:[%s5766_s5 + $0xf8] sm:$0xff] %v3662_v4 }

// kernel: _lambda_.17
= control target key start
LH: loop header
LB: loop body
LE: loop exit
PB: predicated region body
PF: predicated region fallthrough
CT: control target
= control target key end

     0   :  { %s2924_s0 = inlined_call_operand.vmem [shape: bf16[256,256], index: 0, kind: input, shape index: {}]   ;;  %s2925_s1 = inlined_call_operand.vmem [shape: f32[1,256], index: 1, kind: input, shape index: {}]   ;;  %s2926_s2 = inlined_call_operand.vmem [shape: bf16[256,512], index: 2, kind: input, shape index: {}]   ;;  %s2927_s3 = inlined_call_operand.hbm [shape: f32[256,512], index: 3, kind: output, shape index: {}]  }
   0x1   :  { %v19_v0 = vld [vmem:[%s2924_s0] sm:$0xff]  ;;  %v21_v1 = vld [vmem:[%s2924_s0 + $0x10] sm:$0xff]  ;;  %v20_v2 = vld [vmem:[%s2924_s0 + $0x8] sm:$0xff] }
   0x2   :  { %v2251_v3 = vunpack.c.l.bf16 %v19_v0  ;;  %v2253_v4 = vunpack.c.h.bf16 %v19_v0  ;;  %v2255_v5 = vunpack.c.l.bf16 %v21_v1  ;;  %v2257_v6 = vunpack.c.h.bf16 %v21_v1  ;;  %v22_v7 = vld [vmem:[%s2924_s0 + $0x18] sm:$0xff]  ;;  %v24_v12 = vld [vmem:[%s2924_s0 + $0x28] sm:$0xff]  ;;  %v23_v17 = vld [vmem:[%s2924_s0 + $0x20] sm:$0xff] }
   0x3   :  { %v2262_v8 = vunpack.c.l.bf16 %v20_v2  ;;  %v2264_v9 = vunpack.c.h.bf16 %v20_v2  ;;  %v2266_v10 = vunpack.c.l.bf16 %v22_v7  ;;  %v2268_v11 = vunpack.c.h.bf16 %v22_v7  ;;  %v26_v22 = vld [vmem:[%s2924_s0 + $0x38] sm:$0xff]  ;;  %v25_v27 = vld [vmem:[%s2924_s0 + $0x30] sm:$0xff]  ;;  %v28_v32 = vld [vmem:[%s2924_s0 + $0x48] sm:$0xff] }
   0x4   :  { %v115_v13 = vmul.f32 %v2251_v3, %v2251_v3  ;;  %v116_v14 = vmul.f32 %v2253_v4, %v2253_v4  ;;  %v119_v15 = vmul.f32 %v2255_v5, %v2255_v5  ;;  %v120_v16 = vmul.f32 %v2257_v6, %v2257_v6  ;;  %v27_v41 = vld [vmem:[%s2924_s0 + $0x40] sm:$0xff]  ;;  %v30_v42 = vld [vmem:[%s2924_s0 + $0x58] sm:$0xff]  ;;  %v29_v46 = vld [vmem:[%s2924_s0 + $0x50] sm:$0xff] }
   0x5   :  { %v117_v18 = vmul.f32 %v2262_v8, %v2262_v8  ;;  %v118_v19 = vmul.f32 %v2264_v9, %v2264_v9  ;;  %v121_v20 = vmul.f32 %v2266_v10, %v2266_v10  ;;  %v122_v21 = vmul.f32 %v2268_v11, %v2268_v11  ;;  %v2037_v47 = vld [vmem:[%s2926_s2 + $0xe4] ss:$16 sps:$4 sm:$0xff]   ;;  %v2039_v51 = vld [vmem:[%s2926_s2 + $0xec] ss:$16 sps:$4 sm:$0xff]   ;;  %v2041_v52 = vld [vmem:[%s2926_s2 + $0xe0] ss:$16 sps:$4 sm:$0xff]  }
   0x6   :  { %v179_v23 = vadd.f32 %v116_v14, %v115_v13  ;;  %v185_v24 = vadd.f32 %v120_v16, %v119_v15  ;;  %v2295_v25 = vunpack.c.l.bf16 %v24_v12  ;;  %v2297_v26 = vunpack.c.h.bf16 %v24_v12  ;;  %v2042_v57 = vld [vmem:[%s2926_s2 + $0xe8] ss:$16 sps:$4 sm:$0xff]   ;;  %1312 = vmatprep.subr.bf16.mxu0 %v2037_v47  ;;  %1505 = vmatprep.subr.bf16.mxu1 %v2039_v51  ;;  %v2043_v58 = vld [vmem:[%s2926_s2 + $0xc4] ss:$16 sps:$4 sm:$0xff]   ;;  %v2045_v62 = vld [vmem:[%s2926_s2 + $0xcc] ss:$16 sps:$4 sm:$0xff]  }
   0x7   :  { %v182_v28 = vadd.f32 %v118_v19, %v117_v18  ;;  %v188_v29 = vadd.f32 %v122_v21, %v121_v20  ;;  %v2302_v30 = vunpack.c.l.bf16 %v23_v17  ;;  %v2304_v31 = vunpack.c.h.bf16 %v23_v17  ;;  %1313 = vmatpush1.bf16.msra.mxu0 %v2041_v52  ;;  %1506 = vmatpush1.bf16.msra.mxu1 %v2042_v57  ;;  %v2047_v63 = vld [vmem:[%s2926_s2 + $0xc0] ss:$16 sps:$4 sm:$0xff]   ;;  %v2048_v0 = vld [vmem:[%s2926_s2 + $0xc8] ss:$16 sps:$4 sm:$0xff]   ;;  %v2049_v18 = vld [vmem:[%s2926_s2 + $0xa4] ss:$16 sps:$4 sm:$0xff]  }
   0x8   :  { %180 = vadd.xlane.f32.xlu0 %v179_v23  ;;  %186 = vadd.xlane.f32.xlu1 %v185_v24  ;;  %v125_v33 = vmul.f32 %v2295_v25, %v2295_v25  ;;  %v126_v34 = vmul.f32 %v2297_v26, %v2297_v26  ;;  %v2313_v35 = vunpack.c.l.bf16 %v26_v22  ;;  %v2315_v36 = vunpack.c.h.bf16 %v26_v22  ;;  %v32_v13 = vld [vmem:[%s2924_s0 + $0x68] sm:$0xff]  ;;  %v31_v14 = vld [vmem:[%s2924_s0 + $0x60] sm:$0xff]  ;;  %v34_v19 = vld [vmem:[%s2924_s0 + $0x78] sm:$0xff] }
   0x9   :  { %v123_v37 = vmul.f32 %v2302_v30, %v2302_v30  ;;  %v124_v38 = vmul.f32 %v2304_v31, %v2304_v31  ;;  %v2321_v39 = vunpack.c.l.bf16 %v25_v27  ;;  %v2323_v40 = vunpack.c.h.bf16 %v25_v27  ;;  %1314 = vmatprep.subr.bf16.mxu0 %v2043_v58  ;;  %1507 = vmatprep.subr.bf16.mxu1 %v2045_v62  ;;  %v2051_v20 = vld [vmem:[%s2926_s2 + $0xac] ss:$16 sps:$4 sm:$0xff]   ;;  %v2053_v21 = vld [vmem:[%s2926_s2 + $0xa0] ss:$16 sps:$4 sm:$0xff]   ;;  %v2054_v27 = vld [vmem:[%s2926_s2 + $0xa8] ss:$16 sps:$4 sm:$0xff]  }
   0xa   :  { %v129_v43 = vmul.f32 %v2313_v35, %v2313_v35  ;;  %v130_v44 = vmul.f32 %v2315_v36, %v2315_v36  ;;  %v2335_v45 = vunpack.c.l.bf16 %v28_v32  ;;  %v194_v48 = vadd.f32 %v126_v34, %v125_v33  ;;  %v2055_v33 = vld [vmem:[%s2926_s2 + $0x84] ss:$16 sps:$4 sm:$0xff]   ;;  %v2063_v58 = vld [vmem:[%s2926_s2 + $0x6c] ss:$16 sps:$4 sm:$0xff]  }
   0xb   :  { %v127_v49 = vmul.f32 %v2321_v39, %v2321_v39  ;;  %v128_v50 = vmul.f32 %v2323_v40, %v2323_v40  ;;  %v191_v53 = vadd.f32 %v124_v38, %v123_v37  ;;  %v2353_v54 = vunpack.c.h.bf16 %v28_v32  ;;  %1315 = vmatpush1.bf16.msra.mxu0 %v2047_v63  ;;  %1508 = vmatpush1.bf16.msra.mxu1 %v2048_v0  ;;  %v2061_v57 = vld [vmem:[%s2926_s2 + $0x64] ss:$16 sps:$4 sm:$0xff]  }
   0xc   :  { %183 = vadd.xlane.f32.xlu0 %v182_v28  ;;  %189 = vadd.xlane.f32.xlu1 %v188_v29  ;;  %v2355_v55 = vunpack.c.l.bf16 %v27_v41  ;;  %v2357_v56 = vunpack.c.h.bf16 %v27_v41  ;;  %v200_v59 = vadd.f32 %v130_v44, %v129_v43  ;;  %v133_v60 = vmul.f32 %v2335_v45, %v2335_v45  ;;  %v2057_v43 = vld [vmem:[%s2926_s2 + $0x8c] ss:$16 sps:$4 sm:$0xff]   ;;  %v35_v0 = vld [vmem:[%s2924_s0 + $0x80] sm:$0xff] }
   0xd   :  { %v2367_v61 = vunpack.c.l.bf16 %v30_v42  ;;  %v197_v1 = vadd.f32 %v128_v50, %v127_v49  ;;  %v2378_v2 = vunpack.c.h.bf16 %v30_v42  ;;  %v2380_v7 = vunpack.c.l.bf16 %v29_v46  ;;  %1316 = vmatprep.subr.bf16.mxu0 %v2049_v18  ;;  %1509 = vmatprep.subr.bf16.mxu1 %v2051_v20  ;;  %v33_v42 = vld [vmem:[%s2924_s0 + $0x70] sm:$0xff]  ;;  %v36_v44 = vld [vmem:[%s2924_s0 + $0x88] sm:$0xff] }
   0xe   :  { %v2382_v12 = vunpack.c.h.bf16 %v29_v46  ;;  %v134_v15 = vmul.f32 %v2353_v54, %v2353_v54  ;;  %v131_v16 = vmul.f32 %v2355_v55, %v2355_v55  ;;  %v132_v17 = vmul.f32 %v2357_v56, %v2357_v56  ;;  %v2059_v46 = vld [vmem:[%s2926_s2 + $0x80] ss:$16 sps:$4 sm:$0xff]   ;;  %v2060_v50 = vld [vmem:[%s2926_s2 + $0x88] ss:$16 sps:$4 sm:$0xff]  }
   0xf   :  { %v137_v22 = vmul.f32 %v2367_v61, %v2367_v61  ;;  %v2410_v23 = vunpack.c.l.bf16 %v32_v13  ;;  %v2412_v24 = vunpack.c.h.bf16 %v32_v13  ;;  %v138_v28 = vmul.f32 %v2378_v2, %v2378_v2  ;;  %1317 = vmatpush1.bf16.msra.mxu0 %v2053_v21  ;;  %1510 = vmatpush1.bf16.msra.mxu1 %v2054_v27  ;;  %v2069_v27 = vld [vmem:[%s2926_s2 + $0x4c] ss:$16 sps:$4 sm:$0xff]  }
  0x10   :  { %195 = vadd.xlane.f32.xlu1 %v194_v48  ;;  %192 = vadd.xlane.f32.xlu0 %v191_v53  ;;  %v135_v29 = vmul.f32 %v2380_v7, %v2380_v7  ;;  %v136_v32 = vmul.f32 %v2382_v12, %v2382_v12  ;;  %v206_v34 = vadd.f32 %v134_v15, %v133_v60  ;;  %v2426_v38 = vunpack.c.l.bf16 %v31_v14  ;;  %v38_v15 = vld [vmem:[%s2924_s0 + $0x98] sm:$0xff] }
  0x11   :  { %v203_v37 = vadd.f32 %v132_v17, %v131_v16  ;;  %v2428_v41 = vunpack.c.h.bf16 %v31_v14  ;;  %v141_v47 = vmul.f32 %v2410_v23, %v2410_v23  ;;  %v142_v48 = vmul.f32 %v2412_v24, %v2412_v24  ;;  %1318 = vmatprep.subr.bf16.mxu0 %v2055_v33  ;;  %1511 = vmatprep.subr.bf16.mxu1 %v2057_v43  ;;  %v2065_v16 = vld [vmem:[%s2926_s2 + $0x60] ss:$16 sps:$4 sm:$0xff]   ;;  %v2066_v17 = vld [vmem:[%s2926_s2 + $0x68] ss:$16 sps:$4 sm:$0xff]  }
  0x12   :  { %v2446_v49 = vunpack.c.l.bf16 %v34_v19  ;;  %v212_v51 = vadd.f32 %v138_v28, %v137_v22  ;;  %v209_v52 = vadd.f32 %v136_v32, %v135_v29  ;;  %v2451_v53 = vunpack.c.h.bf16 %v34_v19  ;;  %v2067_v22 = vld [vmem:[%s2926_s2 + $0x44] ss:$16 sps:$4 sm:$0xff]  }
  0x13   :  { %v140_v60 = vmul.f32 %v2428_v41, %v2428_v41  ;;  %v2463_v62 = vunpack.c.l.bf16 %v33_v42  ;;  %v2465_v63 = vunpack.c.h.bf16 %v33_v42  ;;  %v2472_v14 = vunpack.c.l.bf16 %v36_v44  ;;  %1319 = vmatpush1.bf16.msra.mxu0 %v2059_v46  ;;  %1512 = vmatpush1.bf16.msra.mxu1 %v2060_v50  ;;  %v37_v33 = vld [vmem:[%s2924_s0 + $0x90] sm:$0xff] }
  0x14   :  { %201 = vadd.xlane.f32.xlu1 %v200_v59  ;;  %198 = vadd.xlane.f32.xlu0 %v197_v1  ;;  %v139_v59 = vmul.f32 %v2426_v38, %v2426_v38  ;;  %v218_v1 = vadd.f32 %v142_v48, %v141_v47  ;;  %v145_v13 = vmul.f32 %v2446_v49, %v2446_v49  ;;  %v2485_v19 = vunpack.c.h.bf16 %v36_v44  ;;  %v2073_v46 = vld [vmem:[%s2926_s2 + $0x24] ss:$16 sps:$4 sm:$0xff]  }
  0x15   :  { %v146_v18 = vmul.f32 %v2451_v53, %v2451_v53  ;;  %v2487_v20 = vunpack.c.l.bf16 %v35_v0  ;;  %v2489_v21 = vunpack.c.h.bf16 %v35_v0  ;;  %1320 = vmatprep.subr.bf16.mxu0 %v2061_v57  ;;  %1513 = vmatprep.subr.bf16.mxu1 %v2063_v58  ;;  %v143_v29 = vmul.f32 %v2463_v62, %v2463_v62  ;;  %v39_v0 = vld [vmem:[%s2924_s0 + $0xa0] sm:$0xff] }
  0x16   :  { %v215_v28 = vadd.f32 %v140_v60, %v139_v59  ;;  %v144_v32 = vmul.f32 %v2465_v63, %v2465_v63  ;;  %v149_v42 = vmul.f32 %v2472_v14, %v2472_v14  ;;  %v2512_v43 = vunpack.c.l.bf16 %v38_v15  ;;  %v40_v60 = vld [vmem:[%s2924_s0 + $0xa8] sm:$0xff] }
  0x17   :  { %v2514_v44 = vunpack.c.h.bf16 %v38_v15  ;;  %1321 = vmatpush1.bf16.msra.mxu0 %v2065_v16  ;;  %1514 = vmatpush1.bf16.msra.mxu1 %v2066_v17  ;;  %v150_v47 = vmul.f32 %v2485_v19, %v2485_v19  ;;  %v147_v48 = vmul.f32 %v2487_v20, %v2487_v20  ;;  %v148_v50 = vmul.f32 %v2489_v21, %v2489_v21  ;;  %v42_v15 = vld [vmem:[%s2924_s0 + $0xb8] sm:$0xff] }
  0x18   :  { %207 = vadd.xlane.f32.xlu1 %v206_v34  ;;  %204 = vadd.xlane.f32.xlu0 %v203_v37  ;;  %v2071_v34 = vld [vmem:[%s2926_s2 + $0x40] ss:$16 sps:$4 sm:$0xff]   ;;  %v2072_v37 = vld [vmem:[%s2926_s2 + $0x48] ss:$16 sps:$4 sm:$0xff]   ;;  %2949 = vst [vmem:[#allocation6_spill] sm:$0xff] %v2512_v43  ;;  %v221_v57 = vadd.f32 %v144_v32, %v143_v29  ;;  %v2528_v58 = vunpack.c.l.bf16 %v37_v33  ;;  %v2530_v59 = vunpack.c.h.bf16 %v37_v33 }
  0x19   :  { %2950 = vst [vmem:[#allocation7_spill] sm:$0xff] %v2514_v44  ;;  %1322 = vmatprep.subr.bf16.mxu0 %v2067_v22  ;;  %1515 = vmatprep.subr.bf16.mxu1 %v2069_v27  ;;  %v154_v16 = vmul.f32 %v2514_v44, %v2514_v44  ;;  %v2078_v17 = vld [vmem:[%s2926_s2 + $0x28] ss:$16 sps:$4 sm:$0xff]   ;;  %v227_v22 = vadd.f32 %v148_v50, %v147_v48  ;;  %v2551_v27 = vunpack.c.l.bf16 %v40_v60  ;;  %v2079_v29 = vld [vmem:[%s2926_s2 + $0x4] ss:$16 sps:$4 sm:$0xff]  }
  0x1a   :  { %2951 = vst [vmem:[#allocation8_spill] sm:$0xff] %v2528_v58  ;;  %v2081_v32 = vld [vmem:[%s2926_s2 + $0xc] ss:$16 sps:$4 sm:$0xff]   ;;  %v151_v33 = vmul.f32 %v2528_v58, %v2528_v58  ;;  %v2084_v48 = vld [vmem:[%s2926_s2 + $0x8] ss:$16 sps:$4 sm:$0xff]  }
  0x1b   :  { %1323 = vmatpush1.bf16.msra.mxu0 %v2071_v34  ;;  %1516 = vmatpush1.bf16.msra.mxu1 %v2072_v37  ;;  %2952 = vst [vmem:[#allocation9_spill] sm:$0xff] %v2551_v27  ;;  %v152_v34 = vmul.f32 %v2530_v59, %v2530_v59  ;;  %v2565_v37 = vunpack.c.l.bf16 %v39_v0 }
  0x1c   :  { %213 = vadd.xlane.f32.xlu1 %v212_v51  ;;  %210 = vadd.xlane.f32.xlu0 %v209_v52  ;;  %v2075_v51 = vld [vmem:[%s2926_s2 + $0x2c] ss:$16 sps:$4 sm:$0xff]   ;;  %v224_v52 = vadd.f32 %v146_v18, %v145_v13  ;;  %v153_v13 = vmul.f32 %v2512_v43, %v2512_v43  ;;  %v230_v18 = vadd.f32 %v150_v47, %v149_v42  ;;  %v2567_v42 = vunpack.c.h.bf16 %v39_v0  ;;  %v2083_v47 = vld [vmem:[%s2926_s2] ss:$16 sps:$4 sm:$0xff]  }
  0x1d   :  { %1324 = vmatprep.subr.bf16.mxu0 %v2073_v46  ;;  %1517 = vmatprep.subr.bf16.mxu1 %v2075_v51  ;;  %2954 = vst [vmem:[#allocation11_spill] sm:$0xff] %v2565_v37  ;;  %v41_v46 = vld [vmem:[%s2924_s0 + $0xb0] sm:$0xff]  ;;  %v2578_v51 = vunpack.c.l.bf16 %v42_v15 }
  0x1e   :  { %2955 = vst [vmem:[#allocation12_spill] sm:$0xff] %v2567_v42  ;;  %v236_v50 = vadd.f32 %v154_v16, %v153_v13  ;;  %v2589_v43 = vunpack.c.l.bf16 %v41_v46  ;;  %v2591_v58 = vunpack.c.h.bf16 %v41_v46  ;;  %v155_v13 = vmul.f32 %v2565_v37, %v2565_v37 }
  0x1f   :  { %2956 = vst [vmem:[#allocation13_spill] sm:$0xff] %v2578_v51  ;;  %1518 = vmatpush1.bf16.msra.mxu1 %v2078_v17  ;;  %v156_v16 = vmul.f32 %v2567_v42, %v2567_v42  ;;  %v44_v17 = vld [vmem:[%s2924_s0 + $0xc8] sm:$0xff] }
  0x20   :  { %219 = vadd.xlane.f32.xlu1 %v218_v1  ;;  %216 = vadd.xlane.f32.xlu0 %v215_v28  ;;  %v2077_v1 = vld [vmem:[%s2926_s2 + $0x20] ss:$16 sps:$4 sm:$0xff]   ;;  %v2553_v28 = vunpack.c.h.bf16 %v40_v60  ;;  %v157_v60 = vmul.f32 %v2551_v27, %v2551_v27  ;;  %2958 = vst [vmem:[#allocation15_spill] sm:$0xff] %v2589_v43  ;;  %2959 = vst [vmem:[#allocation16_spill] sm:$0xff] %v2591_v58  ;;  %v159_v27 = vmul.f32 %v2589_v43, %v2589_v43 }
  0x21   :  { %1325 = vmatpush1.bf16.msra.mxu0 %v2077_v1  ;;  %1519 = vmatprep.subr.bf16.mxu1 %v2081_v32  ;;  %v233_v1 = vadd.f32 %v152_v34, %v151_v33  ;;  %v161_v32 = vmul.f32 %v2578_v51, %v2578_v51  ;;  %v2090_v34 = vld [vmem:[%s2926_s2 + $0x1e8] ss:$16 sps:$4 sm:$0xff]   ;;  %v160_v37 = vmul.f32 %v2591_v58, %v2591_v58 }
  0x22   :  { %2953 = vst [vmem:[#allocation10_spill] sm:$0xff] %v2553_v28  ;;  %v158_v0 = vmul.f32 %v2553_v28, %v2553_v28  ;;  %1326 = vmatprep.subr.bf16.mxu0 %v2079_v29  ;;  %v43_v29 = vld [vmem:[%s2924_s0 + $0xc0] sm:$0xff]  ;;  %v2623_v28 = vunpack.c.l.bf16 %v44_v17 }
  0x23   :  { %1520 = vmatpush1.bf16.msra.mxu1 %v2084_v48  ;;  %v2093_v48 = vld [vmem:[%s2926_s2 + $0x1cc] ss:$16 sps:$4 sm:$0xff]   ;;  %v2633_v43 = vunpack.c.l.bf16 %v43_v29  ;;  %v2635_v51 = vunpack.c.h.bf16 %v43_v29  ;;  %v2097_v29 = vld [vmem:[%s2926_s2 + $0x1a4] ss:$16 sps:$4 sm:$0xff]  }
  0x24   :  { %225 = vadd.xlane.f32.xlu1 %v224_v52  ;;  %222 = vadd.xlane.f32.xlu0 %v221_v57  ;;  %v2580_v52 = vunpack.c.h.bf16 %v42_v15  ;;  %v2085_v57 = vld [vmem:[%s2926_s2 + $0x1e4] ss:$16 sps:$4 sm:$0xff]   ;;  %v2087_v15 = vld [vmem:[%s2926_s2 + $0x1ec] ss:$16 sps:$4 sm:$0xff]   ;;  %v242_v46 = vadd.f32 %v158_v0, %v157_v60  ;;  %2960 = vst [vmem:[#allocation17_spill] sm:$0xff] %v2623_v28  ;;  %v239_v60 = vadd.f32 %v156_v16, %v155_v13  ;;  %v2631_v0 = vunpack.c.h.bf16 %v44_v17 }
  0x25   :  { %1327 = vmatpush1.bf16.msra.mxu0 %v2083_v47  ;;  %1521 = vmatprep.subr.bf16.mxu1 %v2087_v15  ;;  %v2091_v47 = vld [vmem:[%s2926_s2 + $0x1c4] ss:$16 sps:$4 sm:$0xff]   ;;  %2961 = vst [vmem:[#allocation18_spill] sm:$0xff] %v2633_v43  ;;  %v48_v15 = vld [vmem:[%s2924_s0 + $0xe8] sm:$0xff]  ;;  %v165_v58 = vmul.f32 %v2623_v28, %v2623_v28 }
  0x26   :  { %2957 = vst [vmem:[#allocation14_spill] sm:$0xff] %v2580_v52  ;;  %v162_v33 = vmul.f32 %v2580_v52, %v2580_v52  ;;  %1328 = vmatprep.subr.bf16.mxu0 %v2085_v57  ;;  %v45_v57 = vld [vmem:[%s2924_s0 + $0xd0] sm:$0xff]  ;;  %v245_v52 = vadd.f32 %v160_v37, %v159_v27  ;;  %v163_v27 = vmul.f32 %v2633_v43, %v2633_v43  ;;  %v2690_v28 = vunpack.c.h.bf16 %v48_v15 }
  0x27   :  { %1522 = vmatpush2.bf16.msra.mxu1 %v2090_v34  ;;  %v2658_v42 = vunpack.c.l.bf16 %v45_v57  ;;  %v2660_v44 = vunpack.c.h.bf16 %v45_v57  ;;  %v164_v37 = vmul.f32 %v2635_v51, %v2635_v51 }
  0x28   :  { %231 = vadd.xlane.f32.xlu1 %v230_v18  ;;  %228 = vadd.xlane.f32.xlu0 %v227_v22  ;;  %v46_v18 = vld [vmem:[%s2924_s0 + $0xd8] sm:$0xff]  ;;  %v2089_v22 = vld [vmem:[%s2926_s2 + $0x1e0] ss:$16 sps:$4 sm:$0xff]   ;;  %v248_v13 = vadd.f32 %v162_v33, %v161_v32 }
  0x29   :  { %v2649_v16 = vunpack.c.l.bf16 %v46_v18  ;;  %v2651_v17 = vunpack.c.h.bf16 %v46_v18  ;;  %1329 = vmatpush2.bf16.msra.mxu0 %v2089_v22  ;;  %2964 = vst [vmem:[#allocation21_spill] sm:$0xff] %v2658_v42  ;;  %2965 = vst [vmem:[#allocation22_spill] sm:$0xff] %v2660_v44  ;;  %1523 = vmatprep.subr.bf16.mxu1 %v2093_v48  ;;  %v2099_v18 = vld [vmem:[%s2926_s2 + $0x1ac] ss:$16 sps:$4 sm:$0xff]   ;;  %v166_v22 = vmul.f32 %v2631_v0, %v2631_v0  ;;  %v47_v32 = vld [vmem:[%s2924_s0 + $0xe0] sm:$0xff] }
  0x2a   :  { %1330 = vmatprep.subr.bf16.mxu0 %v2091_v47  ;;  %v2101_v33 = vld [vmem:[%s2926_s2 + $0x1a0] ss:$16 sps:$4 sm:$0xff]   ;;  %v2681_v47 = vunpack.c.l.bf16 %v48_v15  ;;  %v2102_v48 = vld [vmem:[%s2926_s2 + $0x1a8] ss:$16 sps:$4 sm:$0xff]   ;;  %v168_v57 = vmul.f32 %v2660_v44, %v2660_v44  ;;  %v2700_v43 = vunpack.c.h.bf16 %v47_v32 }
  0x2b   :  { %2962 = vst [vmem:[#allocation19_spill] sm:$0xff] %v2649_v16  ;;  %2963 = vst [vmem:[#allocation20_spill] sm:$0xff] %v2651_v17  ;;  %v169_v34 = vmul.f32 %v2649_v16, %v2649_v16  ;;  %v2103_v16 = vld [vmem:[%s2926_s2 + $0x184] ss:$16 sps:$4 sm:$0xff]   ;;  %v50_v15 = vld [vmem:[%s2924_s0 + $0xf8] sm:$0xff] }
  0x2c   :  { %237 = vadd.xlane.f32.xlu1 %v236_v50  ;;  %234 = vadd.xlane.f32.xlu0 %v233_v1  ;;  %v2095_v50 = vld [vmem:[%s2926_s2 + $0x1c0] ss:$16 sps:$4 sm:$0xff]   ;;  %v2096_v1 = vld [vmem:[%s2926_s2 + $0x1c8] ss:$16 sps:$4 sm:$0xff]   ;;  %v173_v44 = vmul.f32 %v2681_v47, %v2681_v47 }
  0x2d   :  { %1331 = vmatpush2.bf16.msra.mxu0 %v2095_v50  ;;  %1524 = vmatpush2.bf16.msra.mxu1 %v2096_v1  ;;  %v2105_v50 = vld [vmem:[%s2926_s2 + $0x18c] ss:$16 sps:$4 sm:$0xff]   ;;  %v254_v1 = vadd.f32 %v166_v22, %v165_v58  ;;  %v2107_v58 = vld [vmem:[%s2926_s2 + $0x180] ss:$16 sps:$4 sm:$0xff]  }
  0x2e   :  { %1332 = vmatprep.subr.bf16.mxu0 %v2097_v29  ;;  %1525 = vmatprep.subr.bf16.mxu1 %v2099_v18  ;;  %v49_v29 = vld [vmem:[%s2924_s0 + $0xf0] sm:$0xff] }
  0x30   :  { %243 = vadd.xlane.f32.xlu1 %v242_v46  ;;  %240 = vadd.xlane.f32.xlu0 %v239_v60  ;;  %v170_v46 = vmul.f32 %v2651_v17, %v2651_v17  ;;  %v167_v60 = vmul.f32 %v2658_v42, %v2658_v42  ;;  %v251_v17 = vadd.f32 %v164_v37, %v163_v27  ;;  %v2698_v42 = vunpack.c.l.bf16 %v47_v32 }
  0x31   :  { %1333 = vmatpush2.bf16.msra.mxu0 %v2101_v33  ;;  %1526 = vmatpush2.bf16.msra.mxu1 %v2102_v48 }
  0x32   :  { %v260_v18 = vadd.f32 %v170_v46, %v169_v34 }
  0x34   :  { %249 = vadd.xlane.f32.xlu1 %v248_v13  ;;  %246 = vadd.xlane.f32.xlu0 %v245_v52  ;;  %v2108_v52 = vld [vmem:[%s2926_s2 + $0x188] ss:$16 sps:$4 sm:$0xff]  }
  0x35   :  { %8 = vsyncpa [#allocation4], 0  ;;  %v257_v13 = vadd.f32 %v168_v57, %v167_v60  ;;  %v174_v22 = vmul.f32 %v2690_v28, %v2690_v28  ;;  %v2718_v27 = vunpack.c.l.bf16 %v50_v15  ;;  %v2720_v37 = vunpack.c.h.bf16 %v50_v15  ;;  %1334 = vmatprep.subr.bf16.mxu0 %v2103_v16  ;;  %1527 = vmatprep.subr.bf16.mxu1 %v2105_v50  ;;  %v2109_v32 = vld [vmem:[%s2926_s2 + $0x164] ss:$16 sps:$4 sm:$0xff]   ;;  %v2111_v33 = vld [vmem:[%s2926_s2 + $0x16c] ss:$16 sps:$4 sm:$0xff]  }
  0x36   :  { %v171_v34 = vmul.f32 %v2698_v42, %v2698_v42  ;;  %v172_v46 = vmul.f32 %v2700_v43, %v2700_v43  ;;  %v2732_v48 = vunpack.c.l.bf16 %v49_v29  ;;  %v2734_v16 = vunpack.c.h.bf16 %v49_v29  ;;  %1335 = vmatpush2.bf16.msra.mxu0 %v2107_v58  ;;  %1528 = vmatpush2.bf16.msra.mxu1 %v2108_v52  ;;  %v2113_v60 = vld [vmem:[%s2926_s2 + $0x160] ss:$16 sps:$4 sm:$0xff]   ;;  %v2115_v15 = vld [vmem:[%s2926_s2 + $0x144] ss:$16 sps:$4 sm:$0xff]   ;;  %v2117_v29 = vld [vmem:[%s2926_s2 + $0x14c] ss:$16 sps:$4 sm:$0xff]  }
  0x37   :  { %2966 = vst [vmem:[#allocation23_spill] sm:$0xff] %v2718_v27  ;;  %2967 = vst [vmem:[#allocation24_spill] sm:$0xff] %v2720_v37  ;;  %v266_v57 = vadd.f32 %v174_v22, %v173_v44  ;;  %v177_v50 = vmul.f32 %v2718_v27, %v2718_v27  ;;  %1336 = vmatprep.subr.bf16.mxu0 %v2109_v32  ;;  %1529 = vmatprep.subr.bf16.mxu1 %v2111_v33  ;;  %v2119_v22 = vld [vmem:[%s2926_s2 + $0x140] ss:$16 sps:$4 sm:$0xff]   ;;  %v2120_v32 = vld [vmem:[%s2926_s2 + $0x148] ss:$16 sps:$4 sm:$0xff]  }
  0x38   :  { %255 = vadd.xlane.f32.xlu1 %v254_v1  ;;  %252 = vadd.xlane.f32.xlu0 %v251_v17  ;;  %2968 = vst [vmem:[#allocation25_spill] sm:$0xff] %v2732_v48  ;;  %2969 = vst [vmem:[#allocation26_spill] sm:$0xff] %v2734_v16  ;;  %v2114_v17 = vld [vmem:[%s2926_s2 + $0x168] ss:$16 sps:$4 sm:$0xff]   ;;  %v178_v1 = vmul.f32 %v2720_v37, %v2720_v37  ;;  %v263_v58 = vadd.f32 %v172_v46, %v171_v34  ;;  %v2125_v46 = vld [vmem:[%s2926_s2 + $0x120] ss:$16 sps:$4 sm:$0xff]  }
  0x39   :  { %v175_v44 = vmul.f32 %v2732_v48, %v2732_v48  ;;  %v176_v52 = vmul.f32 %v2734_v16, %v2734_v16 }
  0x3a   :  { %1337 = vmatpush2.bf16.msra.mxu0 %v2113_v60  ;;  %1530 = vmatpush2.bf16.msra.mxu1 %v2114_v17  ;;  %v272_v33 = vadd.f32 %v178_v1, %v177_v50  ;;  %v2126_v60 = vld [vmem:[%s2926_s2 + $0x128] ss:$16 sps:$4 sm:$0xff]   ;;  %v2127_v17 = vld [vmem:[%s2926_s2 + $0x104] ss:$16 sps:$4 sm:$0xff]   ;;  %v2131_v50 = vld [vmem:[%s2926_s2 + $0x100] ss:$16 sps:$4 sm:$0xff]  }
  0x3b   :  { %1338 = vmatprep.subr.bf16.mxu0 %v2115_v15  ;;  %1531 = vmatprep.subr.bf16.mxu1 %v2117_v29  ;;  %v269_v34 = vadd.f32 %v176_v52, %v175_v44  ;;  %v2132_v1 = vld [vmem:[%s2926_s2 + $0x108] ss:$16 sps:$4 sm:$0xff]  }
  0x3c   :  { %261 = vadd.xlane.f32.xlu1 %v260_v18  ;;  %258 = vadd.xlane.f32.xlu0 %v257_v13  ;;  %v2121_v18 = vld [vmem:[%s2926_s2 + $0x124] ss:$16 sps:$4 sm:$0xff]   ;;  %v2123_v13 = vld [vmem:[%s2926_s2 + $0x12c] ss:$16 sps:$4 sm:$0xff]  }
  0x3e   :  { %1339 = vmatpush2.bf16.msra.mxu0 %v2119_v22  ;;  %1532 = vmatpush2.bf16.msra.mxu1 %v2120_v32 }
  0x3f   :  { %1340 = vmatprep.subr.bf16.mxu0 %v2121_v18  ;;  %1533 = vmatprep.subr.bf16.mxu1 %v2123_v13 }
  0x40   :  { %267 = vadd.xlane.f32.xlu1 %v266_v57  ;;  %264 = vadd.xlane.f32.xlu0 %v263_v58  ;;  %v2129_v57 = vld [vmem:[%s2926_s2 + $0x10c] ss:$16 sps:$4 sm:$0xff]  }
  0x42   :  { %1341 = vmatpush2.bf16.msra.mxu0 %v2125_v46  ;;  %1534 = vmatpush2.bf16.msra.mxu1 %v2126_v60 }
  0x43   :  { %1342 = vmatprep.subr.bf16.mxu0 %v2127_v17  ;;  %1535 = vmatprep.subr.bf16.mxu1 %v2129_v57  ;;  %v438_v17 = vlaneseq }
  0x44   :  { %273 = vadd.xlane.f32.xlu1 %v272_v33  ;;  %270 = vadd.xlane.f32.xlu0 %v269_v34 }
  0x46   :  { %1343 = vmatpush2.bf16.msra.mxu0 %v2131_v50  ;;  %1536 = vmatpush2.bf16.msra.mxu1 %v2132_v1 }
  0x91   :  { %v181_v15 = vpop.xlane.xlu0 %180  ;;  %v187_v29 = vpop.xlane.xlu1 %186 }
  0x92   :  { %v276_v58 = vmul.f32 0.00390625, %v181_v15  ;;  %v278_v44 = vmul.f32 0.00390625, %v187_v29 }
  0x94   :  { %v308_v52 = vadd.f32 1e-05, %v276_v58  ;;  %v310_v22 = vadd.f32 1e-05, %v278_v44  ;;  %v439_v44 = vshrl.u32 %v438_v17, 7 }
  0x95   :  { %v184_v32 = vpop.xlane.xlu0 %183  ;;  %v190_v18 = vpop.xlane.xlu1 %189 }
  0x96   :  { %2133 = vrsqrt.f32 %v308_v52  ;;  %v277_v13 = vmul.f32 0.00390625, %v184_v32  ;;  %v279_v33 = vmul.f32 0.00390625, %v190_v18  ;;  %v444_v18 = vsub.s32 1, %v439_v44 }
  0x97   :  { %2135 = vrsqrt.f32 %v310_v22 }
  0x98   :  { %v309_v34 = vadd.f32 1e-05, %v277_v13  ;;  %v311_v46 = vadd.f32 1e-05, %v279_v33 }
  0x99   :  { %v196_v60 = vpop.xlane.xlu1 %195  ;;  %v193_v27 = vpop.xlane.xlu0 %192 }
  0x9a   :  { %2137 = vrsqrt.f32 %v309_v34  ;;  %v281_v57 = vmul.f32 0.00390625, %v196_v60  ;;  %v280_v50 = vmul.f32 0.00390625, %v193_v27  ;;  %v436_v34 = vld [vmem:[%s2925_s1] sm:$0x3]  ;;  %v440_v27 = vsub.s32 0, %v439_v44  ;;  %s2219_s1 = smov [#allocation3]  }
  0x9b   :  { %2139 = vrsqrt.f32 %v311_v46  ;;  %s1831_s14 = sshll.u32 %s2219_s1, 4  ;;  %s1832_s14 = int_to_ptr.vmem [resolvable:$true] %s1831_s14 }
  0x9c   :  { %v313_v1 = vadd.f32 1e-05, %v281_v57  ;;  %v312_v15 = vadd.f32 1e-05, %v280_v50  ;;  %s2197_s15 = scalar_lea.vmem %s1832_s14, 16384  ;;  %p2202_p1 = scmp.lt.s32.totalorder %s1832_s14, %s1832_s14 }
  0x9d   :  { %v202_v29 = vpop.xlane.xlu1 %201  ;;  %v199_v58 = vpop.xlane.xlu0 %198  ;;  %p2198_p0 = scmp.ne.s32.totalorder %s1832_s14, %s2197_s15  ;;  %p2203_p2 = scmp.lt.s32.totalorder %s2197_s15, %s2197_s15 }
  0x9e   :  { %2141 = vrsqrt.f32 %v313_v1  ;;  %v283_v48 = vmul.f32 0.00390625, %v202_v29  ;;  %v282_v52 = vmul.f32 0.00390625, %v199_v58  ;;  %v2790_v1 = vrot.slane %v436_v34, %v444_v18 }
  0x9f   :  { %2143 = vrsqrt.f32 %v312_v15  ;;  %v2793_v15 = vrot.slane %v436_v34, %v440_v27  ;;  %p2204_p3 = por %p2203_p2, %p2202_p1 }
  0xa0   :  { %v315_v32 = vadd.f32 1e-05, %v283_v48  ;;  %v314_v22 = vadd.f32 1e-05, %v282_v52 }
  0xa1   :  { %v208_v13 = vpop.xlane.xlu1 %207  ;;  %v205_v33 = vpop.xlane.xlu0 %204  ;;  %p2205_p4 = pnand %p2204_p3, %p2198_p0 }
  0xa2   :  { %2145 = vrsqrt.f32 %v315_v32  ;;  %v285_v60 = vmul.f32 0.00390625, %v208_v13  ;;  %v284_v17 = vmul.f32 0.00390625, %v205_v33 }
  0xa3   :  { %v2134_v46 = vpop.eup %2133  ;;  %2147 = vrsqrt.f32 %v314_v22 }
  0xa4   :  { %v2136_v57 = vpop.eup %2135  ;;  %v373_v50 = vmul.f32 %v2134_v46, %v2253_v4  ;;  %v372_v29 = vmul.f32 %v2134_v46, %v2251_v3  ;;  %v317_v52 = vadd.f32 1e-05, %v285_v60  ;;  %v316_v22 = vadd.f32 1e-05, %v284_v17 }
  0xa5   :  { %v377_v48 = vmul.f32 %v2136_v57, %v2257_v6  ;;  %v214_v37 = vpop.xlane.xlu1 %213  ;;  %v211_v33 = vpop.xlane.xlu0 %210 }
  0xa6   :  { %v449_v4 = vmul.f32 %v2790_v1, %v373_v50  ;;  %v448_v3 = vmul.f32 %v2793_v15, %v372_v29  ;;  %v287_v46 = vmul.f32 0.00390625, %v214_v37  ;;  %2149 = vrsqrt.f32 %v317_v52 }
  0xa7   :  { %v2138_v58 = vpop.eup %2137  ;;  %v453_v6 = vmul.f32 %v2790_v1, %v377_v48  ;;  %2151 = vrsqrt.f32 %v316_v22  ;;  %v376_v48 = vmul.f32 %v2136_v57, %v2255_v5 }
  0xa8   :  { %v2140_v44 = vpop.eup %2139  ;;  %v375_v32 = vmul.f32 %v2138_v58, %v2264_v9  ;;  %v374_v13 = vmul.f32 %v2138_v58, %v2262_v8  ;;  %v286_v8 = vmul.f32 0.00390625, %v211_v33  ;;  %v319_v37 = vadd.f32 1e-05, %v287_v46 }
  0xa9   :  { %v379_v18 = vmul.f32 %v2140_v44, %v2268_v11  ;;  %v220_v33 = vpop.xlane.xlu1 %219  ;;  %v452_v5 = vmul.f32 %v2793_v15, %v376_v48 }
  0xaa   :  { %v451_v34 = vmul.f32 %v2790_v1, %v375_v32  ;;  %v450_v27 = vmul.f32 %v2793_v15, %v374_v13  ;;  %v378_v32 = vmul.f32 %v2140_v44, %v2266_v10  ;;  %v318_v52 = vadd.f32 1e-05, %v286_v8 }
  0xab   :  { %v2142_v60 = vpop.eup %2141  ;;  %v455_v9 = vmul.f32 %v2790_v1, %v379_v18  ;;  %2153 = vrsqrt.f32 %v319_v37  ;;  %v289_v44 = vmul.f32 0.00390625, %v220_v33 }
  0xac   :  { %v2144_v17 = vpop.eup %2143  ;;  %v2003_v58 = vpack.c.bf16 %v451_v34, %v449_v4  ;;  %v2002_v16 = vpack.c.bf16 %v450_v27, %v448_v3  ;;  %v383_v11 = vmul.f32 %v2142_v60, %v2297_v26  ;;  %v454_v10 = vmul.f32 %v2793_v15, %v378_v32 }
  0xad   :  { %v2005_v50 = vpack.c.bf16 %v455_v9, %v453_v6  ;;  %v381_v29 = vmul.f32 %v2144_v17, %v2304_v31  ;;  %v217_v31 = vpop.xlane.xlu0 %216  ;;  %2155 = vrsqrt.f32 %v318_v52  ;;  %v380_v57 = vmul.f32 %v2144_v17, %v2302_v30 }
  0xae   :  { %1344 = vmatprep.mubr.bf16.mxu0 %v2003_v58  ;;  %1537 = vmatprep.mubr.bf16.mxu1 %v2003_v58  ;;  %v459_v26 = vmul.f32 %v2790_v1, %v383_v11  ;;  %v288_v6 = vmul.f32 0.00390625, %v217_v31  ;;  %v2004_v27 = vpack.c.bf16 %v454_v10, %v452_v5  ;;  %v321_v8 = vadd.f32 1e-05, %v289_v44  ;;  %v226_v58 = vpop.xlane.xlu1 %225 }
  0xaf   :  { %1345 = vmatmul.mubr.bf16.vlgmr.msra.gmra.mxu0 %v2002_v16  ;;  %1538 = vmatmul.mubr.bf16.vlgmr.msra.gmra.mxu1 %v2002_v16  ;;  %v2146_v13 = vpop.eup %2145  ;;  %v457_v22 = vmul.f32 %v2790_v1, %v381_v29  ;;  %v382_v16 = vmul.f32 %v2142_v60, %v2295_v25  ;;  %v456_v46 = vmul.f32 %v2793_v15, %v380_v57 }
  0xb0   :  { %1354 = vmatprep.mubr.bf16.mxu0 %v2005_v50  ;;  %1547 = vmatprep.mubr.bf16.mxu1 %v2005_v50  ;;  %v2148_v4 = vpop.eup %2147  ;;  %v387_v3 = vmul.f32 %v2146_v13, %v2315_v36  ;;  %v320_v25 = vadd.f32 1e-05, %v288_v6  ;;  %v291_v36 = vmul.f32 0.00390625, %v226_v58  ;;  %2157 = vrsqrt.f32 %v321_v8 }
  0xb1   :  { %v2007_v18 = vpack.c.bf16 %v459_v26, %v457_v22  ;;  %v385_v34 = vmul.f32 %v2148_v4, %v2323_v40  ;;  %v458_v9 = vmul.f32 %v2793_v15, %v382_v16  ;;  %v223_v11 = vpop.xlane.xlu0 %222  ;;  %v384_v32 = vmul.f32 %v2148_v4, %v2321_v39 }
  0xb2   :  { %v463_v40 = vmul.f32 %v2790_v1, %v387_v3  ;;  %v290_v50 = vmul.f32 0.00390625, %v223_v11  ;;  %v386_v29 = vmul.f32 %v2146_v13, %v2313_v35  ;;  %2159 = vrsqrt.f32 %v320_v25  ;;  %v232_v31 = vpop.xlane.xlu1 %231 }
  0xb3   :  { %v2150_v30 = vpop.eup %2149  ;;  %v461_v60 = vmul.f32 %v2790_v1, %v385_v34  ;;  %v2006_v48 = vpack.c.bf16 %v458_v9, %v456_v46  ;;  %v460_v33 = vmul.f32 %v2793_v15, %v384_v32  ;;  %v323_v10 = vadd.f32 1e-05, %v291_v36 }
  0xb4   :  { %v2152_v17 = vpop.eup %2151  ;;  %v391_v22 = vmul.f32 %v2150_v30, %v2353_v54  ;;  %v462_v5 = vmul.f32 %v2793_v15, %v386_v29  ;;  %v322_v35 = vadd.f32 1e-05, %v290_v50  ;;  %v293_v13 = vmul.f32 0.00390625, %v232_v31 }
  0xb5   :  { %v2009_v37 = vpack.c.bf16 %v463_v40, %v461_v60  ;;  %v389_v52 = vmul.f32 %v2152_v17, %v2357_v56  ;;  %v229_v57 = vpop.xlane.xlu0 %228  ;;  %2161 = vrsqrt.f32 %v323_v10  ;;  %v388_v44 = vmul.f32 %v2152_v17, %v2355_v55 }
  0xb6   :  { %v467_v56 = vmul.f32 %v2790_v1, %v391_v22  ;;  %v292_v54 = vmul.f32 0.00390625, %v229_v57  ;;  %v2008_v4 = vpack.c.bf16 %v462_v5, %v460_v33  ;;  %2163 = vrsqrt.f32 %v322_v35  ;;  %v238_v8 = vpop.xlane.xlu1 %237 }
  0xb7   :  { %1355 = vmatmul.mubr.bf16.gmra.mxu0 %v2004_v27  ;;  %1548 = vmatmul.mubr.bf16.gmra.mxu1 %v2004_v27  ;;  %v465_v39 = vmul.f32 %v2790_v1, %v389_v52  ;;  %v325_v27 = vadd.f32 1e-05, %v293_v13  ;;  %v464_v46 = vmul.f32 %v2793_v15, %v388_v44 }
  0xb8   :  { %1364 = vmatprep.mubr.bf16.mxu0 %v2007_v18  ;;  %1557 = vmatprep.mubr.bf16.mxu1 %v2007_v18  ;;  %v2154_v26 = vpop.eup %2153  ;;  %v390_v18 = vmul.f32 %v2150_v30, %v2335_v45  ;;  %v324_v55 = vadd.f32 1e-05, %v292_v54 }
  0xb9   :  { %v2011_v6 = vpack.c.bf16 %v467_v56, %v465_v39  ;;  %v395_v3 = vmul.f32 %v2154_v26, %v2378_v2  ;;  %v235_v30 = vpop.xlane.xlu0 %234  ;;  %2165 = vrsqrt.f32 %v325_v27  ;;  %v295_v2 = vmul.f32 0.00390625, %v238_v8 }
  0xba   :  { %v2156_v16 = vpop.eup %2155  ;;  %v466_v9 = vmul.f32 %v2793_v15, %v390_v18  ;;  %v394_v40 = vmul.f32 %v2154_v26, %v2367_v61  ;;  %v294_v17 = vmul.f32 0.00390625, %v235_v30  ;;  %2167 = vrsqrt.f32 %v324_v55  ;;  %v244_v52 = vpop.xlane.xlu1 %243 }
  0xbb   :  { %v393_v34 = vmul.f32 %v2156_v16, %v2382_v12  ;;  %v471_v11 = vmul.f32 %v2790_v1, %v395_v3  ;;  %v392_v60 = vmul.f32 %v2156_v16, %v2380_v7  ;;  %v297_v5 = vmul.f32 0.00390625, %v244_v52 }
  0xbc   :  { %v2010_v25 = vpack.c.bf16 %v466_v9, %v464_v46  ;;  %v470_v29 = vmul.f32 %v2793_v15, %v394_v40  ;;  %v326_v61 = vadd.f32 1e-05, %v294_v17 }
  0xbd   :  { %v2158_v58 = vpop.eup %2157  ;;  %v469_v45 = vmul.f32 %v2790_v1, %v393_v34  ;;  %v468_v32 = vmul.f32 %v2793_v15, %v392_v60  ;;  %v241_v22 = vpop.xlane.xlu0 %240  ;;  %v329_v56 = vadd.f32 1e-05, %v297_v5 }
  0xbe   :  { %v398_v57 = vmul.f32 %v2158_v58, %v2410_v23  ;;  %v250_v44 = vpop.xlane.xlu1 %249 }
  0xbf   :  { %1365 = vmatmul.mubr.bf16.gmra.mxu0 %v2006_v48  ;;  %1558 = vmatmul.mubr.bf16.gmra.mxu1 %v2006_v48  ;;  %v2160_v12 = vpop.eup %2159  ;;  %v2013_v36 = vpack.c.bf16 %v471_v11, %v469_v45  ;;  %v399_v48 = vmul.f32 %v2158_v58, %v2412_v24  ;;  %v296_v24 = vmul.f32 0.00390625, %v241_v22  ;;  %v2012_v10 = vpack.c.bf16 %v470_v29, %v468_v32  ;;  %v2970_v32 = vld [vmem:[#allocation7_spill] sm:$0xff] }
  0xc0   :  { %1374 = vmatprep.mubr.bf16.mxu0 %v2009_v37  ;;  %1567 = vmatprep.mubr.bf16.mxu1 %v2009_v37  ;;  %v397_v50 = vmul.f32 %v2160_v12, %v2428_v41  ;;  %v327_v37 = vadd.f32 1e-05, %v295_v2  ;;  %v396_v31 = vmul.f32 %v2160_v12, %v2426_v38 }
  0xc1   :  { %v475_v26 = vmul.f32 %v2790_v1, %v399_v48  ;;  %v328_v38 = vadd.f32 1e-05, %v296_v24  ;;  %v2971_v24 = vld [vmem:[#allocation8_spill] sm:$0xff] }
  0xc2   :  { %v2162_v33 = vpop.eup %2161  ;;  %v473_v7 = vmul.f32 %v2790_v1, %v397_v50  ;;  %2169 = vrsqrt.f32 %v327_v37  ;;  %v472_v54 = vmul.f32 %v2793_v15, %v396_v31  ;;  %v256_v30 = vpop.xlane.xlu1 %255  ;;  %v2972_v31 = vld [vmem:[#allocation6_spill] sm:$0xff] }
  0xc3   :  { %v2164_v41 = vpop.eup %2163  ;;  %2171 = vrsqrt.f32 %v326_v61  ;;  %v403_v39 = vmul.f32 %v2162_v33, %v2451_v53  ;;  %v299_v53 = vmul.f32 0.00390625, %v250_v44  ;;  %v402_v27 = vmul.f32 %v2162_v33, %v2446_v49 }
  0xc4   :  { %v2015_v16 = vpack.c.bf16 %v475_v26, %v473_v7  ;;  %v401_v35 = vmul.f32 %v2164_v41, %v2465_v63  ;;  %2173 = vrsqrt.f32 %v329_v56  ;;  %v400_v3 = vmul.f32 %v2164_v41, %v2463_v62 }
  0xc5   :  { %v479_v18 = vmul.f32 %v2790_v1, %v403_v39  ;;  %2175 = vrsqrt.f32 %v328_v38  ;;  %v331_v55 = vadd.f32 1e-05, %v299_v53  ;;  %v478_v11 = vmul.f32 %v2793_v15, %v402_v27  ;;  %v2973_v39 = vld [vmem:[#allocation12_spill] sm:$0xff] }
  0xc6   :  { %v2166_v13 = vpop.eup %2165  ;;  %v477_v23 = vmul.f32 %v2790_v1, %v401_v35  ;;  %v476_v45 = vmul.f32 %v2793_v15, %v400_v3  ;;  %v262_v7 = vpop.xlane.xlu1 %261 }
  0xc7   :  { %1375 = vmatmul.mubr.bf16.gmra.mxu0 %v2008_v4  ;;  %1568 = vmatmul.mubr.bf16.gmra.mxu1 %v2008_v4  ;;  %v474_v4 = vmul.f32 %v2793_v15, %v398_v57  ;;  %v2168_v63 = vpop.eup %2167  ;;  %v407_v58 = vmul.f32 %v2166_v13, %v2485_v19  ;;  %2177 = vrsqrt.f32 %v331_v55  ;;  %v301_v19 = vmul.f32 0.00390625, %v256_v30  ;;  %v2977_v30 = vld [vmem:[#allocation16_spill] sm:$0xff] }
  0xc8   :  { %1384 = vmatprep.mubr.bf16.mxu0 %v2011_v6  ;;  %1577 = vmatprep.mubr.bf16.mxu1 %v2011_v6  ;;  %v247_v6 = vpop.xlane.xlu0 %246  ;;  %v2017_v9 = vpack.c.bf16 %v479_v18, %v477_v23  ;;  %v405_v8 = vmul.f32 %v2168_v63, %v2489_v21  ;;  %v2016_v60 = vpack.c.bf16 %v478_v11, %v476_v45  ;;  %v303_v41 = vmul.f32 0.00390625, %v262_v7 }
  0xc9   :  { %v2014_v34 = vpack.c.bf16 %v474_v4, %v472_v54  ;;  %v298_v46 = vmul.f32 0.00390625, %v247_v6  ;;  %v483_v2 = vmul.f32 %v2790_v1, %v407_v58  ;;  %v404_v40 = vmul.f32 %v2168_v63, %v2487_v20  ;;  %v2976_v58 = vld [vmem:[#allocation9_spill] sm:$0xff] }
  0xca   :  { %v481_v49 = vmul.f32 %v2790_v1, %v405_v8  ;;  %v406_v17 = vmul.f32 %v2166_v13, %v2472_v14  ;;  %v333_v37 = vadd.f32 1e-05, %v301_v19  ;;  %v2974_v13 = vld [vmem:[#allocation10_spill] sm:$0xff]  ;;  %v335_v4 = vadd.f32 1e-05, %v303_v41  ;;  %v268_v18 = vpop.xlane.xlu1 %267 }
  0xcb   :  { %v330_v62 = vadd.f32 1e-05, %v298_v46  ;;  %v480_v22 = vmul.f32 %v2793_v15, %v404_v40  ;;  %v305_v27 = vmul.f32 0.00390625, %v268_v18 }
  0xcc   :  { %v2019_v50 = vpack.c.bf16 %v483_v2, %v481_v49  ;;  %v482_v33 = vmul.f32 %v2793_v15, %v406_v17 }
  0xcd   :  { %2179 = vrsqrt.f32 %v330_v62  ;;  %v2978_v62 = vld [vmem:[#allocation14_spill] sm:$0xff]  ;;  %v337_v2 = vadd.f32 1e-05, %v305_v27 }
  0xce   :  { %2181 = vrsqrt.f32 %v333_v37  ;;  %v2018_v5 = vpack.c.bf16 %v482_v33, %v480_v22 }
  0xcf   :  { %1385 = vmatmul.mubr.bf16.gmra.mxu0 %v2010_v25  ;;  %1578 = vmatmul.mubr.bf16.gmra.mxu1 %v2010_v25  ;;  %v2170_v12 = vpop.eup %2169  ;;  %v253_v25 = vpop.xlane.xlu0 %252 }
  0xd0   :  { %1394 = vmatprep.mubr.bf16.mxu0 %v2013_v36  ;;  %1587 = vmatprep.mubr.bf16.mxu1 %v2013_v36  ;;  %v2172_v21 = vpop.eup %2171  ;;  %v300_v36 = vmul.f32 0.00390625, %v253_v25  ;;  %v411_v29 = vmul.f32 %v2170_v12, %v2970_v32  ;;  %v410_v57 = vmul.f32 %v2170_v12, %v2972_v31  ;;  %v2979_v32 = vld [vmem:[#allocation13_spill] sm:$0xff] }
  0xd1   :  { %v409_v48 = vmul.f32 %v2172_v21, %v2530_v59  ;;  %v2174_v52 = vpop.eup %2173 }
  0xd2   :  { %v332_v61 = vadd.f32 1e-05, %v300_v36  ;;  %v487_v20 = vmul.f32 %v2790_v1, %v411_v29  ;;  %v2176_v26 = vpop.eup %2175  ;;  %v415_v54 = vmul.f32 %v2174_v52, %v2974_v13  ;;  %v486_v23 = vmul.f32 %v2793_v15, %v410_v57  ;;  %v2983_v13 = vld [vmem:[#allocation22_spill] sm:$0xff] }
  0xd3   :  { %v485_v14 = vmul.f32 %v2790_v1, %v409_v48  ;;  %v259_v59 = vpop.xlane.xlu0 %258  ;;  %v413_v56 = vmul.f32 %v2176_v26, %v2973_v39  ;;  %v414_v55 = vmul.f32 %v2174_v52, %v2976_v58  ;;  %v2980_v52 = vld [vmem:[#allocation15_spill] sm:$0xff] }
  0xd4   :  { %2183 = vrsqrt.f32 %v332_v61  ;;  %v302_v35 = vmul.f32 0.00390625, %v259_v59  ;;  %v2178_v44 = vpop.eup %2177  ;;  %v491_v53 = vmul.f32 %v2790_v1, %v415_v54 }
  0xd5   :  { %v489_v63 = vmul.f32 %v2790_v1, %v413_v56  ;;  %2185 = vrsqrt.f32 %v335_v4  ;;  %v419_v49 = vmul.f32 %v2178_v44, %v2978_v62  ;;  %v490_v19 = vmul.f32 %v2793_v15, %v414_v55  ;;  %v2984_v4 = vld [vmem:[#allocation20_spill] sm:$0xff] }
  0xd6   :  { %v334_v6 = vadd.f32 1e-05, %v302_v35  ;;  %v418_v29 = vmul.f32 %v2178_v44, %v2979_v32  ;;  %v2982_v35 = vld [vmem:[#allocation17_spill] sm:$0xff] }
  0xd7   :  { %1395 = vmatmul.mubr.bf16.gmra.mxu0 %v2012_v10  ;;  %1588 = vmatmul.mubr.bf16.gmra.mxu1 %v2012_v10  ;;  %v408_v10 = vmul.f32 %v2172_v21, %v2971_v24  ;;  %v2023_v11 = vpack.c.bf16 %v491_v53, %v489_v63  ;;  %v495_v36 = vmul.f32 %v2790_v1, %v419_v49  ;;  %v2989_v32 = vld [vmem:[#allocation25_spill] sm:$0xff] }
  0xd8   :  { %1404 = vmatprep.mubr.bf16.mxu0 %v2015_v16  ;;  %1597 = vmatprep.mubr.bf16.mxu1 %v2015_v16  ;;  %v2021_v16 = vpack.c.bf16 %v487_v20, %v485_v14  ;;  %2187 = vrsqrt.f32 %v334_v6  ;;  %v494_v41 = vmul.f32 %v2793_v15, %v418_v29  ;;  %v2990_v29 = vld [vmem:[#allocation23_spill] sm:$0xff] }
  0xd9   :  { %v484_v38 = vmul.f32 %v2793_v15, %v408_v10  ;;  %2189 = vrsqrt.f32 %v337_v2 }
  0xda   :  { %v2180_v3 = vpop.eup %2179 }
  0xdb   :  { %v2020_v46 = vpack.c.bf16 %v486_v23, %v484_v38  ;;  %v417_v12 = vmul.f32 %v2180_v3, %v2977_v30  ;;  %v2182_v25 = vpop.eup %2181  ;;  %v416_v22 = vmul.f32 %v2180_v3, %v2980_v52  ;;  %v2985_v3 = vld [vmem:[#allocation21_spill] sm:$0xff] }
  0xdc   :  { %v423_v20 = vmul.f32 %v2182_v25, %v2631_v0  ;;  %v422_v39 = vmul.f32 %v2182_v25, %v2982_v35 }
  0xdd   :  { %v493_v17 = vmul.f32 %v2790_v1, %v417_v12  ;;  %v492_v59 = vmul.f32 %v2793_v15, %v416_v22 }
  0xde   :  { %v499_v31 = vmul.f32 %v2790_v1, %v423_v20  ;;  %v498_v18 = vmul.f32 %v2793_v15, %v422_v39 }
  0xdf   :  { %1405 = vmatmul.mubr.bf16.gmra.mxu0 %v2014_v34  ;;  %1598 = vmatmul.mubr.bf16.gmra.mxu1 %v2014_v34  ;;  %v265_v34 = vpop.xlane.xlu0 %264  ;;  %v2025_v61 = vpack.c.bf16 %v495_v36, %v493_v17 }
  0xe0   :  { %1414 = vmatprep.mubr.bf16.mxu0 %v2017_v9  ;;  %1607 = vmatprep.mubr.bf16.mxu1 %v2017_v9  ;;  %v2975_v9 = vld [vmem:[#allocation11_spill] sm:$0xff]  ;;  %v304_v45 = vmul.f32 0.00390625, %v265_v34 }
  0xe1   :  { %v412_v8 = vmul.f32 %v2176_v26, %v2975_v9  ;;  %v2184_v40 = vpop.eup %2183 }
  0xe2   :  { %v421_v14 = vmul.f32 %v2184_v40, %v2635_v51  ;;  %v2186_v26 = vpop.eup %2185  ;;  %v2981_v51 = vld [vmem:[#allocation18_spill] sm:$0xff] }
  0xe3   :  { %v488_v21 = vmul.f32 %v2793_v15, %v412_v8  ;;  %v271_v48 = vpop.xlane.xlu0 %270  ;;  %v420_v0 = vmul.f32 %v2184_v40, %v2981_v51  ;;  %v427_v44 = vmul.f32 %v2186_v26, %v2984_v4 }
  0xe4   :  { %v306_v7 = vmul.f32 0.00390625, %v271_v48  ;;  %v497_v10 = vmul.f32 %v2790_v1, %v421_v14 }
  0xe5   :  { %v2022_v37 = vpack.c.bf16 %v490_v19, %v488_v21  ;;  %v2188_v57 = vpop.eup %2187  ;;  %v496_v23 = vmul.f32 %v2793_v15, %v420_v0  ;;  %v503_v53 = vmul.f32 %v2790_v1, %v427_v44  ;;  %v2987_v21 = vld [vmem:[#allocation26_spill] sm:$0xff] }
  0xe6   :  { %v338_v24 = vadd.f32 1e-05, %v306_v7  ;;  %v2027_v56 = vpack.c.bf16 %v499_v31, %v497_v10  ;;  %v425_v54 = vmul.f32 %v2188_v57, %v2983_v13  ;;  %v2190_v38 = vpop.eup %2189  ;;  %v424_v27 = vmul.f32 %v2188_v57, %v2985_v3 }
  0xe7   :  { %1415 = vmatmul.mubr.bf16.gmra.mxu0 %v2016_v60  ;;  %1608 = vmatmul.mubr.bf16.gmra.mxu1 %v2016_v60  ;;  %v336_v60 = vadd.f32 1e-05, %v304_v45  ;;  %v2026_v34 = vpack.c.bf16 %v498_v18, %v496_v23  ;;  %v431_v55 = vmul.f32 %v2190_v38, %v2690_v28 }
  0xe8   :  { %1424 = vmatprep.mubr.bf16.mxu0 %v2019_v50  ;;  %1617 = vmatprep.mubr.bf16.mxu1 %v2019_v50  ;;  %v274_v50 = vpop.xlane.xlu1 %273  ;;  %v501_v63 = vmul.f32 %v2790_v1, %v425_v54  ;;  %v500_v45 = vmul.f32 %v2793_v15, %v424_v27 }
  0xe9   :  { %2191 = vrsqrt.f32 %v336_v60  ;;  %v307_v33 = vmul.f32 0.00390625, %v274_v50  ;;  %v507_v62 = vmul.f32 %v2790_v1, %v431_v55  ;;  %v2988_v60 = vld [vmem:[#allocation24_spill] sm:$0xff] }
  0xea   :  { %v2029_v8 = vpack.c.bf16 %v503_v53, %v501_v63 }
  0xef   :  { %1425 = vmatmul.mubr.bf16.gmra.mxu0 %v2018_v5  ;;  %1618 = vmatmul.mubr.bf16.gmra.mxu1 %v2018_v5  ;;  %v339_v5 = vadd.f32 1e-05, %v307_v33 }
  0xf0   :  { %1434 = vmatprep.mubr.bf16.mxu0 %v2021_v16  ;;  %1627 = vmatprep.mubr.bf16.mxu1 %v2021_v16  ;;  %v2024_v16 = vpack.c.bf16 %v494_v41, %v492_v59 }
  0xf1   :  { %2193 = vrsqrt.f32 %v339_v5 }
  0xf2   :  { %2195 = vrsqrt.f32 %v338_v24 }
  0xf6   :  { %v2192_v6 = vpop.eup %2191 }
  0xf7   :  { %1435 = vmatmul.mubr.bf16.gmra.mxu0 %v2020_v46  ;;  %1628 = vmatmul.mubr.bf16.gmra.mxu1 %v2020_v46  ;;  %v2986_v46 = vld [vmem:[#allocation19_spill] sm:$0xff]  ;;  %v429_v58 = vmul.f32 %v2192_v6, %v2700_v43  ;;  %v428_v25 = vmul.f32 %v2192_v6, %v2698_v42  ;;  %v430_v43 = vmul.f32 %v2190_v38, %v2681_v47 }
  0xf8   :  { %1444 = vmatprep.mubr.bf16.mxu0 %v2023_v11  ;;  %1637 = vmatprep.mubr.bf16.mxu1 %v2023_v11  ;;  %v426_v9 = vmul.f32 %v2186_v26, %v2986_v46 }
  0xf9   :  { %v505_v12 = vmul.f32 %v2790_v1, %v429_v58  ;;  %v504_v17 = vmul.f32 %v2793_v15, %v428_v25  ;;  %v506_v36 = vmul.f32 %v2793_v15, %v430_v43 }
  0xfa   :  { %v502_v11 = vmul.f32 %v2793_v15, %v426_v9 }
  0xfb   :  { %v2031_v28 = vpack.c.bf16 %v507_v62, %v505_v12  ;;  %v2030_v42 = vpack.c.bf16 %v506_v36, %v504_v17 }
  0xfc   :  { %v2028_v2 = vpack.c.bf16 %v502_v11, %v500_v45 }
  0xfe   :  { %v2194_v30 = vpop.eup %2193 }
  0xff   :  { %1445 = vmatmul.mubr.bf16.gmra.mxu0 %v2022_v37  ;;  %1638 = vmatmul.mubr.bf16.gmra.mxu1 %v2022_v37  ;;  %v2196_v49 = vpop.eup %2195  ;;  %v435_v40 = vmul.f32 %v2194_v30, %v2988_v60  ;;  %v434_v37 = vmul.f32 %v2194_v30, %v2990_v29 }
 0x100   :  { %1454 = vmatprep.mubr.bf16.mxu0 %v2025_v61  ;;  %1647 = vmatprep.mubr.bf16.mxu1 %v2025_v61  ;;  %v433_v19 = vmul.f32 %v2196_v49, %v2987_v21  ;;  %v432_v47 = vmul.f32 %v2196_v49, %v2989_v32 }
 0x101   :  { %v511_v48 = vmul.f32 %v2790_v1, %v435_v40  ;;  %v510_v33 = vmul.f32 %v2793_v15, %v434_v37 }
 0x102   :  { %v509_v50 = vmul.f32 %v2790_v1, %v433_v19  ;;  %v508_v22 = vmul.f32 %v2793_v15, %v432_v47 }
 0x104   :  { %v2033_v52 = vpack.c.bf16 %v511_v48, %v509_v50  ;;  %v2032_v61 = vpack.c.bf16 %v510_v33, %v508_v22 }
 0x107   :  { %1455 = vmatmul.mubr.bf16.gmra.mxu0 %v2024_v16  ;;  %1648 = vmatmul.mubr.bf16.gmra.mxu1 %v2024_v16 }
 0x108   :  { %1464 = vmatprep.mubr.bf16.mxu0 %v2027_v56  ;;  %1657 = vmatprep.mubr.bf16.mxu1 %v2027_v56 }
 0x10f   :  { %1465 = vmatmul.mubr.bf16.gmra.mxu0 %v2026_v34  ;;  %1658 = vmatmul.mubr.bf16.gmra.mxu1 %v2026_v34 }
 0x110   :  { %1474 = vmatprep.mubr.bf16.mxu0 %v2029_v8  ;;  %1667 = vmatprep.mubr.bf16.mxu1 %v2029_v8 }
 0x117   :  { %1475 = vmatmul.mubr.bf16.gmra.mxu0 %v2028_v2  ;;  %1668 = vmatmul.mubr.bf16.gmra.mxu1 %v2028_v2 }
 0x118   :  { %1484 = vmatprep.mubr.bf16.mxu0 %v2031_v28  ;;  %1677 = vmatprep.mubr.bf16.mxu1 %v2031_v28 }
 0x11f   :  { %1485 = vmatmul.mubr.bf16.gmra.mxu0 %v2030_v42  ;;  %1678 = vmatmul.mubr.bf16.gmra.mxu1 %v2030_v42 }
 0x120   :  { %1494 = vmatprep.mubr.bf16.mxu0 %v2033_v52  ;;  %1687 = vmatprep.mubr.bf16.mxu1 %v2033_v52 }
 0x127   :  { %1495 = vmatmul.mubr.bf16.gmra.mxu0 %v2032_v61  ;;  %1688 = vmatmul.mubr.bf16.gmra.mxu1 %v2032_v61 }
 0x16f   :  { %v1346_v7 = vpop.f32.mrf.mxu0  ;;  %v1539_v14 = vpop.f32.mrf.mxu1 }
 0x170   :  { %1698 = vst [vmem:[#allocation3] sm:$0xff] %v1346_v7  ;;  %1700 = vst [vmem:[#allocation3 + $0x10] sm:$0xff] %v1539_v14 }
 0x171   :  { %v1348_v1 = vpop.f32.mrf.mxu0  ;;  %v1541_v20 = vpop.f32.mrf.mxu1 }
 0x172   :  { %1699 = vst [vmem:[#allocation3 + $0x8] sm:$0xff] %v1348_v1  ;;  %1701 = vst [vmem:[#allocation3 + $0x18] sm:$0xff] %v1541_v20 }
 0x173   :  { %v1350_v26 = vpop.f32.mrf.mxu0  ;;  %v1543_v59 = vpop.f32.mrf.mxu1 }
 0x174   :  { %1702 = vst [vmem:[#allocation3 + $0x20] sm:$0xff] %v1350_v26  ;;  %1704 = vst [vmem:[#allocation3 + $0x30] sm:$0xff] %v1543_v59 }
 0x175   :  { %v1352_v41 = vpop.f32.mrf.mxu0  ;;  %v1545_v5 = vpop.f32.mrf.mxu1 }
 0x176   :  { %1703 = vst [vmem:[#allocation3 + $0x28] sm:$0xff] %v1352_v41  ;;  %1705 = vst [vmem:[#allocation3 + $0x38] sm:$0xff] %v1545_v5 }
 0x177   :  { %v1356_v15 = vpop.f32.mrf.mxu0  ;;  %v1549_v24 = vpop.f32.mrf.mxu1 }
 0x178   :  { %1706 = vst [vmem:[#allocation3 + $0x40] sm:$0xff] %v1356_v15  ;;  %1708 = vst [vmem:[#allocation3 + $0x50] sm:$0xff] %v1549_v24 }
 0x179   :  { %v1358_v10 = vpop.f32.mrf.mxu0  ;;  %v1551_v31 = vpop.f32.mrf.mxu1 }
 0x17a   :  { %1707 = vst [vmem:[#allocation3 + $0x48] sm:$0xff] %v1358_v10  ;;  %1709 = vst [vmem:[#allocation3 + $0x58] sm:$0xff] %v1551_v31 }
 0x17b   :  { %v1360_v57 = vpop.f32.mrf.mxu0  ;;  %v1553_v16 = vpop.f32.mrf.mxu1 }
 0x17c   :  { %1710 = vst [vmem:[#allocation3 + $0x60] sm:$0xff] %v1360_v57  ;;  %1712 = vst [vmem:[#allocation3 + $0x70] sm:$0xff] %v1553_v16 }
 0x17d   :  { %v1362_v51 = vpop.f32.mrf.mxu0  ;;  %v1555_v0 = vpop.f32.mrf.mxu1 }
 0x17e   :  { %1711 = vst [vmem:[#allocation3 + $0x68] sm:$0xff] %v1362_v51  ;;  %1713 = vst [vmem:[#allocation3 + $0x78] sm:$0xff] %v1555_v0 }
 0x17f   :  { %v1366_v35 = vpop.f32.mrf.mxu0  ;;  %v1559_v39 = vpop.f32.mrf.mxu1 }
 0x180   :  { %1714 = vst [vmem:[#allocation3 + $0x80] sm:$0xff] %v1366_v35  ;;  %1716 = vst [vmem:[#allocation3 + $0x90] sm:$0xff] %v1559_v39 }
 0x181   :  { %v1368_v56 = vpop.f32.mrf.mxu0  ;;  %v1561_v13 = vpop.f32.mrf.mxu1 }
 0x182   :  { %1715 = vst [vmem:[#allocation3 + $0x88] sm:$0xff] %v1368_v56  ;;  %1717 = vst [vmem:[#allocation3 + $0x98] sm:$0xff] %v1561_v13 }
 0x183   :  { %v1370_v54 = vpop.f32.mrf.mxu0  ;;  %v1563_v4 = vpop.f32.mrf.mxu1 }
 0x184   :  { %1718 = vst [vmem:[#allocation3 + $0xa0] sm:$0xff] %v1370_v54  ;;  %1720 = vst [vmem:[#allocation3 + $0xb0] sm:$0xff] %v1563_v4 }
 0x185   :  { %v1372_v44 = vpop.f32.mrf.mxu0  ;;  %v1565_v38 = vpop.f32.mrf.mxu1 }
 0x186   :  { %1719 = vst [vmem:[#allocation3 + $0xa8] sm:$0xff] %v1372_v44  ;;  %1721 = vst [vmem:[#allocation3 + $0xb8] sm:$0xff] %v1565_v38 }
 0x187   :  { %v1376_v23 = vpop.f32.mrf.mxu0  ;;  %v1569_v18 = vpop.f32.mrf.mxu1 }
 0x188   :  { %1722 = vst [vmem:[#allocation3 + $0xc0] sm:$0xff] %v1376_v23  ;;  %1724 = vst [vmem:[#allocation3 + $0xd0] sm:$0xff] %v1569_v18 }
 0x189   :  { %v1378_v6 = vpop.f32.mrf.mxu0  ;;  %v1571_v63 = vpop.f32.mrf.mxu1 }
 0x18a   :  { %1723 = vst [vmem:[#allocation3 + $0xc8] sm:$0xff] %v1378_v6  ;;  %1725 = vst [vmem:[#allocation3 + $0xd8] sm:$0xff] %v1571_v63 }
 0x18b   :  { %v1380_v53 = vpop.f32.mrf.mxu0  ;;  %v1573_v34 = vpop.f32.mrf.mxu1 }
 0x18c   :  { %1726 = vst [vmem:[#allocation3 + $0xe0] sm:$0xff] %v1380_v53  ;;  %1728 = vst [vmem:[#allocation3 + $0xf0] sm:$0xff] %v1573_v34 }
 0x18d   :  { %v1382_v3 = vpop.f32.mrf.mxu0  ;;  %v1575_v27 = vpop.f32.mrf.mxu1 }
 0x18e   :  { %1727 = vst [vmem:[#allocation3 + $0xe8] sm:$0xff] %v1382_v3  ;;  %1729 = vst [vmem:[#allocation3 + $0xf8] sm:$0xff] %v1575_v27 }
 0x18f   :  { %v1386_v46 = vpop.f32.mrf.mxu0  ;;  %v1579_v9 = vpop.f32.mrf.mxu1 }
 0x190   :  { %1730 = vst [vmem:[#allocation3 + $0x100] sm:$0xff] %v1386_v46  ;;  %1732 = vst [vmem:[#allocation3 + $0x110] sm:$0xff] %v1579_v9 }
 0x191   :  { %v1388_v8 = vpop.f32.mrf.mxu0  ;;  %v1581_v58 = vpop.f32.mrf.mxu1 }
 0x192   :  { %1731 = vst [vmem:[#allocation3 + $0x108] sm:$0xff] %v1388_v8  ;;  %1733 = vst [vmem:[#allocation3 + $0x118] sm:$0xff] %v1581_v58 }
 0x193   :  { %v1390_v55 = vpop.f32.mrf.mxu0  ;;  %v1583_v45 = vpop.f32.mrf.mxu1 }
 0x194   :  { %1734 = vst [vmem:[#allocation3 + $0x120] sm:$0xff] %v1390_v55  ;;  %1736 = vst [vmem:[#allocation3 + $0x130] sm:$0xff] %v1583_v45 }
 0x195   :  { %v1392_v11 = vpop.f32.mrf.mxu0  ;;  %v1585_v30 = vpop.f32.mrf.mxu1 }
 0x196   :  { %1735 = vst [vmem:[#allocation3 + $0x128] sm:$0xff] %v1392_v11  ;;  %1737 = vst [vmem:[#allocation3 + $0x138] sm:$0xff] %v1585_v30 }
 0x197   :  { %v1396_v12 = vpop.f32.mrf.mxu0  ;;  %v1589_v62 = vpop.f32.mrf.mxu1 }
 0x198   :  { %1738 = vst [vmem:[#allocation3 + $0x140] sm:$0xff] %v1396_v12  ;;  %1740 = vst [vmem:[#allocation3 + $0x150] sm:$0xff] %v1589_v62 }
 0x199   :  { %v1398_v49 = vpop.f32.mrf.mxu0  ;;  %v1591_v2 = vpop.f32.mrf.mxu1 }
 0x19a   :  { %1739 = vst [vmem:[#allocation3 + $0x148] sm:$0xff] %v1398_v49  ;;  %1741 = vst [vmem:[#allocation3 + $0x158] sm:$0xff] %v1591_v2 }
 0x19b   :  { %v1400_v25 = vpop.f32.mrf.mxu0  ;;  %v1593_v43 = vpop.f32.mrf.mxu1 }
 0x19c   :  { %1742 = vst [vmem:[#allocation3 + $0x160] sm:$0xff] %v1400_v25  ;;  %1744 = vst [vmem:[#allocation3 + $0x170] sm:$0xff] %v1593_v43 }
 0x19d   :  { %v1402_v28 = vpop.f32.mrf.mxu0  ;;  %v1595_v21 = vpop.f32.mrf.mxu1 }
 0x19e   :  { %1743 = vst [vmem:[#allocation3 + $0x168] sm:$0xff] %v1402_v28  ;;  %1745 = vst [vmem:[#allocation3 + $0x178] sm:$0xff] %v1595_v21 }
 0x19f   :  { %v1406_v19 = vpop.f32.mrf.mxu0  ;;  %v1599_v60 = vpop.f32.mrf.mxu1 }
 0x1a0   :  { %1746 = vst [vmem:[#allocation3 + $0x180] sm:$0xff] %v1406_v19  ;;  %1748 = vst [vmem:[#allocation3 + $0x190] sm:$0xff] %v1599_v60 }
 0x1a1   :  { %v1408_v40 = vpop.f32.mrf.mxu0  ;;  %v1601_v17 = vpop.f32.mrf.mxu1 }
 0x1a2   :  { %1747 = vst [vmem:[#allocation3 + $0x188] sm:$0xff] %v1408_v40  ;;  %1749 = vst [vmem:[#allocation3 + $0x198] sm:$0xff] %v1601_v17 }
 0x1a3   :  { %v1410_v36 = vpop.f32.mrf.mxu0  ;;  %v1603_v50 = vpop.f32.mrf.mxu1 }
 0x1a4   :  { %1750 = vst [vmem:[#allocation3 + $0x1a0] sm:$0xff] %v1410_v36  ;;  %1752 = vst [vmem:[#allocation3 + $0x1b0] sm:$0xff] %v1603_v50 }
 0x1a5   :  { %v1412_v48 = vpop.f32.mrf.mxu0  ;;  %v1605_v42 = vpop.f32.mrf.mxu1 }
 0x1a6   :  { %1751 = vst [vmem:[#allocation3 + $0x1a8] sm:$0xff] %v1412_v48  ;;  %1753 = vst [vmem:[#allocation3 + $0x1b8] sm:$0xff] %v1605_v42 }
 0x1a7   :  { %v1416_v32 = vpop.f32.mrf.mxu0  ;;  %v1609_v47 = vpop.f32.mrf.mxu1 }
 0x1a8   :  { %1754 = vst [vmem:[#allocation3 + $0x1c0] sm:$0xff] %v1416_v32  ;;  %1756 = vst [vmem:[#allocation3 + $0x1d0] sm:$0xff] %v1609_v47 }
 0x1a9   :  { %v1418_v29 = vpop.f32.mrf.mxu0  ;;  %v1611_v37 = vpop.f32.mrf.mxu1 }
 0x1aa   :  { %1755 = vst [vmem:[#allocation3 + $0x1c8] sm:$0xff] %v1418_v29  ;;  %1757 = vst [vmem:[#allocation3 + $0x1d8] sm:$0xff] %v1611_v37 }
 0x1ab   :  { %v1420_v52 = vpop.f32.mrf.mxu0  ;;  %v1613_v22 = vpop.f32.mrf.mxu1 }
 0x1ac   :  { %1758 = vst [vmem:[#allocation3 + $0x1e0] sm:$0xff] %v1420_v52  ;;  %1760 = vst [vmem:[#allocation3 + $0x1f0] sm:$0xff] %v1613_v22 }
 0x1ad   :  { %v1422_v33 = vpop.f32.mrf.mxu0  ;;  %v1615_v61 = vpop.f32.mrf.mxu1 }
 0x1ae   :  { %1759 = vst [vmem:[#allocation3 + $0x1e8] sm:$0xff] %v1422_v33  ;;  %1761 = vst [vmem:[#allocation3 + $0x1f8] sm:$0xff] %v1615_v61 }
 0x1af   :  { %v1426_v7 = vpop.f32.mrf.mxu0  ;;  %v1619_v14 = vpop.f32.mrf.mxu1 }
 0x1b0   :  { %1762 = vst [vmem:[#allocation3 + $0x200] sm:$0xff] %v1426_v7  ;;  %1764 = vst [vmem:[#allocation3 + $0x210] sm:$0xff] %v1619_v14 }
 0x1b1   :  { %v1428_v1 = vpop.f32.mrf.mxu0  ;;  %v1621_v20 = vpop.f32.mrf.mxu1 }
 0x1b2   :  { %1763 = vst [vmem:[#allocation3 + $0x208] sm:$0xff] %v1428_v1  ;;  %1765 = vst [vmem:[#allocation3 + $0x218] sm:$0xff] %v1621_v20 }
 0x1b3   :  { %v1430_v26 = vpop.f32.mrf.mxu0  ;;  %v1623_v59 = vpop.f32.mrf.mxu1 }
 0x1b4   :  { %1766 = vst [vmem:[#allocation3 + $0x220] sm:$0xff] %v1430_v26  ;;  %1768 = vst [vmem:[#allocation3 + $0x230] sm:$0xff] %v1623_v59 }
 0x1b5   :  { %v1432_v41 = vpop.f32.mrf.mxu0  ;;  %v1625_v5 = vpop.f32.mrf.mxu1 }
 0x1b6   :  { %1767 = vst [vmem:[#allocation3 + $0x228] sm:$0xff] %v1432_v41  ;;  %1769 = vst [vmem:[#allocation3 + $0x238] sm:$0xff] %v1625_v5 }
 0x1b7   :  { %v1436_v15 = vpop.f32.mrf.mxu0  ;;  %v1629_v24 = vpop.f32.mrf.mxu1 }
 0x1b8   :  { %1770 = vst [vmem:[#allocation3 + $0x240] sm:$0xff] %v1436_v15  ;;  %1772 = vst [vmem:[#allocation3 + $0x250] sm:$0xff] %v1629_v24 }
 0x1b9   :  { %v1438_v10 = vpop.f32.mrf.mxu0  ;;  %v1631_v31 = vpop.f32.mrf.mxu1 }
 0x1ba   :  { %1771 = vst [vmem:[#allocation3 + $0x248] sm:$0xff] %v1438_v10  ;;  %1773 = vst [vmem:[#allocation3 + $0x258] sm:$0xff] %v1631_v31 }
 0x1bb   :  { %v1440_v57 = vpop.f32.mrf.mxu0  ;;  %v1633_v16 = vpop.f32.mrf.mxu1 }
 0x1bc   :  { %1774 = vst [vmem:[#allocation3 + $0x260] sm:$0xff] %v1440_v57  ;;  %1776 = vst [vmem:[#allocation3 + $0x270] sm:$0xff] %v1633_v16 }
 0x1bd   :  { %v1442_v51 = vpop.f32.mrf.mxu0  ;;  %v1635_v0 = vpop.f32.mrf.mxu1 }
 0x1be   :  { %1775 = vst [vmem:[#allocation3 + $0x268] sm:$0xff] %v1442_v51  ;;  %1777 = vst [vmem:[#allocation3 + $0x278] sm:$0xff] %v1635_v0 }
 0x1bf   :  { %v1446_v35 = vpop.f32.mrf.mxu0  ;;  %v1639_v39 = vpop.f32.mrf.mxu1 }
 0x1c0   :  { %1778 = vst [vmem:[#allocation3 + $0x280] sm:$0xff] %v1446_v35  ;;  %1780 = vst [vmem:[#allocation3 + $0x290] sm:$0xff] %v1639_v39 }
 0x1c1   :  { %v1448_v56 = vpop.f32.mrf.mxu0  ;;  %v1641_v13 = vpop.f32.mrf.mxu1 }
 0x1c2   :  { %1779 = vst [vmem:[#allocation3 + $0x288] sm:$0xff] %v1448_v56  ;;  %1781 = vst [vmem:[#allocation3 + $0x298] sm:$0xff] %v1641_v13 }
 0x1c3   :  { %v1450_v54 = vpop.f32.mrf.mxu0  ;;  %v1643_v4 = vpop.f32.mrf.mxu1 }
 0x1c4   :  { %1782 = vst [vmem:[#allocation3 + $0x2a0] sm:$0xff] %v1450_v54  ;;  %1784 = vst [vmem:[#allocation3 + $0x2b0] sm:$0xff] %v1643_v4 }
 0x1c5   :  { %v1452_v44 = vpop.f32.mrf.mxu0  ;;  %v1645_v38 = vpop.f32.mrf.mxu1 }
 0x1c6   :  { %1783 = vst [vmem:[#allocation3 + $0x2a8] sm:$0xff] %v1452_v44  ;;  %1785 = vst [vmem:[#allocation3 + $0x2b8] sm:$0xff] %v1645_v38 }
 0x1c7   :  { %v1456_v23 = vpop.f32.mrf.mxu0  ;;  %v1649_v18 = vpop.f32.mrf.mxu1 }
 0x1c8   :  { %1786 = vst [vmem:[#allocation3 + $0x2c0] sm:$0xff] %v1456_v23  ;;  %1788 = vst [vmem:[#allocation3 + $0x2d0] sm:$0xff] %v1649_v18 }
 0x1c9   :  { %v1458_v6 = vpop.f32.mrf.mxu0  ;;  %v1651_v63 = vpop.f32.mrf.mxu1 }
 0x1ca   :  { %1787 = vst [vmem:[#allocation3 + $0x2c8] sm:$0xff] %v1458_v6  ;;  %1789 = vst [vmem:[#allocation3 + $0x2d8] sm:$0xff] %v1651_v63 }
 0x1cb   :  { %v1460_v53 = vpop.f32.mrf.mxu0  ;;  %v1653_v34 = vpop.f32.mrf.mxu1 }
 0x1cc   :  { %1790 = vst [vmem:[#allocation3 + $0x2e0] sm:$0xff] %v1460_v53  ;;  %1792 = vst [vmem:[#allocation3 + $0x2f0] sm:$0xff] %v1653_v34 }
 0x1cd   :  { %v1462_v3 = vpop.f32.mrf.mxu0  ;;  %v1655_v27 = vpop.f32.mrf.mxu1 }
 0x1ce   :  { %1791 = vst [vmem:[#allocation3 + $0x2e8] sm:$0xff] %v1462_v3  ;;  %1793 = vst [vmem:[#allocation3 + $0x2f8] sm:$0xff] %v1655_v27 }
 0x1cf   :  { %v1466_v46 = vpop.f32.mrf.mxu0  ;;  %v1659_v9 = vpop.f32.mrf.mxu1 }
 0x1d0   :  { %1794 = vst [vmem:[#allocation3 + $0x300] sm:$0xff] %v1466_v46  ;;  %1796 = vst [vmem:[#allocation3 + $0x310] sm:$0xff] %v1659_v9 }
 0x1d1   :  { %v1468_v8 = vpop.f32.mrf.mxu0  ;;  %v1661_v58 = vpop.f32.mrf.mxu1 }
 0x1d2   :  { %1795 = vst [vmem:[#allocation3 + $0x308] sm:$0xff] %v1468_v8  ;;  %1797 = vst [vmem:[#allocation3 + $0x318] sm:$0xff] %v1661_v58 }
 0x1d3   :  { %v1470_v55 = vpop.f32.mrf.mxu0  ;;  %v1663_v45 = vpop.f32.mrf.mxu1 }
 0x1d4   :  { %1798 = vst [vmem:[#allocation3 + $0x320] sm:$0xff] %v1470_v55  ;;  %1800 = vst [vmem:[#allocation3 + $0x330] sm:$0xff] %v1663_v45 }
 0x1d5   :  { %v1472_v11 = vpop.f32.mrf.mxu0  ;;  %v1665_v30 = vpop.f32.mrf.mxu1 }
 0x1d6   :  { %1799 = vst [vmem:[#allocation3 + $0x328] sm:$0xff] %v1472_v11  ;;  %1801 = vst [vmem:[#allocation3 + $0x338] sm:$0xff] %v1665_v30 }
 0x1d7   :  { %v1476_v12 = vpop.f32.mrf.mxu0  ;;  %v1669_v62 = vpop.f32.mrf.mxu1 }
 0x1d8   :  { %1802 = vst [vmem:[#allocation3 + $0x340] sm:$0xff] %v1476_v12  ;;  %1804 = vst [vmem:[#allocation3 + $0x350] sm:$0xff] %v1669_v62 }
 0x1d9   :  { %v1478_v49 = vpop.f32.mrf.mxu0  ;;  %v1671_v2 = vpop.f32.mrf.mxu1 }
 0x1da   :  { %1803 = vst [vmem:[#allocation3 + $0x348] sm:$0xff] %v1478_v49  ;;  %1805 = vst [vmem:[#allocation3 + $0x358] sm:$0xff] %v1671_v2 }
 0x1db   :  { %v1480_v25 = vpop.f32.mrf.mxu0  ;;  %v1673_v43 = vpop.f32.mrf.mxu1 }
 0x1dc   :  { %1806 = vst [vmem:[#allocation3 + $0x360] sm:$0xff] %v1480_v25  ;;  %1808 = vst [vmem:[#allocation3 + $0x370] sm:$0xff] %v1673_v43 }
 0x1dd   :  { %v1482_v28 = vpop.f32.mrf.mxu0  ;;  %v1675_v21 = vpop.f32.mrf.mxu1 }
 0x1de   :  { %1807 = vst [vmem:[#allocation3 + $0x368] sm:$0xff] %v1482_v28  ;;  %1809 = vst [vmem:[#allocation3 + $0x378] sm:$0xff] %v1675_v21 }
 0x1df   :  { %v1486_v19 = vpop.f32.mrf.mxu0  ;;  %v1679_v60 = vpop.f32.mrf.mxu1 }
 0x1e0   :  { %1810 = vst [vmem:[#allocation3 + $0x380] sm:$0xff] %v1486_v19  ;;  %1812 = vst [vmem:[#allocation3 + $0x390] sm:$0xff] %v1679_v60 }
 0x1e1   :  { %v1488_v40 = vpop.f32.mrf.mxu0  ;;  %v1681_v17 = vpop.f32.mrf.mxu1 }
 0x1e2   :  { %1811 = vst [vmem:[#allocation3 + $0x388] sm:$0xff] %v1488_v40  ;;  %1813 = vst [vmem:[#allocation3 + $0x398] sm:$0xff] %v1681_v17 }
 0x1e3   :  { %v1490_v36 = vpop.f32.mrf.mxu0  ;;  %v1683_v50 = vpop.f32.mrf.mxu1 }
 0x1e4   :  { %1814 = vst [vmem:[#allocation3 + $0x3a0] sm:$0xff] %v1490_v36  ;;  %1816 = vst [vmem:[#allocation3 + $0x3b0] sm:$0xff] %v1683_v50 }
 0x1e5   :  { %v1492_v48 = vpop.f32.mrf.mxu0  ;;  %v1685_v42 = vpop.f32.mrf.mxu1 }
 0x1e6   :  { %1815 = vst [vmem:[#allocation3 + $0x3a8] sm:$0xff] %v1492_v48  ;;  %1817 = vst [vmem:[#allocation3 + $0x3b8] sm:$0xff] %v1685_v42 }
 0x1e7   :  { %v1496_v32 = vpop.f32.mrf.mxu0  ;;  %v1689_v47 = vpop.f32.mrf.mxu1 }
 0x1e8   :  { %1818 = vst [vmem:[#allocation3 + $0x3c0] sm:$0xff] %v1496_v32  ;;  %1820 = vst [vmem:[#allocation3 + $0x3d0] sm:$0xff] %v1689_v47 }
 0x1e9   :  { %v1498_v29 = vpop.f32.mrf.mxu0  ;;  %v1691_v37 = vpop.f32.mrf.mxu1 }
 0x1ea   :  { %1819 = vst [vmem:[#allocation3 + $0x3c8] sm:$0xff] %v1498_v29  ;;  %1821 = vst [vmem:[#allocation3 + $0x3d8] sm:$0xff] %v1691_v37 }
 0x1eb   :  { %v1500_v52 = vpop.f32.mrf.mxu0  ;;  %v1693_v22 = vpop.f32.mrf.mxu1 }
 0x1ec   :  { %1822 = vst [vmem:[#allocation3 + $0x3e0] sm:$0xff] %v1500_v52  ;;  %1824 = vst [vmem:[#allocation3 + $0x3f0] sm:$0xff] %v1693_v22 }
 0x1ed   :  { %v1502_v33 = vpop.f32.mrf.mxu0  ;;  %v1695_v61 = vpop.f32.mrf.mxu1 }
 0x1ee   :  { %1823 = vst [vmem:[#allocation3 + $0x3e8] sm:$0xff] %v1502_v33  ;;  %1825 = vst [vmem:[#allocation3 + $0x3f8] sm:$0xff] %v1695_v61 }
 0x1ef   :  { %2208 = shalt.err (!%p2205_p4)
}
 0x1f0   :  { %s2220_s16 = smov 512   ;;  %s2221_s17 = smov 32  }
 0x1f1   :  { %1837 = dma.vmem_to_hbm [thread:$0]  %s1832_s14, 16384, %s2927_s3, [#allocation4], %s2220_s16, %s2220_s16, %s2221_s17  }
 0x1f2   :  { %2217 = dma.done.wait [#allocation4], 16384  }
 0x1f3   :  { %2218 = vsyncadd [#allocation4], 4294950912 }
 0x1f4   :  { %1841 = vsyncpa [#allocation4], 1 }

</bundles_post_ra>
